<compile_context>
chip_gen: v6e
topology: v6e:2x2x1
jax: 0.10.0
libtpu: 0.0.40
codegen_flags: <defaults>
</compile_context>

<pallas_src>
import functools

import jax
import jax.numpy as jnp
from jax.experimental import pallas as pl
from jax.experimental.pallas import tpu as pltpu

_VMEM = pl.BlockSpec(memory_space=pltpu.MemorySpace.VMEM)
_BN_EPS = 1e-5
_VMEM_LIMIT = 32 * 1024 * 1024  # safe on v5e/v6e (128 MiB) and v7x (64 MiB)


def _cparams(grid_ndims=None):
    if grid_ndims is None:
        return pltpu.CompilerParams(vmem_limit_bytes=_VMEM_LIMIT)
    return pltpu.CompilerParams(
        dimension_semantics=("parallel",) * grid_ndims,
        vmem_limit_bytes=_VMEM_LIMIT,
    )


def _tree_reduce(vals, op):
    # Pairwise reduction: shortens the dependent VALU chain (9 -> 4 levels).
    vals = list(vals)
    while len(vals) > 1:
        nxt = [op(vals[i], vals[i + 1]) for i in range(0, len(vals) - 1, 2)]
        if len(vals) % 2:
            nxt.append(vals[-1])
        vals = nxt
    return vals[0]


# ----------------------------- Pallas kernels ------------------------------

def _matmul_bn_act_kernel(x_ref, w_ref, s_ref, b_ref, o_ref, *, relu):
    # (bm, Cin) @ (Cin, Cout) on the MXU with bf16 inputs / f32 accumulation,
    # fused affine (folded BN or conv bias) and optional ReLU on the VPU.
    x = x_ref[...].astype(jnp.bfloat16)
    acc = jnp.dot(x, w_ref[...], preferred_element_type=jnp.float32)
    y = acc * s_ref[...] + b_ref[...]
    if relu:
        y = jnp.maximum(y, 0.0)
    o_ref[...] = y


def _dw3x3_s1_bn_kernel(x_ref, w_ref, s_ref, b_ref, o_ref, *, ho, wo):
    # Stride-1 depthwise 3x3 + folded BN.  x_ref: (1, ho+2, wo+2, C) padded
    # image; the nine taps are unit-offset static slices taken in-kernel.
    x = x_ref[0]
    taps = []
    for dy in range(3):
        for dx in range(3):
            taps.append(x[dy:dy + ho, dx:dx + wo, :] * w_ref[dy * 3 + dx])
    acc = _tree_reduce(taps, jnp.add)
    o_ref[0] = acc * s_ref[...] + b_ref[...]


# tap index (0,1,2) -> (even/odd phase, +shift inside the phase grid)
_PHASE_OFF = ((0, 0), (1, 0), (0, 1))


def _dw3x3_s2_bn_kernel(p00_ref, p01_ref, p10_ref, p11_ref,
                        w_ref, s_ref, b_ref, o_ref, *, ho, wo):
    # Stride-2 depthwise 3x3 + folded BN.  The padded image was deinterleaved
    # into 4 spatial phases (1x traffic) so all nine taps become unit-offset
    # static slices of the (1, ho+1, wo+1, C) phase blocks.
    ph = (p00_ref[0], p01_ref[0], p10_ref[0], p11_ref[0])
    taps = []
    for dy in range(3):
        a, r = _PHASE_OFF[dy]
        for dx in range(3):
            b, c = _PHASE_OFF[dx]
            taps.append(ph[a * 2 + b][r:r + ho, c:c + wo, :] * w_ref[dy * 3 + dx])
    acc = _tree_reduce(taps, jnp.add)
    o_ref[0] = acc * s_ref[...] + b_ref[...]


def _maxpool3x3_s2_kernel(p00_ref, p01_ref, p10_ref, p11_ref, o_ref, *, ho, wo):
    ph = (p00_ref[0], p01_ref[0], p10_ref[0], p11_ref[0])
    taps = []
    for dy in range(3):
        a, r = _PHASE_OFF[dy]
        for dx in range(3):
            b, c = _PHASE_OFF[dx]
            taps.append(ph[a * 2 + b][r:r + ho, c:c + wo, :])
    o_ref[0] = _tree_reduce(taps, jnp.maximum)


def _head_kernel(x_ref, w_ref, b_ref, o_ref, *, inv_hw):
    # Global average pool over the spatial axis + final Linear layer.
    pooled = jnp.sum(x_ref[...], axis=1) * inv_hw            # (N, C)
    o_ref[...] = (
        jnp.dot(pooled.astype(jnp.bfloat16), w_ref[...],
                preferred_element_type=jnp.float32)
        + b_ref[...]
    )


# ------------------------------ JAX glue -----------------------------------

def matmul_bn_act(x2d, w, scale, bias, relu, block_m=512):
    m, cin = x2d.shape
    cout = w.shape[1]
    bm = min(block_m, m)
    return pl.pallas_call(
        functools.partial(_matmul_bn_act_kernel, relu=relu),
        out_shape=jax.ShapeDtypeStruct((m, cout), jnp.float32),
        grid=(pl.cdiv(m, bm),),
        in_specs=[
            pl.BlockSpec((bm, cin), lambda i: (i, 0)),
            pl.BlockSpec((cin, cout), lambda i: (0, 0)),
            pl.BlockSpec((1, cout), lambda i: (0, 0)),
            pl.BlockSpec((1, cout), lambda i: (0, 0)),
        ],
        out_specs=pl.BlockSpec((bm, cout), lambda i: (i, 0)),
        compiler_params=_cparams(1),
    )(x2d, w.astype(jnp.bfloat16), scale.reshape(1, cout), bias.reshape(1, cout))


def conv1x1(x_nhwc, w, scale, bias, relu):
    n, h, w_, c = x_nhwc.shape
    out = matmul_bn_act(x_nhwc.reshape(n * h * w_, c), w, scale, bias, relu)
    return out.reshape(n, h, w_, w.shape[1])


def _phase_split(x_nhwc, pad_value):
    """Pad by 1 and deinterleave into the 4 stride-2 spatial phases (1x traffic)."""
    n, h, w, c = x_nhwc.shape
    assert h % 2 == 0 and w % 2 == 0
    xp = jnp.pad(x_nhwc, ((0, 0), (1, 1), (1, 1), (0, 0)),
                 constant_values=pad_value)
    phases = [xp[:, a::2, b::2, :] for a in (0, 1) for b in (0, 1)]
    return phases, (h // 2, w // 2)


def depthwise3x3_bn(x_nhwc, w33c, scale, bias, stride):
    n, h, w_, c = x_nhwc.shape
    w9 = w33c.reshape(9, 1, 1, c)
    s = scale.reshape(1, 1, c)
    b = bias.reshape(1, 1, c)
    w_spec = pl.BlockSpec((9, 1, 1, c), lambda i: (0, 0, 0, 0))
    sb_spec = pl.BlockSpec((1, 1, c), lambda i: (0, 0, 0))

    if stride == 1:
        xp = jnp.pad(x_nhwc, ((0, 0), (1, 1), (1, 1), (0, 0)))
        return pl.pallas_call(
            functools.partial(_dw3x3_s1_bn_kernel, ho=h, wo=w_),
            out_shape=jax.ShapeDtypeStruct((n, h, w_, c), jnp.float32),
            grid=(n,),
            in_specs=[
                pl.BlockSpec((1, h + 2, w_ + 2, c), lambda i: (i, 0, 0, 0)),
                w_spec, sb_spec, sb_spec,
            ],
            out_specs=pl.BlockSpec((1, h, w_, c), lambda i: (i, 0, 0, 0)),
            compiler_params=_cparams(1),
        )(xp, w9, s, b)

    # stride == 2
    phases, (ho, wo) = _phase_split(x_nhwc, 0.0)
    phase_spec = pl.BlockSpec((1, ho + 1, wo + 1, c), lambda i: (i, 0, 0, 0))
    return pl.pallas_call(
        functools.partial(_dw3x3_s2_bn_kernel, ho=ho, wo=wo),
        out_shape=jax.ShapeDtypeStruct((n, ho, wo, c), jnp.float32),
        grid=(n,),
        in_specs=[phase_spec] * 4 + [w_spec, sb_spec, sb_spec],
        out_specs=pl.BlockSpec((1, ho, wo, c), lambda i: (i, 0, 0, 0)),
        compiler_params=_cparams(1),
    )(*phases, w9, s, b)


def maxpool3x3_s2(x_nhwc):
    n, h, w_, c = x_nhwc.shape
    phases, (ho, wo) = _phase_split(x_nhwc, -jnp.inf)
    phase_spec = pl.BlockSpec((1, ho + 1, wo + 1, c), lambda i: (i, 0, 0, 0))
    return pl.pallas_call(
        functools.partial(_maxpool3x3_s2_kernel, ho=ho, wo=wo),
        out_shape=jax.ShapeDtypeStruct((n, ho, wo, c), jnp.float32),
        grid=(n,),
        in_specs=[phase_spec] * 4,
        out_specs=pl.BlockSpec((1, ho, wo, c), lambda i: (i, 0, 0, 0)),
        compiler_params=_cparams(1),
    )(*phases)


def head(x_nhwc, fc_w, fc_b):
    n, h, w, c = x_nhwc.shape
    num_classes = fc_w.shape[1]
    return pl.pallas_call(
        functools.partial(_head_kernel, inv_hw=1.0 / float(h * w)),
        out_shape=jax.ShapeDtypeStruct((n, num_classes), jnp.float32),
        in_specs=[_VMEM, _VMEM, _VMEM],
        out_specs=_VMEM,
        compiler_params=_cparams(),
    )(x_nhwc.reshape(n, h * w, c),
      fc_w.astype(jnp.bfloat16),
      fc_b.reshape(1, num_classes))


def channel_shuffle_nhwc(x, groups):
    n, h, w, c = x.shape
    x = x.reshape(n, h, w, groups, c // groups)
    x = jnp.swapaxes(x, 3, 4)
    return x.reshape(n, h, w, c)


def _im2col_3x3_s2(x_nhwc):
    # Only used for conv1 (3-channel input): the 9x blow-up is on a tiny tensor.
    n, h, w, c = x_nhwc.shape
    ho, wo = h // 2, w // 2
    xp = jnp.pad(x_nhwc, ((0, 0), (1, 1), (1, 1), (0, 0)))
    cols = []
    for dy in range(3):
        for dx in range(3):
            sl = xp[:, dy:dy + 2 * (ho - 1) + 1:2, dx:dx + 2 * (wo - 1) + 1:2, :]
            cols.append(sl.reshape(n * ho * wo, c))
    return jnp.concatenate(cols, axis=1), (n, ho, wo)


# --------------------------- parameter init --------------------------------

def _key_stream(key, n=1024):
    ks = jax.random.split(key, n)
    it = iter(range(n))
    return lambda: ks[next(it)]


def _make_bn(nk, c):
    gamma = 1.0 + 0.1 * jax.random.normal(nk(), (c,), jnp.float32)
    beta = 0.1 * jax.random.normal(nk(), (c,), jnp.float32)
    mean = 0.1 * jax.random.normal(nk(), (c,), jnp.float32)
    var = 1.0 + 0.1 * jax.random.uniform(nk(), (c,), jnp.float32)
    scale = gamma / jnp.sqrt(var + _BN_EPS)
    bias = beta - mean * scale
    return scale, bias


def _w(nk, shape, fan_in):
    return jax.random.normal(nk(), shape, jnp.float32) * (float(fan_in) ** -0.5)


def _init_block(nk, in_c, out_c, stride):
    assert out_c % 2 == 0
    bf = out_c // 2
    p = {"stride": stride}
    if stride == 2:
        p["b1_dw_w"] = _w(nk, (3, 3, in_c), 9)
        p["b1_bn1"] = _make_bn(nk, in_c)
        p["b1_pw_w"] = _w(nk, (in_c, bf), in_c)
        p["b1_bn2"] = _make_bn(nk, bf)
    b2_in = in_c if stride == 2 else bf
    p["b2_pw1_w"] = _w(nk, (b2_in, bf), b2_in)
    p["b2_bn1"] = _make_bn(nk, bf)
    p["b2_dw_w"] = _w(nk, (3, 3, bf), 9)
    p["b2_bn2"] = _make_bn(nk, bf)
    p["b2_pw2_w"] = _w(nk, (bf, bf), bf)
    p["b2_pw2_b"] = 0.1 * jax.random.normal(nk(), (bf,), jnp.float32)
    return p


def init_params(key, stages_repeats, stages_out_channels, num_classes):
    nk = _key_stream(key)
    params = {}
    c0 = stages_out_channels[0]
    params["conv1"] = {"w": _w(nk, (3, 3, 3, c0), 27), "bn": _make_bn(nk, c0)}
    in_c = c0
    for name, repeats, out_c in zip(
        ["stage2", "stage3", "stage4"], stages_repeats, stages_out_channels[1:]
    ):
        blocks = [_init_block(nk, in_c, out_c, 2)]
        for _ in range(repeats - 1):
            blocks.append(_init_block(nk, out_c, out_c, 1))
        params[name] = blocks
        in_c = out_c
    c_last = stages_out_channels[-1]
    params["conv5"] = {"w": _w(nk, (in_c, c_last), in_c), "bn": _make_bn(nk, c_last)}
    params["fc"] = {
        "w": _w(nk, (c_last, num_classes), c_last),
        "b": 0.1 * jax.random.normal(nk(), (num_classes,), jnp.float32),
    }
    return params


# ------------------------------ forward pass --------------------------------

def _branch1(x, p):
    x = depthwise3x3_bn(x, p["b1_dw_w"], *p["b1_bn1"], stride=2)
    x = conv1x1(x, p["b1_pw_w"], *p["b1_bn2"], relu=True)
    return x


def _branch2(x, p, stride):
    x = conv1x1(x, p["b2_pw1_w"], *p["b2_bn1"], relu=True)
    x = depthwise3x3_bn(x, p["b2_dw_w"], *p["b2_bn2"], stride=stride)
    # Final 1x1 conv has a real bias and NO BatchNorm (matches the spec module).
    bf = p["b2_pw2_w"].shape[1]
    x = conv1x1(x, p["b2_pw2_w"], jnp.ones((bf,), jnp.float32),
                p["b2_pw2_b"], relu=True)
    return x


def _inverted_residual(x, p):
    stride = p["stride"]
    if stride == 1:
        c = x.shape[-1]
        x1, x2 = x[..., : c // 2], x[..., c // 2:]
        out = jnp.concatenate([x1, _branch2(x2, p, 1)], axis=-1)
    else:
        out = jnp.concatenate([_branch1(x, p), _branch2(x, p, 2)], axis=-1)
    return channel_shuffle_nhwc(out, 2)


def shufflenet_v2_forward(x_nchw, params):
    x = jnp.transpose(x_nchw, (0, 2, 3, 1)).astype(jnp.float32)  # -> NHWC
    # conv1: 3x3 s2 p1 + BN + ReLU via im2col (tiny, 3 ch) + fused MXU kernel.
    # K padded 27 -> 32 for lane alignment.
    x_col, (n, ho, wo) = _im2col_3x3_s2(x)
    x_col = jnp.pad(x_col, ((0, 0), (0, 5)))
    w = jnp.pad(params["conv1"]["w"].reshape(27, -1), ((0, 5), (0, 0)))
    x = matmul_bn_act(x_col, w, *params["conv1"]["bn"], relu=True)
    x = x.reshape(n, ho, wo, -1)
    # maxpool 3x3 s2 p1
    x = maxpool3x3_s2(x)
    # stages
    for name in ["stage2", "stage3", "stage4"]:
        for blk in params[name]:
            x = _inverted_residual(x, blk)
    # conv5: 1x1 + BN + ReLU
    x = conv1x1(x, params["conv5"]["w"], *params["conv5"]["bn"], relu=True)
    # global mean over H,W + fc (single fused kernel)
    return head(x, params["fc"]["w"], params["fc"]["b"])


# ---------------------------------- main ------------------------------------

if __name__ == "__main__":
    stages_repeats = [2, 2, 2]
    stages_out_channels = [8, 16, 32, 64, 128]
    num_classes = 10

    key = jax.random.PRNGKey(0)
    kx, kp = jax.random.split(key)
    x = jax.random.normal(kx, (2, 3, 64, 64), jnp.float32)  # NCHW like PyTorch
    params = init_params(kp, stages_repeats, stages_out_channels, num_classes)

    fwd = jax.jit(lambda xx: shufflenet_v2_forward(xx, params))
    logits = fwd(x)
    jax.block_until_ready(logits)
    assert logits.shape == (2, num_classes), logits.shape
    print("KERNEL_OK")
</pallas_src>

<mosaic_0001>
module attributes {stable_mosaic.version = 11 : i64} {
  func.func @_matmul_bn_act_kernel(%arg0: i32, %arg1: memref<512x32xf32, #tpu.memory_space<vmem>>, %arg2: memref<32x8xbf16, #tpu.memory_space<vmem>>, %arg3: memref<1x8xf32, #tpu.memory_space<vmem>>, %arg4: memref<1x8xf32, #tpu.memory_space<vmem>>, %arg5: memref<512x8xf32, #tpu.memory_space<vmem>>) attributes {dimension_semantics = [#tpu.dimension_semantics<parallel>], iteration_bounds = array<i64: 4>, scalar_prefetch = 0 : i64, scratch_operands = 0 : i64, tpu.core_type = #tpu.core_type<tc>, window_params = [{transform_indices = @transform_0, window_bounds = array<i64: 512, 32>}, {pipeline_mode = #tpu.pipeline_mode<synchronous>, transform_indices = @transform_1, window_bounds = array<i64: 32, 8>}, {pipeline_mode = #tpu.pipeline_mode<synchronous>, transform_indices = @transform_2, window_bounds = array<i64: 1, 8>}, {pipeline_mode = #tpu.pipeline_mode<synchronous>, transform_indices = @transform_3, window_bounds = array<i64: 1, 8>}, {transform_indices = @transform_4, window_bounds = array<i64: 512, 8>}]} {
    %c0 = arith.constant 0 : index
    %c0_0 = arith.constant 0 : index
    %0 = vector.load %arg1[%c0, %c0_0] : memref<512x32xf32, #tpu.memory_space<vmem>>, vector<512x32xf32>
    %1 = arith.truncf %0 : vector<512x32xf32> to vector<512x32xbf16>
    %c0_1 = arith.constant 0 : index
    %c0_2 = arith.constant 0 : index
    %2 = vector.load %arg2[%c0_1, %c0_2] : memref<32x8xbf16, #tpu.memory_space<vmem>>, vector<32x8xbf16>
    %cst = arith.constant dense<0.000000e+00> : vector<512x8xf32>
    %3 = tpu.matmul %1, %2, %cst {dimension_numbers = #tpu.dot_dimension_numbers<[1], [0], [0], [1], [0, 0, 1, 1], [], []>} : vector<512x32xbf16>, vector<32x8xbf16>, vector<512x8xf32> -> vector<512x8xf32>
    %c0_3 = arith.constant 0 : index
    %c0_4 = arith.constant 0 : index
    %4 = vector.load %arg3[%c0_3, %c0_4] : memref<1x8xf32, #tpu.memory_space<vmem>>, vector<1x8xf32>
    %5 = vector.broadcast %4 : vector<1x8xf32> to vector<512x8xf32>
    %6 = arith.mulf %3, %5 : vector<512x8xf32>
    %c0_5 = arith.constant 0 : index
    %c0_6 = arith.constant 0 : index
    %7 = vector.load %arg4[%c0_5, %c0_6] : memref<1x8xf32, #tpu.memory_space<vmem>>, vector<1x8xf32>
    %8 = vector.broadcast %7 : vector<1x8xf32> to vector<512x8xf32>
    %9 = arith.addf %6, %8 : vector<512x8xf32>
    %cst_7 = arith.constant 0.000000e+00 : f32
    %10 = vector.broadcast %cst_7 : f32 to vector<512x8xf32>
    %11 = arith.maximumf %9, %10 : vector<512x8xf32>
    %c0_8 = arith.constant 0 : index
    %c0_9 = arith.constant 0 : index
    %12 = vector.load %arg5[%c0_8, %c0_9] : memref<512x8xf32, #tpu.memory_space<vmem>>, vector<512x8xf32>
    tpu.vector_store %arg5[%c0_8, %c0_9], %11 {strides = array<i32>} : memref<512x8xf32, #tpu.memory_space<vmem>>, vector<512x8xf32>,
    return
  }
  func.func @transform_0(%arg0: i32) -> (i32, i32) {
    %c0_i32 = arith.constant 0 : i32
    %c0_i32_0 = arith.constant 0 : i32
    return %arg0, %c0_i32 : i32, i32
  }
  func.func @transform_1(%arg0: i32) -> (i32, i32) {
    %c0_i32 = arith.constant 0 : i32
    %c0_i32_0 = arith.constant 0 : i32
    %c0_i32_1 = arith.constant 0 : i32
    return %c0_i32, %c0_i32_0 : i32, i32
  }
  func.func @transform_2(%arg0: i32) -> (i32, i32) {
    %c0_i32 = arith.constant 0 : i32
    %c0_i32_0 = arith.constant 0 : i32
    %c0_i32_1 = arith.constant 0 : i32
    return %c0_i32, %c0_i32_0 : i32, i32
  }
  func.func @transform_3(%arg0: i32) -> (i32, i32) {
    %c0_i32 = arith.constant 0 : i32
    %c0_i32_0 = arith.constant 0 : i32
    %c0_i32_1 = arith.constant 0 : i32
    return %c0_i32, %c0_i32_0 : i32, i32
  }
  func.func @transform_4(%arg0: i32) -> (i32, i32) {
    %c0_i32 = arith.constant 0 : i32
    %c0_i32_0 = arith.constant 0 : i32
    return %arg0, %c0_i32 : i32, i32
  }
}

module attributes {stable_mosaic.version = 11 : i64} {
  func.func @_maxpool3x3_s2_kernel(%arg0: i32, %arg1: memref<1x17x17x8xf32, #tpu.memory_space<vmem>>, %arg2: memref<1x17x17x8xf32, #tpu.memory_space<vmem>>, %arg3: memref<1x17x17x8xf32, #tpu.memory_space<vmem>>, %arg4: memref<1x17x17x8xf32, #tpu.memory_space<vmem>>, %arg5: memref<1x16x16x8xf32, #tpu.memory_space<vmem>>) attributes {dimension_semantics = [#tpu.dimension_semantics<parallel>], iteration_bounds = array<i64: 2>, scalar_prefetch = 0 : i64, scratch_operands = 0 : i64, tpu.core_type = #tpu.core_type<tc>, window_params = [{transform_indices = @transform_0, window_bounds = array<i64: 1, 17, 17, 8>}, {transform_indices = @transform_1, window_bounds = array<i64: 1, 17, 17, 8>}, {transform_indices = @transform_2, window_bounds = array<i64: 1, 17, 17, 8>}, {transform_indices = @transform_3, window_bounds = array<i64: 1, 17, 17, 8>}, {transform_indices = @transform_4, window_bounds = array<i64: 1, 16, 16, 8>}]} {
    %c0 = arith.constant 0 : index
    %c0_0 = arith.constant 0 : index
    %c0_1 = arith.constant 0 : index
    %c0_2 = arith.constant 0 : index
    %0 = vector.load %arg1[%c0, %c0_0, %c0_1, %c0_2] : memref<1x17x17x8xf32, #tpu.memory_space<vmem>>, vector<1x17x17x8xf32>
    %1 = vector.shape_cast %0 : vector<1x17x17x8xf32> to vector<17x17x8xf32>
    %c0_3 = arith.constant 0 : index
    %c0_4 = arith.constant 0 : index
    %c0_5 = arith.constant 0 : index
    %c0_6 = arith.constant 0 : index
    %2 = vector.load %arg2[%c0_3, %c0_4, %c0_5, %c0_6] : memref<1x17x17x8xf32, #tpu.memory_space<vmem>>, vector<1x17x17x8xf32>
    %3 = vector.shape_cast %2 : vector<1x17x17x8xf32> to vector<17x17x8xf32>
    %c0_7 = arith.constant 0 : index
    %c0_8 = arith.constant 0 : index
    %c0_9 = arith.constant 0 : index
    %c0_10 = arith.constant 0 : index
    %4 = vector.load %arg3[%c0_7, %c0_8, %c0_9, %c0_10] : memref<1x17x17x8xf32, #tpu.memory_space<vmem>>, vector<1x17x17x8xf32>
    %5 = vector.shape_cast %4 : vector<1x17x17x8xf32> to vector<17x17x8xf32>
    %c0_11 = arith.constant 0 : index
    %c0_12 = arith.constant 0 : index
    %c0_13 = arith.constant 0 : index
    %c0_14 = arith.constant 0 : index
    %6 = vector.load %arg4[%c0_11, %c0_12, %c0_13, %c0_14] : memref<1x17x17x8xf32, #tpu.memory_space<vmem>>, vector<1x17x17x8xf32>
    %7 = vector.shape_cast %6 : vector<1x17x17x8xf32> to vector<17x17x8xf32>
    %8 = vector.extract_strided_slice %1 {offsets = [0, 0, 0], sizes = [16, 16, 8], strides = [1, 1, 1]} : vector<17x17x8xf32> to vector<16x16x8xf32>
    %9 = vector.extract_strided_slice %3 {offsets = [0, 0, 0], sizes = [16, 16, 8], strides = [1, 1, 1]} : vector<17x17x8xf32> to vector<16x16x8xf32>
    %10 = vector.extract_strided_slice %1 {offsets = [0, 1, 0], sizes = [16, 16, 8], strides = [1, 1, 1]} : vector<17x17x8xf32> to vector<16x16x8xf32>
    %11 = vector.extract_strided_slice %5 {offsets = [0, 0, 0], sizes = [16, 16, 8], strides = [1, 1, 1]} : vector<17x17x8xf32> to vector<16x16x8xf32>
    %12 = vector.extract_strided_slice %7 {offsets = [0, 0, 0], sizes = [16, 16, 8], strides = [1, 1, 1]} : vector<17x17x8xf32> to vector<16x16x8xf32>
    %13 = vector.extract_strided_slice %5 {offsets = [0, 1, 0], sizes = [16, 16, 8], strides = [1, 1, 1]} : vector<17x17x8xf32> to vector<16x16x8xf32>
    %14 = vector.extract_strided_slice %1 {offsets = [1, 0, 0], sizes = [16, 16, 8], strides = [1, 1, 1]} : vector<17x17x8xf32> to vector<16x16x8xf32>
    %15 = vector.extract_strided_slice %3 {offsets = [1, 0, 0], sizes = [16, 16, 8], strides = [1, 1, 1]} : vector<17x17x8xf32> to vector<16x16x8xf32>
    %16 = vector.extract_strided_slice %1 {offsets = [1, 1, 0], sizes = [16, 16, 8], strides = [1, 1, 1]} : vector<17x17x8xf32> to vector<16x16x8xf32>
    %17 = arith.maximumf %8, %9 : vector<16x16x8xf32>
    %18 = arith.maximumf %10, %11 : vector<16x16x8xf32>
    %19 = arith.maximumf %12, %13 : vector<16x16x8xf32>
    %20 = arith.maximumf %14, %15 : vector<16x16x8xf32>
    %21 = arith.maximumf %17, %18 : vector<16x16x8xf32>
    %22 = arith.maximumf %19, %20 : vector<16x16x8xf32>
    %23 = arith.maximumf %21, %22 : vector<16x16x8xf32>
    %24 = arith.maximumf %23, %16 : vector<16x16x8xf32>
    %c0_15 = arith.constant 0 : index
    %c0_16 = arith.constant 0 : index
    %c0_17 = arith.constant 0 : index
    %c0_18 = arith.constant 0 : index
    %25 = vector.load %arg5[%c0_15, %c0_16, %c0_17, %c0_18] : memref<1x16x16x8xf32, #tpu.memory_space<vmem>>, vector<1x16x16x8xf32>
    %26 = vector.shape_cast %25 : vector<1x16x16x8xf32> to vector<16x16x8xf32>
    %27 = vector.shape_cast %24 : vector<16x16x8xf32> to vector<1x16x16x8xf32>
    tpu.vector_store %arg5[%c0_15, %c0_16, %c0_17, %c0_18], %27 {strides = array<i32>} : memref<1x16x16x8xf32, #tpu.memory_space<vmem>>, vector<1x16x16x8xf32>,
    return
  }
  func.func @transform_0(%arg0: i32) -> (i32, i32, i32, i32) {
    %c0_i32 = arith.constant 0 : i32
    %c0_i32_0 = arith.constant 0 : i32
    %c0_i32_1 = arith.constant 0 : i32
    %c0_i32_2 = arith.constant 0 : i32
    return %arg0, %c0_i32, %c0_i32_0, %c0_i32_1 : i32, i32, i32, i32
  }
  func.func @transform_1(%arg0: i32) -> (i32, i32, i32, i32) {
    %c0_i32 = arith.constant 0 : i32
    %c0_i32_0 = arith.constant 0 : i32
    %c0_i32_1 = arith.constant 0 : i32
    %c0_i32_2 = arith.constant 0 : i32
    return %arg0, %c0_i32, %c0_i32_0, %c0_i32_1 : i32, i32, i32, i32
  }
  func.func @transform_2(%arg0: i32) -> (i32, i32, i32, i32) {
    %c0_i32 = arith.constant 0 : i32
    %c0_i32_0 = arith.constant 0 : i32
    %c0_i32_1 = arith.constant 0 : i32
    %c0_i32_2 = arith.constant 0 : i32
    return %arg0, %c0_i32, %c0_i32_0, %c0_i32_1 : i32, i32, i32, i32
  }
  func.func @transform_3(%arg0: i32) -> (i32, i32, i32, i32) {
    %c0_i32 = arith.constant 0 : i32
    %c0_i32_0 = arith.constant 0 : i32
    %c0_i32_1 = arith.constant 0 : i32
    %c0_i32_2 = arith.constant 0 : i32
    return %arg0, %c0_i32, %c0_i32_0, %c0_i32_1 : i32, i32, i32, i32
  }
  func.func @transform_4(%arg0: i32) -> (i32, i32, i32, i32) {
    %c0_i32 = arith.constant 0 : i32
    %c0_i32_0 = arith.constant 0 : i32
    %c0_i32_1 = arith.constant 0 : i32
    %c0_i32_2 = arith.constant 0 : i32
    return %arg0, %c0_i32, %c0_i32_0, %c0_i32_1 : i32, i32, i32, i32
  }
}

module attributes {stable_mosaic.version = 11 : i64} {
  func.func @_dw3x3_s2_bn_kernel(%arg0: i32, %arg1: memref<1x9x9x8xf32, #tpu.memory_space<vmem>>, %arg2: memref<1x9x9x8xf32, #tpu.memory_space<vmem>>, %arg3: memref<1x9x9x8xf32, #tpu.memory_space<vmem>>, %arg4: memref<1x9x9x8xf32, #tpu.memory_space<vmem>>, %arg5: memref<9x1x1x8xf32, #tpu.memory_space<vmem>>, %arg6: memref<1x1x8xf32, #tpu.memory_space<vmem>>, %arg7: memref<1x1x8xf32, #tpu.memory_space<vmem>>, %arg8: memref<1x8x8x8xf32, #tpu.memory_space<vmem>>) attributes {dimension_semantics = [#tpu.dimension_semantics<parallel>], iteration_bounds = array<i64: 2>, scalar_prefetch = 0 : i64, scratch_operands = 0 : i64, tpu.core_type = #tpu.core_type<tc>, window_params = [{transform_indices = @transform_0, window_bounds = array<i64: 1, 9, 9, 8>}, {transform_indices = @transform_1, window_bounds = array<i64: 1, 9, 9, 8>}, {transform_indices = @transform_2, window_bounds = array<i64: 1, 9, 9, 8>}, {transform_indices = @transform_3, window_bounds = array<i64: 1, 9, 9, 8>}, {pipeline_mode = #tpu.pipeline_mode<synchronous>, transform_indices = @transform_4, window_bounds = array<i64: 9, 1, 1, 8>}, {pipeline_mode = #tpu.pipeline_mode<synchronous>, transform_indices = @transform_5, window_bounds = array<i64: 1, 1, 8>}, {pipeline_mode = #tpu.pipeline_mode<synchronous>, transform_indices = @transform_6, window_bounds = array<i64: 1, 1, 8>}, {transform_indices = @transform_7, window_bounds = array<i64: 1, 8, 8, 8>}]} {
    %c0 = arith.constant 0 : index
    %c0_0 = arith.constant 0 : index
    %c0_1 = arith.constant 0 : index
    %c0_2 = arith.constant 0 : index
    %0 = vector.load %arg1[%c0, %c0_0, %c0_1, %c0_2] : memref<1x9x9x8xf32, #tpu.memory_space<vmem>>, vector<1x9x9x8xf32>
    %1 = vector.shape_cast %0 : vector<1x9x9x8xf32> to vector<9x9x8xf32>
    %c0_3 = arith.constant 0 : index
    %c0_4 = arith.constant 0 : index
    %c0_5 = arith.constant 0 : index
    %c0_6 = arith.constant 0 : index
    %2 = vector.load %arg2[%c0_3, %c0_4, %c0_5, %c0_6] : memref<1x9x9x8xf32, #tpu.memory_space<vmem>>, vector<1x9x9x8xf32>
    %3 = vector.shape_cast %2 : vector<1x9x9x8xf32> to vector<9x9x8xf32>
    %c0_7 = arith.constant 0 : index
    %c0_8 = arith.constant 0 : index
    %c0_9 = arith.constant 0 : index
    %c0_10 = arith.constant 0 : index
    %4 = vector.load %arg3[%c0_7, %c0_8, %c0_9, %c0_10] : memref<1x9x9x8xf32, #tpu.memory_space<vmem>>, vector<1x9x9x8xf32>
    %5 = vector.shape_cast %4 : vector<1x9x9x8xf32> to vector<9x9x8xf32>
    %c0_11 = arith.constant 0 : index
    %c0_12 = arith.constant 0 : index
    %c0_13 = arith.constant 0 : index
    %c0_14 = arith.constant 0 : index
    %6 = vector.load %arg4[%c0_11, %c0_12, %c0_13, %c0_14] : memref<1x9x9x8xf32, #tpu.memory_space<vmem>>, vector<1x9x9x8xf32>
    %7 = vector.shape_cast %6 : vector<1x9x9x8xf32> to vector<9x9x8xf32>
    %8 = vector.extract_strided_slice %1 {offsets = [0, 0, 0], sizes = [8, 8, 8], strides = [1, 1, 1]} : vector<9x9x8xf32> to vector<8x8x8xf32>
    %c0_15 = arith.constant 0 : index
    %c0_16 = arith.constant 0 : index
    %c0_17 = arith.constant 0 : index
    %c0_18 = arith.constant 0 : index
    %9 = vector.load %arg5[%c0_15, %c0_16, %c0_17, %c0_18] : memref<9x1x1x8xf32, #tpu.memory_space<vmem>>, vector<1x1x1x8xf32>
    %10 = vector.shape_cast %9 : vector<1x1x1x8xf32> to vector<1x1x8xf32>
    %11 = vector.broadcast %10 : vector<1x1x8xf32> to vector<8x8x8xf32>
    %12 = arith.mulf %8, %11 : vector<8x8x8xf32>
    %13 = vector.extract_strided_slice %3 {offsets = [0, 0, 0], sizes = [8, 8, 8], strides = [1, 1, 1]} : vector<9x9x8xf32> to vector<8x8x8xf32>
    %c1 = arith.constant 1 : index
    %c0_19 = arith.constant 0 : index
    %c0_20 = arith.constant 0 : index
    %c0_21 = arith.constant 0 : index
    %14 = vector.load %arg5[%c1, %c0_19, %c0_20, %c0_21] : memref<9x1x1x8xf32, #tpu.memory_space<vmem>>, vector<1x1x1x8xf32>
    %15 = vector.shape_cast %14 : vector<1x1x1x8xf32> to vector<1x1x8xf32>
    %16 = vector.broadcast %15 : vector<1x1x8xf32> to vector<8x8x8xf32>
    %17 = arith.mulf %13, %16 : vector<8x8x8xf32>
    %18 = vector.extract_strided_slice %1 {offsets = [0, 1, 0], sizes = [8, 8, 8], strides = [1, 1, 1]} : vector<9x9x8xf32> to vector<8x8x8xf32>
    %c2 = arith.constant 2 : index
    %c0_22 = arith.constant 0 : index
    %c0_23 = arith.constant 0 : index
    %c0_24 = arith.constant 0 : index
    %19 = vector.load %arg5[%c2, %c0_22, %c0_23, %c0_24] : memref<9x1x1x8xf32, #tpu.memory_space<vmem>>, vector<1x1x1x8xf32>
    %20 = vector.shape_cast %19 : vector<1x1x1x8xf32> to vector<1x1x8xf32>
    %21 = vector.broadcast %20 : vector<1x1x8xf32> to vector<8x8x8xf32>
    %22 = arith.mulf %18, %21 : vector<8x8x8xf32>
    %23 = vector.extract_strided_slice %5 {offsets = [0, 0, 0], sizes = [8, 8, 8], strides = [1, 1, 1]} : vector<9x9x8xf32> to vector<8x8x8xf32>
    %c3 = arith.constant 3 : index
    %c0_25 = arith.constant 0 : index
    %c0_26 = arith.constant 0 : index
    %c0_27 = arith.constant 0 : index
    %24 = vector.load %arg5[%c3, %c0_25, %c0_26, %c0_27] : memref<9x1x1x8xf32, #tpu.memory_space<vmem>>, vector<1x1x1x8xf32>
    %25 = vector.shape_cast %24 : vector<1x1x1x8xf32> to vector<1x1x8xf32>
    %26 = vector.broadcast %25 : vector<1x1x8xf32> to vector<8x8x8xf32>
    %27 = arith.mulf %23, %26 : vector<8x8x8xf32>
    %28 = vector.extract_strided_slice %7 {offsets = [0, 0, 0], sizes = [8, 8, 8], strides = [1, 1, 1]} : vector<9x9x8xf32> to vector<8x8x8xf32>
    %c4 = arith.constant 4 : index
    %c0_28 = arith.constant 0 : index
    %c0_29 = arith.constant 0 : index
    %c0_30 = arith.constant 0 : index
    %29 = vector.load %arg5[%c4, %c0_28, %c0_29, %c0_30] : memref<9x1x1x8xf32, #tpu.memory_space<vmem>>, vector<1x1x1x8xf32>
    %30 = vector.shape_cast %29 : vector<1x1x1x8xf32> to vector<1x1x8xf32>
    %31 = vector.broadcast %30 : vector<1x1x8xf32> to vector<8x8x8xf32>
    %32 = arith.mulf %28, %31 : vector<8x8x8xf32>
    %33 = vector.extract_strided_slice %5 {offsets = [0, 1, 0], sizes = [8, 8, 8], strides = [1, 1, 1]} : vector<9x9x8xf32> to vector<8x8x8xf32>
    %c5 = arith.constant 5 : index
    %c0_31 = arith.constant 0 : index
    %c0_32 = arith.constant 0 : index
    %c0_33 = arith.constant 0 : index
    %34 = vector.load %arg5[%c5, %c0_31, %c0_32, %c0_33] : memref<9x1x1x8xf32, #tpu.memory_space<vmem>>, vector<1x1x1x8xf32>
    %35 = vector.shape_cast %34 : vector<1x1x1x8xf32> to vector<1x1x8xf32>
    %36 = vector.broadcast %35 : vector<1x1x8xf32> to vector<8x8x8xf32>
    %37 = arith.mulf %33, %36 : vector<8x8x8xf32>
    %38 = vector.extract_strided_slice %1 {offsets = [1, 0, 0], sizes = [8, 8, 8], strides = [1, 1, 1]} : vector<9x9x8xf32> to vector<8x8x8xf32>
    %c6 = arith.constant 6 : index
    %c0_34 = arith.constant 0 : index
    %c0_35 = arith.constant 0 : index
    %c0_36 = arith.constant 0 : index
    %39 = vector.load %arg5[%c6, %c0_34, %c0_35, %c0_36] : memref<9x1x1x8xf32, #tpu.memory_space<vmem>>, vector<1x1x1x8xf32>
    %40 = vector.shape_cast %39 : vector<1x1x1x8xf32> to vector<1x1x8xf32>
    %41 = vector.broadcast %40 : vector<1x1x8xf32> to vector<8x8x8xf32>
    %42 = arith.mulf %38, %41 : vector<8x8x8xf32>
    %43 = vector.extract_strided_slice %3 {offsets = [1, 0, 0], sizes = [8, 8, 8], strides = [1, 1, 1]} : vector<9x9x8xf32> to vector<8x8x8xf32>
    %c7 = arith.constant 7 : index
    %c0_37 = arith.constant 0 : index
    %c0_38 = arith.constant 0 : index
    %c0_39 = arith.constant 0 : index
    %44 = vector.load %arg5[%c7, %c0_37, %c0_38, %c0_39] : memref<9x1x1x8xf32, #tpu.memory_space<vmem>>, vector<1x1x1x8xf32>
    %45 = vector.shape_cast %44 : vector<1x1x1x8xf32> to vector<1x1x8xf32>
    %46 = vector.broadcast %45 : vector<1x1x8xf32> to vector<8x8x8xf32>
    %47 = arith.mulf %43, %46 : vector<8x8x8xf32>
    %48 = vector.extract_strided_slice %1 {offsets = [1, 1, 0], sizes = [8, 8, 8], strides = [1, 1, 1]} : vector<9x9x8xf32> to vector<8x8x8xf32>
    %c8 = arith.constant 8 : index
    %c0_40 = arith.constant 0 : index
    %c0_41 = arith.constant 0 : index
    %c0_42 = arith.constant 0 : index
    %49 = vector.load %arg5[%c8, %c0_40, %c0_41, %c0_42] : memref<9x1x1x8xf32, #tpu.memory_space<vmem>>, vector<1x1x1x8xf32>
    %50 = vector.shape_cast %49 : vector<1x1x1x8xf32> to vector<1x1x8xf32>
    %51 = vector.broadcast %50 : vector<1x1x8xf32> to vector<8x8x8xf32>
    %52 = arith.mulf %48, %51 : vector<8x8x8xf32>
    %53 = arith.addf %12, %17 : vector<8x8x8xf32>
    %54 = arith.addf %22, %27 : vector<8x8x8xf32>
    %55 = arith.addf %32, %37 : vector<8x8x8xf32>
    %56 = arith.addf %42, %47 : vector<8x8x8xf32>
    %57 = arith.addf %53, %54 : vector<8x8x8xf32>
    %58 = arith.addf %55, %56 : vector<8x8x8xf32>
    %59 = arith.addf %57, %58 : vector<8x8x8xf32>
    %60 = arith.addf %59, %52 : vector<8x8x8xf32>
    %c0_43 = arith.constant 0 : index
    %c0_44 = arith.constant 0 : index
    %c0_45 = arith.constant 0 : index
    %61 = vector.load %arg6[%c0_43, %c0_44, %c0_45] : memref<1x1x8xf32, #tpu.memory_space<vmem>>, vector<1x1x8xf32>
    %62 = vector.broadcast %61 : vector<1x1x8xf32> to vector<8x8x8xf32>
    %63 = arith.mulf %60, %62 : vector<8x8x8xf32>
    %c0_46 = arith.constant 0 : index
    %c0_47 = arith.constant 0 : index
    %c0_48 = arith.constant 0 : index
    %64 = vector.load %arg7[%c0_46, %c0_47, %c0_48] : memref<1x1x8xf32, #tpu.memory_space<vmem>>, vector<1x1x8xf32>
    %65 = vector.broadcast %64 : vector<1x1x8xf32> to vector<8x8x8xf32>
    %66 = arith.addf %63, %65 : vector<8x8x8xf32>
    %c0_49 = arith.constant 0 : index
    %c0_50 = arith.constant 0 : index
    %c0_51 = arith.constant 0 : index
    %c0_52 = arith.constant 0 : index
    %67 = vector.load %arg8[%c0_49, %c0_50, %c0_51, %c0_52] : memref<1x8x8x8xf32, #tpu.memory_space<vmem>>, vector<1x8x8x8xf32>
    %68 = vector.shape_cast %67 : vector<1x8x8x8xf32> to vector<8x8x8xf32>
    %69 = vector.shape_cast %66 : vector<8x8x8xf32> to vector<1x8x8x8xf32>
    tpu.vector_store %arg8[%c0_49, %c0_50, %c0_51, %c0_52], %69 {strides = array<i32>} : memref<1x8x8x8xf32, #tpu.memory_space<vmem>>, vector<1x8x8x8xf32>,
    return
  }
  func.func @transform_0(%arg0: i32) -> (i32, i32, i32, i32) {
    %c0_i32 = arith.constant 0 : i32
    %c0_i32_0 = arith.constant 0 : i32
    %c0_i32_1 = arith.constant 0 : i32
    %c0_i32_2 = arith.constant 0 : i32
    return %arg0, %c0_i32, %c0_i32_0, %c0_i32_1 : i32, i32, i32, i32
  }
  func.func @transform_1(%arg0: i32) -> (i32, i32, i32, i32) {
    %c0_i32 = arith.constant 0 : i32
    %c0_i32_0 = arith.constant 0 : i32
    %c0_i32_1 = arith.constant 0 : i32
    %c0_i32_2 = arith.constant 0 : i32
    return %arg0, %c0_i32, %c0_i32_0, %c0_i32_1 : i32, i32, i32, i32
  }
  func.func @transform_2(%arg0: i32) -> (i32, i32, i32, i32) {
    %c0_i32 = arith.constant 0 : i32
    %c0_i32_0 = arith.constant 0 : i32
    %c0_i32_1 = arith.constant 0 : i32
    %c0_i32_2 = arith.constant 0 : i32
    return %arg0, %c0_i32, %c0_i32_0, %c0_i32_1 : i32, i32, i32, i32
  }
  func.func @transform_3(%arg0: i32) -> (i32, i32, i32, i32) {
    %c0_i32 = arith.constant 0 : i32
    %c0_i32_0 = arith.constant 0 : i32
    %c0_i32_1 = arith.constant 0 : i32
    %c0_i32_2 = arith.constant 0 : i32
    return %arg0, %c0_i32, %c0_i32_0, %c0_i32_1 : i32, i32, i32, i32
  }
  func.func @transform_4(%arg0: i32) -> (i32, i32, i32, i32) {
    %c0_i32 = arith.constant 0 : i32
    %c0_i32_0 = arith.constant 0 : i32
    %c0_i32_1 = arith.constant 0 : i32
    %c0_i32_2 = arith.constant 0 : i32
    %c0_i32_3 = arith.constant 0 : i32
    return %c0_i32, %c0_i32_0, %c0_i32_1, %c0_i32_2 : i32, i32, i32, i32
  }
  func.func @transform_5(%arg0: i32) -> (i32, i32, i32) {
    %c0_i32 = arith.constant 0 : i32
    %c0_i32_0 = arith.constant 0 : i32
    %c0_i32_1 = arith.constant 0 : i32
    %c0_i32_2 = arith.constant 0 : i32
    return %c0_i32, %c0_i32_0, %c0_i32_1 : i32, i32, i32
  }
  func.func @transform_6(%arg0: i32) -> (i32, i32, i32) {
    %c0_i32 = arith.constant 0 : i32
    %c0_i32_0 = arith.constant 0 : i32
    %c0_i32_1 = arith.constant 0 : i32
    %c0_i32_2 = arith.constant 0 : i32
    return %c0_i32, %c0_i32_0, %c0_i32_1 : i32, i32, i32
  }
  func.func @transform_7(%arg0: i32) -> (i32, i32, i32, i32) {
    %c0_i32 = arith.constant 0 : i32
    %c0_i32_0 = arith.constant 0 : i32
    %c0_i32_1 = arith.constant 0 : i32
    %c0_i32_2 = arith.constant 0 : i32
    return %arg0, %c0_i32, %c0_i32_0, %c0_i32_1 : i32, i32, i32, i32
  }
}

module attributes {stable_mosaic.version = 11 : i64} {
  func.func @_matmul_bn_act_kernel(%arg0: i32, %arg1: memref<128x8xf32, #tpu.memory_space<vmem>>, %arg2: memref<8x8xbf16, #tpu.memory_space<vmem>>, %arg3: memref<1x8xf32, #tpu.memory_space<vmem>>, %arg4: memref<1x8xf32, #tpu.memory_space<vmem>>, %arg5: memref<128x8xf32, #tpu.memory_space<vmem>>) attributes {dimension_semantics = [#tpu.dimension_semantics<parallel>], iteration_bounds = array<i64: 1>, scalar_prefetch = 0 : i64, scratch_operands = 0 : i64, tpu.core_type = #tpu.core_type<tc>, window_params = [{transform_indices = @transform_0, window_bounds = array<i64: 128, 8>}, {pipeline_mode = #tpu.pipeline_mode<synchronous>, transform_indices = @transform_1, window_bounds = array<i64: 8, 8>}, {pipeline_mode = #tpu.pipeline_mode<synchronous>, transform_indices = @transform_2, window_bounds = array<i64: 1, 8>}, {pipeline_mode = #tpu.pipeline_mode<synchronous>, transform_indices = @transform_3, window_bounds = array<i64: 1, 8>}, {transform_indices = @transform_4, window_bounds = array<i64: 128, 8>}]} {
    %c0 = arith.constant 0 : index
    %c0_0 = arith.constant 0 : index
    %0 = vector.load %arg1[%c0, %c0_0] : memref<128x8xf32, #tpu.memory_space<vmem>>, vector<128x8xf32>
    %1 = arith.truncf %0 : vector<128x8xf32> to vector<128x8xbf16>
    %c0_1 = arith.constant 0 : index
    %c0_2 = arith.constant 0 : index
    %2 = vector.load %arg2[%c0_1, %c0_2] : memref<8x8xbf16, #tpu.memory_space<vmem>>, vector<8x8xbf16>
    %cst = arith.constant dense<0.000000e+00> : vector<128x8xf32>
    %3 = tpu.matmul %1, %2, %cst {dimension_numbers = #tpu.dot_dimension_numbers<[1], [0], [0], [1], [0, 0, 1, 1], [], []>} : vector<128x8xbf16>, vector<8x8xbf16>, vector<128x8xf32> -> vector<128x8xf32>
    %c0_3 = arith.constant 0 : index
    %c0_4 = arith.constant 0 : index
    %4 = vector.load %arg3[%c0_3, %c0_4] : memref<1x8xf32, #tpu.memory_space<vmem>>, vector<1x8xf32>
    %5 = vector.broadcast %4 : vector<1x8xf32> to vector<128x8xf32>
    %6 = arith.mulf %3, %5 : vector<128x8xf32>
    %c0_5 = arith.constant 0 : index
    %c0_6 = arith.constant 0 : index
    %7 = vector.load %arg4[%c0_5, %c0_6] : memref<1x8xf32, #tpu.memory_space<vmem>>, vector<1x8xf32>
    %8 = vector.broadcast %7 : vector<1x8xf32> to vector<128x8xf32>
    %9 = arith.addf %6, %8 : vector<128x8xf32>
    %cst_7 = arith.constant 0.000000e+00 : f32
    %10 = vector.broadcast %cst_7 : f32 to vector<128x8xf32>
    %11 = arith.maximumf %9, %10 : vector<128x8xf32>
    %c0_8 = arith.constant 0 : index
    %c0_9 = arith.constant 0 : index
    %12 = vector.load %arg5[%c0_8, %c0_9] : memref<128x8xf32, #tpu.memory_space<vmem>>, vector<128x8xf32>
    tpu.vector_store %arg5[%c0_8, %c0_9], %11 {strides = array<i32>} : memref<128x8xf32, #tpu.memory_space<vmem>>, vector<128x8xf32>,
    return
  }
  func.func @transform_0(%arg0: i32) -> (i32, i32) {
    %c0_i32 = arith.constant 0 : i32
    %c0_i32_0 = arith.constant 0 : i32
    return %arg0, %c0_i32 : i32, i32
  }
  func.func @transform_1(%arg0: i32) -> (i32, i32) {
    %c0_i32 = arith.constant 0 : i32
    %c0_i32_0 = arith.constant 0 : i32
    %c0_i32_1 = arith.constant 0 : i32
    return %c0_i32, %c0_i32_0 : i32, i32
  }
  func.func @transform_2(%arg0: i32) -> (i32, i32) {
    %c0_i32 = arith.constant 0 : i32
    %c0_i32_0 = arith.constant 0 : i32
    %c0_i32_1 = arith.constant 0 : i32
    return %c0_i32, %c0_i32_0 : i32, i32
  }
  func.func @transform_3(%arg0: i32) -> (i32, i32) {
    %c0_i32 = arith.constant 0 : i32
    %c0_i32_0 = arith.constant 0 : i32
    %c0_i32_1 = arith.constant 0 : i32
    return %c0_i32, %c0_i32_0 : i32, i32
  }
  func.func @transform_4(%arg0: i32) -> (i32, i32) {
    %c0_i32 = arith.constant 0 : i32
    %c0_i32_0 = arith.constant 0 : i32
    return %arg0, %c0_i32 : i32, i32
  }
}

module attributes {stable_mosaic.version = 11 : i64} {
  func.func @_matmul_bn_act_kernel(%arg0: i32, %arg1: memref<512x8xf32, #tpu.memory_space<vmem>>, %arg2: memref<8x8xbf16, #tpu.memory_space<vmem>>, %arg3: memref<1x8xf32, #tpu.memory_space<vmem>>, %arg4: memref<1x8xf32, #tpu.memory_space<vmem>>, %arg5: memref<512x8xf32, #tpu.memory_space<vmem>>) attributes {dimension_semantics = [#tpu.dimension_semantics<parallel>], iteration_bounds = array<i64: 1>, scalar_prefetch = 0 : i64, scratch_operands = 0 : i64, tpu.core_type = #tpu.core_type<tc>, window_params = [{transform_indices = @transform_0, window_bounds = array<i64: 512, 8>}, {pipeline_mode = #tpu.pipeline_mode<synchronous>, transform_indices = @transform_1, window_bounds = array<i64: 8, 8>}, {pipeline_mode = #tpu.pipeline_mode<synchronous>, transform_indices = @transform_2, window_bounds = array<i64: 1, 8>}, {pipeline_mode = #tpu.pipeline_mode<synchronous>, transform_indices = @transform_3, window_bounds = array<i64: 1, 8>}, {transform_indices = @transform_4, window_bounds = array<i64: 512, 8>}]} {
    %c0 = arith.constant 0 : index
    %c0_0 = arith.constant 0 : index
    %0 = vector.load %arg1[%c0, %c0_0] : memref<512x8xf32, #tpu.memory_space<vmem>>, vector<512x8xf32>
    %1 = arith.truncf %0 : vector<512x8xf32> to vector<512x8xbf16>
    %c0_1 = arith.constant 0 : index
    %c0_2 = arith.constant 0 : index
    %2 = vector.load %arg2[%c0_1, %c0_2] : memref<8x8xbf16, #tpu.memory_space<vmem>>, vector<8x8xbf16>
    %cst = arith.constant dense<0.000000e+00> : vector<512x8xf32>
    %3 = tpu.matmul %1, %2, %cst {dimension_numbers = #tpu.dot_dimension_numbers<[1], [0], [0], [1], [0, 0, 1, 1], [], []>} : vector<512x8xbf16>, vector<8x8xbf16>, vector<512x8xf32> -> vector<512x8xf32>
    %c0_3 = arith.constant 0 : index
    %c0_4 = arith.constant 0 : index
    %4 = vector.load %arg3[%c0_3, %c0_4] : memref<1x8xf32, #tpu.memory_space<vmem>>, vector<1x8xf32>
    %5 = vector.broadcast %4 : vector<1x8xf32> to vector<512x8xf32>
    %6 = arith.mulf %3, %5 : vector<512x8xf32>
    %c0_5 = arith.constant 0 : index
    %c0_6 = arith.constant 0 : index
    %7 = vector.load %arg4[%c0_5, %c0_6] : memref<1x8xf32, #tpu.memory_space<vmem>>, vector<1x8xf32>
    %8 = vector.broadcast %7 : vector<1x8xf32> to vector<512x8xf32>
    %9 = arith.addf %6, %8 : vector<512x8xf32>
    %cst_7 = arith.constant 0.000000e+00 : f32
    %10 = vector.broadcast %cst_7 : f32 to vector<512x8xf32>
    %11 = arith.maximumf %9, %10 : vector<512x8xf32>
    %c0_8 = arith.constant 0 : index
    %c0_9 = arith.constant 0 : index
    %12 = vector.load %arg5[%c0_8, %c0_9] : memref<512x8xf32, #tpu.memory_space<vmem>>, vector<512x8xf32>
    tpu.vector_store %arg5[%c0_8, %c0_9], %11 {strides = array<i32>} : memref<512x8xf32, #tpu.memory_space<vmem>>, vector<512x8xf32>,
    return
  }
  func.func @transform_0(%arg0: i32) -> (i32, i32) {
    %c0_i32 = arith.constant 0 : i32
    %c0_i32_0 = arith.constant 0 : i32
    return %arg0, %c0_i32 : i32, i32
  }
  func.func @transform_1(%arg0: i32) -> (i32, i32) {
    %c0_i32 = arith.constant 0 : i32
    %c0_i32_0 = arith.constant 0 : i32
    %c0_i32_1 = arith.constant 0 : i32
    return %c0_i32, %c0_i32_0 : i32, i32
  }
  func.func @transform_2(%arg0: i32) -> (i32, i32) {
    %c0_i32 = arith.constant 0 : i32
    %c0_i32_0 = arith.constant 0 : i32
    %c0_i32_1 = arith.constant 0 : i32
    return %c0_i32, %c0_i32_0 : i32, i32
  }
  func.func @transform_3(%arg0: i32) -> (i32, i32) {
    %c0_i32 = arith.constant 0 : i32
    %c0_i32_0 = arith.constant 0 : i32
    %c0_i32_1 = arith.constant 0 : i32
    return %c0_i32, %c0_i32_0 : i32, i32
  }
  func.func @transform_4(%arg0: i32) -> (i32, i32) {
    %c0_i32 = arith.constant 0 : i32
    %c0_i32_0 = arith.constant 0 : i32
    return %arg0, %c0_i32 : i32, i32
  }
}

module attributes {stable_mosaic.version = 11 : i64} {
  func.func @_dw3x3_s1_bn_kernel(%arg0: i32, %arg1: memref<1x10x10x8xf32, #tpu.memory_space<vmem>>, %arg2: memref<9x1x1x8xf32, #tpu.memory_space<vmem>>, %arg3: memref<1x1x8xf32, #tpu.memory_space<vmem>>, %arg4: memref<1x1x8xf32, #tpu.memory_space<vmem>>, %arg5: memref<1x8x8x8xf32, #tpu.memory_space<vmem>>) attributes {dimension_semantics = [#tpu.dimension_semantics<parallel>], iteration_bounds = array<i64: 2>, scalar_prefetch = 0 : i64, scratch_operands = 0 : i64, tpu.core_type = #tpu.core_type<tc>, window_params = [{transform_indices = @transform_0, window_bounds = array<i64: 1, 10, 10, 8>}, {pipeline_mode = #tpu.pipeline_mode<synchronous>, transform_indices = @transform_1, window_bounds = array<i64: 9, 1, 1, 8>}, {pipeline_mode = #tpu.pipeline_mode<synchronous>, transform_indices = @transform_2, window_bounds = array<i64: 1, 1, 8>}, {pipeline_mode = #tpu.pipeline_mode<synchronous>, transform_indices = @transform_3, window_bounds = array<i64: 1, 1, 8>}, {transform_indices = @transform_4, window_bounds = array<i64: 1, 8, 8, 8>}]} {
    %c0 = arith.constant 0 : index
    %c0_0 = arith.constant 0 : index
    %c0_1 = arith.constant 0 : index
    %c0_2 = arith.constant 0 : index
    %0 = vector.load %arg1[%c0, %c0_0, %c0_1, %c0_2] : memref<1x10x10x8xf32, #tpu.memory_space<vmem>>, vector<1x10x10x8xf32>
    %1 = vector.shape_cast %0 : vector<1x10x10x8xf32> to vector<10x10x8xf32>
    %2 = vector.extract_strided_slice %1 {offsets = [0, 0, 0], sizes = [8, 8, 8], strides = [1, 1, 1]} : vector<10x10x8xf32> to vector<8x8x8xf32>
    %c0_3 = arith.constant 0 : index
    %c0_4 = arith.constant 0 : index
    %c0_5 = arith.constant 0 : index
    %c0_6 = arith.constant 0 : index
    %3 = vector.load %arg2[%c0_3, %c0_4, %c0_5, %c0_6] : memref<9x1x1x8xf32, #tpu.memory_space<vmem>>, vector<1x1x1x8xf32>
    %4 = vector.shape_cast %3 : vector<1x1x1x8xf32> to vector<1x1x8xf32>
    %5 = vector.broadcast %4 : vector<1x1x8xf32> to vector<8x8x8xf32>
    %6 = arith.mulf %2, %5 : vector<8x8x8xf32>
    %7 = vector.extract_strided_slice %1 {offsets = [0, 1, 0], sizes = [8, 8, 8], strides = [1, 1, 1]} : vector<10x10x8xf32> to vector<8x8x8xf32>
    %c1 = arith.constant 1 : index
    %c0_7 = arith.constant 0 : index
    %c0_8 = arith.constant 0 : index
    %c0_9 = arith.constant 0 : index
    %8 = vector.load %arg2[%c1, %c0_7, %c0_8, %c0_9] : memref<9x1x1x8xf32, #tpu.memory_space<vmem>>, vector<1x1x1x8xf32>
    %9 = vector.shape_cast %8 : vector<1x1x1x8xf32> to vector<1x1x8xf32>
    %10 = vector.broadcast %9 : vector<1x1x8xf32> to vector<8x8x8xf32>
    %11 = arith.mulf %7, %10 : vector<8x8x8xf32>
    %12 = vector.extract_strided_slice %1 {offsets = [0, 2, 0], sizes = [8, 8, 8], strides = [1, 1, 1]} : vector<10x10x8xf32> to vector<8x8x8xf32>
    %c2 = arith.constant 2 : index
    %c0_10 = arith.constant 0 : index
    %c0_11 = arith.constant 0 : index
    %c0_12 = arith.constant 0 : index
    %13 = vector.load %arg2[%c2, %c0_10, %c0_11, %c0_12] : memref<9x1x1x8xf32, #tpu.memory_space<vmem>>, vector<1x1x1x8xf32>
    %14 = vector.shape_cast %13 : vector<1x1x1x8xf32> to vector<1x1x8xf32>
    %15 = vector.broadcast %14 : vector<1x1x8xf32> to vector<8x8x8xf32>
    %16 = arith.mulf %12, %15 : vector<8x8x8xf32>
    %17 = vector.extract_strided_slice %1 {offsets = [1, 0, 0], sizes = [8, 8, 8], strides = [1, 1, 1]} : vector<10x10x8xf32> to vector<8x8x8xf32>
    %c3 = arith.constant 3 : index
    %c0_13 = arith.constant 0 : index
    %c0_14 = arith.constant 0 : index
    %c0_15 = arith.constant 0 : index
    %18 = vector.load %arg2[%c3, %c0_13, %c0_14, %c0_15] : memref<9x1x1x8xf32, #tpu.memory_space<vmem>>, vector<1x1x1x8xf32>
    %19 = vector.shape_cast %18 : vector<1x1x1x8xf32> to vector<1x1x8xf32>
    %20 = vector.broadcast %19 : vector<1x1x8xf32> to vector<8x8x8xf32>
    %21 = arith.mulf %17, %20 : vector<8x8x8xf32>
    %22 = vector.extract_strided_slice %1 {offsets = [1, 1, 0], sizes = [8, 8, 8], strides = [1, 1, 1]} : vector<10x10x8xf32> to vector<8x8x8xf32>
    %c4 = arith.constant 4 : index
    %c0_16 = arith.constant 0 : index
    %c0_17 = arith.constant 0 : index
    %c0_18 = arith.constant 0 : index
    %23 = vector.load %arg2[%c4, %c0_16, %c0_17, %c0_18] : memref<9x1x1x8xf32, #tpu.memory_space<vmem>>, vector<1x1x1x8xf32>
    %24 = vector.shape_cast %23 : vector<1x1x1x8xf32> to vector<1x1x8xf32>
    %25 = vector.broadcast %24 : vector<1x1x8xf32> to vector<8x8x8xf32>
    %26 = arith.mulf %22, %25 : vector<8x8x8xf32>
    %27 = vector.extract_strided_slice %1 {offsets = [1, 2, 0], sizes = [8, 8, 8], strides = [1, 1, 1]} : vector<10x10x8xf32> to vector<8x8x8xf32>
    %c5 = arith.constant 5 : index
    %c0_19 = arith.constant 0 : index
    %c0_20 = arith.constant 0 : index
    %c0_21 = arith.constant 0 : index
    %28 = vector.load %arg2[%c5, %c0_19, %c0_20, %c0_21] : memref<9x1x1x8xf32, #tpu.memory_space<vmem>>, vector<1x1x1x8xf32>
    %29 = vector.shape_cast %28 : vector<1x1x1x8xf32> to vector<1x1x8xf32>
    %30 = vector.broadcast %29 : vector<1x1x8xf32> to vector<8x8x8xf32>
    %31 = arith.mulf %27, %30 : vector<8x8x8xf32>
    %32 = vector.extract_strided_slice %1 {offsets = [2, 0, 0], sizes = [8, 8, 8], strides = [1, 1, 1]} : vector<10x10x8xf32> to vector<8x8x8xf32>
    %c6 = arith.constant 6 : index
    %c0_22 = arith.constant 0 : index
    %c0_23 = arith.constant 0 : index
    %c0_24 = arith.constant 0 : index
    %33 = vector.load %arg2[%c6, %c0_22, %c0_23, %c0_24] : memref<9x1x1x8xf32, #tpu.memory_space<vmem>>, vector<1x1x1x8xf32>
    %34 = vector.shape_cast %33 : vector<1x1x1x8xf32> to vector<1x1x8xf32>
    %35 = vector.broadcast %34 : vector<1x1x8xf32> to vector<8x8x8xf32>
    %36 = arith.mulf %32, %35 : vector<8x8x8xf32>
    %37 = vector.extract_strided_slice %1 {offsets = [2, 1, 0], sizes = [8, 8, 8], strides = [1, 1, 1]} : vector<10x10x8xf32> to vector<8x8x8xf32>
    %c7 = arith.constant 7 : index
    %c0_25 = arith.constant 0 : index
    %c0_26 = arith.constant 0 : index
    %c0_27 = arith.constant 0 : index
    %38 = vector.load %arg2[%c7, %c0_25, %c0_26, %c0_27] : memref<9x1x1x8xf32, #tpu.memory_space<vmem>>, vector<1x1x1x8xf32>
    %39 = vector.shape_cast %38 : vector<1x1x1x8xf32> to vector<1x1x8xf32>
    %40 = vector.broadcast %39 : vector<1x1x8xf32> to vector<8x8x8xf32>
    %41 = arith.mulf %37, %40 : vector<8x8x8xf32>
    %42 = vector.extract_strided_slice %1 {offsets = [2, 2, 0], sizes = [8, 8, 8], strides = [1, 1, 1]} : vector<10x10x8xf32> to vector<8x8x8xf32>
    %c8 = arith.constant 8 : index
    %c0_28 = arith.constant 0 : index
    %c0_29 = arith.constant 0 : index
    %c0_30 = arith.constant 0 : index
    %43 = vector.load %arg2[%c8, %c0_28, %c0_29, %c0_30] : memref<9x1x1x8xf32, #tpu.memory_space<vmem>>, vector<1x1x1x8xf32>
    %44 = vector.shape_cast %43 : vector<1x1x1x8xf32> to vector<1x1x8xf32>
    %45 = vector.broadcast %44 : vector<1x1x8xf32> to vector<8x8x8xf32>
    %46 = arith.mulf %42, %45 : vector<8x8x8xf32>
    %47 = arith.addf %6, %11 : vector<8x8x8xf32>
    %48 = arith.addf %16, %21 : vector<8x8x8xf32>
    %49 = arith.addf %26, %31 : vector<8x8x8xf32>
    %50 = arith.addf %36, %41 : vector<8x8x8xf32>
    %51 = arith.addf %47, %48 : vector<8x8x8xf32>
    %52 = arith.addf %49, %50 : vector<8x8x8xf32>
    %53 = arith.addf %51, %52 : vector<8x8x8xf32>
    %54 = arith.addf %53, %46 : vector<8x8x8xf32>
    %c0_31 = arith.constant 0 : index
    %c0_32 = arith.constant 0 : index
    %c0_33 = arith.constant 0 : index
    %55 = vector.load %arg3[%c0_31, %c0_32, %c0_33] : memref<1x1x8xf32, #tpu.memory_space<vmem>>, vector<1x1x8xf32>
    %56 = vector.broadcast %55 : vector<1x1x8xf32> to vector<8x8x8xf32>
    %57 = arith.mulf %54, %56 : vector<8x8x8xf32>
    %c0_34 = arith.constant 0 : index
    %c0_35 = arith.constant 0 : index
    %c0_36 = arith.constant 0 : index
    %58 = vector.load %arg4[%c0_34, %c0_35, %c0_36] : memref<1x1x8xf32, #tpu.memory_space<vmem>>, vector<1x1x8xf32>
    %59 = vector.broadcast %58 : vector<1x1x8xf32> to vector<8x8x8xf32>
    %60 = arith.addf %57, %59 : vector<8x8x8xf32>
    %c0_37 = arith.constant 0 : index
    %c0_38 = arith.constant 0 : index
    %c0_39 = arith.constant 0 : index
    %c0_40 = arith.constant 0 : index
    %61 = vector.load %arg5[%c0_37, %c0_38, %c0_39, %c0_40] : memref<1x8x8x8xf32, #tpu.memory_space<vmem>>, vector<1x8x8x8xf32>
    %62 = vector.shape_cast %61 : vector<1x8x8x8xf32> to vector<8x8x8xf32>
    %63 = vector.shape_cast %60 : vector<8x8x8xf32> to vector<1x8x8x8xf32>
    tpu.vector_store %arg5[%c0_37, %c0_38, %c0_39, %c0_40], %63 {strides = array<i32>} : memref<1x8x8x8xf32, #tpu.memory_space<vmem>>, vector<1x8x8x8xf32>,
    return
  }
  func.func @transform_0(%arg0: i32) -> (i32, i32, i32, i32) {
    %c0_i32 = arith.constant 0 : i32
    %c0_i32_0 = arith.constant 0 : i32
    %c0_i32_1 = arith.constant 0 : i32
    %c0_i32_2 = arith.constant 0 : i32
    return %arg0, %c0_i32, %c0_i32_0, %c0_i32_1 : i32, i32, i32, i32
  }
  func.func @transform_1(%arg0: i32) -> (i32, i32, i32, i32) {
    %c0_i32 = arith.constant 0 : i32
    %c0_i32_0 = arith.constant 0 : i32
    %c0_i32_1 = arith.constant 0 : i32
    %c0_i32_2 = arith.constant 0 : i32
    %c0_i32_3 = arith.constant 0 : i32
    return %c0_i32, %c0_i32_0, %c0_i32_1, %c0_i32_2 : i32, i32, i32, i32
  }
  func.func @transform_2(%arg0: i32) -> (i32, i32, i32) {
    %c0_i32 = arith.constant 0 : i32
    %c0_i32_0 = arith.constant 0 : i32
    %c0_i32_1 = arith.constant 0 : i32
    %c0_i32_2 = arith.constant 0 : i32
    return %c0_i32, %c0_i32_0, %c0_i32_1 : i32, i32, i32
  }
  func.func @transform_3(%arg0: i32) -> (i32, i32, i32) {
    %c0_i32 = arith.constant 0 : i32
    %c0_i32_0 = arith.constant 0 : i32
    %c0_i32_1 = arith.constant 0 : i32
    %c0_i32_2 = arith.constant 0 : i32
    return %c0_i32, %c0_i32_0, %c0_i32_1 : i32, i32, i32
  }
  func.func @transform_4(%arg0: i32) -> (i32, i32, i32, i32) {
    %c0_i32 = arith.constant 0 : i32
    %c0_i32_0 = arith.constant 0 : i32
    %c0_i32_1 = arith.constant 0 : i32
    %c0_i32_2 = arith.constant 0 : i32
    return %arg0, %c0_i32, %c0_i32_0, %c0_i32_1 : i32, i32, i32, i32
  }
}

module attributes {stable_mosaic.version = 11 : i64} {
  func.func @_matmul_bn_act_kernel(%arg0: i32, %arg1: memref<32x16xf32, #tpu.memory_space<vmem>>, %arg2: memref<16x16xbf16, #tpu.memory_space<vmem>>, %arg3: memref<1x16xf32, #tpu.memory_space<vmem>>, %arg4: memref<1x16xf32, #tpu.memory_space<vmem>>, %arg5: memref<32x16xf32, #tpu.memory_space<vmem>>) attributes {dimension_semantics = [#tpu.dimension_semantics<parallel>], iteration_bounds = array<i64: 1>, scalar_prefetch = 0 : i64, scratch_operands = 0 : i64, tpu.core_type = #tpu.core_type<tc>, window_params = [{transform_indices = @transform_0, window_bounds = array<i64: 32, 16>}, {pipeline_mode = #tpu.pipeline_mode<synchronous>, transform_indices = @transform_1, window_bounds = array<i64: 16, 16>}, {pipeline_mode = #tpu.pipeline_mode<synchronous>, transform_indices = @transform_2, window_bounds = array<i64: 1, 16>}, {pipeline_mode = #tpu.pipeline_mode<synchronous>, transform_indices = @transform_3, window_bounds = array<i64: 1, 16>}, {transform_indices = @transform_4, window_bounds = array<i64: 32, 16>}]} {
    %c0 = arith.constant 0 : index
    %c0_0 = arith.constant 0 : index
    %0 = vector.load %arg1[%c0, %c0_0] : memref<32x16xf32, #tpu.memory_space<vmem>>, vector<32x16xf32>
    %1 = arith.truncf %0 : vector<32x16xf32> to vector<32x16xbf16>
    %c0_1 = arith.constant 0 : index
    %c0_2 = arith.constant 0 : index
    %2 = vector.load %arg2[%c0_1, %c0_2] : memref<16x16xbf16, #tpu.memory_space<vmem>>, vector<16x16xbf16>
    %cst = arith.constant dense<0.000000e+00> : vector<32x16xf32>
    %3 = tpu.matmul %1, %2, %cst {dimension_numbers = #tpu.dot_dimension_numbers<[1], [0], [0], [1], [0, 0, 1, 1], [], []>} : vector<32x16xbf16>, vector<16x16xbf16>, vector<32x16xf32> -> vector<32x16xf32>
    %c0_3 = arith.constant 0 : index
    %c0_4 = arith.constant 0 : index
    %4 = vector.load %arg3[%c0_3, %c0_4] : memref<1x16xf32, #tpu.memory_space<vmem>>, vector<1x16xf32>
    %5 = vector.broadcast %4 : vector<1x16xf32> to vector<32x16xf32>
    %6 = arith.mulf %3, %5 : vector<32x16xf32>
    %c0_5 = arith.constant 0 : index
    %c0_6 = arith.constant 0 : index
    %7 = vector.load %arg4[%c0_5, %c0_6] : memref<1x16xf32, #tpu.memory_space<vmem>>, vector<1x16xf32>
    %8 = vector.broadcast %7 : vector<1x16xf32> to vector<32x16xf32>
    %9 = arith.addf %6, %8 : vector<32x16xf32>
    %cst_7 = arith.constant 0.000000e+00 : f32
    %10 = vector.broadcast %cst_7 : f32 to vector<32x16xf32>
    %11 = arith.maximumf %9, %10 : vector<32x16xf32>
    %c0_8 = arith.constant 0 : index
    %c0_9 = arith.constant 0 : index
    %12 = vector.load %arg5[%c0_8, %c0_9] : memref<32x16xf32, #tpu.memory_space<vmem>>, vector<32x16xf32>
    tpu.vector_store %arg5[%c0_8, %c0_9], %11 {strides = array<i32>} : memref<32x16xf32, #tpu.memory_space<vmem>>, vector<32x16xf32>,
    return
  }
  func.func @transform_0(%arg0: i32) -> (i32, i32) {
    %c0_i32 = arith.constant 0 : i32
    %c0_i32_0 = arith.constant 0 : i32
    return %arg0, %c0_i32 : i32, i32
  }
  func.func @transform_1(%arg0: i32) -> (i32, i32) {
    %c0_i32 = arith.constant 0 : i32
    %c0_i32_0 = arith.constant 0 : i32
    %c0_i32_1 = arith.constant 0 : i32
    return %c0_i32, %c0_i32_0 : i32, i32
  }
  func.func @transform_2(%arg0: i32) -> (i32, i32) {
    %c0_i32 = arith.constant 0 : i32
    %c0_i32_0 = arith.constant 0 : i32
    %c0_i32_1 = arith.constant 0 : i32
    return %c0_i32, %c0_i32_0 : i32, i32
  }
  func.func @transform_3(%arg0: i32) -> (i32, i32) {
    %c0_i32 = arith.constant 0 : i32
    %c0_i32_0 = arith.constant 0 : i32
    %c0_i32_1 = arith.constant 0 : i32
    return %c0_i32, %c0_i32_0 : i32, i32
  }
  func.func @transform_4(%arg0: i32) -> (i32, i32) {
    %c0_i32 = arith.constant 0 : i32
    %c0_i32_0 = arith.constant 0 : i32
    return %arg0, %c0_i32 : i32, i32
  }
}

module attributes {stable_mosaic.version = 11 : i64} {
  func.func @_dw3x3_s2_bn_kernel(%arg0: i32, %arg1: memref<1x5x5x16xf32, #tpu.memory_space<vmem>>, %arg2: memref<1x5x5x16xf32, #tpu.memory_space<vmem>>, %arg3: memref<1x5x5x16xf32, #tpu.memory_space<vmem>>, %arg4: memref<1x5x5x16xf32, #tpu.memory_space<vmem>>, %arg5: memref<9x1x1x16xf32, #tpu.memory_space<vmem>>, %arg6: memref<1x1x16xf32, #tpu.memory_space<vmem>>, %arg7: memref<1x1x16xf32, #tpu.memory_space<vmem>>, %arg8: memref<1x4x4x16xf32, #tpu.memory_space<vmem>>) attributes {dimension_semantics = [#tpu.dimension_semantics<parallel>], iteration_bounds = array<i64: 2>, scalar_prefetch = 0 : i64, scratch_operands = 0 : i64, tpu.core_type = #tpu.core_type<tc>, window_params = [{transform_indices = @transform_0, window_bounds = array<i64: 1, 5, 5, 16>}, {transform_indices = @transform_1, window_bounds = array<i64: 1, 5, 5, 16>}, {transform_indices = @transform_2, window_bounds = array<i64: 1, 5, 5, 16>}, {transform_indices = @transform_3, window_bounds = array<i64: 1, 5, 5, 16>}, {pipeline_mode = #tpu.pipeline_mode<synchronous>, transform_indices = @transform_4, window_bounds = array<i64: 9, 1, 1, 16>}, {pipeline_mode = #tpu.pipeline_mode<synchronous>, transform_indices = @transform_5, window_bounds = array<i64: 1, 1, 16>}, {pipeline_mode = #tpu.pipeline_mode<synchronous>, transform_indices = @transform_6, window_bounds = array<i64: 1, 1, 16>}, {transform_indices = @transform_7, window_bounds = array<i64: 1, 4, 4, 16>}]} {
    %c0 = arith.constant 0 : index
    %c0_0 = arith.constant 0 : index
    %c0_1 = arith.constant 0 : index
    %c0_2 = arith.constant 0 : index
    %0 = vector.load %arg1[%c0, %c0_0, %c0_1, %c0_2] : memref<1x5x5x16xf32, #tpu.memory_space<vmem>>, vector<1x5x5x16xf32>
    %1 = vector.shape_cast %0 : vector<1x5x5x16xf32> to vector<5x5x16xf32>
    %c0_3 = arith.constant 0 : index
    %c0_4 = arith.constant 0 : index
    %c0_5 = arith.constant 0 : index
    %c0_6 = arith.constant 0 : index
    %2 = vector.load %arg2[%c0_3, %c0_4, %c0_5, %c0_6] : memref<1x5x5x16xf32, #tpu.memory_space<vmem>>, vector<1x5x5x16xf32>
    %3 = vector.shape_cast %2 : vector<1x5x5x16xf32> to vector<5x5x16xf32>
    %c0_7 = arith.constant 0 : index
    %c0_8 = arith.constant 0 : index
    %c0_9 = arith.constant 0 : index
    %c0_10 = arith.constant 0 : index
    %4 = vector.load %arg3[%c0_7, %c0_8, %c0_9, %c0_10] : memref<1x5x5x16xf32, #tpu.memory_space<vmem>>, vector<1x5x5x16xf32>
    %5 = vector.shape_cast %4 : vector<1x5x5x16xf32> to vector<5x5x16xf32>
    %c0_11 = arith.constant 0 : index
    %c0_12 = arith.constant 0 : index
    %c0_13 = arith.constant 0 : index
    %c0_14 = arith.constant 0 : index
    %6 = vector.load %arg4[%c0_11, %c0_12, %c0_13, %c0_14] : memref<1x5x5x16xf32, #tpu.memory_space<vmem>>, vector<1x5x5x16xf32>
    %7 = vector.shape_cast %6 : vector<1x5x5x16xf32> to vector<5x5x16xf32>
    %8 = vector.extract_strided_slice %1 {offsets = [0, 0, 0], sizes = [4, 4, 16], strides = [1, 1, 1]} : vector<5x5x16xf32> to vector<4x4x16xf32>
    %c0_15 = arith.constant 0 : index
    %c0_16 = arith.constant 0 : index
    %c0_17 = arith.constant 0 : index
    %c0_18 = arith.constant 0 : index
    %9 = vector.load %arg5[%c0_15, %c0_16, %c0_17, %c0_18] : memref<9x1x1x16xf32, #tpu.memory_space<vmem>>, vector<1x1x1x16xf32>
    %10 = vector.shape_cast %9 : vector<1x1x1x16xf32> to vector<1x1x16xf32>
    %11 = vector.broadcast %10 : vector<1x1x16xf32> to vector<4x4x16xf32>
    %12 = arith.mulf %8, %11 : vector<4x4x16xf32>
    %13 = vector.extract_strided_slice %3 {offsets = [0, 0, 0], sizes = [4, 4, 16], strides = [1, 1, 1]} : vector<5x5x16xf32> to vector<4x4x16xf32>
    %c1 = arith.constant 1 : index
    %c0_19 = arith.constant 0 : index
    %c0_20 = arith.constant 0 : index
    %c0_21 = arith.constant 0 : index
    %14 = vector.load %arg5[%c1, %c0_19, %c0_20, %c0_21] : memref<9x1x1x16xf32, #tpu.memory_space<vmem>>, vector<1x1x1x16xf32>
    %15 = vector.shape_cast %14 : vector<1x1x1x16xf32> to vector<1x1x16xf32>
    %16 = vector.broadcast %15 : vector<1x1x16xf32> to vector<4x4x16xf32>
    %17 = arith.mulf %13, %16 : vector<4x4x16xf32>
    %18 = vector.extract_strided_slice %1 {offsets = [0, 1, 0], sizes = [4, 4, 16], strides = [1, 1, 1]} : vector<5x5x16xf32> to vector<4x4x16xf32>
    %c2 = arith.constant 2 : index
    %c0_22 = arith.constant 0 : index
    %c0_23 = arith.constant 0 : index
    %c0_24 = arith.constant 0 : index
    %19 = vector.load %arg5[%c2, %c0_22, %c0_23, %c0_24] : memref<9x1x1x16xf32, #tpu.memory_space<vmem>>, vector<1x1x1x16xf32>
    %20 = vector.shape_cast %19 : vector<1x1x1x16xf32> to vector<1x1x16xf32>
    %21 = vector.broadcast %20 : vector<1x1x16xf32> to vector<4x4x16xf32>
    %22 = arith.mulf %18, %21 : vector<4x4x16xf32>
    %23 = vector.extract_strided_slice %5 {offsets = [0, 0, 0], sizes = [4, 4, 16], strides = [1, 1, 1]} : vector<5x5x16xf32> to vector<4x4x16xf32>
    %c3 = arith.constant 3 : index
    %c0_25 = arith.constant 0 : index
    %c0_26 = arith.constant 0 : index
    %c0_27 = arith.constant 0 : index
    %24 = vector.load %arg5[%c3, %c0_25, %c0_26, %c0_27] : memref<9x1x1x16xf32, #tpu.memory_space<vmem>>, vector<1x1x1x16xf32>
    %25 = vector.shape_cast %24 : vector<1x1x1x16xf32> to vector<1x1x16xf32>
    %26 = vector.broadcast %25 : vector<1x1x16xf32> to vector<4x4x16xf32>
    %27 = arith.mulf %23, %26 : vector<4x4x16xf32>
    %28 = vector.extract_strided_slice %7 {offsets = [0, 0, 0], sizes = [4, 4, 16], strides = [1, 1, 1]} : vector<5x5x16xf32> to vector<4x4x16xf32>
    %c4 = arith.constant 4 : index
    %c0_28 = arith.constant 0 : index
    %c0_29 = arith.constant 0 : index
    %c0_30 = arith.constant 0 : index
    %29 = vector.load %arg5[%c4, %c0_28, %c0_29, %c0_30] : memref<9x1x1x16xf32, #tpu.memory_space<vmem>>, vector<1x1x1x16xf32>
    %30 = vector.shape_cast %29 : vector<1x1x1x16xf32> to vector<1x1x16xf32>
    %31 = vector.broadcast %30 : vector<1x1x16xf32> to vector<4x4x16xf32>
    %32 = arith.mulf %28, %31 : vector<4x4x16xf32>
    %33 = vector.extract_strided_slice %5 {offsets = [0, 1, 0], sizes = [4, 4, 16], strides = [1, 1, 1]} : vector<5x5x16xf32> to vector<4x4x16xf32>
    %c5 = arith.constant 5 : index
    %c0_31 = arith.constant 0 : index
    %c0_32 = arith.constant 0 : index
    %c0_33 = arith.constant 0 : index
    %34 = vector.load %arg5[%c5, %c0_31, %c0_32, %c0_33] : memref<9x1x1x16xf32, #tpu.memory_space<vmem>>, vector<1x1x1x16xf32>
    %35 = vector.shape_cast %34 : vector<1x1x1x16xf32> to vector<1x1x16xf32>
    %36 = vector.broadcast %35 : vector<1x1x16xf32> to vector<4x4x16xf32>
    %37 = arith.mulf %33, %36 : vector<4x4x16xf32>
    %38 = vector.extract_strided_slice %1 {offsets = [1, 0, 0], sizes = [4, 4, 16], strides = [1, 1, 1]} : vector<5x5x16xf32> to vector<4x4x16xf32>
    %c6 = arith.constant 6 : index
    %c0_34 = arith.constant 0 : index
    %c0_35 = arith.constant 0 : index
    %c0_36 = arith.constant 0 : index
    %39 = vector.load %arg5[%c6, %c0_34, %c0_35, %c0_36] : memref<9x1x1x16xf32, #tpu.memory_space<vmem>>, vector<1x1x1x16xf32>
    %40 = vector.shape_cast %39 : vector<1x1x1x16xf32> to vector<1x1x16xf32>
    %41 = vector.broadcast %40 : vector<1x1x16xf32> to vector<4x4x16xf32>
    %42 = arith.mulf %38, %41 : vector<4x4x16xf32>
    %43 = vector.extract_strided_slice %3 {offsets = [1, 0, 0], sizes = [4, 4, 16], strides = [1, 1, 1]} : vector<5x5x16xf32> to vector<4x4x16xf32>
    %c7 = arith.constant 7 : index
    %c0_37 = arith.constant 0 : index
    %c0_38 = arith.constant 0 : index
    %c0_39 = arith.constant 0 : index
    %44 = vector.load %arg5[%c7, %c0_37, %c0_38, %c0_39] : memref<9x1x1x16xf32, #tpu.memory_space<vmem>>, vector<1x1x1x16xf32>
    %45 = vector.shape_cast %44 : vector<1x1x1x16xf32> to vector<1x1x16xf32>
    %46 = vector.broadcast %45 : vector<1x1x16xf32> to vector<4x4x16xf32>
    %47 = arith.mulf %43, %46 : vector<4x4x16xf32>
    %48 = vector.extract_strided_slice %1 {offsets = [1, 1, 0], sizes = [4, 4, 16], strides = [1, 1, 1]} : vector<5x5x16xf32> to vector<4x4x16xf32>
    %c8 = arith.constant 8 : index
    %c0_40 = arith.constant 0 : index
    %c0_41 = arith.constant 0 : index
    %c0_42 = arith.constant 0 : index
    %49 = vector.load %arg5[%c8, %c0_40, %c0_41, %c0_42] : memref<9x1x1x16xf32, #tpu.memory_space<vmem>>, vector<1x1x1x16xf32>
    %50 = vector.shape_cast %49 : vector<1x1x1x16xf32> to vector<1x1x16xf32>
    %51 = vector.broadcast %50 : vector<1x1x16xf32> to vector<4x4x16xf32>
    %52 = arith.mulf %48, %51 : vector<4x4x16xf32>
    %53 = arith.addf %12, %17 : vector<4x4x16xf32>
    %54 = arith.addf %22, %27 : vector<4x4x16xf32>
    %55 = arith.addf %32, %37 : vector<4x4x16xf32>
    %56 = arith.addf %42, %47 : vector<4x4x16xf32>
    %57 = arith.addf %53, %54 : vector<4x4x16xf32>
    %58 = arith.addf %55, %56 : vector<4x4x16xf32>
    %59 = arith.addf %57, %58 : vector<4x4x16xf32>
    %60 = arith.addf %59, %52 : vector<4x4x16xf32>
    %c0_43 = arith.constant 0 : index
    %c0_44 = arith.constant 0 : index
    %c0_45 = arith.constant 0 : index
    %61 = vector.load %arg6[%c0_43, %c0_44, %c0_45] : memref<1x1x16xf32, #tpu.memory_space<vmem>>, vector<1x1x16xf32>
    %62 = vector.broadcast %61 : vector<1x1x16xf32> to vector<4x4x16xf32>
    %63 = arith.mulf %60, %62 : vector<4x4x16xf32>
    %c0_46 = arith.constant 0 : index
    %c0_47 = arith.constant 0 : index
    %c0_48 = arith.constant 0 : index
    %64 = vector.load %arg7[%c0_46, %c0_47, %c0_48] : memref<1x1x16xf32, #tpu.memory_space<vmem>>, vector<1x1x16xf32>
    %65 = vector.broadcast %64 : vector<1x1x16xf32> to vector<4x4x16xf32>
    %66 = arith.addf %63, %65 : vector<4x4x16xf32>
    %c0_49 = arith.constant 0 : index
    %c0_50 = arith.constant 0 : index
    %c0_51 = arith.constant 0 : index
    %c0_52 = arith.constant 0 : index
    %67 = vector.load %arg8[%c0_49, %c0_50, %c0_51, %c0_52] : memref<1x4x4x16xf32, #tpu.memory_space<vmem>>, vector<1x4x4x16xf32>
    %68 = vector.shape_cast %67 : vector<1x4x4x16xf32> to vector<4x4x16xf32>
    %69 = vector.shape_cast %66 : vector<4x4x16xf32> to vector<1x4x4x16xf32>
    tpu.vector_store %arg8[%c0_49, %c0_50, %c0_51, %c0_52], %69 {strides = array<i32>} : memref<1x4x4x16xf32, #tpu.memory_space<vmem>>, vector<1x4x4x16xf32>,
    return
  }
  func.func @transform_0(%arg0: i32) -> (i32, i32, i32, i32) {
    %c0_i32 = arith.constant 0 : i32
    %c0_i32_0 = arith.constant 0 : i32
    %c0_i32_1 = arith.constant 0 : i32
    %c0_i32_2 = arith.constant 0 : i32
    return %arg0, %c0_i32, %c0_i32_0, %c0_i32_1 : i32, i32, i32, i32
  }
  func.func @transform_1(%arg0: i32) -> (i32, i32, i32, i32) {
    %c0_i32 = arith.constant 0 : i32
    %c0_i32_0 = arith.constant 0 : i32
    %c0_i32_1 = arith.constant 0 : i32
    %c0_i32_2 = arith.constant 0 : i32
    return %arg0, %c0_i32, %c0_i32_0, %c0_i32_1 : i32, i32, i32, i32
  }
  func.func @transform_2(%arg0: i32) -> (i32, i32, i32, i32) {
    %c0_i32 = arith.constant 0 : i32
    %c0_i32_0 = arith.constant 0 : i32
    %c0_i32_1 = arith.constant 0 : i32
    %c0_i32_2 = arith.constant 0 : i32
    return %arg0, %c0_i32, %c0_i32_0, %c0_i32_1 : i32, i32, i32, i32
  }
  func.func @transform_3(%arg0: i32) -> (i32, i32, i32, i32) {
    %c0_i32 = arith.constant 0 : i32
    %c0_i32_0 = arith.constant 0 : i32
    %c0_i32_1 = arith.constant 0 : i32
    %c0_i32_2 = arith.constant 0 : i32
    return %arg0, %c0_i32, %c0_i32_0, %c0_i32_1 : i32, i32, i32, i32
  }
  func.func @transform_4(%arg0: i32) -> (i32, i32, i32, i32) {
    %c0_i32 = arith.constant 0 : i32
    %c0_i32_0 = arith.constant 0 : i32
    %c0_i32_1 = arith.constant 0 : i32
    %c0_i32_2 = arith.constant 0 : i32
    %c0_i32_3 = arith.constant 0 : i32
    return %c0_i32, %c0_i32_0, %c0_i32_1, %c0_i32_2 : i32, i32, i32, i32
  }
  func.func @transform_5(%arg0: i32) -> (i32, i32, i32) {
    %c0_i32 = arith.constant 0 : i32
    %c0_i32_0 = arith.constant 0 : i32
    %c0_i32_1 = arith.constant 0 : i32
    %c0_i32_2 = arith.constant 0 : i32
    return %c0_i32, %c0_i32_0, %c0_i32_1 : i32, i32, i32
  }
  func.func @transform_6(%arg0: i32) -> (i32, i32, i32) {
    %c0_i32 = arith.constant 0 : i32
    %c0_i32_0 = arith.constant 0 : i32
    %c0_i32_1 = arith.constant 0 : i32
    %c0_i32_2 = arith.constant 0 : i32
    return %c0_i32, %c0_i32_0, %c0_i32_1 : i32, i32, i32
  }
  func.func @transform_7(%arg0: i32) -> (i32, i32, i32, i32) {
    %c0_i32 = arith.constant 0 : i32
    %c0_i32_0 = arith.constant 0 : i32
    %c0_i32_1 = arith.constant 0 : i32
    %c0_i32_2 = arith.constant 0 : i32
    return %arg0, %c0_i32, %c0_i32_0, %c0_i32_1 : i32, i32, i32, i32
  }
}

module attributes {stable_mosaic.version = 11 : i64} {
  func.func @_matmul_bn_act_kernel(%arg0: i32, %arg1: memref<128x16xf32, #tpu.memory_space<vmem>>, %arg2: memref<16x16xbf16, #tpu.memory_space<vmem>>, %arg3: memref<1x16xf32, #tpu.memory_space<vmem>>, %arg4: memref<1x16xf32, #tpu.memory_space<vmem>>, %arg5: memref<128x16xf32, #tpu.memory_space<vmem>>) attributes {dimension_semantics = [#tpu.dimension_semantics<parallel>], iteration_bounds = array<i64: 1>, scalar_prefetch = 0 : i64, scratch_operands = 0 : i64, tpu.core_type = #tpu.core_type<tc>, window_params = [{transform_indices = @transform_0, window_bounds = array<i64: 128, 16>}, {pipeline_mode = #tpu.pipeline_mode<synchronous>, transform_indices = @transform_1, window_bounds = array<i64: 16, 16>}, {pipeline_mode = #tpu.pipeline_mode<synchronous>, transform_indices = @transform_2, window_bounds = array<i64: 1, 16>}, {pipeline_mode = #tpu.pipeline_mode<synchronous>, transform_indices = @transform_3, window_bounds = array<i64: 1, 16>}, {transform_indices = @transform_4, window_bounds = array<i64: 128, 16>}]} {
    %c0 = arith.constant 0 : index
    %c0_0 = arith.constant 0 : index
    %0 = vector.load %arg1[%c0, %c0_0] : memref<128x16xf32, #tpu.memory_space<vmem>>, vector<128x16xf32>
    %1 = arith.truncf %0 : vector<128x16xf32> to vector<128x16xbf16>
    %c0_1 = arith.constant 0 : index
    %c0_2 = arith.constant 0 : index
    %2 = vector.load %arg2[%c0_1, %c0_2] : memref<16x16xbf16, #tpu.memory_space<vmem>>, vector<16x16xbf16>
    %cst = arith.constant dense<0.000000e+00> : vector<128x16xf32>
    %3 = tpu.matmul %1, %2, %cst {dimension_numbers = #tpu.dot_dimension_numbers<[1], [0], [0], [1], [0, 0, 1, 1], [], []>} : vector<128x16xbf16>, vector<16x16xbf16>, vector<128x16xf32> -> vector<128x16xf32>
    %c0_3 = arith.constant 0 : index
    %c0_4 = arith.constant 0 : index
    %4 = vector.load %arg3[%c0_3, %c0_4] : memref<1x16xf32, #tpu.memory_space<vmem>>, vector<1x16xf32>
    %5 = vector.broadcast %4 : vector<1x16xf32> to vector<128x16xf32>
    %6 = arith.mulf %3, %5 : vector<128x16xf32>
    %c0_5 = arith.constant 0 : index
    %c0_6 = arith.constant 0 : index
    %7 = vector.load %arg4[%c0_5, %c0_6] : memref<1x16xf32, #tpu.memory_space<vmem>>, vector<1x16xf32>
    %8 = vector.broadcast %7 : vector<1x16xf32> to vector<128x16xf32>
    %9 = arith.addf %6, %8 : vector<128x16xf32>
    %cst_7 = arith.constant 0.000000e+00 : f32
    %10 = vector.broadcast %cst_7 : f32 to vector<128x16xf32>
    %11 = arith.maximumf %9, %10 : vector<128x16xf32>
    %c0_8 = arith.constant 0 : index
    %c0_9 = arith.constant 0 : index
    %12 = vector.load %arg5[%c0_8, %c0_9] : memref<128x16xf32, #tpu.memory_space<vmem>>, vector<128x16xf32>
    tpu.vector_store %arg5[%c0_8, %c0_9], %11 {strides = array<i32>} : memref<128x16xf32, #tpu.memory_space<vmem>>, vector<128x16xf32>,
    return
  }
  func.func @transform_0(%arg0: i32) -> (i32, i32) {
    %c0_i32 = arith.constant 0 : i32
    %c0_i32_0 = arith.constant 0 : i32
    return %arg0, %c0_i32 : i32, i32
  }
  func.func @transform_1(%arg0: i32) -> (i32, i32) {
    %c0_i32 = arith.constant 0 : i32
    %c0_i32_0 = arith.constant 0 : i32
    %c0_i32_1 = arith.constant 0 : i32
    return %c0_i32, %c0_i32_0 : i32, i32
  }
  func.func @transform_2(%arg0: i32) -> (i32, i32) {
    %c0_i32 = arith.constant 0 : i32
    %c0_i32_0 = arith.constant 0 : i32
    %c0_i32_1 = arith.constant 0 : i32
    return %c0_i32, %c0_i32_0 : i32, i32
  }
  func.func @transform_3(%arg0: i32) -> (i32, i32) {
    %c0_i32 = arith.constant 0 : i32
    %c0_i32_0 = arith.constant 0 : i32
    %c0_i32_1 = arith.constant 0 : i32
    return %c0_i32, %c0_i32_0 : i32, i32
  }
  func.func @transform_4(%arg0: i32) -> (i32, i32) {
    %c0_i32 = arith.constant 0 : i32
    %c0_i32_0 = arith.constant 0 : i32
    return %arg0, %c0_i32 : i32, i32
  }
}

module attributes {stable_mosaic.version = 11 : i64} {
  func.func @_dw3x3_s2_bn_kernel(%arg0: i32, %arg1: memref<1x5x5x16xf32, #tpu.memory_space<vmem>>, %arg2: memref<1x5x5x16xf32, #tpu.memory_space<vmem>>, %arg3: memref<1x5x5x16xf32, #tpu.memory_space<vmem>>, %arg4: memref<1x5x5x16xf32, #tpu.memory_space<vmem>>, %arg5: memref<9x1x1x16xf32, #tpu.memory_space<vmem>>, %arg6: memref<1x1x16xf32, #tpu.memory_space<vmem>>, %arg7: memref<1x1x16xf32, #tpu.memory_space<vmem>>, %arg8: memref<1x4x4x16xf32, #tpu.memory_space<vmem>>) attributes {dimension_semantics = [#tpu.dimension_semantics<parallel>], iteration_bounds = array<i64: 2>, scalar_prefetch = 0 : i64, scratch_operands = 0 : i64, tpu.core_type = #tpu.core_type<tc>, window_params = [{transform_indices = @transform_0, window_bounds = array<i64: 1, 5, 5, 16>}, {transform_indices = @transform_1, window_bounds = array<i64: 1, 5, 5, 16>}, {transform_indices = @transform_2, window_bounds = array<i64: 1, 5, 5, 16>}, {transform_indices = @transform_3, window_bounds = array<i64: 1, 5, 5, 16>}, {pipeline_mode = #tpu.pipeline_mode<synchronous>, transform_indices = @transform_4, window_bounds = array<i64: 9, 1, 1, 16>}, {pipeline_mode = #tpu.pipeline_mode<synchronous>, transform_indices = @transform_5, window_bounds = array<i64: 1, 1, 16>}, {pipeline_mode = #tpu.pipeline_mode<synchronous>, transform_indices = @transform_6, window_bounds = array<i64: 1, 1, 16>}, {transform_indices = @transform_7, window_bounds = array<i64: 1, 4, 4, 16>}]} {
    %c0 = arith.constant 0 : index
    %c0_0 = arith.constant 0 : index
    %c0_1 = arith.constant 0 : index
    %c0_2 = arith.constant 0 : index
    %0 = vector.load %arg1[%c0, %c0_0, %c0_1, %c0_2] : memref<1x5x5x16xf32, #tpu.memory_space<vmem>>, vector<1x5x5x16xf32>
    %1 = vector.shape_cast %0 : vector<1x5x5x16xf32> to vector<5x5x16xf32>
    %c0_3 = arith.constant 0 : index
    %c0_4 = arith.constant 0 : index
    %c0_5 = arith.constant 0 : index
    %c0_6 = arith.constant 0 : index
    %2 = vector.load %arg2[%c0_3, %c0_4, %c0_5, %c0_6] : memref<1x5x5x16xf32, #tpu.memory_space<vmem>>, vector<1x5x5x16xf32>
    %3 = vector.shape_cast %2 : vector<1x5x5x16xf32> to vector<5x5x16xf32>
    %c0_7 = arith.constant 0 : index
    %c0_8 = arith.constant 0 : index
    %c0_9 = arith.constant 0 : index
    %c0_10 = arith.constant 0 : index
    %4 = vector.load %arg3[%c0_7, %c0_8, %c0_9, %c0_10] : memref<1x5x5x16xf32, #tpu.memory_space<vmem>>, vector<1x5x5x16xf32>
    %5 = vector.shape_cast %4 : vector<1x5x5x16xf32> to vector<5x5x16xf32>
    %c0_11 = arith.constant 0 : index
    %c0_12 = arith.constant 0 : index
    %c0_13 = arith.constant 0 : index
    %c0_14 = arith.constant 0 : index
    %6 = vector.load %arg4[%c0_11, %c0_12, %c0_13, %c0_14] : memref<1x5x5x16xf32, #tpu.memory_space<vmem>>, vector<1x5x5x16xf32>
    %7 = vector.shape_cast %6 : vector<1x5x5x16xf32> to vector<5x5x16xf32>
    %8 = vector.extract_strided_slice %1 {offsets = [0, 0, 0], sizes = [4, 4, 16], strides = [1, 1, 1]} : vector<5x5x16xf32> to vector<4x4x16xf32>
    %c0_15 = arith.constant 0 : index
    %c0_16 = arith.constant 0 : index
    %c0_17 = arith.constant 0 : index
    %c0_18 = arith.constant 0 : index
    %9 = vector.load %arg5[%c0_15, %c0_16, %c0_17, %c0_18] : memref<9x1x1x16xf32, #tpu.memory_space<vmem>>, vector<1x1x1x16xf32>
    %10 = vector.shape_cast %9 : vector<1x1x1x16xf32> to vector<1x1x16xf32>
    %11 = vector.broadcast %10 : vector<1x1x16xf32> to vector<4x4x16xf32>
    %12 = arith.mulf %8, %11 : vector<4x4x16xf32>
    %13 = vector.extract_strided_slice %3 {offsets = [0, 0, 0], sizes = [4, 4, 16], strides = [1, 1, 1]} : vector<5x5x16xf32> to vector<4x4x16xf32>
    %c1 = arith.constant 1 : index
    %c0_19 = arith.constant 0 : index
    %c0_20 = arith.constant 0 : index
    %c0_21 = arith.constant 0 : index
    %14 = vector.load %arg5[%c1, %c0_19, %c0_20, %c0_21] : memref<9x1x1x16xf32, #tpu.memory_space<vmem>>, vector<1x1x1x16xf32>
    %15 = vector.shape_cast %14 : vector<1x1x1x16xf32> to vector<1x1x16xf32>
    %16 = vector.broadcast %15 : vector<1x1x16xf32> to vector<4x4x16xf32>
    %17 = arith.mulf %13, %16 : vector<4x4x16xf32>
    %18 = vector.extract_strided_slice %1 {offsets = [0, 1, 0], sizes = [4, 4, 16], strides = [1, 1, 1]} : vector<5x5x16xf32> to vector<4x4x16xf32>
    %c2 = arith.constant 2 : index
    %c0_22 = arith.constant 0 : index
    %c0_23 = arith.constant 0 : index
    %c0_24 = arith.constant 0 : index
    %19 = vector.load %arg5[%c2, %c0_22, %c0_23, %c0_24] : memref<9x1x1x16xf32, #tpu.memory_space<vmem>>, vector<1x1x1x16xf32>
    %20 = vector.shape_cast %19 : vector<1x1x1x16xf32> to vector<1x1x16xf32>
    %21 = vector.broadcast %20 : vector<1x1x16xf32> to vector<4x4x16xf32>
    %22 = arith.mulf %18, %21 : vector<4x4x16xf32>
    %23 = vector.extract_strided_slice %5 {offsets = [0, 0, 0], sizes = [4, 4, 16], strides = [1, 1, 1]} : vector<5x5x16xf32> to vector<4x4x16xf32>
    %c3 = arith.constant 3 : index
    %c0_25 = arith.constant 0 : index
    %c0_26 = arith.constant 0 : index
    %c0_27 = arith.constant 0 : index
    %24 = vector.load %arg5[%c3, %c0_25, %c0_26, %c0_27] : memref<9x1x1x16xf32, #tpu.memory_space<vmem>>, vector<1x1x1x16xf32>
    %25 = vector.shape_cast %24 : vector<1x1x1x16xf32> to vector<1x1x16xf32>
    %26 = vector.broadcast %25 : vector<1x1x16xf32> to vector<4x4x16xf32>
    %27 = arith.mulf %23, %26 : vector<4x4x16xf32>
    %28 = vector.extract_strided_slice %7 {offsets = [0, 0, 0], sizes = [4, 4, 16], strides = [1, 1, 1]} : vector<5x5x16xf32> to vector<4x4x16xf32>
    %c4 = arith.constant 4 : index
    %c0_28 = arith.constant 0 : index
    %c0_29 = arith.constant 0 : index
    %c0_30 = arith.constant 0 : index
    %29 = vector.load %arg5[%c4, %c0_28, %c0_29, %c0_30] : memref<9x1x1x16xf32, #tpu.memory_space<vmem>>, vector<1x1x1x16xf32>
    %30 = vector.shape_cast %29 : vector<1x1x1x16xf32> to vector<1x1x16xf32>
    %31 = vector.broadcast %30 : vector<1x1x16xf32> to vector<4x4x16xf32>
    %32 = arith.mulf %28, %31 : vector<4x4x16xf32>
    %33 = vector.extract_strided_slice %5 {offsets = [0, 1, 0], sizes = [4, 4, 16], strides = [1, 1, 1]} : vector<5x5x16xf32> to vector<4x4x16xf32>
    %c5 = arith.constant 5 : index
    %c0_31 = arith.constant 0 : index
    %c0_32 = arith.constant 0 : index
    %c0_33 = arith.constant 0 : index
    %34 = vector.load %arg5[%c5, %c0_31, %c0_32, %c0_33] : memref<9x1x1x16xf32, #tpu.memory_space<vmem>>, vector<1x1x1x16xf32>
    %35 = vector.shape_cast %34 : vector<1x1x1x16xf32> to vector<1x1x16xf32>
    %36 = vector.broadcast %35 : vector<1x1x16xf32> to vector<4x4x16xf32>
    %37 = arith.mulf %33, %36 : vector<4x4x16xf32>
    %38 = vector.extract_strided_slice %1 {offsets = [1, 0, 0], sizes = [4, 4, 16], strides = [1, 1, 1]} : vector<5x5x16xf32> to vector<4x4x16xf32>
    %c6 = arith.constant 6 : index
    %c0_34 = arith.constant 0 : index
    %c0_35 = arith.constant 0 : index
    %c0_36 = arith.constant 0 : index
    %39 = vector.load %arg5[%c6, %c0_34, %c0_35, %c0_36] : memref<9x1x1x16xf32, #tpu.memory_space<vmem>>, vector<1x1x1x16xf32>
    %40 = vector.shape_cast %39 : vector<1x1x1x16xf32> to vector<1x1x16xf32>
    %41 = vector.broadcast %40 : vector<1x1x16xf32> to vector<4x4x16xf32>
    %42 = arith.mulf %38, %41 : vector<4x4x16xf32>
    %43 = vector.extract_strided_slice %3 {offsets = [1, 0, 0], sizes = [4, 4, 16], strides = [1, 1, 1]} : vector<5x5x16xf32> to vector<4x4x16xf32>
    %c7 = arith.constant 7 : index
    %c0_37 = arith.constant 0 : index
    %c0_38 = arith.constant 0 : index
    %c0_39 = arith.constant 0 : index
    %44 = vector.load %arg5[%c7, %c0_37, %c0_38, %c0_39] : memref<9x1x1x16xf32, #tpu.memory_space<vmem>>, vector<1x1x1x16xf32>
    %45 = vector.shape_cast %44 : vector<1x1x1x16xf32> to vector<1x1x16xf32>
    %46 = vector.broadcast %45 : vector<1x1x16xf32> to vector<4x4x16xf32>
    %47 = arith.mulf %43, %46 : vector<4x4x16xf32>
    %48 = vector.extract_strided_slice %1 {offsets = [1, 1, 0], sizes = [4, 4, 16], strides = [1, 1, 1]} : vector<5x5x16xf32> to vector<4x4x16xf32>
    %c8 = arith.constant 8 : index
    %c0_40 = arith.constant 0 : index
    %c0_41 = arith.constant 0 : index
    %c0_42 = arith.constant 0 : index
    %49 = vector.load %arg5[%c8, %c0_40, %c0_41, %c0_42] : memref<9x1x1x16xf32, #tpu.memory_space<vmem>>, vector<1x1x1x16xf32>
    %50 = vector.shape_cast %49 : vector<1x1x1x16xf32> to vector<1x1x16xf32>
    %51 = vector.broadcast %50 : vector<1x1x16xf32> to vector<4x4x16xf32>
    %52 = arith.mulf %48, %51 : vector<4x4x16xf32>
    %53 = arith.addf %12, %17 : vector<4x4x16xf32>
    %54 = arith.addf %22, %27 : vector<4x4x16xf32>
    %55 = arith.addf %32, %37 : vector<4x4x16xf32>
    %56 = arith.addf %42, %47 : vector<4x4x16xf32>
    %57 = arith.addf %53, %54 : vector<4x4x16xf32>
    %58 = arith.addf %55, %56 : vector<4x4x16xf32>
    %59 = arith.addf %57, %58 : vector<4x4x16xf32>
    %60 = arith.addf %59, %52 : vector<4x4x16xf32>
    %c0_43 = arith.constant 0 : index
    %c0_44 = arith.constant 0 : index
    %c0_45 = arith.constant 0 : index
    %61 = vector.load %arg6[%c0_43, %c0_44, %c0_45] : memref<1x1x16xf32, #tpu.memory_space<vmem>>, vector<1x1x16xf32>
    %62 = vector.broadcast %61 : vector<1x1x16xf32> to vector<4x4x16xf32>
    %63 = arith.mulf %60, %62 : vector<4x4x16xf32>
    %c0_46 = arith.constant 0 : index
    %c0_47 = arith.constant 0 : index
    %c0_48 = arith.constant 0 : index
    %64 = vector.load %arg7[%c0_46, %c0_47, %c0_48] : memref<1x1x16xf32, #tpu.memory_space<vmem>>, vector<1x1x16xf32>
    %65 = vector.broadcast %64 : vector<1x1x16xf32> to vector<4x4x16xf32>
    %66 = arith.addf %63, %65 : vector<4x4x16xf32>
    %c0_49 = arith.constant 0 : index
    %c0_50 = arith.constant 0 : index
    %c0_51 = arith.constant 0 : index
    %c0_52 = arith.constant 0 : index
    %67 = vector.load %arg8[%c0_49, %c0_50, %c0_51, %c0_52] : memref<1x4x4x16xf32, #tpu.memory_space<vmem>>, vector<1x4x4x16xf32>
    %68 = vector.shape_cast %67 : vector<1x4x4x16xf32> to vector<4x4x16xf32>
    %69 = vector.shape_cast %66 : vector<4x4x16xf32> to vector<1x4x4x16xf32>
    tpu.vector_store %arg8[%c0_49, %c0_50, %c0_51, %c0_52], %69 {strides = array<i32>} : memref<1x4x4x16xf32, #tpu.memory_space<vmem>>, vector<1x4x4x16xf32>,
    return
  }
  func.func @transform_0(%arg0: i32) -> (i32, i32, i32, i32) {
    %c0_i32 = arith.constant 0 : i32
    %c0_i32_0 = arith.constant 0 : i32
    %c0_i32_1 = arith.constant 0 : i32
    %c0_i32_2 = arith.constant 0 : i32
    return %arg0, %c0_i32, %c0_i32_0, %c0_i32_1 : i32, i32, i32, i32
  }
  func.func @transform_1(%arg0: i32) -> (i32, i32, i32, i32) {
    %c0_i32 = arith.constant 0 : i32
    %c0_i32_0 = arith.constant 0 : i32
    %c0_i32_1 = arith.constant 0 : i32
    %c0_i32_2 = arith.constant 0 : i32
    return %arg0, %c0_i32, %c0_i32_0, %c0_i32_1 : i32, i32, i32, i32
  }
  func.func @transform_2(%arg0: i32) -> (i32, i32, i32, i32) {
    %c0_i32 = arith.constant 0 : i32
    %c0_i32_0 = arith.constant 0 : i32
    %c0_i32_1 = arith.constant 0 : i32
    %c0_i32_2 = arith.constant 0 : i32
    return %arg0, %c0_i32, %c0_i32_0, %c0_i32_1 : i32, i32, i32, i32
  }
  func.func @transform_3(%arg0: i32) -> (i32, i32, i32, i32) {
    %c0_i32 = arith.constant 0 : i32
    %c0_i32_0 = arith.constant 0 : i32
    %c0_i32_1 = arith.constant 0 : i32
    %c0_i32_2 = arith.constant 0 : i32
    return %arg0, %c0_i32, %c0_i32_0, %c0_i32_1 : i32, i32, i32, i32
  }
  func.func @transform_4(%arg0: i32) -> (i32, i32, i32, i32) {
    %c0_i32 = arith.constant 0 : i32
    %c0_i32_0 = arith.constant 0 : i32
    %c0_i32_1 = arith.constant 0 : i32
    %c0_i32_2 = arith.constant 0 : i32
    %c0_i32_3 = arith.constant 0 : i32
    return %c0_i32, %c0_i32_0, %c0_i32_1, %c0_i32_2 : i32, i32, i32, i32
  }
  func.func @transform_5(%arg0: i32) -> (i32, i32, i32) {
    %c0_i32 = arith.constant 0 : i32
    %c0_i32_0 = arith.constant 0 : i32
    %c0_i32_1 = arith.constant 0 : i32
    %c0_i32_2 = arith.constant 0 : i32
    return %c0_i32, %c0_i32_0, %c0_i32_1 : i32, i32, i32
  }
  func.func @transform_6(%arg0: i32) -> (i32, i32, i32) {
    %c0_i32 = arith.constant 0 : i32
    %c0_i32_0 = arith.constant 0 : i32
    %c0_i32_1 = arith.constant 0 : i32
    %c0_i32_2 = arith.constant 0 : i32
    return %c0_i32, %c0_i32_0, %c0_i32_1 : i32, i32, i32
  }
  func.func @transform_7(%arg0: i32) -> (i32, i32, i32, i32) {
    %c0_i32 = arith.constant 0 : i32
    %c0_i32_0 = arith.constant 0 : i32
    %c0_i32_1 = arith.constant 0 : i32
    %c0_i32_2 = arith.constant 0 : i32
    return %arg0, %c0_i32, %c0_i32_0, %c0_i32_1 : i32, i32, i32, i32
  }
}

module attributes {stable_mosaic.version = 11 : i64} {
  func.func @_dw3x3_s1_bn_kernel(%arg0: i32, %arg1: memref<1x6x6x16xf32, #tpu.memory_space<vmem>>, %arg2: memref<9x1x1x16xf32, #tpu.memory_space<vmem>>, %arg3: memref<1x1x16xf32, #tpu.memory_space<vmem>>, %arg4: memref<1x1x16xf32, #tpu.memory_space<vmem>>, %arg5: memref<1x4x4x16xf32, #tpu.memory_space<vmem>>) attributes {dimension_semantics = [#tpu.dimension_semantics<parallel>], iteration_bounds = array<i64: 2>, scalar_prefetch = 0 : i64, scratch_operands = 0 : i64, tpu.core_type = #tpu.core_type<tc>, window_params = [{transform_indices = @transform_0, window_bounds = array<i64: 1, 6, 6, 16>}, {pipeline_mode = #tpu.pipeline_mode<synchronous>, transform_indices = @transform_1, window_bounds = array<i64: 9, 1, 1, 16>}, {pipeline_mode = #tpu.pipeline_mode<synchronous>, transform_indices = @transform_2, window_bounds = array<i64: 1, 1, 16>}, {pipeline_mode = #tpu.pipeline_mode<synchronous>, transform_indices = @transform_3, window_bounds = array<i64: 1, 1, 16>}, {transform_indices = @transform_4, window_bounds = array<i64: 1, 4, 4, 16>}]} {
    %c0 = arith.constant 0 : index
    %c0_0 = arith.constant 0 : index
    %c0_1 = arith.constant 0 : index
    %c0_2 = arith.constant 0 : index
    %0 = vector.load %arg1[%c0, %c0_0, %c0_1, %c0_2] : memref<1x6x6x16xf32, #tpu.memory_space<vmem>>, vector<1x6x6x16xf32>
    %1 = vector.shape_cast %0 : vector<1x6x6x16xf32> to vector<6x6x16xf32>
    %2 = vector.extract_strided_slice %1 {offsets = [0, 0, 0], sizes = [4, 4, 16], strides = [1, 1, 1]} : vector<6x6x16xf32> to vector<4x4x16xf32>
    %c0_3 = arith.constant 0 : index
    %c0_4 = arith.constant 0 : index
    %c0_5 = arith.constant 0 : index
    %c0_6 = arith.constant 0 : index
    %3 = vector.load %arg2[%c0_3, %c0_4, %c0_5, %c0_6] : memref<9x1x1x16xf32, #tpu.memory_space<vmem>>, vector<1x1x1x16xf32>
    %4 = vector.shape_cast %3 : vector<1x1x1x16xf32> to vector<1x1x16xf32>
    %5 = vector.broadcast %4 : vector<1x1x16xf32> to vector<4x4x16xf32>
    %6 = arith.mulf %2, %5 : vector<4x4x16xf32>
    %7 = vector.extract_strided_slice %1 {offsets = [0, 1, 0], sizes = [4, 4, 16], strides = [1, 1, 1]} : vector<6x6x16xf32> to vector<4x4x16xf32>
    %c1 = arith.constant 1 : index
    %c0_7 = arith.constant 0 : index
    %c0_8 = arith.constant 0 : index
    %c0_9 = arith.constant 0 : index
    %8 = vector.load %arg2[%c1, %c0_7, %c0_8, %c0_9] : memref<9x1x1x16xf32, #tpu.memory_space<vmem>>, vector<1x1x1x16xf32>
    %9 = vector.shape_cast %8 : vector<1x1x1x16xf32> to vector<1x1x16xf32>
    %10 = vector.broadcast %9 : vector<1x1x16xf32> to vector<4x4x16xf32>
    %11 = arith.mulf %7, %10 : vector<4x4x16xf32>
    %12 = vector.extract_strided_slice %1 {offsets = [0, 2, 0], sizes = [4, 4, 16], strides = [1, 1, 1]} : vector<6x6x16xf32> to vector<4x4x16xf32>
    %c2 = arith.constant 2 : index
    %c0_10 = arith.constant 0 : index
    %c0_11 = arith.constant 0 : index
    %c0_12 = arith.constant 0 : index
    %13 = vector.load %arg2[%c2, %c0_10, %c0_11, %c0_12] : memref<9x1x1x16xf32, #tpu.memory_space<vmem>>, vector<1x1x1x16xf32>
    %14 = vector.shape_cast %13 : vector<1x1x1x16xf32> to vector<1x1x16xf32>
    %15 = vector.broadcast %14 : vector<1x1x16xf32> to vector<4x4x16xf32>
    %16 = arith.mulf %12, %15 : vector<4x4x16xf32>
    %17 = vector.extract_strided_slice %1 {offsets = [1, 0, 0], sizes = [4, 4, 16], strides = [1, 1, 1]} : vector<6x6x16xf32> to vector<4x4x16xf32>
    %c3 = arith.constant 3 : index
    %c0_13 = arith.constant 0 : index
    %c0_14 = arith.constant 0 : index
    %c0_15 = arith.constant 0 : index
    %18 = vector.load %arg2[%c3, %c0_13, %c0_14, %c0_15] : memref<9x1x1x16xf32, #tpu.memory_space<vmem>>, vector<1x1x1x16xf32>
    %19 = vector.shape_cast %18 : vector<1x1x1x16xf32> to vector<1x1x16xf32>
    %20 = vector.broadcast %19 : vector<1x1x16xf32> to vector<4x4x16xf32>
    %21 = arith.mulf %17, %20 : vector<4x4x16xf32>
    %22 = vector.extract_strided_slice %1 {offsets = [1, 1, 0], sizes = [4, 4, 16], strides = [1, 1, 1]} : vector<6x6x16xf32> to vector<4x4x16xf32>
    %c4 = arith.constant 4 : index
    %c0_16 = arith.constant 0 : index
    %c0_17 = arith.constant 0 : index
    %c0_18 = arith.constant 0 : index
    %23 = vector.load %arg2[%c4, %c0_16, %c0_17, %c0_18] : memref<9x1x1x16xf32, #tpu.memory_space<vmem>>, vector<1x1x1x16xf32>
    %24 = vector.shape_cast %23 : vector<1x1x1x16xf32> to vector<1x1x16xf32>
    %25 = vector.broadcast %24 : vector<1x1x16xf32> to vector<4x4x16xf32>
    %26 = arith.mulf %22, %25 : vector<4x4x16xf32>
    %27 = vector.extract_strided_slice %1 {offsets = [1, 2, 0], sizes = [4, 4, 16], strides = [1, 1, 1]} : vector<6x6x16xf32> to vector<4x4x16xf32>
    %c5 = arith.constant 5 : index
    %c0_19 = arith.constant 0 : index
    %c0_20 = arith.constant 0 : index
    %c0_21 = arith.constant 0 : index
    %28 = vector.load %arg2[%c5, %c0_19, %c0_20, %c0_21] : memref<9x1x1x16xf32, #tpu.memory_space<vmem>>, vector<1x1x1x16xf32>
    %29 = vector.shape_cast %28 : vector<1x1x1x16xf32> to vector<1x1x16xf32>
    %30 = vector.broadcast %29 : vector<1x1x16xf32> to vector<4x4x16xf32>
    %31 = arith.mulf %27, %30 : vector<4x4x16xf32>
    %32 = vector.extract_strided_slice %1 {offsets = [2, 0, 0], sizes = [4, 4, 16], strides = [1, 1, 1]} : vector<6x6x16xf32> to vector<4x4x16xf32>
    %c6 = arith.constant 6 : index
    %c0_22 = arith.constant 0 : index
    %c0_23 = arith.constant 0 : index
    %c0_24 = arith.constant 0 : index
    %33 = vector.load %arg2[%c6, %c0_22, %c0_23, %c0_24] : memref<9x1x1x16xf32, #tpu.memory_space<vmem>>, vector<1x1x1x16xf32>
    %34 = vector.shape_cast %33 : vector<1x1x1x16xf32> to vector<1x1x16xf32>
    %35 = vector.broadcast %34 : vector<1x1x16xf32> to vector<4x4x16xf32>
    %36 = arith.mulf %32, %35 : vector<4x4x16xf32>
    %37 = vector.extract_strided_slice %1 {offsets = [2, 1, 0], sizes = [4, 4, 16], strides = [1, 1, 1]} : vector<6x6x16xf32> to vector<4x4x16xf32>
    %c7 = arith.constant 7 : index
    %c0_25 = arith.constant 0 : index
    %c0_26 = arith.constant 0 : index
    %c0_27 = arith.constant 0 : index
    %38 = vector.load %arg2[%c7, %c0_25, %c0_26, %c0_27] : memref<9x1x1x16xf32, #tpu.memory_space<vmem>>, vector<1x1x1x16xf32>
    %39 = vector.shape_cast %38 : vector<1x1x1x16xf32> to vector<1x1x16xf32>
    %40 = vector.broadcast %39 : vector<1x1x16xf32> to vector<4x4x16xf32>
    %41 = arith.mulf %37, %40 : vector<4x4x16xf32>
    %42 = vector.extract_strided_slice %1 {offsets = [2, 2, 0], sizes = [4, 4, 16], strides = [1, 1, 1]} : vector<6x6x16xf32> to vector<4x4x16xf32>
    %c8 = arith.constant 8 : index
    %c0_28 = arith.constant 0 : index
    %c0_29 = arith.constant 0 : index
    %c0_30 = arith.constant 0 : index
    %43 = vector.load %arg2[%c8, %c0_28, %c0_29, %c0_30] : memref<9x1x1x16xf32, #tpu.memory_space<vmem>>, vector<1x1x1x16xf32>
    %44 = vector.shape_cast %43 : vector<1x1x1x16xf32> to vector<1x1x16xf32>
    %45 = vector.broadcast %44 : vector<1x1x16xf32> to vector<4x4x16xf32>
    %46 = arith.mulf %42, %45 : vector<4x4x16xf32>
    %47 = arith.addf %6, %11 : vector<4x4x16xf32>
    %48 = arith.addf %16, %21 : vector<4x4x16xf32>
    %49 = arith.addf %26, %31 : vector<4x4x16xf32>
    %50 = arith.addf %36, %41 : vector<4x4x16xf32>
    %51 = arith.addf %47, %48 : vector<4x4x16xf32>
    %52 = arith.addf %49, %50 : vector<4x4x16xf32>
    %53 = arith.addf %51, %52 : vector<4x4x16xf32>
    %54 = arith.addf %53, %46 : vector<4x4x16xf32>
    %c0_31 = arith.constant 0 : index
    %c0_32 = arith.constant 0 : index
    %c0_33 = arith.constant 0 : index
    %55 = vector.load %arg3[%c0_31, %c0_32, %c0_33] : memref<1x1x16xf32, #tpu.memory_space<vmem>>, vector<1x1x16xf32>
    %56 = vector.broadcast %55 : vector<1x1x16xf32> to vector<4x4x16xf32>
    %57 = arith.mulf %54, %56 : vector<4x4x16xf32>
    %c0_34 = arith.constant 0 : index
    %c0_35 = arith.constant 0 : index
    %c0_36 = arith.constant 0 : index
    %58 = vector.load %arg4[%c0_34, %c0_35, %c0_36] : memref<1x1x16xf32, #tpu.memory_space<vmem>>, vector<1x1x16xf32>
    %59 = vector.broadcast %58 : vector<1x1x16xf32> to vector<4x4x16xf32>
    %60 = arith.addf %57, %59 : vector<4x4x16xf32>
    %c0_37 = arith.constant 0 : index
    %c0_38 = arith.constant 0 : index
    %c0_39 = arith.constant 0 : index
    %c0_40 = arith.constant 0 : index
    %61 = vector.load %arg5[%c0_37, %c0_38, %c0_39, %c0_40] : memref<1x4x4x16xf32, #tpu.memory_space<vmem>>, vector<1x4x4x16xf32>
    %62 = vector.shape_cast %61 : vector<1x4x4x16xf32> to vector<4x4x16xf32>
    %63 = vector.shape_cast %60 : vector<4x4x16xf32> to vector<1x4x4x16xf32>
    tpu.vector_store %arg5[%c0_37, %c0_38, %c0_39, %c0_40], %63 {strides = array<i32>} : memref<1x4x4x16xf32, #tpu.memory_space<vmem>>, vector<1x4x4x16xf32>,
    return
  }
  func.func @transform_0(%arg0: i32) -> (i32, i32, i32, i32) {
    %c0_i32 = arith.constant 0 : i32
    %c0_i32_0 = arith.constant 0 : i32
    %c0_i32_1 = arith.constant 0 : i32
    %c0_i32_2 = arith.constant 0 : i32
    return %arg0, %c0_i32, %c0_i32_0, %c0_i32_1 : i32, i32, i32, i32
  }
  func.func @transform_1(%arg0: i32) -> (i32, i32, i32, i32) {
    %c0_i32 = arith.constant 0 : i32
    %c0_i32_0 = arith.constant 0 : i32
    %c0_i32_1 = arith.constant 0 : i32
    %c0_i32_2 = arith.constant 0 : i32
    %c0_i32_3 = arith.constant 0 : i32
    return %c0_i32, %c0_i32_0, %c0_i32_1, %c0_i32_2 : i32, i32, i32, i32
  }
  func.func @transform_2(%arg0: i32) -> (i32, i32, i32) {
    %c0_i32 = arith.constant 0 : i32
    %c0_i32_0 = arith.constant 0 : i32
    %c0_i32_1 = arith.constant 0 : i32
    %c0_i32_2 = arith.constant 0 : i32
    return %c0_i32, %c0_i32_0, %c0_i32_1 : i32, i32, i32
  }
  func.func @transform_3(%arg0: i32) -> (i32, i32, i32) {
    %c0_i32 = arith.constant 0 : i32
    %c0_i32_0 = arith.constant 0 : i32
    %c0_i32_1 = arith.constant 0 : i32
    %c0_i32_2 = arith.constant 0 : i32
    return %c0_i32, %c0_i32_0, %c0_i32_1 : i32, i32, i32
  }
  func.func @transform_4(%arg0: i32) -> (i32, i32, i32, i32) {
    %c0_i32 = arith.constant 0 : i32
    %c0_i32_0 = arith.constant 0 : i32
    %c0_i32_1 = arith.constant 0 : i32
    %c0_i32_2 = arith.constant 0 : i32
    return %arg0, %c0_i32, %c0_i32_0, %c0_i32_1 : i32, i32, i32, i32
  }
}

module attributes {stable_mosaic.version = 11 : i64} {
  func.func @_dw3x3_s2_bn_kernel(%arg0: i32, %arg1: memref<1x3x3x32xf32, #tpu.memory_space<vmem>>, %arg2: memref<1x3x3x32xf32, #tpu.memory_space<vmem>>, %arg3: memref<1x3x3x32xf32, #tpu.memory_space<vmem>>, %arg4: memref<1x3x3x32xf32, #tpu.memory_space<vmem>>, %arg5: memref<9x1x1x32xf32, #tpu.memory_space<vmem>>, %arg6: memref<1x1x32xf32, #tpu.memory_space<vmem>>, %arg7: memref<1x1x32xf32, #tpu.memory_space<vmem>>, %arg8: memref<1x2x2x32xf32, #tpu.memory_space<vmem>>) attributes {dimension_semantics = [#tpu.dimension_semantics<parallel>], iteration_bounds = array<i64: 2>, scalar_prefetch = 0 : i64, scratch_operands = 0 : i64, tpu.core_type = #tpu.core_type<tc>, window_params = [{transform_indices = @transform_0, window_bounds = array<i64: 1, 3, 3, 32>}, {transform_indices = @transform_1, window_bounds = array<i64: 1, 3, 3, 32>}, {transform_indices = @transform_2, window_bounds = array<i64: 1, 3, 3, 32>}, {transform_indices = @transform_3, window_bounds = array<i64: 1, 3, 3, 32>}, {pipeline_mode = #tpu.pipeline_mode<synchronous>, transform_indices = @transform_4, window_bounds = array<i64: 9, 1, 1, 32>}, {pipeline_mode = #tpu.pipeline_mode<synchronous>, transform_indices = @transform_5, window_bounds = array<i64: 1, 1, 32>}, {pipeline_mode = #tpu.pipeline_mode<synchronous>, transform_indices = @transform_6, window_bounds = array<i64: 1, 1, 32>}, {transform_indices = @transform_7, window_bounds = array<i64: 1, 2, 2, 32>}]} {
    %c0 = arith.constant 0 : index
    %c0_0 = arith.constant 0 : index
    %c0_1 = arith.constant 0 : index
    %c0_2 = arith.constant 0 : index
    %0 = vector.load %arg1[%c0, %c0_0, %c0_1, %c0_2] : memref<1x3x3x32xf32, #tpu.memory_space<vmem>>, vector<1x3x3x32xf32>
    %1 = vector.shape_cast %0 : vector<1x3x3x32xf32> to vector<3x3x32xf32>
    %c0_3 = arith.constant 0 : index
    %c0_4 = arith.constant 0 : index
    %c0_5 = arith.constant 0 : index
    %c0_6 = arith.constant 0 : index
    %2 = vector.load %arg2[%c0_3, %c0_4, %c0_5, %c0_6] : memref<1x3x3x32xf32, #tpu.memory_space<vmem>>, vector<1x3x3x32xf32>
    %3 = vector.shape_cast %2 : vector<1x3x3x32xf32> to vector<3x3x32xf32>
    %c0_7 = arith.constant 0 : index
    %c0_8 = arith.constant 0 : index
    %c0_9 = arith.constant 0 : index
    %c0_10 = arith.constant 0 : index
    %4 = vector.load %arg3[%c0_7, %c0_8, %c0_9, %c0_10] : memref<1x3x3x32xf32, #tpu.memory_space<vmem>>, vector<1x3x3x32xf32>
    %5 = vector.shape_cast %4 : vector<1x3x3x32xf32> to vector<3x3x32xf32>
    %c0_11 = arith.constant 0 : index
    %c0_12 = arith.constant 0 : index
    %c0_13 = arith.constant 0 : index
    %c0_14 = arith.constant 0 : index
    %6 = vector.load %arg4[%c0_11, %c0_12, %c0_13, %c0_14] : memref<1x3x3x32xf32, #tpu.memory_space<vmem>>, vector<1x3x3x32xf32>
    %7 = vector.shape_cast %6 : vector<1x3x3x32xf32> to vector<3x3x32xf32>
    %8 = vector.extract_strided_slice %1 {offsets = [0, 0, 0], sizes = [2, 2, 32], strides = [1, 1, 1]} : vector<3x3x32xf32> to vector<2x2x32xf32>
    %c0_15 = arith.constant 0 : index
    %c0_16 = arith.constant 0 : index
    %c0_17 = arith.constant 0 : index
    %c0_18 = arith.constant 0 : index
    %9 = vector.load %arg5[%c0_15, %c0_16, %c0_17, %c0_18] : memref<9x1x1x32xf32, #tpu.memory_space<vmem>>, vector<1x1x1x32xf32>
    %10 = vector.shape_cast %9 : vector<1x1x1x32xf32> to vector<1x1x32xf32>
    %11 = vector.broadcast %10 : vector<1x1x32xf32> to vector<2x2x32xf32>
    %12 = arith.mulf %8, %11 : vector<2x2x32xf32>
    %13 = vector.extract_strided_slice %3 {offsets = [0, 0, 0], sizes = [2, 2, 32], strides = [1, 1, 1]} : vector<3x3x32xf32> to vector<2x2x32xf32>
    %c1 = arith.constant 1 : index
    %c0_19 = arith.constant 0 : index
    %c0_20 = arith.constant 0 : index
    %c0_21 = arith.constant 0 : index
    %14 = vector.load %arg5[%c1, %c0_19, %c0_20, %c0_21] : memref<9x1x1x32xf32, #tpu.memory_space<vmem>>, vector<1x1x1x32xf32>
    %15 = vector.shape_cast %14 : vector<1x1x1x32xf32> to vector<1x1x32xf32>
    %16 = vector.broadcast %15 : vector<1x1x32xf32> to vector<2x2x32xf32>
    %17 = arith.mulf %13, %16 : vector<2x2x32xf32>
    %18 = vector.extract_strided_slice %1 {offsets = [0, 1, 0], sizes = [2, 2, 32], strides = [1, 1, 1]} : vector<3x3x32xf32> to vector<2x2x32xf32>
    %c2 = arith.constant 2 : index
    %c0_22 = arith.constant 0 : index
    %c0_23 = arith.constant 0 : index
    %c0_24 = arith.constant 0 : index
    %19 = vector.load %arg5[%c2, %c0_22, %c0_23, %c0_24] : memref<9x1x1x32xf32, #tpu.memory_space<vmem>>, vector<1x1x1x32xf32>
    %20 = vector.shape_cast %19 : vector<1x1x1x32xf32> to vector<1x1x32xf32>
    %21 = vector.broadcast %20 : vector<1x1x32xf32> to vector<2x2x32xf32>
    %22 = arith.mulf %18, %21 : vector<2x2x32xf32>
    %23 = vector.extract_strided_slice %5 {offsets = [0, 0, 0], sizes = [2, 2, 32], strides = [1, 1, 1]} : vector<3x3x32xf32> to vector<2x2x32xf32>
    %c3 = arith.constant 3 : index
    %c0_25 = arith.constant 0 : index
    %c0_26 = arith.constant 0 : index
    %c0_27 = arith.constant 0 : index
    %24 = vector.load %arg5[%c3, %c0_25, %c0_26, %c0_27] : memref<9x1x1x32xf32, #tpu.memory_space<vmem>>, vector<1x1x1x32xf32>
    %25 = vector.shape_cast %24 : vector<1x1x1x32xf32> to vector<1x1x32xf32>
    %26 = vector.broadcast %25 : vector<1x1x32xf32> to vector<2x2x32xf32>
    %27 = arith.mulf %23, %26 : vector<2x2x32xf32>
    %28 = vector.extract_strided_slice %7 {offsets = [0, 0, 0], sizes = [2, 2, 32], strides = [1, 1, 1]} : vector<3x3x32xf32> to vector<2x2x32xf32>
    %c4 = arith.constant 4 : index
    %c0_28 = arith.constant 0 : index
    %c0_29 = arith.constant 0 : index
    %c0_30 = arith.constant 0 : index
    %29 = vector.load %arg5[%c4, %c0_28, %c0_29, %c0_30] : memref<9x1x1x32xf32, #tpu.memory_space<vmem>>, vector<1x1x1x32xf32>
    %30 = vector.shape_cast %29 : vector<1x1x1x32xf32> to vector<1x1x32xf32>
    %31 = vector.broadcast %30 : vector<1x1x32xf32> to vector<2x2x32xf32>
    %32 = arith.mulf %28, %31 : vector<2x2x32xf32>
    %33 = vector.extract_strided_slice %5 {offsets = [0, 1, 0], sizes = [2, 2, 32], strides = [1, 1, 1]} : vector<3x3x32xf32> to vector<2x2x32xf32>
    %c5 = arith.constant 5 : index
    %c0_31 = arith.constant 0 : index
    %c0_32 = arith.constant 0 : index
    %c0_33 = arith.constant 0 : index
    %34 = vector.load %arg5[%c5, %c0_31, %c0_32, %c0_33] : memref<9x1x1x32xf32, #tpu.memory_space<vmem>>, vector<1x1x1x32xf32>
    %35 = vector.shape_cast %34 : vector<1x1x1x32xf32> to vector<1x1x32xf32>
    %36 = vector.broadcast %35 : vector<1x1x32xf32> to vector<2x2x32xf32>
    %37 = arith.mulf %33, %36 : vector<2x2x32xf32>
    %38 = vector.extract_strided_slice %1 {offsets = [1, 0, 0], sizes = [2, 2, 32], strides = [1, 1, 1]} : vector<3x3x32xf32> to vector<2x2x32xf32>
    %c6 = arith.constant 6 : index
    %c0_34 = arith.constant 0 : index
    %c0_35 = arith.constant 0 : index
    %c0_36 = arith.constant 0 : index
    %39 = vector.load %arg5[%c6, %c0_34, %c0_35, %c0_36] : memref<9x1x1x32xf32, #tpu.memory_space<vmem>>, vector<1x1x1x32xf32>
    %40 = vector.shape_cast %39 : vector<1x1x1x32xf32> to vector<1x1x32xf32>
    %41 = vector.broadcast %40 : vector<1x1x32xf32> to vector<2x2x32xf32>
    %42 = arith.mulf %38, %41 : vector<2x2x32xf32>
    %43 = vector.extract_strided_slice %3 {offsets = [1, 0, 0], sizes = [2, 2, 32], strides = [1, 1, 1]} : vector<3x3x32xf32> to vector<2x2x32xf32>
    %c7 = arith.constant 7 : index
    %c0_37 = arith.constant 0 : index
    %c0_38 = arith.constant 0 : index
    %c0_39 = arith.constant 0 : index
    %44 = vector.load %arg5[%c7, %c0_37, %c0_38, %c0_39] : memref<9x1x1x32xf32, #tpu.memory_space<vmem>>, vector<1x1x1x32xf32>
    %45 = vector.shape_cast %44 : vector<1x1x1x32xf32> to vector<1x1x32xf32>
    %46 = vector.broadcast %45 : vector<1x1x32xf32> to vector<2x2x32xf32>
    %47 = arith.mulf %43, %46 : vector<2x2x32xf32>
    %48 = vector.extract_strided_slice %1 {offsets = [1, 1, 0], sizes = [2, 2, 32], strides = [1, 1, 1]} : vector<3x3x32xf32> to vector<2x2x32xf32>
    %c8 = arith.constant 8 : index
    %c0_40 = arith.constant 0 : index
    %c0_41 = arith.constant 0 : index
    %c0_42 = arith.constant 0 : index
    %49 = vector.load %arg5[%c8, %c0_40, %c0_41, %c0_42] : memref<9x1x1x32xf32, #tpu.memory_space<vmem>>, vector<1x1x1x32xf32>
    %50 = vector.shape_cast %49 : vector<1x1x1x32xf32> to vector<1x1x32xf32>
    %51 = vector.broadcast %50 : vector<1x1x32xf32> to vector<2x2x32xf32>
    %52 = arith.mulf %48, %51 : vector<2x2x32xf32>
    %53 = arith.addf %12, %17 : vector<2x2x32xf32>
    %54 = arith.addf %22, %27 : vector<2x2x32xf32>
    %55 = arith.addf %32, %37 : vector<2x2x32xf32>
    %56 = arith.addf %42, %47 : vector<2x2x32xf32>
    %57 = arith.addf %53, %54 : vector<2x2x32xf32>
    %58 = arith.addf %55, %56 : vector<2x2x32xf32>
    %59 = arith.addf %57, %58 : vector<2x2x32xf32>
    %60 = arith.addf %59, %52 : vector<2x2x32xf32>
    %c0_43 = arith.constant 0 : index
    %c0_44 = arith.constant 0 : index
    %c0_45 = arith.constant 0 : index
    %61 = vector.load %arg6[%c0_43, %c0_44, %c0_45] : memref<1x1x32xf32, #tpu.memory_space<vmem>>, vector<1x1x32xf32>
    %62 = vector.broadcast %61 : vector<1x1x32xf32> to vector<2x2x32xf32>
    %63 = arith.mulf %60, %62 : vector<2x2x32xf32>
    %c0_46 = arith.constant 0 : index
    %c0_47 = arith.constant 0 : index
    %c0_48 = arith.constant 0 : index
    %64 = vector.load %arg7[%c0_46, %c0_47, %c0_48] : memref<1x1x32xf32, #tpu.memory_space<vmem>>, vector<1x1x32xf32>
    %65 = vector.broadcast %64 : vector<1x1x32xf32> to vector<2x2x32xf32>
    %66 = arith.addf %63, %65 : vector<2x2x32xf32>
    %c0_49 = arith.constant 0 : index
    %c0_50 = arith.constant 0 : index
    %c0_51 = arith.constant 0 : index
    %c0_52 = arith.constant 0 : index
    %67 = vector.load %arg8[%c0_49, %c0_50, %c0_51, %c0_52] : memref<1x2x2x32xf32, #tpu.memory_space<vmem>>, vector<1x2x2x32xf32>
    %68 = vector.shape_cast %67 : vector<1x2x2x32xf32> to vector<2x2x32xf32>
    %69 = vector.shape_cast %66 : vector<2x2x32xf32> to vector<1x2x2x32xf32>
    tpu.vector_store %arg8[%c0_49, %c0_50, %c0_51, %c0_52], %69 {strides = array<i32>} : memref<1x2x2x32xf32, #tpu.memory_space<vmem>>, vector<1x2x2x32xf32>,
    return
  }
  func.func @transform_0(%arg0: i32) -> (i32, i32, i32, i32) {
    %c0_i32 = arith.constant 0 : i32
    %c0_i32_0 = arith.constant 0 : i32
    %c0_i32_1 = arith.constant 0 : i32
    %c0_i32_2 = arith.constant 0 : i32
    return %arg0, %c0_i32, %c0_i32_0, %c0_i32_1 : i32, i32, i32, i32
  }
  func.func @transform_1(%arg0: i32) -> (i32, i32, i32, i32) {
    %c0_i32 = arith.constant 0 : i32
    %c0_i32_0 = arith.constant 0 : i32
    %c0_i32_1 = arith.constant 0 : i32
    %c0_i32_2 = arith.constant 0 : i32
    return %arg0, %c0_i32, %c0_i32_0, %c0_i32_1 : i32, i32, i32, i32
  }
  func.func @transform_2(%arg0: i32) -> (i32, i32, i32, i32) {
    %c0_i32 = arith.constant 0 : i32
    %c0_i32_0 = arith.constant 0 : i32
    %c0_i32_1 = arith.constant 0 : i32
    %c0_i32_2 = arith.constant 0 : i32
    return %arg0, %c0_i32, %c0_i32_0, %c0_i32_1 : i32, i32, i32, i32
  }
  func.func @transform_3(%arg0: i32) -> (i32, i32, i32, i32) {
    %c0_i32 = arith.constant 0 : i32
    %c0_i32_0 = arith.constant 0 : i32
    %c0_i32_1 = arith.constant 0 : i32
    %c0_i32_2 = arith.constant 0 : i32
    return %arg0, %c0_i32, %c0_i32_0, %c0_i32_1 : i32, i32, i32, i32
  }
  func.func @transform_4(%arg0: i32) -> (i32, i32, i32, i32) {
    %c0_i32 = arith.constant 0 : i32
    %c0_i32_0 = arith.constant 0 : i32
    %c0_i32_1 = arith.constant 0 : i32
    %c0_i32_2 = arith.constant 0 : i32
    %c0_i32_3 = arith.constant 0 : i32
    return %c0_i32, %c0_i32_0, %c0_i32_1, %c0_i32_2 : i32, i32, i32, i32
  }
  func.func @transform_5(%arg0: i32) -> (i32, i32, i32) {
    %c0_i32 = arith.constant 0 : i32
    %c0_i32_0 = arith.constant 0 : i32
    %c0_i32_1 = arith.constant 0 : i32
    %c0_i32_2 = arith.constant 0 : i32
    return %c0_i32, %c0_i32_0, %c0_i32_1 : i32, i32, i32
  }
  func.func @transform_6(%arg0: i32) -> (i32, i32, i32) {
    %c0_i32 = arith.constant 0 : i32
    %c0_i32_0 = arith.constant 0 : i32
    %c0_i32_1 = arith.constant 0 : i32
    %c0_i32_2 = arith.constant 0 : i32
    return %c0_i32, %c0_i32_0, %c0_i32_1 : i32, i32, i32
  }
  func.func @transform_7(%arg0: i32) -> (i32, i32, i32, i32) {
    %c0_i32 = arith.constant 0 : i32
    %c0_i32_0 = arith.constant 0 : i32
    %c0_i32_1 = arith.constant 0 : i32
    %c0_i32_2 = arith.constant 0 : i32
    return %arg0, %c0_i32, %c0_i32_0, %c0_i32_1 : i32, i32, i32, i32
  }
}

module attributes {stable_mosaic.version = 11 : i64} {
  func.func @_matmul_bn_act_kernel(%arg0: i32, %arg1: memref<8x32xf32, #tpu.memory_space<vmem>>, %arg2: memref<32x32xbf16, #tpu.memory_space<vmem>>, %arg3: memref<1x32xf32, #tpu.memory_space<vmem>>, %arg4: memref<1x32xf32, #tpu.memory_space<vmem>>, %arg5: memref<8x32xf32, #tpu.memory_space<vmem>>) attributes {dimension_semantics = [#tpu.dimension_semantics<parallel>], iteration_bounds = array<i64: 1>, scalar_prefetch = 0 : i64, scratch_operands = 0 : i64, tpu.core_type = #tpu.core_type<tc>, window_params = [{transform_indices = @transform_0, window_bounds = array<i64: 8, 32>}, {pipeline_mode = #tpu.pipeline_mode<synchronous>, transform_indices = @transform_1, window_bounds = array<i64: 32, 32>}, {pipeline_mode = #tpu.pipeline_mode<synchronous>, transform_indices = @transform_2, window_bounds = array<i64: 1, 32>}, {pipeline_mode = #tpu.pipeline_mode<synchronous>, transform_indices = @transform_3, window_bounds = array<i64: 1, 32>}, {transform_indices = @transform_4, window_bounds = array<i64: 8, 32>}]} {
    %c0 = arith.constant 0 : index
    %c0_0 = arith.constant 0 : index
    %0 = vector.load %arg1[%c0, %c0_0] : memref<8x32xf32, #tpu.memory_space<vmem>>, vector<8x32xf32>
    %1 = arith.truncf %0 : vector<8x32xf32> to vector<8x32xbf16>
    %c0_1 = arith.constant 0 : index
    %c0_2 = arith.constant 0 : index
    %2 = vector.load %arg2[%c0_1, %c0_2] : memref<32x32xbf16, #tpu.memory_space<vmem>>, vector<32x32xbf16>
    %cst = arith.constant dense<0.000000e+00> : vector<8x32xf32>
    %3 = tpu.matmul %1, %2, %cst {dimension_numbers = #tpu.dot_dimension_numbers<[1], [0], [0], [1], [0, 0, 1, 1], [], []>} : vector<8x32xbf16>, vector<32x32xbf16>, vector<8x32xf32> -> vector<8x32xf32>
    %c0_3 = arith.constant 0 : index
    %c0_4 = arith.constant 0 : index
    %4 = vector.load %arg3[%c0_3, %c0_4] : memref<1x32xf32, #tpu.memory_space<vmem>>, vector<1x32xf32>
    %5 = vector.broadcast %4 : vector<1x32xf32> to vector<8x32xf32>
    %6 = arith.mulf %3, %5 : vector<8x32xf32>
    %c0_5 = arith.constant 0 : index
    %c0_6 = arith.constant 0 : index
    %7 = vector.load %arg4[%c0_5, %c0_6] : memref<1x32xf32, #tpu.memory_space<vmem>>, vector<1x32xf32>
    %8 = vector.broadcast %7 : vector<1x32xf32> to vector<8x32xf32>
    %9 = arith.addf %6, %8 : vector<8x32xf32>
    %cst_7 = arith.constant 0.000000e+00 : f32
    %10 = vector.broadcast %cst_7 : f32 to vector<8x32xf32>
    %11 = arith.maximumf %9, %10 : vector<8x32xf32>
    %c0_8 = arith.constant 0 : index
    %c0_9 = arith.constant 0 : index
    %12 = vector.load %arg5[%c0_8, %c0_9] : memref<8x32xf32, #tpu.memory_space<vmem>>, vector<8x32xf32>
    tpu.vector_store %arg5[%c0_8, %c0_9], %11 {strides = array<i32>} : memref<8x32xf32, #tpu.memory_space<vmem>>, vector<8x32xf32>,
    return
  }
  func.func @transform_0(%arg0: i32) -> (i32, i32) {
    %c0_i32 = arith.constant 0 : i32
    %c0_i32_0 = arith.constant 0 : i32
    return %arg0, %c0_i32 : i32, i32
  }
  func.func @transform_1(%arg0: i32) -> (i32, i32) {
    %c0_i32 = arith.constant 0 : i32
    %c0_i32_0 = arith.constant 0 : i32
    %c0_i32_1 = arith.constant 0 : i32
    return %c0_i32, %c0_i32_0 : i32, i32
  }
  func.func @transform_2(%arg0: i32) -> (i32, i32) {
    %c0_i32 = arith.constant 0 : i32
    %c0_i32_0 = arith.constant 0 : i32
    %c0_i32_1 = arith.constant 0 : i32
    return %c0_i32, %c0_i32_0 : i32, i32
  }
  func.func @transform_3(%arg0: i32) -> (i32, i32) {
    %c0_i32 = arith.constant 0 : i32
    %c0_i32_0 = arith.constant 0 : i32
    %c0_i32_1 = arith.constant 0 : i32
    return %c0_i32, %c0_i32_0 : i32, i32
  }
  func.func @transform_4(%arg0: i32) -> (i32, i32) {
    %c0_i32 = arith.constant 0 : i32
    %c0_i32_0 = arith.constant 0 : i32
    return %arg0, %c0_i32 : i32, i32
  }
}

module attributes {stable_mosaic.version = 11 : i64} {
  func.func @_matmul_bn_act_kernel(%arg0: i32, %arg1: memref<32x32xf32, #tpu.memory_space<vmem>>, %arg2: memref<32x32xbf16, #tpu.memory_space<vmem>>, %arg3: memref<1x32xf32, #tpu.memory_space<vmem>>, %arg4: memref<1x32xf32, #tpu.memory_space<vmem>>, %arg5: memref<32x32xf32, #tpu.memory_space<vmem>>) attributes {dimension_semantics = [#tpu.dimension_semantics<parallel>], iteration_bounds = array<i64: 1>, scalar_prefetch = 0 : i64, scratch_operands = 0 : i64, tpu.core_type = #tpu.core_type<tc>, window_params = [{transform_indices = @transform_0, window_bounds = array<i64: 32, 32>}, {pipeline_mode = #tpu.pipeline_mode<synchronous>, transform_indices = @transform_1, window_bounds = array<i64: 32, 32>}, {pipeline_mode = #tpu.pipeline_mode<synchronous>, transform_indices = @transform_2, window_bounds = array<i64: 1, 32>}, {pipeline_mode = #tpu.pipeline_mode<synchronous>, transform_indices = @transform_3, window_bounds = array<i64: 1, 32>}, {transform_indices = @transform_4, window_bounds = array<i64: 32, 32>}]} {
    %c0 = arith.constant 0 : index
    %c0_0 = arith.constant 0 : index
    %0 = vector.load %arg1[%c0, %c0_0] : memref<32x32xf32, #tpu.memory_space<vmem>>, vector<32x32xf32>
    %1 = arith.truncf %0 : vector<32x32xf32> to vector<32x32xbf16>
    %c0_1 = arith.constant 0 : index
    %c0_2 = arith.constant 0 : index
    %2 = vector.load %arg2[%c0_1, %c0_2] : memref<32x32xbf16, #tpu.memory_space<vmem>>, vector<32x32xbf16>
    %cst = arith.constant dense<0.000000e+00> : vector<32x32xf32>
    %3 = tpu.matmul %1, %2, %cst {dimension_numbers = #tpu.dot_dimension_numbers<[1], [0], [0], [1], [0, 0, 1, 1], [], []>} : vector<32x32xbf16>, vector<32x32xbf16>, vector<32x32xf32> -> vector<32x32xf32>
    %c0_3 = arith.constant 0 : index
    %c0_4 = arith.constant 0 : index
    %4 = vector.load %arg3[%c0_3, %c0_4] : memref<1x32xf32, #tpu.memory_space<vmem>>, vector<1x32xf32>
    %5 = vector.broadcast %4 : vector<1x32xf32> to vector<32x32xf32>
    %6 = arith.mulf %3, %5 : vector<32x32xf32>
    %c0_5 = arith.constant 0 : index
    %c0_6 = arith.constant 0 : index
    %7 = vector.load %arg4[%c0_5, %c0_6] : memref<1x32xf32, #tpu.memory_space<vmem>>, vector<1x32xf32>
    %8 = vector.broadcast %7 : vector<1x32xf32> to vector<32x32xf32>
    %9 = arith.addf %6, %8 : vector<32x32xf32>
    %cst_7 = arith.constant 0.000000e+00 : f32
    %10 = vector.broadcast %cst_7 : f32 to vector<32x32xf32>
    %11 = arith.maximumf %9, %10 : vector<32x32xf32>
    %c0_8 = arith.constant 0 : index
    %c0_9 = arith.constant 0 : index
    %12 = vector.load %arg5[%c0_8, %c0_9] : memref<32x32xf32, #tpu.memory_space<vmem>>, vector<32x32xf32>
    tpu.vector_store %arg5[%c0_8, %c0_9], %11 {strides = array<i32>} : memref<32x32xf32, #tpu.memory_space<vmem>>, vector<32x32xf32>,
    return
  }
  func.func @transform_0(%arg0: i32) -> (i32, i32) {
    %c0_i32 = arith.constant 0 : i32
    %c0_i32_0 = arith.constant 0 : i32
    return %arg0, %c0_i32 : i32, i32
  }
  func.func @transform_1(%arg0: i32) -> (i32, i32) {
    %c0_i32 = arith.constant 0 : i32
    %c0_i32_0 = arith.constant 0 : i32
    %c0_i32_1 = arith.constant 0 : i32
    return %c0_i32, %c0_i32_0 : i32, i32
  }
  func.func @transform_2(%arg0: i32) -> (i32, i32) {
    %c0_i32 = arith.constant 0 : i32
    %c0_i32_0 = arith.constant 0 : i32
    %c0_i32_1 = arith.constant 0 : i32
    return %c0_i32, %c0_i32_0 : i32, i32
  }
  func.func @transform_3(%arg0: i32) -> (i32, i32) {
    %c0_i32 = arith.constant 0 : i32
    %c0_i32_0 = arith.constant 0 : i32
    %c0_i32_1 = arith.constant 0 : i32
    return %c0_i32, %c0_i32_0 : i32, i32
  }
  func.func @transform_4(%arg0: i32) -> (i32, i32) {
    %c0_i32 = arith.constant 0 : i32
    %c0_i32_0 = arith.constant 0 : i32
    return %arg0, %c0_i32 : i32, i32
  }
}

module attributes {stable_mosaic.version = 11 : i64} {
  func.func @_dw3x3_s1_bn_kernel(%arg0: i32, %arg1: memref<1x4x4x32xf32, #tpu.memory_space<vmem>>, %arg2: memref<9x1x1x32xf32, #tpu.memory_space<vmem>>, %arg3: memref<1x1x32xf32, #tpu.memory_space<vmem>>, %arg4: memref<1x1x32xf32, #tpu.memory_space<vmem>>, %arg5: memref<1x2x2x32xf32, #tpu.memory_space<vmem>>) attributes {dimension_semantics = [#tpu.dimension_semantics<parallel>], iteration_bounds = array<i64: 2>, scalar_prefetch = 0 : i64, scratch_operands = 0 : i64, tpu.core_type = #tpu.core_type<tc>, window_params = [{transform_indices = @transform_0, window_bounds = array<i64: 1, 4, 4, 32>}, {pipeline_mode = #tpu.pipeline_mode<synchronous>, transform_indices = @transform_1, window_bounds = array<i64: 9, 1, 1, 32>}, {pipeline_mode = #tpu.pipeline_mode<synchronous>, transform_indices = @transform_2, window_bounds = array<i64: 1, 1, 32>}, {pipeline_mode = #tpu.pipeline_mode<synchronous>, transform_indices = @transform_3, window_bounds = array<i64: 1, 1, 32>}, {transform_indices = @transform_4, window_bounds = array<i64: 1, 2, 2, 32>}]} {
    %c0 = arith.constant 0 : index
    %c0_0 = arith.constant 0 : index
    %c0_1 = arith.constant 0 : index
    %c0_2 = arith.constant 0 : index
    %0 = vector.load %arg1[%c0, %c0_0, %c0_1, %c0_2] : memref<1x4x4x32xf32, #tpu.memory_space<vmem>>, vector<1x4x4x32xf32>
    %1 = vector.shape_cast %0 : vector<1x4x4x32xf32> to vector<4x4x32xf32>
    %2 = vector.extract_strided_slice %1 {offsets = [0, 0, 0], sizes = [2, 2, 32], strides = [1, 1, 1]} : vector<4x4x32xf32> to vector<2x2x32xf32>
    %c0_3 = arith.constant 0 : index
    %c0_4 = arith.constant 0 : index
    %c0_5 = arith.constant 0 : index
    %c0_6 = arith.constant 0 : index
    %3 = vector.load %arg2[%c0_3, %c0_4, %c0_5, %c0_6] : memref<9x1x1x32xf32, #tpu.memory_space<vmem>>, vector<1x1x1x32xf32>
    %4 = vector.shape_cast %3 : vector<1x1x1x32xf32> to vector<1x1x32xf32>
    %5 = vector.broadcast %4 : vector<1x1x32xf32> to vector<2x2x32xf32>
    %6 = arith.mulf %2, %5 : vector<2x2x32xf32>
    %7 = vector.extract_strided_slice %1 {offsets = [0, 1, 0], sizes = [2, 2, 32], strides = [1, 1, 1]} : vector<4x4x32xf32> to vector<2x2x32xf32>
    %c1 = arith.constant 1 : index
    %c0_7 = arith.constant 0 : index
    %c0_8 = arith.constant 0 : index
    %c0_9 = arith.constant 0 : index
    %8 = vector.load %arg2[%c1, %c0_7, %c0_8, %c0_9] : memref<9x1x1x32xf32, #tpu.memory_space<vmem>>, vector<1x1x1x32xf32>
    %9 = vector.shape_cast %8 : vector<1x1x1x32xf32> to vector<1x1x32xf32>
    %10 = vector.broadcast %9 : vector<1x1x32xf32> to vector<2x2x32xf32>
    %11 = arith.mulf %7, %10 : vector<2x2x32xf32>
    %12 = vector.extract_strided_slice %1 {offsets = [0, 2, 0], sizes = [2, 2, 32], strides = [1, 1, 1]} : vector<4x4x32xf32> to vector<2x2x32xf32>
    %c2 = arith.constant 2 : index
    %c0_10 = arith.constant 0 : index
    %c0_11 = arith.constant 0 : index
    %c0_12 = arith.constant 0 : index
    %13 = vector.load %arg2[%c2, %c0_10, %c0_11, %c0_12] : memref<9x1x1x32xf32, #tpu.memory_space<vmem>>, vector<1x1x1x32xf32>
    %14 = vector.shape_cast %13 : vector<1x1x1x32xf32> to vector<1x1x32xf32>
    %15 = vector.broadcast %14 : vector<1x1x32xf32> to vector<2x2x32xf32>
    %16 = arith.mulf %12, %15 : vector<2x2x32xf32>
    %17 = vector.extract_strided_slice %1 {offsets = [1, 0, 0], sizes = [2, 2, 32], strides = [1, 1, 1]} : vector<4x4x32xf32> to vector<2x2x32xf32>
    %c3 = arith.constant 3 : index
    %c0_13 = arith.constant 0 : index
    %c0_14 = arith.constant 0 : index
    %c0_15 = arith.constant 0 : index
    %18 = vector.load %arg2[%c3, %c0_13, %c0_14, %c0_15] : memref<9x1x1x32xf32, #tpu.memory_space<vmem>>, vector<1x1x1x32xf32>
    %19 = vector.shape_cast %18 : vector<1x1x1x32xf32> to vector<1x1x32xf32>
    %20 = vector.broadcast %19 : vector<1x1x32xf32> to vector<2x2x32xf32>
    %21 = arith.mulf %17, %20 : vector<2x2x32xf32>
    %22 = vector.extract_strided_slice %1 {offsets = [1, 1, 0], sizes = [2, 2, 32], strides = [1, 1, 1]} : vector<4x4x32xf32> to vector<2x2x32xf32>
    %c4 = arith.constant 4 : index
    %c0_16 = arith.constant 0 : index
    %c0_17 = arith.constant 0 : index
    %c0_18 = arith.constant 0 : index
    %23 = vector.load %arg2[%c4, %c0_16, %c0_17, %c0_18] : memref<9x1x1x32xf32, #tpu.memory_space<vmem>>, vector<1x1x1x32xf32>
    %24 = vector.shape_cast %23 : vector<1x1x1x32xf32> to vector<1x1x32xf32>
    %25 = vector.broadcast %24 : vector<1x1x32xf32> to vector<2x2x32xf32>
    %26 = arith.mulf %22, %25 : vector<2x2x32xf32>
    %27 = vector.extract_strided_slice %1 {offsets = [1, 2, 0], sizes = [2, 2, 32], strides = [1, 1, 1]} : vector<4x4x32xf32> to vector<2x2x32xf32>
    %c5 = arith.constant 5 : index
    %c0_19 = arith.constant 0 : index
    %c0_20 = arith.constant 0 : index
    %c0_21 = arith.constant 0 : index
    %28 = vector.load %arg2[%c5, %c0_19, %c0_20, %c0_21] : memref<9x1x1x32xf32, #tpu.memory_space<vmem>>, vector<1x1x1x32xf32>
    %29 = vector.shape_cast %28 : vector<1x1x1x32xf32> to vector<1x1x32xf32>
    %30 = vector.broadcast %29 : vector<1x1x32xf32> to vector<2x2x32xf32>
    %31 = arith.mulf %27, %30 : vector<2x2x32xf32>
    %32 = vector.extract_strided_slice %1 {offsets = [2, 0, 0], sizes = [2, 2, 32], strides = [1, 1, 1]} : vector<4x4x32xf32> to vector<2x2x32xf32>
    %c6 = arith.constant 6 : index
    %c0_22 = arith.constant 0 : index
    %c0_23 = arith.constant 0 : index
    %c0_24 = arith.constant 0 : index
    %33 = vector.load %arg2[%c6, %c0_22, %c0_23, %c0_24] : memref<9x1x1x32xf32, #tpu.memory_space<vmem>>, vector<1x1x1x32xf32>
    %34 = vector.shape_cast %33 : vector<1x1x1x32xf32> to vector<1x1x32xf32>
    %35 = vector.broadcast %34 : vector<1x1x32xf32> to vector<2x2x32xf32>
    %36 = arith.mulf %32, %35 : vector<2x2x32xf32>
    %37 = vector.extract_strided_slice %1 {offsets = [2, 1, 0], sizes = [2, 2, 32], strides = [1, 1, 1]} : vector<4x4x32xf32> to vector<2x2x32xf32>
    %c7 = arith.constant 7 : index
    %c0_25 = arith.constant 0 : index
    %c0_26 = arith.constant 0 : index
    %c0_27 = arith.constant 0 : index
    %38 = vector.load %arg2[%c7, %c0_25, %c0_26, %c0_27] : memref<9x1x1x32xf32, #tpu.memory_space<vmem>>, vector<1x1x1x32xf32>
    %39 = vector.shape_cast %38 : vector<1x1x1x32xf32> to vector<1x1x32xf32>
    %40 = vector.broadcast %39 : vector<1x1x32xf32> to vector<2x2x32xf32>
    %41 = arith.mulf %37, %40 : vector<2x2x32xf32>
    %42 = vector.extract_strided_slice %1 {offsets = [2, 2, 0], sizes = [2, 2, 32], strides = [1, 1, 1]} : vector<4x4x32xf32> to vector<2x2x32xf32>
    %c8 = arith.constant 8 : index
    %c0_28 = arith.constant 0 : index
    %c0_29 = arith.constant 0 : index
    %c0_30 = arith.constant 0 : index
    %43 = vector.load %arg2[%c8, %c0_28, %c0_29, %c0_30] : memref<9x1x1x32xf32, #tpu.memory_space<vmem>>, vector<1x1x1x32xf32>
    %44 = vector.shape_cast %43 : vector<1x1x1x32xf32> to vector<1x1x32xf32>
    %45 = vector.broadcast %44 : vector<1x1x32xf32> to vector<2x2x32xf32>
    %46 = arith.mulf %42, %45 : vector<2x2x32xf32>
    %47 = arith.addf %6, %11 : vector<2x2x32xf32>
    %48 = arith.addf %16, %21 : vector<2x2x32xf32>
    %49 = arith.addf %26, %31 : vector<2x2x32xf32>
    %50 = arith.addf %36, %41 : vector<2x2x32xf32>
    %51 = arith.addf %47, %48 : vector<2x2x32xf32>
    %52 = arith.addf %49, %50 : vector<2x2x32xf32>
    %53 = arith.addf %51, %52 : vector<2x2x32xf32>
    %54 = arith.addf %53, %46 : vector<2x2x32xf32>
    %c0_31 = arith.constant 0 : index
    %c0_32 = arith.constant 0 : index
    %c0_33 = arith.constant 0 : index
    %55 = vector.load %arg3[%c0_31, %c0_32, %c0_33] : memref<1x1x32xf32, #tpu.memory_space<vmem>>, vector<1x1x32xf32>
    %56 = vector.broadcast %55 : vector<1x1x32xf32> to vector<2x2x32xf32>
    %57 = arith.mulf %54, %56 : vector<2x2x32xf32>
    %c0_34 = arith.constant 0 : index
    %c0_35 = arith.constant 0 : index
    %c0_36 = arith.constant 0 : index
    %58 = vector.load %arg4[%c0_34, %c0_35, %c0_36] : memref<1x1x32xf32, #tpu.memory_space<vmem>>, vector<1x1x32xf32>
    %59 = vector.broadcast %58 : vector<1x1x32xf32> to vector<2x2x32xf32>
    %60 = arith.addf %57, %59 : vector<2x2x32xf32>
    %c0_37 = arith.constant 0 : index
    %c0_38 = arith.constant 0 : index
    %c0_39 = arith.constant 0 : index
    %c0_40 = arith.constant 0 : index
    %61 = vector.load %arg5[%c0_37, %c0_38, %c0_39, %c0_40] : memref<1x2x2x32xf32, #tpu.memory_space<vmem>>, vector<1x2x2x32xf32>
    %62 = vector.shape_cast %61 : vector<1x2x2x32xf32> to vector<2x2x32xf32>
    %63 = vector.shape_cast %60 : vector<2x2x32xf32> to vector<1x2x2x32xf32>
    tpu.vector_store %arg5[%c0_37, %c0_38, %c0_39, %c0_40], %63 {strides = array<i32>} : memref<1x2x2x32xf32, #tpu.memory_space<vmem>>, vector<1x2x2x32xf32>,
    return
  }
  func.func @transform_0(%arg0: i32) -> (i32, i32, i32, i32) {
    %c0_i32 = arith.constant 0 : i32
    %c0_i32_0 = arith.constant 0 : i32
    %c0_i32_1 = arith.constant 0 : i32
    %c0_i32_2 = arith.constant 0 : i32
    return %arg0, %c0_i32, %c0_i32_0, %c0_i32_1 : i32, i32, i32, i32
  }
  func.func @transform_1(%arg0: i32) -> (i32, i32, i32, i32) {
    %c0_i32 = arith.constant 0 : i32
    %c0_i32_0 = arith.constant 0 : i32
    %c0_i32_1 = arith.constant 0 : i32
    %c0_i32_2 = arith.constant 0 : i32
    %c0_i32_3 = arith.constant 0 : i32
    return %c0_i32, %c0_i32_0, %c0_i32_1, %c0_i32_2 : i32, i32, i32, i32
  }
  func.func @transform_2(%arg0: i32) -> (i32, i32, i32) {
    %c0_i32 = arith.constant 0 : i32
    %c0_i32_0 = arith.constant 0 : i32
    %c0_i32_1 = arith.constant 0 : i32
    %c0_i32_2 = arith.constant 0 : i32
    return %c0_i32, %c0_i32_0, %c0_i32_1 : i32, i32, i32
  }
  func.func @transform_3(%arg0: i32) -> (i32, i32, i32) {
    %c0_i32 = arith.constant 0 : i32
    %c0_i32_0 = arith.constant 0 : i32
    %c0_i32_1 = arith.constant 0 : i32
    %c0_i32_2 = arith.constant 0 : i32
    return %c0_i32, %c0_i32_0, %c0_i32_1 : i32, i32, i32
  }
  func.func @transform_4(%arg0: i32) -> (i32, i32, i32, i32) {
    %c0_i32 = arith.constant 0 : i32
    %c0_i32_0 = arith.constant 0 : i32
    %c0_i32_1 = arith.constant 0 : i32
    %c0_i32_2 = arith.constant 0 : i32
    return %arg0, %c0_i32, %c0_i32_0, %c0_i32_1 : i32, i32, i32, i32
  }
}

module attributes {stable_mosaic.version = 11 : i64} {
  func.func @_matmul_bn_act_kernel(%arg0: i32, %arg1: memref<8x64xf32, #tpu.memory_space<vmem>>, %arg2: memref<64x128xbf16, #tpu.memory_space<vmem>>, %arg3: memref<1x128xf32, #tpu.memory_space<vmem>>, %arg4: memref<1x128xf32, #tpu.memory_space<vmem>>, %arg5: memref<8x128xf32, #tpu.memory_space<vmem>>) attributes {dimension_semantics = [#tpu.dimension_semantics<parallel>], iteration_bounds = array<i64: 1>, scalar_prefetch = 0 : i64, scratch_operands = 0 : i64, tpu.core_type = #tpu.core_type<tc>, window_params = [{transform_indices = @transform_0, window_bounds = array<i64: 8, 64>}, {pipeline_mode = #tpu.pipeline_mode<synchronous>, transform_indices = @transform_1, window_bounds = array<i64: 64, 128>}, {pipeline_mode = #tpu.pipeline_mode<synchronous>, transform_indices = @transform_2, window_bounds = array<i64: 1, 128>}, {pipeline_mode = #tpu.pipeline_mode<synchronous>, transform_indices = @transform_3, window_bounds = array<i64: 1, 128>}, {transform_indices = @transform_4, window_bounds = array<i64: 8, 128>}]} {
    %c0 = arith.constant 0 : index
    %c0_0 = arith.constant 0 : index
    %0 = vector.load %arg1[%c0, %c0_0] : memref<8x64xf32, #tpu.memory_space<vmem>>, vector<8x64xf32>
    %1 = arith.truncf %0 : vector<8x64xf32> to vector<8x64xbf16>
    %c0_1 = arith.constant 0 : index
    %c0_2 = arith.constant 0 : index
    %2 = vector.load %arg2[%c0_1, %c0_2] : memref<64x128xbf16, #tpu.memory_space<vmem>>, vector<64x128xbf16>
    %cst = arith.constant dense<0.000000e+00> : vector<8x128xf32>
    %3 = tpu.matmul %1, %2, %cst {dimension_numbers = #tpu.dot_dimension_numbers<[1], [0], [0], [1], [0, 0, 1, 1], [], []>} : vector<8x64xbf16>, vector<64x128xbf16>, vector<8x128xf32> -> vector<8x128xf32>
    %c0_3 = arith.constant 0 : index
    %c0_4 = arith.constant 0 : index
    %4 = vector.load %arg3[%c0_3, %c0_4] : memref<1x128xf32, #tpu.memory_space<vmem>>, vector<1x128xf32>
    %5 = vector.broadcast %4 : vector<1x128xf32> to vector<8x128xf32>
    %6 = arith.mulf %3, %5 : vector<8x128xf32>
    %c0_5 = arith.constant 0 : index
    %c0_6 = arith.constant 0 : index
    %7 = vector.load %arg4[%c0_5, %c0_6] : memref<1x128xf32, #tpu.memory_space<vmem>>, vector<1x128xf32>
    %8 = vector.broadcast %7 : vector<1x128xf32> to vector<8x128xf32>
    %9 = arith.addf %6, %8 : vector<8x128xf32>
    %cst_7 = arith.constant 0.000000e+00 : f32
    %10 = vector.broadcast %cst_7 : f32 to vector<8x128xf32>
    %11 = arith.maximumf %9, %10 : vector<8x128xf32>
    %c0_8 = arith.constant 0 : index
    %c0_9 = arith.constant 0 : index
    %12 = vector.load %arg5[%c0_8, %c0_9] : memref<8x128xf32, #tpu.memory_space<vmem>>, vector<8x128xf32>
    tpu.vector_store %arg5[%c0_8, %c0_9], %11 {strides = array<i32>} : memref<8x128xf32, #tpu.memory_space<vmem>>, vector<8x128xf32>,
    return
  }
  func.func @transform_0(%arg0: i32) -> (i32, i32) {
    %c0_i32 = arith.constant 0 : i32
    %c0_i32_0 = arith.constant 0 : i32
    return %arg0, %c0_i32 : i32, i32
  }
  func.func @transform_1(%arg0: i32) -> (i32, i32) {
    %c0_i32 = arith.constant 0 : i32
    %c0_i32_0 = arith.constant 0 : i32
    %c0_i32_1 = arith.constant 0 : i32
    return %c0_i32, %c0_i32_0 : i32, i32
  }
  func.func @transform_2(%arg0: i32) -> (i32, i32) {
    %c0_i32 = arith.constant 0 : i32
    %c0_i32_0 = arith.constant 0 : i32
    %c0_i32_1 = arith.constant 0 : i32
    return %c0_i32, %c0_i32_0 : i32, i32
  }
  func.func @transform_3(%arg0: i32) -> (i32, i32) {
    %c0_i32 = arith.constant 0 : i32
    %c0_i32_0 = arith.constant 0 : i32
    %c0_i32_1 = arith.constant 0 : i32
    return %c0_i32, %c0_i32_0 : i32, i32
  }
  func.func @transform_4(%arg0: i32) -> (i32, i32) {
    %c0_i32 = arith.constant 0 : i32
    %c0_i32_0 = arith.constant 0 : i32
    return %arg0, %c0_i32 : i32, i32
  }
}

module attributes {stable_mosaic.version = 11 : i64} {
  func.func @_head_kernel(%arg0: memref<2x4x128xf32, #tpu.memory_space<vmem>>, %arg1: memref<128x10xbf16, #tpu.memory_space<vmem>>, %arg2: memref<1x10xf32, #tpu.memory_space<vmem>>, %arg3: memref<2x10xf32, #tpu.memory_space<vmem>>) attributes {dimension_semantics = [], scalar_prefetch = 0 : i64, scratch_operands = 0 : i64, tpu.core_type = #tpu.core_type<tc>} {
    %c0 = arith.constant 0 : index
    %c0_0 = arith.constant 0 : index
    %c0_1 = arith.constant 0 : index
    %0 = vector.load %arg0[%c0, %c0_0, %c0_1] : memref<2x4x128xf32, #tpu.memory_space<vmem>>, vector<2x4x128xf32>
    %cst = arith.constant dense<0.000000e+00> : vector<2x128xf32>
    %1 = vector.multi_reduction <add>, %0, %cst [1] : vector<2x4x128xf32> to vector<2x128xf32>
    %cst_2 = arith.constant 2.500000e-01 : f32
    %2 = vector.broadcast %cst_2 : f32 to vector<2x128xf32>
    %3 = arith.mulf %1, %2 : vector<2x128xf32>
    %4 = arith.truncf %3 : vector<2x128xf32> to vector<2x128xbf16>
    %c0_3 = arith.constant 0 : index
    %c0_4 = arith.constant 0 : index
    %5 = vector.load %arg1[%c0_3, %c0_4] : memref<128x10xbf16, #tpu.memory_space<vmem>>, vector<128x10xbf16>
    %cst_5 = arith.constant dense<0.000000e+00> : vector<2x10xf32>
    %6 = tpu.matmul %4, %5, %cst_5 {dimension_numbers = #tpu.dot_dimension_numbers<[1], [0], [0], [1], [0, 0, 1, 1], [], []>} : vector<2x128xbf16>, vector<128x10xbf16>, vector<2x10xf32> -> vector<2x10xf32>
    %c0_6 = arith.constant 0 : index
    %c0_7 = arith.constant 0 : index
    %7 = vector.load %arg2[%c0_6, %c0_7] : memref<1x10xf32, #tpu.memory_space<vmem>>, vector<1x10xf32>
    %8 = vector.broadcast %7 : vector<1x10xf32> to vector<2x10xf32>
    %9 = arith.addf %6, %8 : vector<2x10xf32>
    %c0_8 = arith.constant 0 : index
    %c0_9 = arith.constant 0 : index
    %10 = vector.load %arg3[%c0_8, %c0_9] : memref<2x10xf32, #tpu.memory_space<vmem>>, vector<2x10xf32>
    tpu.vector_store %arg3[%c0_8, %c0_9], %9 {strides = array<i32>} : memref<2x10xf32, #tpu.memory_space<vmem>>, vector<2x10xf32>,
    return
  }
}

</mosaic_0001>

<bundles_post_ra>
// kernel: _lambda_.28
= control target key start
LH: loop header
LB: loop body
LE: loop exit
PB: predicated region body
PF: predicated region fallthrough
CT: control target
= control target key end

     0   :  { %s1223_s15 = smov 0   ;;  %s1619_s0 = inlined_call_operand.vmem [shape: f32[2048,32], index: 0, kind: input, shape index: {}]   ;;  %s1620_s1 = inlined_call_operand.vmem [shape: bf16[32,8], index: 1, kind: input, shape index: {}]   ;;  %s1621_s2 = inlined_call_operand.vmem [shape: f32[1,8], index: 2, kind: input, shape index: {}]   ;;  %s1622_s3 = inlined_call_operand.vmem [shape: f32[1,8], index: 3, kind: input, shape index: {}]   ;;  %s1623_s4 = inlined_call_operand.vmem [shape: f32[2048,8], index: 4, kind: output, shape index: {}]  }
   0x1 LB: > { %s1027_s16 = sadd.s32 4294967295, %s1196_s15   ;;  %p1031_p0 = scmp.ge.s32.totalorder %s1196_s15, 1  ;;  %s1196_s15 = sphi %s1223_s15, %s14_s15  }
   0x2   : > { %p163_p1 = scmp.lt.s32.totalorder %s1196_s15, 5 }
   0x4   : > { %p164_p2 = pnand %p1031_p0, %p163_p1 }
   0x5   : > { %s1032_s19 = sshll.u32 (!%p164_p2), %s1027_s16, 6 }
   0x6   : > { %167 = sbr.rel (%p164_p2) target bundleno = 283 (0x11b), region = 36  ;;  %p190_p3 = scmp.lt.s32.totalorder (!%p164_p2), %s1032_s19, 255 }
   0xb   : > { %v1188_v0 = vld [vmem:[%s1620_s1 + $0x8] sm:$0xff]   ;;  %v1189_v1 = vld [vmem:[%s1620_s1] sm:$0xff]   ;;  %s1625_s19 = smov (!%p190_p3, %s1032_s19), 255  ;;  %vm314_vm0 = vcmask 261120   ;;  %vm906_vm1 = vcmask 64512  }
   0xc   : > { %1108 = vmatprep.subr.bf16.mxu0 %v1188_v0  ;;  %1176 = vmatprep.subr.bf16.mxu1 %v1188_v0  ;;  %s1033_s22 = sshll.u32 %s1625_s19, 3 }
   0xd   : > { %1109 = vmatpush3.bf16.msra.mxu0 %v1188_v0  ;;  %1178 = vmatpush3.bf16.msra.mxu1 %v1188_v0  ;;  %s1245_s25 = scalar_lea.vmem %s1619_s0, %s1033_s22  ;;  %s1362_s6 = scalar_lea.vmem %s1623_s4, %s1033_s22 }
   0xe   : > { %1110 = vmatprep.subr.bf16.mxu0 %v1189_v1  ;;  %1177 = vmatprep.subr.bf16.mxu1 %v1189_v1  ;;  %v202_v2 = vld [vmem:[%s1245_s25] sm:$0xff]  ;;  %v203_v3 = vld [vmem:[%s1245_s25 + $0x8] sm:$0xff]  ;;  %v204_v7 = vld [vmem:[%s1245_s25 + $0x10] sm:$0xff] }
   0xf   : > { %v234_v4 = vld [vmem:[%s1245_s25 + $0x100] sm:$0xff]  ;;  %v266_v5 = vpack.c.bf16 %v203_v3, %v202_v2  ;;  %v235_v6 = vld [vmem:[%s1245_s25 + $0x108] sm:$0xff]  ;;  %v205_v8 = vld [vmem:[%s1245_s25 + $0x18] sm:$0xff] }
  0x10   : > { %v282_v9 = vpack.c.bf16 %v235_v6, %v234_v4  ;;  %v267_v10 = vpack.c.bf16 %v205_v8, %v204_v7  ;;  %v236_v11 = vld [vmem:[%s1245_s25 + $0x110] sm:$0xff]  ;;  %v237_v12 = vld [vmem:[%s1245_s25 + $0x118] sm:$0xff]  ;;  %v206_v13 = vld [vmem:[%s1245_s25 + $0x20] sm:$0xff] }
  0x11   : > { %1111 = vmatpush3.bf16.msra.mxu0 %v1189_v1  ;;  %1179 = vmatpush3.bf16.msra.mxu1 %v1189_v1  ;;  %v283_v14 = vpack.c.bf16 %v237_v12, %v236_v11  ;;  %v207_v15 = vld [vmem:[%s1245_s25 + $0x28] sm:$0xff]  ;;  %v238_v16 = vld [vmem:[%s1245_s25 + $0x120] sm:$0xff]  ;;  %v208_v20 = vld [vmem:[%s1245_s25 + $0x30] sm:$0xff] }
  0x12   : > { %1112 = vmatprep.mubr.msk.bf16.mxu0 %vm314_vm0, %v266_v5  ;;  %v239_v17 = vld [vmem:[%s1245_s25 + $0x128] sm:$0xff]  ;;  %1144 = vmatprep.mubr.msk.bf16.mxu1 %vm314_vm0, %v282_v9  ;;  %v268_v18 = vpack.c.bf16 %v207_v15, %v206_v13  ;;  %v209_v21 = vld [vmem:[%s1245_s25 + $0x38] sm:$0xff]  ;;  %v240_v22 = vld [vmem:[%s1245_s25 + $0x130] sm:$0xff] }
  0x13   : > { %v284_v19 = vpack.c.bf16 %v239_v17, %v238_v16  ;;  %v241_v23 = vld [vmem:[%s1245_s25 + $0x138] sm:$0xff]  ;;  %v210_v24 = vld [vmem:[%s1245_s25 + $0x40] sm:$0xff]  ;;  %v211_v25 = vld [vmem:[%s1245_s25 + $0x48] sm:$0xff]  ;;  %v269_v28 = vpack.c.bf16 %v209_v21, %v208_v20 }
  0x14   : > { %1113 = vmatmul.mubr.msk.bf16.vlgmr.msra.gmra.mxu0 %vm314_vm0, %v267_v10  ;;  %1145 = vmatmul.mubr.msk.bf16.vlgmr.msra.gmra.mxu1 %vm314_vm0, %v283_v14  ;;  %v242_v26 = vld [vmem:[%s1245_s25 + $0x140] sm:$0xff]  ;;  %v243_v27 = vld [vmem:[%s1245_s25 + $0x148] sm:$0xff]  ;;  %v285_v29 = vpack.c.bf16 %v241_v23, %v240_v22  ;;  %v270_v30 = vpack.c.bf16 %v211_v25, %v210_v24  ;;  %v212_v32 = vld [vmem:[%s1245_s25 + $0x50] sm:$0xff] }
  0x15   : > { %1116 = vmatprep.mubr.msk.bf16.mxu0 %vm314_vm0, %v268_v18  ;;  %1148 = vmatprep.mubr.msk.bf16.mxu1 %vm314_vm0, %v284_v19  ;;  %v286_v31 = vpack.c.bf16 %v243_v27, %v242_v26  ;;  %v213_v33 = vld [vmem:[%s1245_s25 + $0x58] sm:$0xff]  ;;  %v244_v34 = vld [vmem:[%s1245_s25 + $0x150] sm:$0xff]  ;;  %v214_v36 = vld [vmem:[%s1245_s25 + $0x60] sm:$0xff] }
  0x16   : > { %v245_v35 = vld [vmem:[%s1245_s25 + $0x158] sm:$0xff]  ;;  %v215_v37 = vld [vmem:[%s1245_s25 + $0x68] sm:$0xff]  ;;  %v246_v38 = vld [vmem:[%s1245_s25 + $0x160] sm:$0xff]  ;;  %v271_v40 = vpack.c.bf16 %v213_v33, %v212_v32 }
  0x17   : > { %v247_v39 = vld [vmem:[%s1245_s25 + $0x168] sm:$0xff]  ;;  %v287_v41 = vpack.c.bf16 %v245_v35, %v244_v34  ;;  %v272_v42 = vpack.c.bf16 %v215_v37, %v214_v36  ;;  %v216_v44 = vld [vmem:[%s1245_s25 + $0x70] sm:$0xff]  ;;  %v217_v45 = vld [vmem:[%s1245_s25 + $0x78] sm:$0xff] }
  0x18   : > { %v288_v43 = vpack.c.bf16 %v247_v39, %v246_v38  ;;  %v248_v46 = vld [vmem:[%s1245_s25 + $0x170] sm:$0xff]  ;;  %v249_v47 = vld [vmem:[%s1245_s25 + $0x178] sm:$0xff]  ;;  %v218_v48 = vld [vmem:[%s1245_s25 + $0x80] sm:$0xff]  ;;  %v273_v52 = vpack.c.bf16 %v217_v45, %v216_v44 }
  0x19   : > { %v219_v49 = vld [vmem:[%s1245_s25 + $0x88] sm:$0xff]  ;;  %v250_v50 = vld [vmem:[%s1245_s25 + $0x180] sm:$0xff]  ;;  %v289_v53 = vpack.c.bf16 %v249_v47, %v248_v46  ;;  %v220_v56 = vld [vmem:[%s1245_s25 + $0x90] sm:$0xff] }
  0x1a   : > { %v251_v51 = vld [vmem:[%s1245_s25 + $0x188] sm:$0xff]  ;;  %v274_v54 = vpack.c.bf16 %v219_v49, %v218_v48  ;;  %v221_v57 = vld [vmem:[%s1245_s25 + $0x98] sm:$0xff]  ;;  %v252_v58 = vld [vmem:[%s1245_s25 + $0x190] sm:$0xff] }
  0x1b   : > { %v290_v55 = vpack.c.bf16 %v251_v51, %v250_v50  ;;  %v253_v59 = vld [vmem:[%s1245_s25 + $0x198] sm:$0xff]  ;;  %v222_v60 = vld [vmem:[%s1245_s25 + $0xa0] sm:$0xff]  ;;  %v223_v61 = vld [vmem:[%s1245_s25 + $0xa8] sm:$0xff]  ;;  %v275_v0 = vpack.c.bf16 %v221_v57, %v220_v56 }
  0x1c   : > { %1117 = vmatmul.mubr.msk.bf16.gmra.mxu0 %vm314_vm0, %v269_v28  ;;  %1149 = vmatmul.mubr.msk.bf16.gmra.mxu1 %vm314_vm0, %v285_v29  ;;  %v254_v62 = vld [vmem:[%s1245_s25 + $0x1a0] sm:$0xff]  ;;  %v255_v63 = vld [vmem:[%s1245_s25 + $0x1a8] sm:$0xff]  ;;  %v291_v1 = vpack.c.bf16 %v253_v59, %v252_v58  ;;  %v276_v2 = vpack.c.bf16 %v223_v61, %v222_v60  ;;  %v224_v4 = vld [vmem:[%s1245_s25 + $0xb0] sm:$0xff] }
  0x1d   : > { %1120 = vmatprep.mubr.msk.bf16.mxu0 %vm314_vm0, %v270_v30  ;;  %1152 = vmatprep.mubr.msk.bf16.mxu1 %vm314_vm0, %v286_v31  ;;  %v292_v3 = vpack.c.bf16 %v255_v63, %v254_v62  ;;  %v225_v5 = vld [vmem:[%s1245_s25 + $0xb8] sm:$0xff]  ;;  %v256_v6 = vld [vmem:[%s1245_s25 + $0x1b0] sm:$0xff]  ;;  %v226_v8 = vld [vmem:[%s1245_s25 + $0xc0] sm:$0xff] }
  0x1e   : > { %v257_v7 = vld [vmem:[%s1245_s25 + $0x1b8] sm:$0xff]  ;;  %v227_v9 = vld [vmem:[%s1245_s25 + $0xc8] sm:$0xff]  ;;  %v258_v10 = vld [vmem:[%s1245_s25 + $0x1c0] sm:$0xff]  ;;  %v277_v12 = vpack.c.bf16 %v225_v5, %v224_v4 }
  0x1f   : > { %v259_v11 = vld [vmem:[%s1245_s25 + $0x1c8] sm:$0xff]  ;;  %v293_v13 = vpack.c.bf16 %v257_v7, %v256_v6  ;;  %v278_v14 = vpack.c.bf16 %v227_v9, %v226_v8  ;;  %v228_v16 = vld [vmem:[%s1245_s25 + $0xd0] sm:$0xff]  ;;  %v229_v17 = vld [vmem:[%s1245_s25 + $0xd8] sm:$0xff] }
  0x20   : > { %v294_v15 = vpack.c.bf16 %v259_v11, %v258_v10  ;;  %v260_v18 = vld [vmem:[%s1245_s25 + $0x1d0] sm:$0xff]  ;;  %v261_v19 = vld [vmem:[%s1245_s25 + $0x1d8] sm:$0xff]  ;;  %v230_v20 = vld [vmem:[%s1245_s25 + $0xe0] sm:$0xff]  ;;  %v279_v24 = vpack.c.bf16 %v229_v17, %v228_v16 }
  0x21   : > { %v231_v21 = vld [vmem:[%s1245_s25 + $0xe8] sm:$0xff]  ;;  %v262_v22 = vld [vmem:[%s1245_s25 + $0x1e0] sm:$0xff]  ;;  %v295_v25 = vpack.c.bf16 %v261_v19, %v260_v18  ;;  %v232_v28 = vld [vmem:[%s1245_s25 + $0xf0] sm:$0xff] }
  0x22   : > { %v263_v23 = vld [vmem:[%s1245_s25 + $0x1e8] sm:$0xff]  ;;  %v280_v26 = vpack.c.bf16 %v231_v21, %v230_v20  ;;  %v233_v29 = vld [vmem:[%s1245_s25 + $0xf8] sm:$0xff]  ;;  %v264_v30 = vld [vmem:[%s1245_s25 + $0x1f0] sm:$0xff] }
  0x23   : > { %v296_v27 = vpack.c.bf16 %v263_v23, %v262_v22  ;;  %v265_v31 = vld [vmem:[%s1245_s25 + $0x1f8] sm:$0xff]  ;;  %v281_v32 = vpack.c.bf16 %v233_v29, %v232_v28  ;;  %v1346_v34 = vld [vmem:[%s1621_s2] ss:$0 sm:$0xff] }
  0x24   : > { %1121 = vmatmul.mubr.msk.bf16.gmra.mxu0 %vm314_vm0, %v271_v40  ;;  %1153 = vmatmul.mubr.msk.bf16.gmra.mxu1 %vm314_vm0, %v287_v41  ;;  %v297_v33 = vpack.c.bf16 %v265_v31, %v264_v30  ;;  %v1351_v36 = vld [vmem:[%s1622_s3] ss:$0 sm:$0xff] }
  0x25   : > { %1124 = vmatprep.mubr.msk.bf16.mxu0 %vm314_vm0, %v272_v42  ;;  %1156 = vmatprep.mubr.msk.bf16.mxu1 %vm314_vm0, %v288_v43 }
  0x2c   : > { %1125 = vmatmul.mubr.msk.bf16.gmra.mxu0 %vm314_vm0, %v273_v52  ;;  %1157 = vmatmul.mubr.msk.bf16.gmra.mxu1 %vm314_vm0, %v289_v53 }
  0x2d   : > { %1128 = vmatprep.mubr.msk.bf16.mxu0 %vm314_vm0, %v274_v54  ;;  %1160 = vmatprep.mubr.msk.bf16.mxu1 %vm314_vm0, %v290_v55 }
  0x34   : > { %1129 = vmatmul.mubr.msk.bf16.gmra.mxu0 %vm314_vm0, %v275_v0  ;;  %1161 = vmatmul.mubr.msk.bf16.gmra.mxu1 %vm314_vm0, %v291_v1 }
  0x35   : > { %1132 = vmatprep.mubr.msk.bf16.mxu0 %vm314_vm0, %v276_v2  ;;  %1164 = vmatprep.mubr.msk.bf16.mxu1 %vm314_vm0, %v292_v3 }
  0x3c   : > { %1133 = vmatmul.mubr.msk.bf16.gmra.mxu0 %vm314_vm0, %v277_v12  ;;  %1165 = vmatmul.mubr.msk.bf16.gmra.mxu1 %vm314_vm0, %v293_v13 }
  0x3d   : > { %1136 = vmatprep.mubr.msk.bf16.mxu0 %vm314_vm0, %v278_v14  ;;  %1168 = vmatprep.mubr.msk.bf16.mxu1 %vm314_vm0, %v294_v15 }
  0x44   : > { %1137 = vmatmul.mubr.msk.bf16.gmra.mxu0 %vm314_vm0, %v279_v24  ;;  %1169 = vmatmul.mubr.msk.bf16.gmra.mxu1 %vm314_vm0, %v295_v25 }
  0x45   : > { %1140 = vmatprep.mubr.msk.bf16.mxu0 %vm314_vm0, %v280_v26  ;;  %1172 = vmatprep.mubr.msk.bf16.mxu1 %vm314_vm0, %v296_v27 }
  0x4c   : > { %1141 = vmatmul.mubr.msk.bf16.gmra.mxu0 %vm314_vm0, %v281_v32  ;;  %1173 = vmatmul.mubr.msk.bf16.gmra.mxu1 %vm314_vm0, %v297_v33 }
  0xd4   : > { %v1114_v35 = vpop.f32.mrf.mxu0  ;;  %v1146_v38 = vpop.f32.mrf.mxu1 }
  0xd5   : > { %v709_v37 = vmul.f32 %v1114_v35, %v1346_v34  ;;  %v741_v39 = vmul.f32 %v1146_v38, %v1346_v34 }
  0xd6   : > { %v445_v40 = vpop.f32.mrf.mxu0  ;;  %v573_v43 = vpop.f32.mrf.mxu1 }
  0xd7   : > { %v780_v41 = vadd.f32 %v1351_v36, %v709_v37  ;;  %v707_v42 = vmul.f32 %v1346_v34, %v445_v40  ;;  %v812_v44 = vadd.f32 %v1351_v36, %v741_v39  ;;  %v739_v45 = vmul.f32 %v1346_v34, %v573_v43 }
  0xd8   : > { %v1115_v46 = vpop.f32.mrf.mxu0  ;;  %v1147_v50 = vpop.f32.mrf.mxu1 }
  0xd9   : > { %v844_v47 = vmax.f32 %v780_v41, 0.0  ;;  %v778_v48 = vadd.f32 %v1351_v36, %v707_v42  ;;  %v710_v49 = vmul.f32 %v1115_v46, %v1346_v34  ;;  %v876_v51 = vmax.f32 %v812_v44, 0.0 }
  0xda   : > { %v810_v52 = vadd.f32 %v1351_v36, %v739_v45  ;;  %v742_v53 = vmul.f32 %v1147_v50, %v1346_v34  ;;  %v448_v54 = vpop.f32.mrf.mxu0  ;;  %v576_v58 = vpop.f32.mrf.mxu1 }
  0xdb   : > { %909 = vst.msk [vmem:[%s1362_s6 + $0x10] sm:$0xff] %vm906_vm1, %v844_v47  ;;  %v842_v55 = vmax.f32 %v778_v48, 0.0  ;;  %v781_v56 = vadd.f32 %v1351_v36, %v710_v49  ;;  %v708_v57 = vmul.f32 %v1346_v34, %v448_v54  ;;  %941 = vst.msk [vmem:[%s1362_s6 + $0x110] sm:$0xff] %vm906_vm1, %v876_v51  ;;  %v740_v61 = vmul.f32 %v1346_v34, %v576_v58 }
  0xdc   : > { %v874_v59 = vmax.f32 %v810_v52, 0.0  ;;  %v813_v60 = vadd.f32 %v1351_v36, %v742_v53  ;;  %v1118_v62 = vpop.f32.mrf.mxu0  ;;  %v1150_v2 = vpop.f32.mrf.mxu1 }
  0xdd   : > { %907 = vst.msk [vmem:[%s1362_s6] sm:$0xff] %vm906_vm1, %v842_v55  ;;  %v845_v63 = vmax.f32 %v781_v56, 0.0  ;;  %v779_v0 = vadd.f32 %v1351_v36, %v708_v57  ;;  %v713_v1 = vmul.f32 %v1118_v62, %v1346_v34  ;;  %v811_v4 = vadd.f32 %v1351_v36, %v740_v61 }
  0xde   : > { %939 = vst.msk [vmem:[%s1362_s6 + $0x100] sm:$0xff] %vm906_vm1, %v874_v59  ;;  %v877_v3 = vmax.f32 %v813_v60, 0.0  ;;  %v745_v5 = vmul.f32 %v1150_v2, %v1346_v34  ;;  %v461_v6 = vpop.f32.mrf.mxu0  ;;  %v589_v10 = vpop.f32.mrf.mxu1 }
  0xdf   : > { %910 = vst.msk [vmem:[%s1362_s6 + $0x18] sm:$0xff] %vm906_vm1, %v845_v63  ;;  %v843_v7 = vmax.f32 %v779_v0, 0.0  ;;  %v784_v8 = vadd.f32 %v1351_v36, %v713_v1  ;;  %v711_v9 = vmul.f32 %v1346_v34, %v461_v6  ;;  %v875_v11 = vmax.f32 %v811_v4, 0.0 }
  0xe0   : > { %942 = vst.msk [vmem:[%s1362_s6 + $0x118] sm:$0xff] %vm906_vm1, %v877_v3  ;;  %v816_v12 = vadd.f32 %v1351_v36, %v745_v5  ;;  %v743_v13 = vmul.f32 %v1346_v34, %v589_v10  ;;  %v1119_v14 = vpop.f32.mrf.mxu0  ;;  %v1151_v18 = vpop.f32.mrf.mxu1 }
  0xe1   : > { %908 = vst.msk [vmem:[%s1362_s6 + $0x8] sm:$0xff] %vm906_vm1, %v843_v7  ;;  %v848_v15 = vmax.f32 %v784_v8, 0.0  ;;  %v782_v16 = vadd.f32 %v1351_v36, %v711_v9  ;;  %v714_v17 = vmul.f32 %v1119_v14, %v1346_v34  ;;  %940 = vst.msk [vmem:[%s1362_s6 + $0x108] sm:$0xff] %vm906_vm1, %v875_v11  ;;  %v746_v21 = vmul.f32 %v1151_v18, %v1346_v34 }
  0xe2   : > { %v880_v19 = vmax.f32 %v816_v12, 0.0  ;;  %v814_v20 = vadd.f32 %v1351_v36, %v743_v13  ;;  %v464_v22 = vpop.f32.mrf.mxu0  ;;  %v592_v26 = vpop.f32.mrf.mxu1 }
  0xe3   : > { %913 = vst.msk [vmem:[%s1362_s6 + $0x30] sm:$0xff] %vm906_vm1, %v848_v15  ;;  %v846_v23 = vmax.f32 %v782_v16, 0.0  ;;  %v785_v24 = vadd.f32 %v1351_v36, %v714_v17  ;;  %v712_v25 = vmul.f32 %v1346_v34, %v464_v22  ;;  %v817_v28 = vadd.f32 %v1351_v36, %v746_v21 }
  0xe4   : > { %945 = vst.msk [vmem:[%s1362_s6 + $0x130] sm:$0xff] %vm906_vm1, %v880_v19  ;;  %v878_v27 = vmax.f32 %v814_v20, 0.0  ;;  %v744_v29 = vmul.f32 %v1346_v34, %v592_v26  ;;  %v1122_v30 = vpop.f32.mrf.mxu0  ;;  %v1154_v35 = vpop.f32.mrf.mxu1 }
  0xe5   : > { %911 = vst.msk [vmem:[%s1362_s6 + $0x20] sm:$0xff] %vm906_vm1, %v846_v23  ;;  %v849_v31 = vmax.f32 %v785_v24, 0.0  ;;  %v783_v32 = vadd.f32 %v1351_v36, %v712_v25  ;;  %v717_v33 = vmul.f32 %v1122_v30, %v1346_v34  ;;  %v881_v37 = vmax.f32 %v817_v28, 0.0 }
  0xe6   : > { %943 = vst.msk [vmem:[%s1362_s6 + $0x120] sm:$0xff] %vm906_vm1, %v878_v27  ;;  %v815_v38 = vadd.f32 %v1351_v36, %v744_v29  ;;  %v749_v39 = vmul.f32 %v1154_v35, %v1346_v34  ;;  %v477_v40 = vpop.f32.mrf.mxu0  ;;  %v605_v44 = vpop.f32.mrf.mxu1 }
  0xe7   : > { %914 = vst.msk [vmem:[%s1362_s6 + $0x38] sm:$0xff] %vm906_vm1, %v849_v31  ;;  %v847_v41 = vmax.f32 %v783_v32, 0.0  ;;  %v788_v42 = vadd.f32 %v1351_v36, %v717_v33  ;;  %v715_v43 = vmul.f32 %v1346_v34, %v477_v40  ;;  %946 = vst.msk [vmem:[%s1362_s6 + $0x138] sm:$0xff] %vm906_vm1, %v881_v37  ;;  %v747_v47 = vmul.f32 %v1346_v34, %v605_v44 }
  0xe8   : > { %v879_v45 = vmax.f32 %v815_v38, 0.0  ;;  %v820_v46 = vadd.f32 %v1351_v36, %v749_v39  ;;  %v1123_v48 = vpop.f32.mrf.mxu0  ;;  %v1155_v52 = vpop.f32.mrf.mxu1 }
  0xe9   : > { %912 = vst.msk [vmem:[%s1362_s6 + $0x28] sm:$0xff] %vm906_vm1, %v847_v41  ;;  %v852_v49 = vmax.f32 %v788_v42, 0.0  ;;  %v786_v50 = vadd.f32 %v1351_v36, %v715_v43  ;;  %v718_v51 = vmul.f32 %v1123_v48, %v1346_v34  ;;  %v818_v54 = vadd.f32 %v1351_v36, %v747_v47 }
  0xea   : > { %944 = vst.msk [vmem:[%s1362_s6 + $0x128] sm:$0xff] %vm906_vm1, %v879_v45  ;;  %v884_v53 = vmax.f32 %v820_v46, 0.0  ;;  %v750_v55 = vmul.f32 %v1155_v52, %v1346_v34  ;;  %v480_v56 = vpop.f32.mrf.mxu0  ;;  %v608_v60 = vpop.f32.mrf.mxu1 }
  0xeb   : > { %917 = vst.msk [vmem:[%s1362_s6 + $0x50] sm:$0xff] %vm906_vm1, %v852_v49  ;;  %v850_v57 = vmax.f32 %v786_v50, 0.0  ;;  %v789_v58 = vadd.f32 %v1351_v36, %v718_v51  ;;  %v716_v59 = vmul.f32 %v1346_v34, %v480_v56  ;;  %v882_v61 = vmax.f32 %v818_v54, 0.0 }
  0xec   : > { %949 = vst.msk [vmem:[%s1362_s6 + $0x150] sm:$0xff] %vm906_vm1, %v884_v53  ;;  %v821_v62 = vadd.f32 %v1351_v36, %v750_v55  ;;  %v748_v63 = vmul.f32 %v1346_v34, %v608_v60  ;;  %v1126_v0 = vpop.f32.mrf.mxu0  ;;  %v1158_v4 = vpop.f32.mrf.mxu1 }
  0xed   : > { %915 = vst.msk [vmem:[%s1362_s6 + $0x40] sm:$0xff] %vm906_vm1, %v850_v57  ;;  %v853_v1 = vmax.f32 %v789_v58, 0.0  ;;  %v787_v2 = vadd.f32 %v1351_v36, %v716_v59  ;;  %v721_v3 = vmul.f32 %v1126_v0, %v1346_v34  ;;  %947 = vst.msk [vmem:[%s1362_s6 + $0x140] sm:$0xff] %vm906_vm1, %v882_v61  ;;  %v753_v7 = vmul.f32 %v1158_v4, %v1346_v34 }
  0xee   : > { %v885_v5 = vmax.f32 %v821_v62, 0.0  ;;  %v819_v6 = vadd.f32 %v1351_v36, %v748_v63  ;;  %v493_v8 = vpop.f32.mrf.mxu0  ;;  %v621_v12 = vpop.f32.mrf.mxu1 }
  0xef   : > { %918 = vst.msk [vmem:[%s1362_s6 + $0x58] sm:$0xff] %vm906_vm1, %v853_v1  ;;  %v851_v9 = vmax.f32 %v787_v2, 0.0  ;;  %v792_v10 = vadd.f32 %v1351_v36, %v721_v3  ;;  %v719_v11 = vmul.f32 %v1346_v34, %v493_v8  ;;  %v824_v14 = vadd.f32 %v1351_v36, %v753_v7 }
  0xf0   : > { %950 = vst.msk [vmem:[%s1362_s6 + $0x158] sm:$0xff] %vm906_vm1, %v885_v5  ;;  %v883_v13 = vmax.f32 %v819_v6, 0.0  ;;  %v751_v15 = vmul.f32 %v1346_v34, %v621_v12  ;;  %v1127_v16 = vpop.f32.mrf.mxu0  ;;  %v1159_v20 = vpop.f32.mrf.mxu1 }
  0xf1   : > { %916 = vst.msk [vmem:[%s1362_s6 + $0x48] sm:$0xff] %vm906_vm1, %v851_v9  ;;  %v856_v17 = vmax.f32 %v792_v10, 0.0  ;;  %v790_v18 = vadd.f32 %v1351_v36, %v719_v11  ;;  %v722_v19 = vmul.f32 %v1127_v16, %v1346_v34  ;;  %v888_v21 = vmax.f32 %v824_v14, 0.0 }
  0xf2   : > { %948 = vst.msk [vmem:[%s1362_s6 + $0x148] sm:$0xff] %vm906_vm1, %v883_v13  ;;  %v822_v22 = vadd.f32 %v1351_v36, %v751_v15  ;;  %v754_v23 = vmul.f32 %v1159_v20, %v1346_v34  ;;  %v496_v24 = vpop.f32.mrf.mxu0  ;;  %v624_v28 = vpop.f32.mrf.mxu1 }
  0xf3   : > { %921 = vst.msk [vmem:[%s1362_s6 + $0x70] sm:$0xff] %vm906_vm1, %v856_v17  ;;  %v854_v25 = vmax.f32 %v790_v18, 0.0  ;;  %v793_v26 = vadd.f32 %v1351_v36, %v722_v19  ;;  %v720_v27 = vmul.f32 %v1346_v34, %v496_v24  ;;  %953 = vst.msk [vmem:[%s1362_s6 + $0x170] sm:$0xff] %vm906_vm1, %v888_v21  ;;  %v752_v31 = vmul.f32 %v1346_v34, %v624_v28 }
  0xf4   : > { %v886_v29 = vmax.f32 %v822_v22, 0.0  ;;  %v825_v30 = vadd.f32 %v1351_v36, %v754_v23  ;;  %v1130_v32 = vpop.f32.mrf.mxu0  ;;  %v1162_v38 = vpop.f32.mrf.mxu1 }
  0xf5   : > { %919 = vst.msk [vmem:[%s1362_s6 + $0x60] sm:$0xff] %vm906_vm1, %v854_v25  ;;  %v857_v33 = vmax.f32 %v793_v26, 0.0  ;;  %v791_v35 = vadd.f32 %v1351_v36, %v720_v27  ;;  %v725_v37 = vmul.f32 %v1130_v32, %v1346_v34  ;;  %v823_v40 = vadd.f32 %v1351_v36, %v752_v31 }
  0xf6   : > { %951 = vst.msk [vmem:[%s1362_s6 + $0x160] sm:$0xff] %vm906_vm1, %v886_v29  ;;  %v889_v39 = vmax.f32 %v825_v30, 0.0  ;;  %v757_v41 = vmul.f32 %v1162_v38, %v1346_v34  ;;  %v509_v42 = vpop.f32.mrf.mxu0  ;;  %v637_v46 = vpop.f32.mrf.mxu1 }
  0xf7   : > { %922 = vst.msk [vmem:[%s1362_s6 + $0x78] sm:$0xff] %vm906_vm1, %v857_v33  ;;  %v855_v43 = vmax.f32 %v791_v35, 0.0  ;;  %v796_v44 = vadd.f32 %v1351_v36, %v725_v37  ;;  %v723_v45 = vmul.f32 %v1346_v34, %v509_v42  ;;  %v887_v47 = vmax.f32 %v823_v40, 0.0 }
  0xf8   : > { %954 = vst.msk [vmem:[%s1362_s6 + $0x178] sm:$0xff] %vm906_vm1, %v889_v39  ;;  %v828_v48 = vadd.f32 %v1351_v36, %v757_v41  ;;  %v755_v49 = vmul.f32 %v1346_v34, %v637_v46  ;;  %v1131_v50 = vpop.f32.mrf.mxu0  ;;  %v1163_v54 = vpop.f32.mrf.mxu1 }
  0xf9   : > { %920 = vst.msk [vmem:[%s1362_s6 + $0x68] sm:$0xff] %vm906_vm1, %v855_v43  ;;  %v860_v51 = vmax.f32 %v796_v44, 0.0  ;;  %v794_v52 = vadd.f32 %v1351_v36, %v723_v45  ;;  %v726_v53 = vmul.f32 %v1131_v50, %v1346_v34  ;;  %952 = vst.msk [vmem:[%s1362_s6 + $0x168] sm:$0xff] %vm906_vm1, %v887_v47  ;;  %v758_v57 = vmul.f32 %v1163_v54, %v1346_v34 }
  0xfa   : > { %v892_v55 = vmax.f32 %v828_v48, 0.0  ;;  %v826_v56 = vadd.f32 %v1351_v36, %v755_v49  ;;  %v512_v58 = vpop.f32.mrf.mxu0  ;;  %v640_v62 = vpop.f32.mrf.mxu1 }
  0xfb   : > { %925 = vst.msk [vmem:[%s1362_s6 + $0x90] sm:$0xff] %vm906_vm1, %v860_v51  ;;  %v858_v59 = vmax.f32 %v794_v52, 0.0  ;;  %v797_v60 = vadd.f32 %v1351_v36, %v726_v53  ;;  %v724_v61 = vmul.f32 %v1346_v34, %v512_v58  ;;  %v829_v0 = vadd.f32 %v1351_v36, %v758_v57 }
  0xfc   : > { %957 = vst.msk [vmem:[%s1362_s6 + $0x190] sm:$0xff] %vm906_vm1, %v892_v55  ;;  %v890_v63 = vmax.f32 %v826_v56, 0.0  ;;  %v756_v1 = vmul.f32 %v1346_v34, %v640_v62  ;;  %v1134_v2 = vpop.f32.mrf.mxu0  ;;  %v1166_v6 = vpop.f32.mrf.mxu1 }
  0xfd   : > { %923 = vst.msk [vmem:[%s1362_s6 + $0x80] sm:$0xff] %vm906_vm1, %v858_v59  ;;  %v861_v3 = vmax.f32 %v797_v60, 0.0  ;;  %v795_v4 = vadd.f32 %v1351_v36, %v724_v61  ;;  %v729_v5 = vmul.f32 %v1134_v2, %v1346_v34  ;;  %v893_v7 = vmax.f32 %v829_v0, 0.0 }
  0xfe   : > { %955 = vst.msk [vmem:[%s1362_s6 + $0x180] sm:$0xff] %vm906_vm1, %v890_v63  ;;  %v827_v8 = vadd.f32 %v1351_v36, %v756_v1  ;;  %v761_v9 = vmul.f32 %v1166_v6, %v1346_v34  ;;  %v525_v10 = vpop.f32.mrf.mxu0  ;;  %v653_v14 = vpop.f32.mrf.mxu1 }
  0xff   : > { %926 = vst.msk [vmem:[%s1362_s6 + $0x98] sm:$0xff] %vm906_vm1, %v861_v3  ;;  %v859_v11 = vmax.f32 %v795_v4, 0.0  ;;  %v800_v12 = vadd.f32 %v1351_v36, %v729_v5  ;;  %v727_v13 = vmul.f32 %v1346_v34, %v525_v10  ;;  %958 = vst.msk [vmem:[%s1362_s6 + $0x198] sm:$0xff] %vm906_vm1, %v893_v7  ;;  %v759_v17 = vmul.f32 %v1346_v34, %v653_v14 }
 0x100   : > { %v891_v15 = vmax.f32 %v827_v8, 0.0  ;;  %v832_v16 = vadd.f32 %v1351_v36, %v761_v9  ;;  %v1135_v18 = vpop.f32.mrf.mxu0  ;;  %v1167_v22 = vpop.f32.mrf.mxu1 }
 0x101   : > { %924 = vst.msk [vmem:[%s1362_s6 + $0x88] sm:$0xff] %vm906_vm1, %v859_v11  ;;  %v864_v19 = vmax.f32 %v800_v12, 0.0  ;;  %v798_v20 = vadd.f32 %v1351_v36, %v727_v13  ;;  %v730_v21 = vmul.f32 %v1135_v18, %v1346_v34  ;;  %v830_v24 = vadd.f32 %v1351_v36, %v759_v17 }
 0x102   : > { %956 = vst.msk [vmem:[%s1362_s6 + $0x188] sm:$0xff] %vm906_vm1, %v891_v15  ;;  %v896_v23 = vmax.f32 %v832_v16, 0.0  ;;  %v762_v25 = vmul.f32 %v1167_v22, %v1346_v34  ;;  %v528_v26 = vpop.f32.mrf.mxu0  ;;  %v656_v30 = vpop.f32.mrf.mxu1 }
 0x103   : > { %929 = vst.msk [vmem:[%s1362_s6 + $0xb0] sm:$0xff] %vm906_vm1, %v864_v19  ;;  %v862_v27 = vmax.f32 %v798_v20, 0.0  ;;  %v801_v28 = vadd.f32 %v1351_v36, %v730_v21  ;;  %v728_v29 = vmul.f32 %v1346_v34, %v528_v26  ;;  %v894_v31 = vmax.f32 %v830_v24, 0.0 }
 0x104   : > { %961 = vst.msk [vmem:[%s1362_s6 + $0x1b0] sm:$0xff] %vm906_vm1, %v896_v23  ;;  %v833_v32 = vadd.f32 %v1351_v36, %v762_v25  ;;  %v760_v33 = vmul.f32 %v1346_v34, %v656_v30  ;;  %v1138_v35 = vpop.f32.mrf.mxu0  ;;  %v1170_v40 = vpop.f32.mrf.mxu1 }
 0x105   : > { %927 = vst.msk [vmem:[%s1362_s6 + $0xa0] sm:$0xff] %vm906_vm1, %v862_v27  ;;  %v865_v37 = vmax.f32 %v801_v28, 0.0  ;;  %v799_v38 = vadd.f32 %v1351_v36, %v728_v29  ;;  %v733_v39 = vmul.f32 %v1138_v35, %v1346_v34  ;;  %959 = vst.msk [vmem:[%s1362_s6 + $0x1a0] sm:$0xff] %vm906_vm1, %v894_v31  ;;  %v765_v43 = vmul.f32 %v1170_v40, %v1346_v34 }
 0x106   : > { %v897_v41 = vmax.f32 %v833_v32, 0.0  ;;  %v831_v42 = vadd.f32 %v1351_v36, %v760_v33  ;;  %v541_v44 = vpop.f32.mrf.mxu0  ;;  %v669_v48 = vpop.f32.mrf.mxu1 }
 0x107   : > { %930 = vst.msk [vmem:[%s1362_s6 + $0xb8] sm:$0xff] %vm906_vm1, %v865_v37  ;;  %v863_v45 = vmax.f32 %v799_v38, 0.0  ;;  %v804_v46 = vadd.f32 %v1351_v36, %v733_v39  ;;  %v731_v47 = vmul.f32 %v1346_v34, %v541_v44  ;;  %v836_v50 = vadd.f32 %v1351_v36, %v765_v43 }
 0x108   : > { %962 = vst.msk [vmem:[%s1362_s6 + $0x1b8] sm:$0xff] %vm906_vm1, %v897_v41  ;;  %v895_v49 = vmax.f32 %v831_v42, 0.0  ;;  %v763_v51 = vmul.f32 %v1346_v34, %v669_v48  ;;  %v1139_v52 = vpop.f32.mrf.mxu0  ;;  %v1171_v56 = vpop.f32.mrf.mxu1 }
 0x109   : > { %928 = vst.msk [vmem:[%s1362_s6 + $0xa8] sm:$0xff] %vm906_vm1, %v863_v45  ;;  %v868_v53 = vmax.f32 %v804_v46, 0.0  ;;  %v802_v54 = vadd.f32 %v1351_v36, %v731_v47  ;;  %v734_v55 = vmul.f32 %v1139_v52, %v1346_v34  ;;  %v900_v57 = vmax.f32 %v836_v50, 0.0 }
 0x10a   : > { %960 = vst.msk [vmem:[%s1362_s6 + $0x1a8] sm:$0xff] %vm906_vm1, %v895_v49  ;;  %v834_v58 = vadd.f32 %v1351_v36, %v763_v51  ;;  %v766_v59 = vmul.f32 %v1171_v56, %v1346_v34  ;;  %v544_v60 = vpop.f32.mrf.mxu0  ;;  %v672_v0 = vpop.f32.mrf.mxu1 }
 0x10b   : > { %933 = vst.msk [vmem:[%s1362_s6 + $0xd0] sm:$0xff] %vm906_vm1, %v868_v53  ;;  %v866_v61 = vmax.f32 %v802_v54, 0.0  ;;  %v805_v62 = vadd.f32 %v1351_v36, %v734_v55  ;;  %v732_v63 = vmul.f32 %v1346_v34, %v544_v60  ;;  %965 = vst.msk [vmem:[%s1362_s6 + $0x1d0] sm:$0xff] %vm906_vm1, %v900_v57  ;;  %v764_v3 = vmul.f32 %v1346_v34, %v672_v0 }
 0x10c   : > { %v898_v1 = vmax.f32 %v834_v58, 0.0  ;;  %v837_v2 = vadd.f32 %v1351_v36, %v766_v59  ;;  %v1142_v4 = vpop.f32.mrf.mxu0  ;;  %v1174_v8 = vpop.f32.mrf.mxu1 }
 0x10d   : > { %931 = vst.msk [vmem:[%s1362_s6 + $0xc0] sm:$0xff] %vm906_vm1, %v866_v61  ;;  %v869_v5 = vmax.f32 %v805_v62, 0.0  ;;  %v803_v6 = vadd.f32 %v1351_v36, %v732_v63  ;;  %v737_v7 = vmul.f32 %v1142_v4, %v1346_v34  ;;  %v835_v10 = vadd.f32 %v1351_v36, %v764_v3 }
 0x10e   : > { %963 = vst.msk [vmem:[%s1362_s6 + $0x1c0] sm:$0xff] %vm906_vm1, %v898_v1  ;;  %v901_v9 = vmax.f32 %v837_v2, 0.0  ;;  %v769_v11 = vmul.f32 %v1174_v8, %v1346_v34  ;;  %v557_v12 = vpop.f32.mrf.mxu0  ;;  %v685_v16 = vpop.f32.mrf.mxu1 }
 0x10f   : > { %934 = vst.msk [vmem:[%s1362_s6 + $0xd8] sm:$0xff] %vm906_vm1, %v869_v5  ;;  %v867_v13 = vmax.f32 %v803_v6, 0.0  ;;  %v808_v14 = vadd.f32 %v1351_v36, %v737_v7  ;;  %v735_v15 = vmul.f32 %v1346_v34, %v557_v12  ;;  %v899_v17 = vmax.f32 %v835_v10, 0.0 }
 0x110   : > { %966 = vst.msk [vmem:[%s1362_s6 + $0x1d8] sm:$0xff] %vm906_vm1, %v901_v9  ;;  %v840_v18 = vadd.f32 %v1351_v36, %v769_v11  ;;  %v767_v19 = vmul.f32 %v1346_v34, %v685_v16  ;;  %v1143_v20 = vpop.f32.mrf.mxu0  ;;  %v1175_v24 = vpop.f32.mrf.mxu1 }
 0x111   : > { %932 = vst.msk [vmem:[%s1362_s6 + $0xc8] sm:$0xff] %vm906_vm1, %v867_v13  ;;  %v872_v21 = vmax.f32 %v808_v14, 0.0  ;;  %v806_v22 = vadd.f32 %v1351_v36, %v735_v15  ;;  %v738_v23 = vmul.f32 %v1143_v20, %v1346_v34  ;;  %964 = vst.msk [vmem:[%s1362_s6 + $0x1c8] sm:$0xff] %vm906_vm1, %v899_v17  ;;  %v770_v27 = vmul.f32 %v1175_v24, %v1346_v34 }
 0x112   : > { %v904_v25 = vmax.f32 %v840_v18, 0.0  ;;  %v838_v26 = vadd.f32 %v1351_v36, %v767_v19  ;;  %v560_v28 = vpop.f32.mrf.mxu0  ;;  %v688_v32 = vpop.f32.mrf.mxu1 }
 0x113   : > { %937 = vst.msk [vmem:[%s1362_s6 + $0xf0] sm:$0xff] %vm906_vm1, %v872_v21  ;;  %v870_v29 = vmax.f32 %v806_v22, 0.0  ;;  %v809_v30 = vadd.f32 %v1351_v36, %v738_v23  ;;  %v736_v31 = vmul.f32 %v1346_v34, %v560_v28  ;;  %v841_v35 = vadd.f32 %v1351_v36, %v770_v27 }
 0x114   : > { %969 = vst.msk [vmem:[%s1362_s6 + $0x1f0] sm:$0xff] %vm906_vm1, %v904_v25  ;;  %v902_v33 = vmax.f32 %v838_v26, 0.0  ;;  %v768_v37 = vmul.f32 %v1346_v34, %v688_v32 }
 0x115   : > { %935 = vst.msk [vmem:[%s1362_s6 + $0xe0] sm:$0xff] %vm906_vm1, %v870_v29  ;;  %v873_v38 = vmax.f32 %v809_v30, 0.0  ;;  %v807_v39 = vadd.f32 %v1351_v36, %v736_v31  ;;  %v905_v40 = vmax.f32 %v841_v35, 0.0 }
 0x116   : > { %967 = vst.msk [vmem:[%s1362_s6 + $0x1e0] sm:$0xff] %vm906_vm1, %v902_v33  ;;  %v839_v41 = vadd.f32 %v1351_v36, %v768_v37 }
 0x117   : > { %938 = vst.msk [vmem:[%s1362_s6 + $0xf8] sm:$0xff] %vm906_vm1, %v873_v38  ;;  %v871_v42 = vmax.f32 %v807_v39, 0.0  ;;  %970 = vst.msk [vmem:[%s1362_s6 + $0x1f8] sm:$0xff] %vm906_vm1, %v905_v40 }
 0x118   : > { %v903_v43 = vmax.f32 %v839_v41, 0.0 }
 0x119   : > { %936 = vst.msk [vmem:[%s1362_s6 + $0xe8] sm:$0xff] %vm906_vm1, %v871_v42 }
 0x11a   : > { %968 = vst.msk [vmem:[%s1362_s6 + $0x1e8] sm:$0xff] %vm906_vm1, %v903_v43 }
 0x11b PF: > { %s14_s15 = sadd.s32 1, %s1196_s15  }
 0x11c   : > { %p11_p4 = scmp.ge.s32.totalorder %s14_s15, 6  }
 0x11e   :  { %13 = sbr.rel (!%p11_p4) target bundleno = 1 (0x1), region = 66 }

// kernel: _lambda_.30
= control target key start
LH: loop header
LB: loop body
LE: loop exit
PB: predicated region body
PF: predicated region fallthrough
CT: control target
= control target key end

     0   :  { %s1018_s24 = smov 0   ;;  %s1316_s0 = inlined_call_operand.vmem [shape: f32[2,9,9,8], index: 0, kind: input, shape index: {}]   ;;  %s1317_s1 = inlined_call_operand.vmem [shape: f32[2,9,9,8], index: 1, kind: input, shape index: {}]   ;;  %s1318_s2 = inlined_call_operand.vmem [shape: f32[2,9,9,8], index: 2, kind: input, shape index: {}]   ;;  %s1319_s3 = inlined_call_operand.vmem [shape: f32[2,9,9,8], index: 3, kind: input, shape index: {}]   ;;  %s1320_s4 = inlined_call_operand.vmem [shape: f32[9,1,1,8], index: 4, kind: input, shape index: {}]   ;;  %s1321_s5 = inlined_call_operand.vmem [shape: f32[1,1,8], index: 5, kind: input, shape index: {}]   ;;  %s1322_s6 = inlined_call_operand.vmem [shape: f32[1,1,8], index: 6, kind: input, shape index: {}]   ;;  %s1323_s7 = inlined_call_operand.vmem [shape: f32[2,8,8,8], index: 7, kind: output, shape index: {}]  }
   0x1 LB: > { %s928_s25 = sadd.s32 4294967295, %s976_s24   ;;  %p932_p0 = scmp.ge.s32.totalorder %s976_s24, 1  ;;  %s976_s24 = sphi %s1018_s24, %s17_s24  }
   0x2   : > { %p267_p1 = scmp.lt.s32.totalorder %s976_s24, 3 }
   0x4   : > { %p268_p2 = pnand %p932_p0, %p267_p1 }
   0x5   : > { %p314_p3 = scmp.lt.s32.totalorder (!%p268_p2), %s928_s25, 1 }
   0x6   : > { %271 = sbr.rel (%p268_p2) target bundleno = 93 (0x5d), region = 48 }
   0xb   : > { %s1325_s25 = smov (!%p314_p3, %s928_s25), 1  ;;  %v1032_v0 = vld [vmem:[%s1320_s4] ss:$0 sm:$0xff]  ;;  %v1037_v1 = vld [vmem:[%s1320_s4 + $0x1] ss:$0 sm:$0xff]  ;;  %vm621_vm0 = vcmask 1046528  }
   0xc   : > { %s961_s26 = smul.u32 144, %s1325_s25  ;;  %v1042_v2 = vld [vmem:[%s1320_s4 + $0x2] ss:$0 sm:$0xff]  ;;  %v1047_v3 = vld [vmem:[%s1320_s4 + $0x3] ss:$0 sm:$0xff]  ;;  %vm828_vm1 = vcmask 64512  }
   0xd   : > { %v1052_v4 = vld [vmem:[%s1320_s4 + $0x6] ss:$0 sm:$0xff]  ;;  %v1067_v5 = vld [vmem:[%s1320_s4 + $0x4] ss:$0 sm:$0xff]  ;;  %v1072_v6 = vld [vmem:[%s1320_s4 + $0x5] ss:$0 sm:$0xff] }
   0xe   : > { %s1057_s16 = scalar_lea.vmem %s1316_s0, %s961_s26  ;;  %s1062_s19 = scalar_lea.vmem %s1317_s1, %s961_s26  ;;  %v1077_v7 = vld [vmem:[%s1320_s4 + $0x7] ss:$0 sm:$0xff]  ;;  %v1082_v8 = vld [vmem:[%s1320_s4 + $0x8] ss:$0 sm:$0xff] }
   0xf   : > { %s1087_s10 = scalar_lea.vmem %s1318_s2, %s961_s26  ;;  %s1092_s13 = scalar_lea.vmem %s1319_s3, %s961_s26  ;;  %v339_v9 = vld [vmem:[%s1057_s16] sm:$0xff]  ;;  %v340_v10 = vld [vmem:[%s1057_s16 + $0x8] sm:$0x1]  ;;  %v341_v11 = vld [vmem:[%s1057_s16 + $0x10] sm:$0xff] }
  0x10   : > { %v342_v12 = vld [vmem:[%s1057_s16 + $0x18] sm:$0x1]  ;;  %v357_v13 = vld [vmem:[%s1062_s19] sm:$0xff]  ;;  %v358_v14 = vld [vmem:[%s1062_s19 + $0x10] sm:$0xff]  ;;  %v397_v15 = vmul.f32 %v1032_v0, %v339_v9  ;;  %v509_v16 = vmul.f32 %v1052_v4, %v341_v11  ;;  %v429_v21 = vmul.f32 %v1042_v2, %v339_v9  ;;  %v541_v23 = vmul.f32 %v1082_v8, %v341_v11  ;;  %s960_s15 = sshll.u32 %s1325_s25, 6 }
  0x11   : > { %v366_v17 = vld [vmem:[%s1087_s10] sm:$0xff]  ;;  %v367_v18 = vld [vmem:[%s1087_s10 + $0x8] sm:$0x1]  ;;  %v413_v20 = vmul.f32 %v1037_v1, %v357_v13  ;;  %v525_v22 = vmul.f32 %v1077_v7, %v358_v14  ;;  %v430_v24 = vmul.f32 %v1042_v2, %v340_v10  ;;  %v432_v28 = vmul.f32 %v1042_v2, %v342_v12  ;;  %v368_v32 = vld [vmem:[%s1087_s10 + $0x10] sm:$0xff]  ;;  %s1169_s21 = scalar_lea.vmem %s1323_s7, %s960_s15 }
  0x12   : > { %v382_v19 = vld [vmem:[%s1092_s13] sm:$0xff]  ;;  %v453_v25 = vmul.f32 %v1047_v3, %v366_v17  ;;  %v485_v26 = vmul.f32 %v1072_v6, %v366_v17  ;;  %v486_v27 = vmul.f32 %v1072_v6, %v367_v18  ;;  %v542_v30 = vmul.f32 %v1082_v8, %v342_v12  ;;  %v344_v37 = vld [vmem:[%s1057_s16 + $0x28] sm:$0x1]  ;;  %v369_v40 = vld [vmem:[%s1087_s10 + $0x18] sm:$0x1] }
  0x13   : > { %v469_v29 = vmul.f32 %v1067_v5, %v382_v19  ;;  %v557_v31 = vadd.f32 %v413_v20, %v397_v15  ;;  %v662_v36 = vadd.f32 %v525_v22, %v509_v16  ;;  %v758_v38 = vrot.slane %v541_v23, 1  ;;  %v359_v46 = vld [vmem:[%s1062_s19 + $0x20] sm:$0xff]  ;;  %v383_v50 = vld [vmem:[%s1092_s13 + $0x10] sm:$0xff]  ;;  %v371_v23 = vld [vmem:[%s1087_s10 + $0x28] sm:$0x1] }
  0x14   : > { %v573_v33 = vrot.slane %v453_v25, 7  ;;  %v622_v34 = vrot.slane %v485_v26, 1  ;;  %v623_v35 = vrot.slane %v486_v27, 1  ;;  %v759_v39 = vrot.slane %v542_v30, 1  ;;  %v343_v49 = vld [vmem:[%s1057_s16 + $0x20] sm:$0xff] }
  0x15   : > { %v398_v41 = vmul.f32 %v1032_v0, %v341_v11  ;;  %v414_v42 = vmul.f32 %v1037_v1, %v358_v14  ;;  %v454_v47 = vmul.f32 %v1047_v3, %v368_v32  ;;  %v431_v51 = vmul.f32 %v1042_v2, %v341_v11  ;;  %v370_v19 = vld [vmem:[%s1087_s10 + $0x20] sm:$0xff] }
  0x16   : > { %v589_v43 = vadd.f32 %v573_v33, %v429_v21  ;;  %v590_v44 = vadd.f32 %v573_v33, %v430_v24  ;;  %v624_v45 = vsel %vm621_vm0, %v622_v34, %v623_v35  ;;  %v434_v52 = vmul.f32 %v1042_v2, %v344_v37  ;;  %v1144_v25 = vld [vmem:[%s1321_s5] ss:$0 sm:$0xff] }
  0x17   : > { %v654_v48 = vadd.f32 %v624_v45, %v469_v29  ;;  %v487_v53 = vmul.f32 %v1072_v6, %v368_v32  ;;  %v488_v56 = vmul.f32 %v1072_v6, %v369_v40  ;;  %v510_v57 = vmul.f32 %v1052_v4, %v343_v49  ;;  %v360_v29 = vld [vmem:[%s1062_s19 + $0x30] sm:$0xff]  ;;  %v384_v33 = vld [vmem:[%s1092_s13 + $0x20] sm:$0xff] }
  0x18   : > { %v686_v54 = vrot.slane %v589_v43, 1  ;;  %v687_v55 = vrot.slane %v590_v44, 1  ;;  %v526_v59 = vmul.f32 %v1077_v7, %v359_v46  ;;  %v543_v60 = vmul.f32 %v1082_v8, %v343_v49  ;;  %v346_v44 = vld [vmem:[%s1057_s16 + $0x38] sm:$0x1] }
  0x19   : > { %v726_v58 = vadd.f32 %v662_v36, %v654_v48  ;;  %v544_v61 = vmul.f32 %v1082_v8, %v344_v37  ;;  %v470_v63 = vmul.f32 %v1067_v5, %v383_v50  ;;  %v574_v9 = vrot.slane %v454_v47, 7  ;;  %v1156_v36 = vld [vmem:[%s1322_s6] ss:$0 sm:$0xff] }
  0x1a   : > { %v688_v62 = vsel %vm621_vm0, %v686_v54, %v687_v55  ;;  %v625_v10 = vrot.slane %v487_v53, 1  ;;  %v760_v12 = vsel %vm621_vm0, %v758_v38, %v759_v39  ;;  %v626_v13 = vrot.slane %v488_v56, 1  ;;  %v345_v39 = vld [vmem:[%s1057_s16 + $0x30] sm:$0xff] }
  0x1b   : > { %v718_v11 = vadd.f32 %v688_v62, %v557_v31  ;;  %v761_v14 = vrot.slane %v543_v60, 1  ;;  %v591_v15 = vadd.f32 %v574_v9, %v431_v51  ;;  %v592_v16 = vadd.f32 %v574_v9, %v432_v28  ;;  %v372_v9 = vld [vmem:[%s1087_s10 + $0x30] sm:$0xff] }
  0x1c   : > { %v663_v17 = vadd.f32 %v526_v59, %v510_v57  ;;  %v762_v18 = vrot.slane %v544_v61, 1  ;;  %v558_v21 = vadd.f32 %v414_v42, %v398_v41  ;;  %v627_v22 = vsel %vm621_vm0, %v625_v10, %v626_v13 }
  0x1d   : > { %v734_v20 = vadd.f32 %v726_v58, %v718_v11  ;;  %v399_v24 = vmul.f32 %v1032_v0, %v343_v49  ;;  %v655_v26 = vadd.f32 %v627_v22, %v470_v63  ;;  %v689_v27 = vrot.slane %v591_v15, 1 }
  0x1e   : > { %v690_v28 = vrot.slane %v592_v16, 1  ;;  %v415_v30 = vmul.f32 %v1037_v1, %v359_v46  ;;  %v763_v32 = vsel %vm621_vm0, %v761_v14, %v762_v18  ;;  %v433_v34 = vmul.f32 %v1042_v2, %v343_v49  ;;  %v361_v16 = vld [vmem:[%s1062_s19 + $0x40] sm:$0xff] }
  0x1f   : > { %v790_v31 = vadd.f32 %v760_v12, %v734_v20  ;;  %v455_v35 = vmul.f32 %v1047_v3, %v370_v19  ;;  %v727_v38 = vadd.f32 %v663_v17, %v655_v26  ;;  %v489_v40 = vmul.f32 %v1072_v6, %v370_v19 }
  0x20   : > { %v691_v37 = vsel %vm621_vm0, %v689_v27, %v690_v28  ;;  %v490_v41 = vmul.f32 %v1072_v6, %v371_v23  ;;  %v511_v45 = vmul.f32 %v1052_v4, %v345_v39  ;;  %v527_v46 = vmul.f32 %v1077_v7, %v360_v29  ;;  %v347_v27 = vld [vmem:[%s1057_s16 + $0x40] sm:$0xff]  ;;  %v348_v28 = vld [vmem:[%s1057_s16 + $0x48] sm:$0x1] }
  0x21   : > { %v805_v42 = vmul.f32 %v1144_v25, %v790_v31  ;;  %v719_v43 = vadd.f32 %v691_v37, %v558_v21  ;;  %v471_v47 = vmul.f32 %v1067_v5, %v384_v33  ;;  %v545_v48 = vmul.f32 %v1082_v8, %v345_v39  ;;  %v385_v21 = vld [vmem:[%s1092_s13 + $0x30] sm:$0xff] }
  0x22   : > { %v546_v49 = vmul.f32 %v1082_v8, %v346_v44  ;;  %v575_v50 = vrot.slane %v455_v35, 7  ;;  %v628_v54 = vrot.slane %v489_v40, 1  ;;  %v629_v55 = vrot.slane %v490_v41, 1 }
  0x23   : > { %v820_v51 = vadd.f32 %v1156_v36, %v805_v42  ;;  %v735_v53 = vadd.f32 %v727_v38, %v719_v43  ;;  %v664_v58 = vadd.f32 %v527_v46, %v511_v45  ;;  %v764_v59 = vrot.slane %v545_v48, 1  ;;  %v374_v48 = vld [vmem:[%s1087_s10 + $0x40] sm:$0xff] }
  0x24   : > { %v593_v56 = vadd.f32 %v575_v50, %v433_v34  ;;  %v594_v57 = vadd.f32 %v575_v50, %v434_v52  ;;  %v559_v61 = vadd.f32 %v415_v30, %v399_v24  ;;  %v630_v62 = vsel %vm621_vm0, %v628_v54, %v629_v55  ;;  %v373_v52 = vld [vmem:[%s1087_s10 + $0x38] sm:$0x1] }
  0x25   : > { %829 = vst.msk [vmem:[%s1169_s21] sm:$0xff] %vm828_vm1, %v820_v51  ;;  %v791_v60 = vadd.f32 %v763_v32, %v735_v53  ;;  %v765_v63 = vrot.slane %v546_v49, 1  ;;  %v436_v10 = vmul.f32 %v1042_v2, %v346_v44  ;;  %v656_v11 = vadd.f32 %v630_v62, %v471_v47  ;;  %v375_v53 = vld [vmem:[%s1087_s10 + $0x48] sm:$0x1] }
  0x26   : > { %v692_v12 = vrot.slane %v593_v56, 1  ;;  %v693_v13 = vrot.slane %v594_v57, 1  ;;  %v400_v17 = vmul.f32 %v1032_v0, %v345_v39  ;;  %v416_v18 = vmul.f32 %v1037_v1, %v360_v29 }
  0x27   : > { %v806_v14 = vmul.f32 %v1144_v25, %v791_v60  ;;  %v766_v15 = vsel %vm621_vm0, %v764_v59, %v765_v63  ;;  %v728_v20 = vadd.f32 %v664_v58, %v656_v11  ;;  %v435_v22 = vmul.f32 %v1042_v2, %v345_v39  ;;  %v362_v59 = vld [vmem:[%s1062_s19 + $0x50] sm:$0xff]  ;;  %v386_v60 = vld [vmem:[%s1092_s13 + $0x40] sm:$0xff] }
  0x28   : > { %v694_v19 = vsel %vm621_vm0, %v692_v12, %v693_v13  ;;  %v456_v23 = vmul.f32 %v1047_v3, %v372_v9  ;;  %v491_v30 = vmul.f32 %v1072_v6, %v372_v9  ;;  %v492_v31 = vmul.f32 %v1072_v6, %v373_v52  ;;  %v349_v13 = vld [vmem:[%s1057_s16 + $0x50] sm:$0xff]  ;;  %v350_v52 = vld [vmem:[%s1057_s16 + $0x58] sm:$0x1] }
  0x29   : > { %v821_v24 = vadd.f32 %v1156_v36, %v806_v14  ;;  %v720_v26 = vadd.f32 %v694_v19, %v559_v61  ;;  %v512_v29 = vmul.f32 %v1052_v4, %v347_v27  ;;  %v528_v32 = vmul.f32 %v1077_v7, %v361_v16 }
  0x2a   : > { %v547_v33 = vmul.f32 %v1082_v8, %v347_v27  ;;  %v548_v34 = vmul.f32 %v1082_v8, %v348_v28  ;;  %v472_v37 = vmul.f32 %v1067_v5, %v385_v21  ;;  %v576_v38 = vrot.slane %v456_v23, 7 }
  0x2b   : > { %830 = vst.msk [vmem:[%s1169_s21 + $0x8] sm:$0xff] %vm828_vm1, %v821_v24  ;;  %v736_v35 = vadd.f32 %v728_v20, %v720_v26  ;;  %v631_v39 = vrot.slane %v491_v30, 1  ;;  %v438_v40 = vmul.f32 %v1042_v2, %v348_v28  ;;  %v632_v41 = vrot.slane %v492_v31, 1 }
  0x2c   : > { %v767_v42 = vrot.slane %v547_v33, 1  ;;  %v768_v43 = vrot.slane %v548_v34, 1  ;;  %v595_v45 = vadd.f32 %v576_v38, %v435_v22  ;;  %v596_v46 = vadd.f32 %v576_v38, %v436_v10 }
  0x2d   : > { %v792_v44 = vadd.f32 %v766_v15, %v736_v35  ;;  %v665_v47 = vadd.f32 %v528_v32, %v512_v29  ;;  %v560_v49 = vadd.f32 %v416_v18, %v400_v17  ;;  %v633_v50 = vsel %vm621_vm0, %v631_v39, %v632_v41  ;;  %v376_v32 = vld [vmem:[%s1087_s10 + $0x50] sm:$0xff] }
  0x2e   : > { %v769_v51 = vsel %vm621_vm0, %v767_v42, %v768_v43  ;;  %v401_v54 = vmul.f32 %v1032_v0, %v347_v27  ;;  %v657_v56 = vadd.f32 %v633_v50, %v472_v37  ;;  %v695_v57 = vrot.slane %v595_v45, 1  ;;  %v377_v37 = vld [vmem:[%s1087_s10 + $0x58] sm:$0x1]  ;;  %v363_v43 = vld [vmem:[%s1062_s19 + $0x60] sm:$0xff] }
  0x2f   : > { %v807_v55 = vmul.f32 %v1144_v25, %v792_v44  ;;  %v696_v58 = vrot.slane %v596_v46, 1  ;;  %v417_v61 = vmul.f32 %v1037_v1, %v361_v16  ;;  %v437_v62 = vmul.f32 %v1042_v2, %v347_v27  ;;  %v387_v46 = vld [vmem:[%s1092_s13 + $0x50] sm:$0xff] }
  0x30   : > { %v457_v63 = vmul.f32 %v1047_v3, %v374_v48  ;;  %v493_v9 = vmul.f32 %v1072_v6, %v374_v48  ;;  %v729_v12 = vadd.f32 %v665_v47, %v657_v56  ;;  %v494_v14 = vmul.f32 %v1072_v6, %v375_v53 }
  0x31   : > { %v822_v10 = vadd.f32 %v1156_v36, %v807_v55  ;;  %v697_v11 = vsel %vm621_vm0, %v695_v57, %v696_v58  ;;  %v513_v17 = vmul.f32 %v1052_v4, %v349_v13  ;;  %v529_v16 = vmul.f32 %v1077_v7, %v362_v59  ;;  %v352_v57 = vld [vmem:[%s1057_s16 + $0x68] sm:$0x1] }
  0x32   : > { %v721_v15 = vadd.f32 %v697_v11, %v560_v49  ;;  %v549_v18 = vmul.f32 %v1082_v8, %v349_v13  ;;  %v473_v19 = vmul.f32 %v1067_v5, %v386_v60  ;;  %v550_v20 = vmul.f32 %v1082_v8, %v350_v52 }
  0x33   : > { %831 = vst.msk [vmem:[%s1169_s21 + $0x10] sm:$0xff] %vm828_vm1, %v822_v10  ;;  %v577_v21 = vrot.slane %v457_v63, 7  ;;  %v634_v22 = vrot.slane %v493_v9, 1  ;;  %v440_v24 = vmul.f32 %v1042_v2, %v350_v52  ;;  %v635_v26 = vrot.slane %v494_v14, 1 }
  0x34   : > { %v737_v23 = vadd.f32 %v729_v12, %v721_v15  ;;  %v770_v27 = vrot.slane %v549_v18, 1  ;;  %v666_v31 = vadd.f32 %v529_v16, %v513_v17  ;;  %v771_v29 = vrot.slane %v550_v20, 1  ;;  %v378_v17 = vld [vmem:[%s1087_s10 + $0x60] sm:$0xff] }
  0x35   : > { %v597_v28 = vadd.f32 %v577_v21, %v437_v62  ;;  %v598_v30 = vadd.f32 %v577_v21, %v438_v40  ;;  %v561_v34 = vadd.f32 %v417_v61, %v401_v54  ;;  %v636_v35 = vsel %vm621_vm0, %v634_v22, %v635_v26  ;;  %v379_v26 = vld [vmem:[%s1087_s10 + $0x68] sm:$0x1] }
  0x36   : > { %v793_v33 = vadd.f32 %v769_v51, %v737_v23  ;;  %v402_v38 = vmul.f32 %v1032_v0, %v349_v13  ;;  %v658_v39 = vadd.f32 %v636_v35, %v473_v19  ;;  %v418_v44 = vmul.f32 %v1037_v1, %v362_v59  ;;  %v351_v51 = vld [vmem:[%s1057_s16 + $0x60] sm:$0xff]  ;;  %v353_v35 = vld [vmem:[%s1057_s16 + $0x70] sm:$0xff] }
  0x37   : > { %v698_v41 = vrot.slane %v597_v28, 1  ;;  %v699_v42 = vrot.slane %v598_v30, 1  ;;  %v772_v45 = vsel %vm621_vm0, %v770_v27, %v771_v29  ;;  %v439_v47 = vmul.f32 %v1042_v2, %v349_v13  ;;  %v364_v30 = vld [vmem:[%s1062_s19 + $0x70] sm:$0xff] }
  0x38   : > { %v808_v40 = vmul.f32 %v1144_v25, %v793_v33  ;;  %v458_v48 = vmul.f32 %v1047_v3, %v376_v32  ;;  %v730_v50 = vadd.f32 %v666_v31, %v658_v39  ;;  %v495_v53 = vmul.f32 %v1072_v6, %v376_v32  ;;  %v388_v31 = vld [vmem:[%s1092_s13 + $0x60] sm:$0xff] }
  0x39   : > { %v700_v49 = vsel %vm621_vm0, %v698_v41, %v699_v42  ;;  %v496_v54 = vmul.f32 %v1072_v6, %v377_v37  ;;  %v514_v58 = vmul.f32 %v1052_v4, %v351_v51  ;;  %v530_v59 = vmul.f32 %v1077_v7, %v363_v43  ;;  %v354_v42 = vld [vmem:[%s1057_s16 + $0x78] sm:$0x1] }
  0x3a   : > { %v823_v55 = vadd.f32 %v1156_v36, %v808_v40  ;;  %v722_v56 = vadd.f32 %v700_v49, %v561_v34  ;;  %v474_v60 = vmul.f32 %v1067_v5, %v387_v46  ;;  %v551_v61 = vmul.f32 %v1082_v8, %v351_v51 }
  0x3b   : > { %v552_v62 = vmul.f32 %v1082_v8, %v352_v57  ;;  %v578_v63 = vrot.slane %v458_v48, 7  ;;  %v637_v10 = vrot.slane %v495_v53, 1  ;;  %v638_v11 = vrot.slane %v496_v54, 1 }
  0x3c   : > { %832 = vst.msk [vmem:[%s1169_s21 + $0x18] sm:$0xff] %vm828_vm1, %v823_v55  ;;  %v738_v9 = vadd.f32 %v730_v50, %v722_v56  ;;  %v667_v12 = vadd.f32 %v530_v59, %v514_v58  ;;  %v773_v14 = vrot.slane %v551_v61, 1  ;;  %v442_v18 = vmul.f32 %v1042_v2, %v352_v57  ;;  %v380_v57 = vld [vmem:[%s1087_s10 + $0x70] sm:$0xff] }
  0x3d   : > { %v599_v13 = vadd.f32 %v578_v63, %v439_v47  ;;  %v600_v52 = vadd.f32 %v578_v63, %v440_v24  ;;  %v774_v15 = vrot.slane %v552_v62, 1  ;;  %v562_v19 = vadd.f32 %v418_v44, %v402_v38  ;;  %v381_v62 = vld [vmem:[%s1087_s10 + $0x78] sm:$0x1] }
  0x3e   : > { %v794_v16 = vadd.f32 %v772_v45, %v738_v9  ;;  %v639_v20 = vsel %vm621_vm0, %v637_v10, %v638_v11  ;;  %v403_v27 = vmul.f32 %v1032_v0, %v351_v51  ;;  %v419_v29 = vmul.f32 %v1037_v1, %v363_v43  ;;  %v355_v11 = vld [vmem:[%s1057_s16 + $0x80] sm:$0xff] }
  0x3f   : > { %v659_v21 = vadd.f32 %v639_v20, %v474_v60  ;;  %v701_v22 = vrot.slane %v599_v13, 1  ;;  %v702_v23 = vrot.slane %v600_v52, 1  ;;  %v775_v28 = vsel %vm621_vm0, %v773_v14, %v774_v15 }
  0x40   : > { %v809_v24 = vmul.f32 %v1144_v25, %v794_v16  ;;  %v459_v32 = vmul.f32 %v1047_v3, %v378_v17  ;;  %v441_v37 = vmul.f32 %v1042_v2, %v351_v51  ;;  %v497_v38 = vmul.f32 %v1072_v6, %v378_v17  ;;  %v389_v17 = vld [vmem:[%s1092_s13 + $0x70] sm:$0xff] }
  0x41   : > { %v703_v33 = vsel %vm621_vm0, %v701_v22, %v702_v23  ;;  %v731_v34 = vadd.f32 %v667_v12, %v659_v21  ;;  %v498_v44 = vmul.f32 %v1072_v6, %v379_v26  ;;  %v515_v43 = vmul.f32 %v1052_v4, %v353_v35  ;;  %v365_v12 = vld [vmem:[%s1062_s19 + $0x80] sm:$0xff] }
  0x42   : > { %v824_v39 = vadd.f32 %v1156_v36, %v809_v24  ;;  %v723_v41 = vadd.f32 %v703_v33, %v562_v19  ;;  %v475_v40 = vmul.f32 %v1067_v5, %v388_v31  ;;  %v531_v45 = vmul.f32 %v1077_v7, %v364_v30  ;;  %v356_v19 = vld [vmem:[%s1057_s16 + $0x88] sm:$0x1] }
  0x43   : > { %v553_v46 = vmul.f32 %v1082_v8, %v353_v35  ;;  %v554_v47 = vmul.f32 %v1082_v8, %v354_v42  ;;  %v579_v49 = vrot.slane %v459_v32, 7  ;;  %v640_v50 = vrot.slane %v497_v38, 1 }
  0x44   : > { %833 = vst.msk [vmem:[%s1169_s21 + $0x20] sm:$0xff] %vm828_vm1, %v824_v39  ;;  %v739_v48 = vadd.f32 %v731_v34, %v723_v41  ;;  %v641_v51 = vrot.slane %v498_v44, 1  ;;  %v444_v53 = vmul.f32 %v1042_v2, %v354_v42  ;;  %v668_v54 = vadd.f32 %v531_v45, %v515_v43 }
  0x45   : > { %v776_v55 = vrot.slane %v553_v46, 1  ;;  %v777_v56 = vrot.slane %v554_v47, 1  ;;  %v601_v59 = vadd.f32 %v579_v49, %v441_v37  ;;  %v602_v60 = vadd.f32 %v579_v49, %v442_v18 }
  0x46   : > { %v795_v58 = vadd.f32 %v775_v28, %v739_v48  ;;  %v642_v61 = vsel %vm621_vm0, %v640_v50, %v641_v51  ;;  %v563_v63 = vadd.f32 %v419_v29, %v403_v27  ;;  %v404_v13 = vmul.f32 %v1032_v0, %v353_v35 }
  0x47   : > { %v660_v9 = vadd.f32 %v642_v61, %v475_v40  ;;  %v778_v10 = vsel %vm621_vm0, %v776_v55, %v777_v56  ;;  %v704_v14 = vrot.slane %v601_v59, 1  ;;  %v705_v15 = vrot.slane %v602_v60, 1 }
  0x48   : > { %v810_v52 = vmul.f32 %v1144_v25, %v795_v58  ;;  %v460_v16 = vmul.f32 %v1047_v3, %v380_v57  ;;  %v443_v20 = vmul.f32 %v1042_v2, %v353_v35  ;;  %v499_v21 = vmul.f32 %v1072_v6, %v380_v57 }
  0x49   : > { %v732_v18 = vadd.f32 %v668_v54, %v660_v9  ;;  %v500_v22 = vmul.f32 %v1072_v6, %v381_v62  ;;  %v706_v0 = vsel %vm621_vm0, %v704_v14, %v705_v15  ;;  %v516_v26 = vmul.f32 %v1052_v4, %v355_v11 }
  0x4a   : > { %v825_v23 = vadd.f32 %v1156_v36, %v810_v52  ;;  %v532_v27 = vmul.f32 %v1077_v7, %v365_v12  ;;  %v724_v24 = vadd.f32 %v706_v0, %v563_v63  ;;  %v420_v28 = vmul.f32 %v1037_v1, %v364_v30 }
  0x4b   : > { %v476_v3 = vmul.f32 %v1067_v5, %v389_v17  ;;  %v555_v31 = vmul.f32 %v1082_v8, %v355_v11  ;;  %v556_v2 = vmul.f32 %v1082_v8, %v356_v19  ;;  %v580_v6 = vrot.slane %v460_v16, 7 }
  0x4c   : > { %834 = vst.msk [vmem:[%s1169_s21 + $0x28] sm:$0xff] %vm828_vm1, %v825_v23  ;;  %v643_v29 = vrot.slane %v499_v21, 1  ;;  %v644_v32 = vrot.slane %v500_v22, 1  ;;  %v740_v33 = vadd.f32 %v732_v18, %v724_v24  ;;  %v669_v34 = vadd.f32 %v532_v27, %v516_v26 }
  0x4d   : > { %v603_v35 = vadd.f32 %v580_v6, %v443_v20  ;;  %v604_v4 = vadd.f32 %v580_v6, %v444_v53  ;;  %v564_v1 = vadd.f32 %v420_v28, %v404_v13  ;;  %v779_v39 = vrot.slane %v555_v31, 1 }
  0x4e   : > { %v645_v7 = vsel %vm621_vm0, %v643_v29, %v644_v32  ;;  %v796_v37 = vadd.f32 %v778_v10, %v740_v33  ;;  %v780_v41 = vrot.slane %v556_v2, 1 }
  0x4f   : > { %v661_v30 = vadd.f32 %v645_v7, %v476_v3  ;;  %v707_v5 = vrot.slane %v603_v35, 1  ;;  %v708_v38 = vrot.slane %v604_v4, 1 }
  0x50   : > { %v811_v8 = vmul.f32 %v1144_v25, %v796_v37  ;;  %v781_v45 = vsel %vm621_vm0, %v779_v39, %v780_v41 }
  0x51   : > { %v733_v42 = vadd.f32 %v669_v34, %v661_v30  ;;  %v709_v44 = vsel %vm621_vm0, %v707_v5, %v708_v38 }
  0x52   : > { %v826_v43 = vadd.f32 %v1156_v36, %v811_v8  ;;  %v725_v40 = vadd.f32 %v709_v44, %v564_v1 }
  0x54   : > { %835 = vst.msk [vmem:[%s1169_s21 + $0x30] sm:$0xff] %vm828_vm1, %v826_v43  ;;  %v741_v46 = vadd.f32 %v733_v42, %v725_v40 }
  0x56   : > { %v797_v47 = vadd.f32 %v781_v45, %v741_v46 }
  0x58   : > { %v812_v48 = vmul.f32 %v1144_v25, %v797_v47 }
  0x5a   : > { %v827_v49 = vadd.f32 %v1156_v36, %v812_v48 }
  0x5c   : > { %836 = vst.msk [vmem:[%s1169_s21 + $0x38] sm:$0xff] %vm828_vm1, %v827_v49 }
  0x5d PF: > { %s17_s24 = sadd.s32 1, %s976_s24  }
  0x5e   : > { %p14_p4 = scmp.ge.s32.totalorder %s17_s24, 4  }
  0x60   :  { %16 = sbr.rel (!%p14_p4) target bundleno = 1 (0x1), region = 95 }

// kernel: _lambda_.31
= control target key start
LH: loop header
LB: loop body
LE: loop exit
PB: predicated region body
PF: predicated region fallthrough
CT: control target
= control target key end

     0   :  { %vm68_vm0 = vcmask 1043456   ;;  %vm43_vm1 = vcmask 64512   ;;  %s482_s1 = inlined_call_operand.vmem [shape: bf16[8,8], index: 1, kind: input, shape index: {}]   ;;  %s483_s0 = inlined_call_operand.vmem [shape: f32[128,8], index: 0, kind: input, shape index: {}]   ;;  %s484_s2 = inlined_call_operand.vmem [shape: f32[1,8], index: 2, kind: input, shape index: {}]   ;;  %s485_s3 = inlined_call_operand.vmem [shape: f32[1,8], index: 3, kind: input, shape index: {}]   ;;  %s486_s4 = inlined_call_operand.vmem [shape: f32[128,8], index: 4, kind: output, shape index: {}]  }
   0x1   :  { %v42_v0 = vld [vmem:[%s482_s1] sm:$0xf]  ;;  %v19_v2 = vld [vmem:[%s483_s0 + $0x8] sm:$0xff]  ;;  %v20_v7 = vld [vmem:[%s483_s0 + $0x10] sm:$0xff] }
   0x2   :  { %v18_v1 = vld [vmem:[%s483_s0] sm:$0xff]  ;;  %290 = vmatprep.subr.msk.bf16.mxu0 %vm68_vm0, %v42_v0  ;;  %291 = vmatprep.subr.msk.bf16.mxu1 %vm68_vm0, %v42_v0  ;;  %v70_v3 = vsel %vm68_vm0, %v42_v0, 0  ;;  %v27_v6 = vld [vmem:[%s483_s0 + $0x48] sm:$0xff]  ;;  %v21_v9 = vld [vmem:[%s483_s0 + $0x18] sm:$0xff] }
   0x3   :  { %v34_v4 = vpack.c.bf16 %v19_v2, %v18_v1  ;;  %v26_v5 = vld [vmem:[%s483_s0 + $0x40] sm:$0xff]  ;;  %271 = vmatpush3.bf16.msra.mxu0 %v70_v3  ;;  %289 = vmatpush3.bf16.msra.mxu1 %v70_v3  ;;  %v28_v10 = vld [vmem:[%s483_s0 + $0x50] sm:$0xff]  ;;  %v29_v11 = vld [vmem:[%s483_s0 + $0x58] sm:$0xff]  ;;  %v35_v12 = vpack.c.bf16 %v21_v9, %v20_v7 }
   0x4   :  { %v38_v8 = vpack.c.bf16 %v27_v6, %v26_v5  ;;  %v39_v13 = vpack.c.bf16 %v29_v11, %v28_v10  ;;  %v22_v14 = vld [vmem:[%s483_s0 + $0x20] sm:$0xff]  ;;  %v23_v15 = vld [vmem:[%s483_s0 + $0x28] sm:$0xff]  ;;  %v24_v20 = vld [vmem:[%s483_s0 + $0x30] sm:$0xff] }
   0x5   :  { %272 = vmatprep.mubr.msk.bf16.mxu0 %vm43_vm1, %v34_v4  ;;  %v30_v16 = vld [vmem:[%s483_s0 + $0x60] sm:$0xff]  ;;  %v36_v17 = vpack.c.bf16 %v23_v15, %v22_v14  ;;  %v31_v18 = vld [vmem:[%s483_s0 + $0x68] sm:$0xff]  ;;  %v25_v21 = vld [vmem:[%s483_s0 + $0x38] sm:$0xff] }
   0x6   :  { %280 = vmatprep.mubr.msk.bf16.mxu1 %vm43_vm1, %v38_v8  ;;  %273 = vmatmul.mubr.msk.bf16.vlgmr.msra.gmra.mxu0 %vm43_vm1, %v35_v12  ;;  %v40_v19 = vpack.c.bf16 %v31_v18, %v30_v16  ;;  %v32_v22 = vld [vmem:[%s483_s0 + $0x70] sm:$0xff]  ;;  %v33_v23 = vld [vmem:[%s483_s0 + $0x78] sm:$0xff]  ;;  %v37_v24 = vpack.c.bf16 %v25_v21, %v24_v20  ;;  %v379_v26 = vld [vmem:[%s484_s2] ss:$0 sm:$0xff] }
   0x7   :  { %281 = vmatmul.mubr.msk.bf16.vlgmr.msra.gmra.mxu1 %vm43_vm1, %v39_v13  ;;  %276 = vmatprep.mubr.msk.bf16.mxu0 %vm43_vm1, %v36_v17  ;;  %v41_v25 = vpack.c.bf16 %v33_v23, %v32_v22  ;;  %v384_v28 = vld [vmem:[%s485_s3] ss:$0 sm:$0xff] }
   0x8   :  { %284 = vmatprep.mubr.msk.bf16.mxu1 %vm43_vm1, %v40_v19 }
   0xe   :  { %277 = vmatmul.mubr.msk.bf16.gmra.mxu0 %vm43_vm1, %v37_v24 }
   0xf   :  { %285 = vmatmul.mubr.msk.bf16.gmra.mxu1 %vm43_vm1, %v41_v25 }
  0xc6   :  { %v274_v27 = vpop.f32.mrf.mxu0 }
  0xc7   :  { %v282_v29 = vpop.f32.mrf.mxu1  ;;  %v178_v30 = vmul.f32 %v274_v27, %v379_v26 }
  0xc8   :  { %v186_v31 = vmul.f32 %v282_v29, %v379_v26  ;;  %v106_v32 = vpop.f32.mrf.mxu0 }
  0xc9   :  { %v138_v33 = vpop.f32.mrf.mxu1  ;;  %v201_v34 = vadd.f32 %v384_v28, %v178_v30  ;;  %v176_v36 = vmul.f32 %v379_v26, %v106_v32 }
  0xca   :  { %v209_v35 = vadd.f32 %v384_v28, %v186_v31  ;;  %v184_v37 = vmul.f32 %v379_v26, %v138_v33  ;;  %v275_v38 = vpop.f32.mrf.mxu0 }
  0xcb   :  { %v283_v39 = vpop.f32.mrf.mxu1  ;;  %v217_v40 = vmax.f32 %v201_v34, 0.0  ;;  %v199_v42 = vadd.f32 %v384_v28, %v176_v36  ;;  %v179_v44 = vmul.f32 %v275_v38, %v379_v26 }
  0xcc   :  { %v225_v41 = vmax.f32 %v209_v35, 0.0  ;;  %v207_v43 = vadd.f32 %v384_v28, %v184_v37  ;;  %v187_v45 = vmul.f32 %v283_v39, %v379_v26  ;;  %v109_v46 = vpop.f32.mrf.mxu0 }
  0xcd   :  { %v141_v47 = vpop.f32.mrf.mxu1  ;;  %233 = vst.msk [vmem:[%s486_s4 + $0x10] sm:$0xff] %vm43_vm1, %v217_v40  ;;  %v215_v48 = vmax.f32 %v199_v42, 0.0  ;;  %v177_v50 = vmul.f32 %v379_v26, %v109_v46  ;;  %v202_v52 = vadd.f32 %v384_v28, %v179_v44 }
  0xce   :  { %241 = vst.msk [vmem:[%s486_s4 + $0x50] sm:$0xff] %vm43_vm1, %v225_v41  ;;  %v223_v49 = vmax.f32 %v207_v43, 0.0  ;;  %v185_v51 = vmul.f32 %v379_v26, %v141_v47  ;;  %v210_v53 = vadd.f32 %v384_v28, %v187_v45  ;;  %v278_v54 = vpop.f32.mrf.mxu0 }
  0xcf   :  { %v286_v55 = vpop.f32.mrf.mxu1  ;;  %231 = vst.msk [vmem:[%s486_s4] sm:$0xff] %vm43_vm1, %v215_v48  ;;  %v200_v56 = vadd.f32 %v384_v28, %v177_v50  ;;  %v182_v58 = vmul.f32 %v278_v54, %v379_v26  ;;  %v218_v60 = vmax.f32 %v202_v52, 0.0 }
  0xd0   :  { %239 = vst.msk [vmem:[%s486_s4 + $0x40] sm:$0xff] %vm43_vm1, %v223_v49  ;;  %v208_v57 = vadd.f32 %v384_v28, %v185_v51  ;;  %v190_v59 = vmul.f32 %v286_v55, %v379_v26  ;;  %v226_v61 = vmax.f32 %v210_v53, 0.0  ;;  %v122_v62 = vpop.f32.mrf.mxu0 }
  0xd1   :  { %v154_v63 = vpop.f32.mrf.mxu1  ;;  %v216_v0 = vmax.f32 %v200_v56, 0.0  ;;  %v205_v2 = vadd.f32 %v384_v28, %v182_v58  ;;  %234 = vst.msk [vmem:[%s486_s4 + $0x18] sm:$0xff] %vm43_vm1, %v218_v60  ;;  %v180_v4 = vmul.f32 %v379_v26, %v122_v62 }
  0xd2   :  { %v224_v1 = vmax.f32 %v208_v57, 0.0  ;;  %v213_v3 = vadd.f32 %v384_v28, %v190_v59  ;;  %242 = vst.msk [vmem:[%s486_s4 + $0x58] sm:$0xff] %vm43_vm1, %v226_v61  ;;  %v188_v5 = vmul.f32 %v379_v26, %v154_v63  ;;  %v279_v6 = vpop.f32.mrf.mxu0 }
  0xd3   :  { %v287_v7 = vpop.f32.mrf.mxu1  ;;  %232 = vst.msk [vmem:[%s486_s4 + $0x8] sm:$0xff] %vm43_vm1, %v216_v0  ;;  %v221_v8 = vmax.f32 %v205_v2, 0.0  ;;  %v183_v10 = vmul.f32 %v279_v6, %v379_v26  ;;  %v203_v12 = vadd.f32 %v384_v28, %v180_v4 }
  0xd4   :  { %240 = vst.msk [vmem:[%s486_s4 + $0x48] sm:$0xff] %vm43_vm1, %v224_v1  ;;  %v229_v9 = vmax.f32 %v213_v3, 0.0  ;;  %v191_v11 = vmul.f32 %v287_v7, %v379_v26  ;;  %v211_v13 = vadd.f32 %v384_v28, %v188_v5  ;;  %v125_v14 = vpop.f32.mrf.mxu0 }
  0xd5   :  { %v157_v15 = vpop.f32.mrf.mxu1  ;;  %237 = vst.msk [vmem:[%s486_s4 + $0x30] sm:$0xff] %vm43_vm1, %v221_v8  ;;  %v206_v16 = vadd.f32 %v384_v28, %v183_v10  ;;  %v181_v18 = vmul.f32 %v379_v26, %v125_v14  ;;  %v219_v20 = vmax.f32 %v203_v12, 0.0 }
  0xd6   :  { %245 = vst.msk [vmem:[%s486_s4 + $0x70] sm:$0xff] %vm43_vm1, %v229_v9  ;;  %v214_v17 = vadd.f32 %v384_v28, %v191_v11  ;;  %v189_v19 = vmul.f32 %v379_v26, %v157_v15  ;;  %v227_v21 = vmax.f32 %v211_v13, 0.0 }
  0xd7   :  { %v222_v22 = vmax.f32 %v206_v16, 0.0  ;;  %v204_v24 = vadd.f32 %v384_v28, %v181_v18  ;;  %235 = vst.msk [vmem:[%s486_s4 + $0x20] sm:$0xff] %vm43_vm1, %v219_v20 }
  0xd8   :  { %v230_v23 = vmax.f32 %v214_v17, 0.0  ;;  %v212_v25 = vadd.f32 %v384_v28, %v189_v19  ;;  %243 = vst.msk [vmem:[%s486_s4 + $0x60] sm:$0xff] %vm43_vm1, %v227_v21 }
  0xd9   :  { %238 = vst.msk [vmem:[%s486_s4 + $0x38] sm:$0xff] %vm43_vm1, %v222_v22  ;;  %v220_v26 = vmax.f32 %v204_v24, 0.0 }
  0xda   :  { %246 = vst.msk [vmem:[%s486_s4 + $0x78] sm:$0xff] %vm43_vm1, %v230_v23  ;;  %v228_v27 = vmax.f32 %v212_v25, 0.0 }
  0xdb   :  { %236 = vst.msk [vmem:[%s486_s4 + $0x28] sm:$0xff] %vm43_vm1, %v220_v26 }
  0xdc   :  { %244 = vst.msk [vmem:[%s486_s4 + $0x68] sm:$0xff] %vm43_vm1, %v228_v27 }

// kernel: _lambda_.29
= control target key start
LH: loop header
LB: loop body
LE: loop exit
PB: predicated region body
PF: predicated region fallthrough
CT: control target
= control target key end

     0   :  { %s1423_s15 = smov 0   ;;  %s2079_s0 = inlined_call_operand.vmem [shape: f32[2,17,17,8], index: 0, kind: input, shape index: {}]   ;;  %s2080_s1 = inlined_call_operand.vmem [shape: f32[2,17,17,8], index: 1, kind: input, shape index: {}]   ;;  %s2081_s2 = inlined_call_operand.vmem [shape: f32[2,17,17,8], index: 2, kind: input, shape index: {}]   ;;  %s2082_s3 = inlined_call_operand.vmem [shape: f32[2,17,17,8], index: 3, kind: input, shape index: {}]   ;;  %s2083_s4 = inlined_call_operand.vmem [shape: f32[2,16,16,8], index: 4, kind: output, shape index: {}]  }
   0x1 LB: > { %s1367_s16 = sadd.s32 4294967295, %s1396_s15   ;;  %p1371_p0 = scmp.ge.s32.totalorder %s1396_s15, 1  ;;  %s1396_s15 = sphi %s1423_s15, %s14_s15  }
   0x2   : > { %p192_p1 = scmp.lt.s32.totalorder %s1396_s15, 3 }
   0x4   : > { %p193_p2 = pnand %p1371_p0, %p192_p1 }
   0x5   : > { %p233_p3 = scmp.lt.s32.totalorder (!%p193_p2), %s1367_s16, 1 }
   0x6   : > { %196 = sbr.rel (%p193_p2) target bundleno = 157 (0x9d), region = 36 }
   0xb   : > { %s2085_s16 = smov (!%p233_p3, %s1367_s16), 1  ;;  %vm487_vm0 = vcmask 1040384   ;;  %vm648_vm1 = vcmask 1046528   ;;  %vm1243_vm2 = vcmask 64512  }
   0xc   : > { %s1381_s17 = smul.u32 408, %s2085_s16  ;;  %s1380_s30 = sshll.u32 %s2085_s16, 8 }
   0xd   : > { %s1516_s7 = scalar_lea.vmem %s2083_s4, %s1380_s30 }
   0xe   : > { %s1437_s20 = scalar_lea.vmem %s2079_s0, %s1381_s17  ;;  %s1442_s23 = scalar_lea.vmem %s2080_s1, %s1381_s17 }
   0xf   : > { %s1447_s26 = scalar_lea.vmem %s2081_s2, %s1381_s17  ;;  %s1452_s29 = scalar_lea.vmem %s2082_s3, %s1381_s17  ;;  %v261_v0 = vld [vmem:[%s1437_s20 + $0x18] sm:$0xff]  ;;  %v1456_v1 = vld [vmem:[%s1437_s20 + $0x20] sm:$0xff]  ;;  %v259_v9 = vld [vmem:[%s1437_s20 + $0x8] sm:$0xff] }
  0x10   : > { %v309_v2 = vld [vmem:[%s1442_s23] sm:$0xff]  ;;  %v311_v3 = vld [vmem:[%s1442_s23 + $0x18] sm:$0xff]  ;;  %v1099_v4 = vrot.slane %v261_v0, 1  ;;  %v344_v7 = vld [vmem:[%s1447_s26 + $0x8] sm:$0xff]  ;;  %v1100_v8 = vrot.slane %v1456_v1, 1 }
  0x11   : > { %v258_v5 = vld [vmem:[%s1437_s20] sm:$0xff]  ;;  %v489_v12 = vrot.slane %v344_v7, 7  ;;  %v650_v14 = vrot.slane %v344_v7, 1  ;;  %v1466_v16 = vmax.f32 %v261_v0, %v311_v3  ;;  %v260_v18 = vld [vmem:[%s1437_s20 + $0x10] sm:$0x1]  ;;  %v310_v19 = vld [vmem:[%s1442_s23 + $0x8] sm:$0xff] }
  0x12   : > { %v343_v6 = vld [vmem:[%s1447_s26] sm:$0xff]  ;;  %v423_v15 = vmax.f32 %v258_v5, %v309_v2  ;;  %v1101_v17 = vsel %vm648_vm1, %v1099_v4, %v1100_v8  ;;  %v263_v24 = vld [vmem:[%s1437_s20 + $0x28] sm:$0x1]  ;;  %v345_v25 = vld [vmem:[%s1447_s26 + $0x10] sm:$0x1]  ;;  %v424_v27 = vmax.f32 %v259_v9, %v310_v19 }
  0x13   : > { %v391_v10 = vld [vmem:[%s1452_s29] sm:$0xff]  ;;  %v488_v11 = vrot.slane %v343_v6, 7  ;;  %v649_v13 = vrot.slane %v343_v6, 1  ;;  %v313_v32 = vld [vmem:[%s1442_s23 + $0x30] sm:$0xff]  ;;  %v392_v34 = vld [vmem:[%s1452_s29 + $0x8] sm:$0xff]  ;;  %v586_v35 = vmax.f32 %v260_v18, %v489_v12  ;;  %v652_v36 = vrot.slane %v345_v25, 1 }
  0x14   : > { %v312_v20 = vld [vmem:[%s1442_s23 + $0x20] sm:$0xff]  ;;  %v1102_v37 = vrot.slane %v263_v24, 1  ;;  %v1486_v38 = vld [vmem:[%s1437_s20 + $0x30] sm:$0xff]  ;;  %v346_v39 = vld [vmem:[%s1447_s26 + $0x18] sm:$0xff] }
  0x15   : > { %v490_v21 = vsel %vm487_vm0, %v488_v11, %v489_v12  ;;  %v584_v22 = vmax.f32 %v258_v5, %v488_v11  ;;  %v651_v23 = vsel %vm648_vm1, %v649_v13, %v650_v14  ;;  %v1477_v26 = vld [vmem:[%s1447_s26 + $0x20] sm:$0xff]  ;;  %v1480_v30 = vmax.f32 %v1456_v1, %v312_v20  ;;  %v314_v56 = vld [vmem:[%s1442_s23 + $0x38] sm:$0xff]  ;;  %v348_v5 = vld [vmem:[%s1447_s26 + $0x28] sm:$0x1] }
  0x16   : > { %v585_v28 = vmax.f32 %v259_v9, %v490_v21  ;;  %v761_v29 = vmax.f32 %v391_v10, %v651_v23  ;;  %v492_v31 = vrot.slane %v1477_v26, 7  ;;  %v1491_v43 = vmax.f32 %v1486_v38, %v313_v32  ;;  %v1502_v59 = vld [vmem:[%s1437_s20 + $0x38] sm:$0xff]  ;;  %v394_v20 = vld [vmem:[%s1452_s29 + $0x20] sm:$0xff] }
  0x17   : > { %v843_v33 = vrot.slane %v584_v22, 1  ;;  %v653_v44 = vsel %vm648_vm1, %v650_v14, %v652_v36  ;;  %v846_v45 = vrot.slane %v586_v35, 1  ;;  %v1103_v46 = vsel %vm648_vm1, %v1100_v8, %v1102_v37  ;;  %v393_v60 = vld [vmem:[%s1452_s29 + $0x18] sm:$0xff]  ;;  %v266_v8 = vld [vmem:[%s1437_s20 + $0x40] sm:$0x1]  ;;  %v315_v14 = vld [vmem:[%s1442_s23 + $0x48] sm:$0xff] }
  0x18   : > { %v844_v40 = vrot.slane %v585_v28, 1  ;;  %v987_v41 = vmax.f32 %v761_v29, %v1466_v16  ;;  %v589_v42 = vmax.f32 %v263_v24, %v492_v31  ;;  %v491_v47 = vrot.slane %v346_v39, 7  ;;  %v1508_v63 = vld [vmem:[%s1447_s26 + $0x38] sm:$0xff]  ;;  %v395_v36 = vld [vmem:[%s1452_s29 + $0x30] sm:$0xff] }
  0x19   : > { %v762_v49 = vmax.f32 %v392_v34, %v653_v44  ;;  %v654_v51 = vrot.slane %v346_v39, 1  ;;  %v655_v62 = vrot.slane %v1477_v26, 1  ;;  %v1105_v4 = vrot.slane %v1502_v59, 1  ;;  %v1536_v26 = vld [vmem:[%s1437_s20 + $0x48] sm:$0xff] }
  0x1a   : > { %v845_v48 = vsel %vm648_vm1, %v843_v33, %v844_v40  ;;  %v851_v50 = vrot.slane %v589_v42, 1  ;;  %v847_v53 = vsel %vm648_vm1, %v844_v40, %v846_v45  ;;  %v493_v54 = vsel %vm487_vm0, %v491_v47, %v492_v31  ;;  %v268_v45 = vld [vmem:[%s1437_s20 + $0x50] sm:$0xff] }
  0x1b   : > { %v955_v52 = vmax.f32 %v423_v15, %v845_v48  ;;  %v587_v55 = vmax.f32 %v261_v0, %v491_v47  ;;  %v956_v57 = vmax.f32 %v424_v27, %v847_v53  ;;  %v988_v58 = vmax.f32 %v762_v49, %v1480_v30  ;;  %v349_v15 = vld [vmem:[%s1447_s26 + $0x30] sm:$0xff]  ;;  %v351_v48 = vld [vmem:[%s1447_s26 + $0x40] sm:$0x1] }
  0x1c   : > { %v588_v61 = vmax.f32 %v1456_v1, %v493_v54  ;;  %v1104_v0 = vrot.slane %v1486_v38, 1  ;;  %v656_v6 = vsel %vm648_vm1, %v654_v51, %v655_v62  ;;  %v1521_v9 = vmax.f32 %v1502_v59, %v314_v56  ;;  %v317_v49 = vld [vmem:[%s1442_s23 + $0x60] sm:$0xff] }
  0x1d   : > { %v1019_v2 = vmax.f32 %v955_v52, %v987_v41  ;;  %v848_v3 = vrot.slane %v587_v55, 1  ;;  %v1020_v1 = vmax.f32 %v956_v57, %v988_v58  ;;  %v763_v11 = vmax.f32 %v393_v60, %v656_v6  ;;  %v1551_v41 = vld [vmem:[%s1447_s26 + $0x50] sm:$0xff]  ;;  %v269_v52 = vld [vmem:[%s1437_s20 + $0x58] sm:$0x1]  ;;  %v1567_v58 = vld [vmem:[%s1437_s20 + $0x60] sm:$0xff] }
  0x1e   : > { %v849_v7 = vrot.slane %v588_v61, 1  ;;  %v1106_v12 = vsel %vm648_vm1, %v1104_v0, %v1105_v4  ;;  %v495_v13 = vrot.slane %v1508_v63, 7  ;;  %v657_v21 = vrot.slane %v348_v5, 1  ;;  %v396_v60 = vld [vmem:[%s1452_s29 + $0x38] sm:$0xff] }
  0x1f   : > { %v1211_v10 = vmax.f32 %v1019_v2, %v1101_v17  ;;  %v1212_v18 = vmax.f32 %v1020_v1, %v1103_v46  ;;  %v989_v23 = vmax.f32 %v763_v11, %v1491_v43  ;;  %v1107_v28 = vrot.slane %v266_v8, 1 }
  0x20   : > { %v850_v19 = vsel %vm648_vm1, %v848_v3, %v849_v7  ;;  %v852_v22 = vsel %vm648_vm1, %v849_v7, %v851_v50  ;;  %v592_v24 = vmax.f32 %v266_v8, %v495_v13  ;;  %v658_v27 = vsel %vm648_vm1, %v655_v62, %v657_v21 }
  0x21   : > { %1244 = vst.msk [vmem:[%s1516_s7] sm:$0xff] %vm1243_vm2, %v1211_v10  ;;  %v957_v17 = vmax.f32 %v1466_v16, %v850_v19  ;;  %v958_v25 = vmax.f32 %v1480_v30, %v852_v22  ;;  %1245 = vst.msk [vmem:[%s1516_s7 + $0x8] sm:$0xff] %vm1243_vm2, %v1212_v18  ;;  %v1542_v29 = vmax.f32 %v1536_v26, %v315_v14  ;;  %v494_v31 = vrot.slane %v349_v15, 7  ;;  %v316_v30 = vld [vmem:[%s1442_s23 + $0x50] sm:$0xff]  ;;  %v318_v14 = vld [vmem:[%s1442_s23 + $0x68] sm:$0xff] }
  0x22   : > { %v764_v32 = vmax.f32 %v394_v20, %v658_v27  ;;  %v856_v33 = vrot.slane %v592_v24, 1  ;;  %v659_v34 = vrot.slane %v349_v15, 1  ;;  %v1108_v35 = vsel %vm648_vm1, %v1105_v4, %v1107_v28  ;;  %v1586_v18 = vld [vmem:[%s1437_s20 + $0x68] sm:$0xff]  ;;  %v354_v24 = vld [vmem:[%s1447_s26 + $0x58] sm:$0x1] }
  0x23   : > { %v1021_v16 = vmax.f32 %v957_v17, %v989_v23  ;;  %v496_v37 = vsel %vm487_vm0, %v494_v31, %v495_v13  ;;  %v590_v39 = vmax.f32 %v1486_v38, %v494_v31  ;;  %v660_v40 = vrot.slane %v1508_v63, 1  ;;  %v352_v63 = vld [vmem:[%s1447_s26 + $0x48] sm:$0xff] }
  0x24   : > { %v990_v44 = vmax.f32 %v764_v32, %v1521_v9  ;;  %v591_v46 = vmax.f32 %v1502_v59, %v496_v37  ;;  %v1109_v47 = vrot.slane %v1536_v26, 1  ;;  %v1110_v51 = vrot.slane %v268_v45, 1  ;;  %v319_v32 = vld [vmem:[%s1442_s23 + $0x78] sm:$0xff] }
  0x25   : > { %v1213_v42 = vmax.f32 %v1021_v16, %v1106_v12  ;;  %v661_v50 = vsel %vm648_vm1, %v659_v34, %v660_v40  ;;  %v853_v38 = vrot.slane %v590_v39, 1  ;;  %v1561_v53 = vmax.f32 %v268_v45, %v316_v30  ;;  %v398_v39 = vld [vmem:[%s1452_s29 + $0x50] sm:$0xff] }
  0x26   : > { %v1022_v54 = vmax.f32 %v958_v25, %v990_v44  ;;  %v765_v55 = vmax.f32 %v395_v36, %v661_v50  ;;  %v854_v56 = vrot.slane %v591_v46, 1  ;;  %v498_v57 = vrot.slane %v1551_v41, 7  ;;  %v1597_v25 = vld [vmem:[%s1447_s26 + $0x68] sm:$0xff]  ;;  %v272_v36 = vld [vmem:[%s1437_s20 + $0x70] sm:$0x1]  ;;  %v1612_v44 = vld [vmem:[%s1437_s20 + $0x78] sm:$0xff] }
  0x27   : > { %1246 = vst.msk [vmem:[%s1516_s7 + $0x10] sm:$0xff] %vm1243_vm2, %v1213_v42  ;;  %v1111_v59 = vsel %vm648_vm1, %v1109_v47, %v1110_v51  ;;  %v662_v61 = vrot.slane %v351_v48, 1  ;;  %v1112_v62 = vrot.slane %v269_v52, 1  ;;  %v1573_v2 = vmax.f32 %v1567_v58, %v317_v49 }
  0x28   : > { %v1214_v3 = vmax.f32 %v1022_v54, %v1108_v35  ;;  %v855_v0 = vsel %vm648_vm1, %v853_v38, %v854_v56  ;;  %v991_v4 = vmax.f32 %v765_v55, %v1542_v29  ;;  %v595_v5 = vmax.f32 %v269_v52, %v498_v57 }
  0x29   : > { %v959_v1 = vmax.f32 %v1491_v43, %v855_v0  ;;  %v663_v6 = vsel %vm648_vm1, %v660_v40, %v662_v61  ;;  %v857_v7 = vsel %vm648_vm1, %v854_v56, %v856_v33  ;;  %v1113_v8 = vsel %vm648_vm1, %v1110_v51, %v1112_v62  ;;  %v397_v43 = vld [vmem:[%s1452_s29 + $0x48] sm:$0xff]  ;;  %v355_v33 = vld [vmem:[%s1447_s26 + $0x60] sm:$0xff] }
  0x2a   : > { %1247 = vst.msk [vmem:[%s1516_s7 + $0x18] sm:$0xff] %vm1243_vm2, %v1214_v3  ;;  %v766_v10 = vmax.f32 %v396_v60, %v663_v6  ;;  %v861_v11 = vrot.slane %v595_v5, 1  ;;  %v960_v12 = vmax.f32 %v1521_v9, %v857_v7  ;;  %v497_v13 = vrot.slane %v352_v63, 7  ;;  %v1628_v60 = vld [vmem:[%s1437_s20 + $0x80] sm:$0xff]  ;;  %v357_v5 = vld [vmem:[%s1447_s26 + $0x70] sm:$0x1] }
  0x2b   : > { %v1023_v15 = vmax.f32 %v959_v1, %v991_v4  ;;  %v664_v19 = vrot.slane %v352_v63, 1  ;;  %v665_v20 = vrot.slane %v1551_v41, 1  ;;  %v1114_v21 = vrot.slane %v1567_v58, 1  ;;  %v1638_v1 = vld [vmem:[%s1447_s26 + $0x80] sm:$0xff] }
  0x2c   : > { %v992_v22 = vmax.f32 %v766_v10, %v1561_v53  ;;  %v499_v17 = vsel %vm487_vm0, %v497_v13, %v498_v57  ;;  %v593_v9 = vmax.f32 %v1536_v26, %v497_v13  ;;  %v1115_v23 = vrot.slane %v1586_v18, 1  ;;  %v320_v57 = vld [vmem:[%s1442_s23 + $0x80] sm:$0xff] }
  0x2d   : > { %v1215_v27 = vmax.f32 %v1023_v15, %v1111_v59  ;;  %v594_v28 = vmax.f32 %v268_v45, %v499_v17  ;;  %v666_v31 = vsel %vm648_vm1, %v664_v19, %v665_v20  ;;  %v1601_v16 = vmax.f32 %v1586_v18, %v318_v14  ;;  %v275_v14 = vld [vmem:[%s1437_s20 + $0x88] sm:$0x1] }
  0x2e   : > { %v1024_v34 = vmax.f32 %v960_v12, %v992_v22  ;;  %v767_v30 = vmax.f32 %v397_v43, %v666_v31  ;;  %v858_v35 = vrot.slane %v593_v9, 1  ;;  %v1116_v26 = vsel %vm648_vm1, %v1114_v21, %v1115_v23  ;;  %v400_v43 = vld [vmem:[%s1452_s29 + $0x68] sm:$0xff]  ;;  %v321_v21 = vld [vmem:[%s1442_s23 + $0x90] sm:$0xff] }
  0x2f   : > { %1248 = vst.msk [vmem:[%s1516_s7 + $0x20] sm:$0xff] %vm1243_vm2, %v1215_v27  ;;  %v859_v37 = vrot.slane %v594_v28, 1  ;;  %v501_v40 = vrot.slane %v1597_v25, 7  ;;  %v667_v41 = vrot.slane %v354_v24, 1  ;;  %v1117_v42 = vrot.slane %v272_v36, 1  ;;  %v358_v24 = vld [vmem:[%s1447_s26 + $0x78] sm:$0xff] }
  0x30   : > { %v1216_v45 = vmax.f32 %v1024_v34, %v1113_v8  ;;  %v993_v46 = vmax.f32 %v767_v30, %v1573_v2  ;;  %v1616_v47 = vmax.f32 %v1612_v44, %v319_v32  ;;  %v500_v48 = vrot.slane %v355_v33, 7  ;;  %v276_v32 = vld [vmem:[%s1437_s20 + $0x90] sm:$0xff] }
  0x31   : > { %v860_v49 = vsel %vm648_vm1, %v858_v35, %v859_v37  ;;  %v598_v50 = vmax.f32 %v272_v36, %v501_v40  ;;  %v668_v38 = vsel %vm648_vm1, %v665_v20, %v667_v41  ;;  %v862_v51 = vsel %vm648_vm1, %v859_v37, %v861_v11  ;;  %v277_v37 = vld [vmem:[%s1437_s20 + $0x98] sm:$0xff] }
  0x32   : > { %1249 = vst.msk [vmem:[%s1516_s7 + $0x28] sm:$0xff] %vm1243_vm2, %v1216_v45  ;;  %v961_v52 = vmax.f32 %v1542_v29, %v860_v49  ;;  %v768_v54 = vmax.f32 %v398_v39, %v668_v38  ;;  %v962_v55 = vmax.f32 %v1561_v53, %v862_v51  ;;  %v1118_v56 = vsel %vm648_vm1, %v1115_v23, %v1117_v42  ;;  %v399_v29 = vld [vmem:[%s1452_s29 + $0x60] sm:$0xff]  ;;  %v401_v39 = vld [vmem:[%s1452_s29 + $0x78] sm:$0xff] }
  0x33   : > { %v866_v59 = vrot.slane %v598_v50, 1  ;;  %v502_v61 = vsel %vm487_vm0, %v500_v48, %v501_v40  ;;  %v596_v62 = vmax.f32 %v1567_v58, %v500_v48  ;;  %v669_v63 = vrot.slane %v355_v33, 1  ;;  %v360_v48 = vld [vmem:[%s1447_s26 + $0x88] sm:$0x1]  ;;  %v1673_v49 = vld [vmem:[%s1447_s26 + $0x98] sm:$0xff] }
  0x34   : > { %v1025_v3 = vmax.f32 %v961_v52, %v993_v46  ;;  %v994_v0 = vmax.f32 %v768_v54, %v1601_v16  ;;  %v597_v4 = vmax.f32 %v1586_v18, %v502_v61  ;;  %v670_v53 = vrot.slane %v1597_v25, 1  ;;  %v323_v54 = vld [vmem:[%s1442_s23 + $0xa8] sm:$0xff]  ;;  %v278_v61 = vld [vmem:[%s1437_s20 + $0xa0] sm:$0x1] }
  0x35   : > { %v863_v6 = vrot.slane %v596_v62, 1  ;;  %v1119_v7 = vrot.slane %v1612_v44, 1  ;;  %v1120_v58 = vrot.slane %v1628_v60, 1  ;;  %v1643_v8 = vmax.f32 %v1628_v60, %v320_v57  ;;  %v361_v62 = vld [vmem:[%s1447_s26 + $0x90] sm:$0xff] }
  0x36   : > { %v1217_v10 = vmax.f32 %v1025_v3, %v1116_v26  ;;  %v1026_v11 = vmax.f32 %v962_v55, %v994_v0  ;;  %v671_v12 = vsel %vm648_vm1, %v669_v63, %v670_v53  ;;  %v864_v13 = vrot.slane %v597_v4, 1  ;;  %v322_v26 = vld [vmem:[%s1442_s23 + $0x98] sm:$0xff]  ;;  %v402_v0 = vld [vmem:[%s1452_s29 + $0x80] sm:$0xff]  ;;  %v1690_v4 = vld [vmem:[%s1437_s20 + $0xa8] sm:$0xff] }
  0x37   : > { %v769_v15 = vmax.f32 %v399_v29, %v671_v12  ;;  %v1121_v18 = vsel %vm648_vm1, %v1119_v7, %v1120_v58  ;;  %v504_v19 = vrot.slane %v1638_v1, 7  ;;  %v672_v20 = vrot.slane %v357_v5, 1 }
  0x38   : > { %1250 = vst.msk [vmem:[%s1516_s7 + $0x30] sm:$0xff] %vm1243_vm2, %v1217_v10  ;;  %v1218_v22 = vmax.f32 %v1026_v11, %v1118_v56  ;;  %v865_v17 = vsel %vm648_vm1, %v863_v6, %v864_v13  ;;  %v867_v9 = vsel %vm648_vm1, %v864_v13, %v866_v59  ;;  %v1122_v23 = vrot.slane %v275_v14, 1 }
  0x39   : > { %v963_v25 = vmax.f32 %v1573_v2, %v865_v17  ;;  %v995_v27 = vmax.f32 %v769_v15, %v1616_v47  ;;  %v601_v28 = vmax.f32 %v275_v14, %v504_v19  ;;  %v673_v31 = vsel %vm648_vm1, %v670_v53, %v672_v20  ;;  %v324_v20 = vld [vmem:[%s1442_s23 + $0xb0] sm:$0xff] }
  0x3a   : > { %1251 = vst.msk [vmem:[%s1516_s7 + $0x38] sm:$0xff] %vm1243_vm2, %v1218_v22  ;;  %v770_v33 = vmax.f32 %v400_v43, %v673_v31  ;;  %v964_v34 = vmax.f32 %v1601_v16, %v867_v9  ;;  %v1123_v30 = vsel %vm648_vm1, %v1120_v58, %v1122_v23  ;;  %v1664_v35 = vmax.f32 %v276_v32, %v321_v21  ;;  %v1708_v22 = vld [vmem:[%s1437_s20 + $0xb0] sm:$0xff]  ;;  %v363_v31 = vld [vmem:[%s1447_s26 + $0xa0] sm:$0x1] }
  0x3b   : > { %v1027_v36 = vmax.f32 %v963_v25, %v995_v27  ;;  %v871_v2 = vrot.slane %v601_v28, 1  ;;  %v503_v40 = vrot.slane %v358_v24, 7  ;;  %v674_v41 = vrot.slane %v358_v24, 1  ;;  %v1711_v24 = vld [vmem:[%s1447_s26 + $0xb0] sm:$0xff] }
  0x3c   : > { %v996_v42 = vmax.f32 %v770_v33, %v1643_v8  ;;  %v675_v45 = vrot.slane %v1638_v1, 1  ;;  %v1124_v16 = vrot.slane %v276_v32, 1  ;;  %v1125_v46 = vrot.slane %v277_v37, 1 }
  0x3d   : > { %v1219_v50 = vmax.f32 %v1027_v36, %v1121_v18  ;;  %v505_v38 = vsel %vm487_vm0, %v503_v40, %v504_v19  ;;  %v599_v51 = vmax.f32 %v1612_v44, %v503_v40  ;;  %v1677_v52 = vmax.f32 %v277_v37, %v322_v26  ;;  %v325_v40 = vld [vmem:[%s1442_s23 + $0xc0] sm:$0xff] }
  0x3e   : > { %v1028_v55 = vmax.f32 %v964_v34, %v996_v42  ;;  %v600_v56 = vmax.f32 %v1628_v60, %v505_v38  ;;  %v676_v57 = vsel %vm648_vm1, %v674_v41, %v675_v45  ;;  %v1126_v59 = vsel %vm648_vm1, %v1124_v16, %v1125_v46  ;;  %v404_v16 = vld [vmem:[%s1452_s29 + $0x98] sm:$0xff] }
  0x3f   : > { %1252 = vst.msk [vmem:[%s1516_s7 + $0x40] sm:$0xff] %vm1243_vm2, %v1219_v50  ;;  %v771_v63 = vmax.f32 %v401_v39, %v676_v57  ;;  %v868_v3 = vrot.slane %v599_v51, 1  ;;  %v507_v44 = vrot.slane %v1673_v49, 7  ;;  %v677_v29 = vrot.slane %v360_v48, 1  ;;  %v364_v48 = vld [vmem:[%s1447_s26 + $0xa8] sm:$0xff] }
  0x40   : > { %v1220_v53 = vmax.f32 %v1028_v55, %v1123_v30  ;;  %v869_v5 = vrot.slane %v600_v56, 1  ;;  %v1127_v60 = vrot.slane %v278_v61, 1  ;;  %v1693_v1 = vmax.f32 %v1690_v4, %v323_v54  ;;  %v281_v30 = vld [vmem:[%s1437_s20 + $0xb8] sm:$0x1]  ;;  %v282_v54 = vld [vmem:[%s1437_s20 + $0xc0] sm:$0xff] }
  0x41   : > { %v997_v6 = vmax.f32 %v771_v63, %v1664_v35  ;;  %v604_v7 = vmax.f32 %v278_v61, %v507_v44  ;;  %v678_v58 = vsel %vm648_vm1, %v675_v45, %v677_v29  ;;  %v506_v10 = vrot.slane %v361_v62, 7  ;;  %v405_v29 = vld [vmem:[%s1452_s29 + $0xa8] sm:$0xff] }
  0x42   : > { %1253 = vst.msk [vmem:[%s1516_s7 + $0x48] sm:$0xff] %vm1243_vm2, %v1220_v53  ;;  %v870_v11 = vsel %vm648_vm1, %v868_v3, %v869_v5  ;;  %v772_v12 = vmax.f32 %v402_v0, %v678_v58  ;;  %v872_v13 = vsel %vm648_vm1, %v869_v5, %v871_v2  ;;  %v1128_v14 = vsel %vm648_vm1, %v1125_v46, %v1127_v60  ;;  %v326_v3 = vld [vmem:[%s1442_s23 + $0xc8] sm:$0xff] }
  0x43   : > { %v965_v15 = vmax.f32 %v1616_v47, %v870_v11  ;;  %v876_v18 = vrot.slane %v604_v7, 1  ;;  %v966_v43 = vmax.f32 %v1643_v8, %v872_v13  ;;  %v508_v19 = vsel %vm487_vm0, %v506_v10, %v507_v44  ;;  %v403_v47 = vld [vmem:[%s1452_s29 + $0x90] sm:$0xff]  ;;  %v1744_v44 = vld [vmem:[%s1437_s20 + $0xc8] sm:$0xff] }
  0x44   : > { %v998_v21 = vmax.f32 %v772_v12, %v1677_v52  ;;  %v602_v17 = vmax.f32 %v276_v32, %v506_v10  ;;  %v603_v9 = vmax.f32 %v277_v37, %v508_v19  ;;  %v679_v23 = vrot.slane %v361_v62, 1  ;;  %v366_v10 = vld [vmem:[%s1447_s26 + $0xb8] sm:$0x1]  ;;  %v1754_v11 = vld [vmem:[%s1447_s26 + $0xc8] sm:$0xff] }
  0x45   : > { %v1029_v25 = vmax.f32 %v965_v15, %v997_v6  ;;  %v680_v27 = vrot.slane %v1673_v49, 1  ;;  %v1129_v8 = vrot.slane %v1690_v4, 1  ;;  %v1130_v28 = vrot.slane %v1708_v22, 1 }
  0x46   : > { %v1030_v33 = vmax.f32 %v966_v43, %v998_v21  ;;  %v873_v34 = vrot.slane %v602_v17, 1  ;;  %v874_v32 = vrot.slane %v603_v9, 1  ;;  %v1720_v26 = vmax.f32 %v1708_v22, %v324_v20  ;;  %v367_v43 = vld [vmem:[%s1447_s26 + $0xc0] sm:$0xff]  ;;  %v284_v17 = vld [vmem:[%s1437_s20 + $0xd0] sm:$0x1] }
  0x47   : > { %v1221_v36 = vmax.f32 %v1029_v25, %v1126_v59  ;;  %v681_v2 = vsel %vm648_vm1, %v679_v23, %v680_v27  ;;  %v1131_v37 = vsel %vm648_vm1, %v1129_v8, %v1130_v28  ;;  %v510_v39 = vrot.slane %v1711_v24, 7  ;;  %v406_v23 = vld [vmem:[%s1452_s29 + $0xb0] sm:$0xff] }
  0x48   : > { %v1222_v41 = vmax.f32 %v1030_v33, %v1128_v14  ;;  %v773_v42 = vmax.f32 %v403_v47, %v681_v2  ;;  %v875_v45 = vsel %vm648_vm1, %v873_v34, %v874_v32  ;;  %v682_v46 = vrot.slane %v363_v31, 1  ;;  %v1770_v47 = vld [vmem:[%s1437_s20 + $0xd8] sm:$0xff] }
  0x49   : > { %1254 = vst.msk [vmem:[%s1516_s7 + $0x50] sm:$0xff] %vm1243_vm2, %v1221_v36  ;;  %v967_v49 = vmax.f32 %v1664_v35, %v875_v45  ;;  %v607_v50 = vmax.f32 %v281_v30, %v510_v39  ;;  %v877_v38 = vsel %vm648_vm1, %v874_v32, %v876_v18  ;;  %v1132_v51 = vrot.slane %v281_v30, 1  ;;  %v327_v18 = vld [vmem:[%s1442_s23 + $0xd8] sm:$0xff] }
  0x4a   : > { %1255 = vst.msk [vmem:[%s1516_s7 + $0x58] sm:$0xff] %vm1243_vm2, %v1222_v41  ;;  %v999_v55 = vmax.f32 %v773_v42, %v1693_v1  ;;  %v683_v56 = vsel %vm648_vm1, %v680_v27, %v682_v46  ;;  %v968_v57 = vmax.f32 %v1677_v52, %v877_v38  ;;  %v1739_v59 = vmax.f32 %v282_v54, %v325_v40  ;;  %v328_v40 = vld [vmem:[%s1442_s23 + $0xe0] sm:$0xff]  ;;  %v369_v38 = vld [vmem:[%s1447_s26 + $0xd0] sm:$0x1] }
  0x4b   : > { %v774_v61 = vmax.f32 %v404_v16, %v683_v56  ;;  %v881_v35 = vrot.slane %v607_v50, 1  ;;  %v1133_v62 = vsel %vm648_vm1, %v1130_v28, %v1132_v51  ;;  %v509_v63 = vrot.slane %v364_v48, 7  ;;  %v1786_v42 = vld [vmem:[%s1437_s20 + $0xe0] sm:$0xff] }
  0x4c   : > { %v1031_v0 = vmax.f32 %v967_v49, %v999_v55  ;;  %v684_v53 = vrot.slane %v364_v48, 1  ;;  %v685_v5 = vrot.slane %v1711_v24, 1  ;;  %v1134_v52 = vrot.slane %v282_v54, 1  ;;  %v407_v50 = vld [vmem:[%s1452_s29 + $0xc0] sm:$0xff] }
  0x4d   : > { %v1000_v60 = vmax.f32 %v774_v61, %v1720_v26  ;;  %v511_v6 = vsel %vm487_vm0, %v509_v63, %v510_v39  ;;  %v605_v7 = vmax.f32 %v1690_v4, %v509_v63  ;;  %v1135_v58 = vrot.slane %v1744_v44, 1  ;;  %v1795_v51 = vld [vmem:[%s1447_s26 + $0xe0] sm:$0xff] }
  0x4e   : > { %v1223_v12 = vmax.f32 %v1031_v0, %v1131_v37  ;;  %v606_v13 = vmax.f32 %v1708_v22, %v511_v6  ;;  %v686_v14 = vsel %vm648_vm1, %v684_v53, %v685_v5  ;;  %v1759_v15 = vmax.f32 %v1744_v44, %v326_v3  ;;  %v287_v3 = vld [vmem:[%s1437_s20 + $0xe8] sm:$0x1] }
  0x4f   : > { %v1032_v19 = vmax.f32 %v968_v57, %v1000_v60  ;;  %v775_v20 = vmax.f32 %v405_v29, %v686_v14  ;;  %v878_v4 = vrot.slane %v605_v7, 1  ;;  %v1136_v21 = vsel %vm648_vm1, %v1134_v52, %v1135_v58  ;;  %v408_v29 = vld [vmem:[%s1452_s29 + $0xc8] sm:$0xff]  ;;  %v329_v52 = vld [vmem:[%s1442_s23 + $0xf0] sm:$0xff] }
  0x50   : > { %1256 = vst.msk [vmem:[%s1516_s7 + $0x60] sm:$0xff] %vm1243_vm2, %v1223_v12  ;;  %v879_v9 = vrot.slane %v606_v13, 1  ;;  %v513_v22 = vrot.slane %v1754_v11, 7  ;;  %v687_v24 = vrot.slane %v366_v10, 1  ;;  %v1137_v25 = vrot.slane %v284_v17, 1  ;;  %v370_v10 = vld [vmem:[%s1447_s26 + $0xd8] sm:$0xff] }
  0x51   : > { %v1224_v27 = vmax.f32 %v1032_v19, %v1133_v62  ;;  %v1001_v8 = vmax.f32 %v775_v20, %v1739_v59  ;;  %v1774_v28 = vmax.f32 %v1770_v47, %v327_v18  ;;  %v512_v31 = vrot.slane %v367_v43, 7  ;;  %v288_v18 = vld [vmem:[%s1437_s20 + $0xf0] sm:$0xff] }
  0x52   : > { %v880_v33 = vsel %vm648_vm1, %v878_v4, %v879_v9  ;;  %v610_v34 = vmax.f32 %v284_v17, %v513_v22  ;;  %v688_v32 = vsel %vm648_vm1, %v685_v5, %v687_v24  ;;  %v882_v30 = vsel %vm648_vm1, %v879_v9, %v881_v35  ;;  %v289_v9 = vld [vmem:[%s1437_s20 + $0xf8] sm:$0xff] }
  0x53   : > { %1257 = vst.msk [vmem:[%s1516_s7 + $0x68] sm:$0xff] %vm1243_vm2, %v1224_v27  ;;  %v969_v36 = vmax.f32 %v1693_v1, %v880_v33  ;;  %v776_v2 = vmax.f32 %v406_v23, %v688_v32  ;;  %v970_v37 = vmax.f32 %v1720_v26, %v882_v30  ;;  %v1138_v39 = vsel %vm648_vm1, %v1135_v58, %v1137_v25  ;;  %v409_v23 = vld [vmem:[%s1452_s29 + $0xd8] sm:$0xff] }
  0x54   : > { %v886_v41 = vrot.slane %v610_v34, 1  ;;  %v514_v45 = vsel %vm487_vm0, %v512_v31, %v513_v22  ;;  %v608_v16 = vmax.f32 %v282_v54, %v512_v31  ;;  %v689_v46 = vrot.slane %v367_v43, 1  ;;  %v372_v31 = vld [vmem:[%s1447_s26 + $0xe8] sm:$0x1]  ;;  %v1830_v33 = vld [vmem:[%s1447_s26 + $0xf8] sm:$0xff] }
  0x55   : > { %v1033_v48 = vmax.f32 %v969_v36, %v1001_v8  ;;  %v1002_v49 = vmax.f32 %v776_v2, %v1759_v15  ;;  %v609_v1 = vmax.f32 %v1744_v44, %v514_v45  ;;  %v690_v26 = vrot.slane %v1754_v11, 1  ;;  %v331_v2 = vld [vmem:[%s1442_s23 + $0x108] sm:$0xff]  ;;  %v290_v45 = vld [vmem:[%s1437_s20 + $0x100] sm:$0x1] }
  0x56   : > { %v883_v55 = vrot.slane %v608_v16, 1  ;;  %v1139_v56 = vrot.slane %v1770_v47, 1  ;;  %v1140_v54 = vrot.slane %v1786_v42, 1  ;;  %v1800_v57 = vmax.f32 %v1786_v42, %v328_v40  ;;  %v373_v16 = vld [vmem:[%s1447_s26 + $0xf0] sm:$0xff] }
  0x57   : > { %v1225_v61 = vmax.f32 %v1033_v48, %v1136_v21  ;;  %v1034_v35 = vmax.f32 %v970_v37, %v1002_v49  ;;  %v691_v62 = vsel %vm648_vm1, %v689_v46, %v690_v26  ;;  %v884_v63 = vrot.slane %v609_v1, 1  ;;  %v330_v21 = vld [vmem:[%s1442_s23 + $0xf8] sm:$0xff]  ;;  %v410_v49 = vld [vmem:[%s1452_s29 + $0xe0] sm:$0xff]  ;;  %v1847_v1 = vld [vmem:[%s1437_s20 + $0x108] sm:$0xff] }
  0x58   : > { %v777_v0 = vmax.f32 %v407_v50, %v691_v62  ;;  %v1141_v44 = vsel %vm648_vm1, %v1139_v56, %v1140_v54  ;;  %v516_v53 = vrot.slane %v1795_v51, 7  ;;  %v692_v5 = vrot.slane %v369_v38, 1 }
  0x59   : > { %1258 = vst.msk [vmem:[%s1516_s7 + $0x70] sm:$0xff] %vm1243_vm2, %v1225_v61  ;;  %v1226_v60 = vmax.f32 %v1034_v35, %v1138_v39  ;;  %v885_v6 = vsel %vm648_vm1, %v883_v55, %v884_v63  ;;  %v887_v7 = vsel %vm648_vm1, %v884_v63, %v886_v41  ;;  %v1142_v58 = vrot.slane %v287_v3, 1 }
  0x5a   : > { %v971_v11 = vmax.f32 %v1739_v59, %v885_v6  ;;  %v1003_v12 = vmax.f32 %v777_v0, %v1774_v28  ;;  %v613_v13 = vmax.f32 %v287_v3, %v516_v53  ;;  %v693_v14 = vsel %vm648_vm1, %v690_v26, %v692_v5  ;;  %v332_v5 = vld [vmem:[%s1442_s23 + $0x110] sm:$0xff] }
  0x5b   : > { %1259 = vst.msk [vmem:[%s1516_s7 + $0x78] sm:$0xff] %vm1243_vm2, %v1226_v60  ;;  %v778_v43 = vmax.f32 %v408_v29, %v693_v14  ;;  %v972_v19 = vmax.f32 %v1759_v15, %v887_v7  ;;  %v1143_v20 = vsel %vm648_vm1, %v1140_v54, %v1142_v58  ;;  %v1821_v4 = vmax.f32 %v288_v18, %v329_v52  ;;  %v1865_v60 = vld [vmem:[%s1437_s20 + $0x110] sm:$0xff]  ;;  %v375_v14 = vld [vmem:[%s1447_s26 + $0x100] sm:$0x1] }
  0x5c   : > { %v1035_v17 = vmax.f32 %v971_v11, %v1003_v12  ;;  %v891_v59 = vrot.slane %v613_v13, 1  ;;  %v515_v22 = vrot.slane %v370_v10, 7  ;;  %v694_v24 = vrot.slane %v370_v10, 1  ;;  %v1868_v10 = vld [vmem:[%s1447_s26 + $0x110] sm:$0xff] }
  0x5d   : > { %v1004_v25 = vmax.f32 %v778_v43, %v1800_v57  ;;  %v695_v27 = vrot.slane %v1795_v51, 1  ;;  %v1144_v15 = vrot.slane %v288_v18, 1  ;;  %v1145_v8 = vrot.slane %v289_v9, 1 }
  0x5e   : > { %v1227_v34 = vmax.f32 %v1035_v17, %v1141_v44  ;;  %v517_v32 = vsel %vm487_vm0, %v515_v22, %v516_v53  ;;  %v611_v30 = vmax.f32 %v1770_v47, %v515_v22  ;;  %v1834_v36 = vmax.f32 %v289_v9, %v330_v21  ;;  %v333_v22 = vld [vmem:[%s1442_s23 + $0x120] sm:$0xff] }
  0x5f   : > { %v1036_v37 = vmax.f32 %v972_v19, %v1004_v25  ;;  %v612_v39 = vmax.f32 %v1786_v42, %v517_v32  ;;  %v696_v40 = vsel %vm648_vm1, %v694_v24, %v695_v27  ;;  %v1146_v41 = vsel %vm648_vm1, %v1144_v15, %v1145_v8  ;;  %v412_v15 = vld [vmem:[%s1452_s29 + $0xf8] sm:$0xff] }
  0x60   : > { %1260 = vst.msk [vmem:[%s1516_s7 + $0x80] sm:$0xff] %vm1243_vm2, %v1227_v34  ;;  %v779_v46 = vmax.f32 %v409_v23, %v696_v40  ;;  %v888_v48 = vrot.slane %v611_v30, 1  ;;  %v519_v47 = vrot.slane %v1830_v33, 7  ;;  %v697_v50 = vrot.slane %v372_v31, 1  ;;  %v376_v31 = vld [vmem:[%s1447_s26 + $0x108] sm:$0xff] }
  0x61   : > { %v1228_v26 = vmax.f32 %v1036_v37, %v1143_v20  ;;  %v889_v38 = vrot.slane %v612_v39, 1  ;;  %v1147_v42 = vrot.slane %v290_v45, 1  ;;  %v1850_v51 = vmax.f32 %v1847_v1, %v331_v2  ;;  %v293_v20 = vld [vmem:[%s1437_s20 + $0x118] sm:$0x1]  ;;  %v294_v2 = vld [vmem:[%s1437_s20 + $0x120] sm:$0xff] }
  0x62   : > { %v1005_v55 = vmax.f32 %v779_v46, %v1821_v4  ;;  %v616_v56 = vmax.f32 %v290_v45, %v519_v47  ;;  %v698_v54 = vsel %vm648_vm1, %v695_v27, %v697_v50  ;;  %v518_v61 = vrot.slane %v373_v16, 7  ;;  %v413_v50 = vld [vmem:[%s1452_s29 + $0x108] sm:$0xff] }
  0x63   : > { %1261 = vst.msk [vmem:[%s1516_s7 + $0x88] sm:$0xff] %vm1243_vm2, %v1228_v26  ;;  %v890_v35 = vsel %vm648_vm1, %v888_v48, %v889_v38  ;;  %v780_v62 = vmax.f32 %v410_v49, %v698_v54  ;;  %v892_v63 = vsel %vm648_vm1, %v889_v38, %v891_v59  ;;  %v1148_v3 = vsel %vm648_vm1, %v1145_v8, %v1147_v42  ;;  %v334_v48 = vld [vmem:[%s1442_s23 + $0x128] sm:$0xff] }
  0x64   : > { %v973_v0 = vmax.f32 %v1774_v28, %v890_v35  ;;  %v896_v44 = vrot.slane %v616_v56, 1  ;;  %v974_v29 = vmax.f32 %v1800_v57, %v892_v63  ;;  %v520_v53 = vsel %vm487_vm0, %v518_v61, %v519_v47  ;;  %v411_v28 = vld [vmem:[%s1452_s29 + $0xf0] sm:$0xff]  ;;  %v1901_v47 = vld [vmem:[%s1437_s20 + $0x128] sm:$0xff] }
  0x65   : > { %v1006_v52 = vmax.f32 %v780_v62, %v1834_v36  ;;  %v614_v6 = vmax.f32 %v288_v18, %v518_v61  ;;  %v615_v7 = vmax.f32 %v289_v9, %v520_v53  ;;  %v699_v58 = vrot.slane %v373_v16, 1  ;;  %v378_v61 = vld [vmem:[%s1447_s26 + $0x118] sm:$0x1]  ;;  %v1911_v35 = vld [vmem:[%s1447_s26 + $0x128] sm:$0xff] }
  0x66   : > { %v1037_v11 = vmax.f32 %v973_v0, %v1005_v55  ;;  %v700_v12 = vrot.slane %v1830_v33, 1  ;;  %v1149_v57 = vrot.slane %v1847_v1, 1  ;;  %v1150_v13 = vrot.slane %v1865_v60, 1 }
  0x67   : > { %v1038_v43 = vmax.f32 %v974_v29, %v1006_v52  ;;  %v893_v19 = vrot.slane %v614_v6, 1  ;;  %v894_v18 = vrot.slane %v615_v7, 1  ;;  %v1877_v21 = vmax.f32 %v1865_v60, %v332_v5  ;;  %v379_v29 = vld [vmem:[%s1447_s26 + $0x120] sm:$0xff]  ;;  %v296_v6 = vld [vmem:[%s1437_s20 + $0x130] sm:$0x1] }
  0x68   : > { %v1229_v17 = vmax.f32 %v1037_v11, %v1146_v41  ;;  %v701_v59 = vsel %vm648_vm1, %v699_v58, %v700_v12  ;;  %v1151_v9 = vsel %vm648_vm1, %v1149_v57, %v1150_v13  ;;  %v522_v23 = vrot.slane %v1868_v10, 7  ;;  %v414_v58 = vld [vmem:[%s1452_s29 + $0x110] sm:$0xff] }
  0x69   : > { %v1230_v24 = vmax.f32 %v1038_v43, %v1148_v3  ;;  %v781_v25 = vmax.f32 %v411_v28, %v701_v59  ;;  %v895_v27 = vsel %vm648_vm1, %v893_v19, %v894_v18  ;;  %v702_v8 = vrot.slane %v375_v14, 1  ;;  %v1927_v28 = vld [vmem:[%s1437_s20 + $0x138] sm:$0xff] }
  0x6a   : > { %1262 = vst.msk [vmem:[%s1516_s7 + $0x90] sm:$0xff] %vm1243_vm2, %v1229_v17  ;;  %v975_v33 = vmax.f32 %v1821_v4, %v895_v27  ;;  %v619_v34 = vmax.f32 %v293_v20, %v522_v23  ;;  %v897_v32 = vsel %vm648_vm1, %v894_v18, %v896_v44  ;;  %v1152_v30 = vrot.slane %v293_v20, 1  ;;  %v335_v44 = vld [vmem:[%s1442_s23 + $0x138] sm:$0xff] }
  0x6b   : > { %1263 = vst.msk [vmem:[%s1516_s7 + $0x98] sm:$0xff] %vm1243_vm2, %v1230_v24  ;;  %v1007_v37 = vmax.f32 %v781_v25, %v1850_v51  ;;  %v703_v39 = vsel %vm648_vm1, %v700_v12, %v702_v8  ;;  %v976_v40 = vmax.f32 %v1834_v36, %v897_v32  ;;  %v1896_v41 = vmax.f32 %v294_v2, %v333_v22  ;;  %v336_v22 = vld [vmem:[%s1442_s23 + $0x140] sm:$0xff]  ;;  %v381_v32 = vld [vmem:[%s1447_s26 + $0x130] sm:$0x1] }
  0x6c   : > { %v782_v45 = vmax.f32 %v412_v15, %v703_v39  ;;  %v901_v4 = vrot.slane %v619_v34, 1  ;;  %v1153_v16 = vsel %vm648_vm1, %v1150_v13, %v1152_v30  ;;  %v521_v46 = vrot.slane %v376_v31, 7  ;;  %v1943_v25 = vld [vmem:[%s1437_s20 + $0x140] sm:$0xff] }
  0x6d   : > { %v1039_v49 = vmax.f32 %v975_v33, %v1007_v37  ;;  %v704_v26 = vrot.slane %v376_v31, 1  ;;  %v705_v38 = vrot.slane %v1868_v10, 1  ;;  %v1154_v36 = vrot.slane %v294_v2, 1  ;;  %v415_v34 = vld [vmem:[%s1452_s29 + $0x120] sm:$0xff] }
  0x6e   : > { %v1008_v42 = vmax.f32 %v782_v45, %v1877_v21  ;;  %v523_v55 = vsel %vm487_vm0, %v521_v46, %v522_v23  ;;  %v617_v56 = vmax.f32 %v1847_v1, %v521_v46  ;;  %v1155_v54 = vrot.slane %v1901_v47, 1  ;;  %v1952_v30 = vld [vmem:[%s1447_s26 + $0x140] sm:$0xff] }
  0x6f   : > { %v1231_v62 = vmax.f32 %v1039_v49, %v1151_v9  ;;  %v618_v63 = vmax.f32 %v1865_v60, %v523_v55  ;;  %v706_v3 = vsel %vm648_vm1, %v704_v26, %v705_v38  ;;  %v1916_v0 = vmax.f32 %v1901_v47, %v334_v48  ;;  %v299_v48 = vld [vmem:[%s1437_s20 + $0x148] sm:$0x1] }
  0x70   : > { %v1040_v53 = vmax.f32 %v976_v40, %v1008_v42  ;;  %v783_v5 = vmax.f32 %v413_v50, %v706_v3  ;;  %v898_v1 = vrot.slane %v617_v56, 1  ;;  %v1156_v52 = vsel %vm648_vm1, %v1154_v36, %v1155_v54  ;;  %v416_v50 = vld [vmem:[%s1452_s29 + $0x128] sm:$0xff]  ;;  %v337_v36 = vld [vmem:[%s1442_s23 + $0x150] sm:$0xff] }
  0x71   : > { %1264 = vst.msk [vmem:[%s1516_s7 + $0xa0] sm:$0xff] %vm1243_vm2, %v1231_v62  ;;  %v899_v7 = vrot.slane %v618_v63, 1  ;;  %v525_v60 = vrot.slane %v1911_v35, 7  ;;  %v707_v10 = vrot.slane %v378_v61, 1  ;;  %v1157_v11 = vrot.slane %v296_v6, 1  ;;  %v382_v61 = vld [vmem:[%s1447_s26 + $0x138] sm:$0xff] }
  0x72   : > { %v1232_v12 = vmax.f32 %v1040_v53, %v1153_v16  ;;  %v1009_v57 = vmax.f32 %v783_v5, %v1896_v41  ;;  %v1931_v13 = vmax.f32 %v1927_v28, %v335_v44  ;;  %v524_v14 = vrot.slane %v379_v29, 7  ;;  %v300_v44 = vld [vmem:[%s1437_s20 + $0x150] sm:$0xff] }
  0x73   : > { %v900_v43 = vsel %vm648_vm1, %v898_v1, %v899_v7  ;;  %v622_v19 = vmax.f32 %v296_v6, %v525_v60  ;;  %v708_v18 = vsel %vm648_vm1, %v705_v38, %v707_v10  ;;  %v902_v20 = vsel %vm648_vm1, %v899_v7, %v901_v4  ;;  %v301_v7 = vld [vmem:[%s1437_s20 + $0x158] sm:$0xff] }
  0x74   : > { %1265 = vst.msk [vmem:[%s1516_s7 + $0xa8] sm:$0xff] %vm1243_vm2, %v1232_v12  ;;  %v977_v17 = vmax.f32 %v1850_v51, %v900_v43  ;;  %v784_v59 = vmax.f32 %v414_v58, %v708_v18  ;;  %v978_v9 = vmax.f32 %v1877_v21, %v902_v20  ;;  %v1158_v23 = vsel %vm648_vm1, %v1155_v54, %v1157_v11  ;;  %v417_v58 = vld [vmem:[%s1452_s29 + $0x138] sm:$0xff] }
  0x75   : > { %v906_v24 = vrot.slane %v622_v19, 1  ;;  %v526_v27 = vsel %vm487_vm0, %v524_v14, %v525_v60  ;;  %v620_v15 = vmax.f32 %v294_v2, %v524_v14  ;;  %v709_v8 = vrot.slane %v379_v29, 1  ;;  %v384_v14 = vld [vmem:[%s1447_s26 + $0x148] sm:$0x1]  ;;  %v1987_v43 = vld [vmem:[%s1447_s26 + $0x158] sm:$0xff] }
  0x76   : > { %v1041_v31 = vmax.f32 %v977_v17, %v1009_v57  ;;  %v1010_v33 = vmax.f32 %v784_v59, %v1916_v0  ;;  %v621_v51 = vmax.f32 %v1901_v47, %v526_v27  ;;  %v710_v21 = vrot.slane %v1911_v35, 1  ;;  %v339_v59 = vld [vmem:[%s1442_s23 + $0x168] sm:$0xff]  ;;  %v302_v27 = vld [vmem:[%s1437_s20 + $0x160] sm:$0x1] }
  0x77   : > { %v903_v37 = vrot.slane %v620_v15, 1  ;;  %v1159_v39 = vrot.slane %v1927_v28, 1  ;;  %v1160_v2 = vrot.slane %v1943_v25, 1  ;;  %v1957_v40 = vmax.f32 %v1943_v25, %v336_v22  ;;  %v385_v15 = vld [vmem:[%s1447_s26 + $0x150] sm:$0xff] }
  0x78   : > { %v1233_v45 = vmax.f32 %v1041_v31, %v1156_v52  ;;  %v1042_v4 = vmax.f32 %v978_v9, %v1010_v33  ;;  %v711_v16 = vsel %vm648_vm1, %v709_v8, %v710_v21  ;;  %v904_v46 = vrot.slane %v621_v51, 1  ;;  %v338_v52 = vld [vmem:[%s1442_s23 + $0x158] sm:$0xff]  ;;  %v418_v33 = vld [vmem:[%s1452_s29 + $0x140] sm:$0xff]  ;;  %v2004_v51 = vld [vmem:[%s1437_s20 + $0x168] sm:$0xff] }
  0x79   : > { %v785_v49 = vmax.f32 %v415_v34, %v711_v16  ;;  %v1161_v47 = vsel %vm648_vm1, %v1159_v39, %v1160_v2  ;;  %v528_v26 = vrot.slane %v1952_v30, 7  ;;  %v712_v38 = vrot.slane %v381_v32, 1 }
  0x7a   : > { %1266 = vst.msk [vmem:[%s1516_s7 + $0xb0] sm:$0xff] %vm1243_vm2, %v1233_v45  ;;  %v1234_v42 = vmax.f32 %v1042_v4, %v1158_v23  ;;  %v905_v55 = vsel %vm648_vm1, %v903_v37, %v904_v46  ;;  %v907_v56 = vsel %vm648_vm1, %v904_v46, %v906_v24  ;;  %v1162_v54 = vrot.slane %v299_v48, 1 }
  0x7b   : > { %v979_v35 = vmax.f32 %v1896_v41, %v905_v55  ;;  %v1011_v62 = vmax.f32 %v785_v49, %v1931_v13  ;;  %v625_v63 = vmax.f32 %v299_v48, %v528_v26  ;;  %v713_v3 = vsel %vm648_vm1, %v710_v21, %v712_v38  ;;  %v340_v38 = vld [vmem:[%s1442_s23 + $0x170] sm:$0xff] }
  0x7c   : > { %1267 = vst.msk [vmem:[%s1516_s7 + $0xb8] sm:$0xff] %vm1243_vm2, %v1234_v42  ;;  %v786_v29 = vmax.f32 %v416_v50, %v713_v3  ;;  %v980_v53 = vmax.f32 %v1916_v0, %v907_v56  ;;  %v1163_v5 = vsel %vm648_vm1, %v1160_v2, %v1162_v54  ;;  %v1978_v1 = vmax.f32 %v300_v44, %v337_v36  ;;  %v304_v42 = vld [vmem:[%s1437_s20 + $0x170] sm:$0xff]  ;;  %v387_v3 = vld [vmem:[%s1447_s26 + $0x160] sm:$0x1] }
  0x7d   : > { %v1043_v6 = vmax.f32 %v979_v35, %v1011_v62  ;;  %v911_v41 = vrot.slane %v625_v63, 1  ;;  %v527_v60 = vrot.slane %v382_v61, 7  ;;  %v714_v10 = vrot.slane %v382_v61, 1  ;;  %v2023_v61 = vld [vmem:[%s1447_s26 + $0x170] sm:$0xff] }
  0x7e   : > { %v1012_v11 = vmax.f32 %v786_v29, %v1957_v40  ;;  %v715_v12 = vrot.slane %v1952_v30, 1  ;;  %v1164_v0 = vrot.slane %v300_v44, 1  ;;  %v1165_v57 = vrot.slane %v301_v7, 1  ;;  %v419_v62 = vld [vmem:[%s1452_s29 + $0x150] sm:$0xff] }
  0x7f   : > { %v1235_v19 = vmax.f32 %v1043_v6, %v1161_v47  ;;  %v529_v18 = vsel %vm487_vm0, %v527_v60, %v528_v26  ;;  %v623_v20 = vmax.f32 %v1927_v28, %v527_v60  ;;  %v1991_v17 = vmax.f32 %v301_v7, %v338_v52  ;;  %v305_v52 = vld [vmem:[%s1437_s20 + $0x178] sm:$0x1]  ;;  %v388_v60 = vld [vmem:[%s1447_s26 + $0x168] sm:$0xff] }
  0x80   : > { %v1044_v9 = vmax.f32 %v980_v53, %v1012_v11  ;;  %v624_v23 = vmax.f32 %v1943_v25, %v529_v18  ;;  %v716_v22 = vsel %vm648_vm1, %v714_v10, %v715_v12  ;;  %v1166_v24 = vsel %vm648_vm1, %v1164_v0, %v1165_v57  ;;  %v420_v0 = vld [vmem:[%s1452_s29 + $0x158] sm:$0xff] }
  0x81   : > { %1268 = vst.msk [vmem:[%s1516_s7 + $0xc0] sm:$0xff] %vm1243_vm2, %v1235_v19  ;;  %v787_v8 = vmax.f32 %v417_v58, %v716_v22  ;;  %v908_v31 = vrot.slane %v623_v20, 1  ;;  %v531_v28 = vrot.slane %v1987_v43, 7  ;;  %v717_v34 = vrot.slane %v384_v14, 1  ;;  %v341_v22 = vld [vmem:[%s1442_s23 + $0x180] sm:$0xff] }
  0x82   : > { %v1236_v21 = vmax.f32 %v1044_v9, %v1163_v5  ;;  %v909_v32 = vrot.slane %v624_v23, 1  ;;  %v1167_v25 = vrot.slane %v302_v27, 1  ;;  %v2007_v30 = vmax.f32 %v2004_v51, %v339_v59  ;;  %v306_v23 = vld [vmem:[%s1437_s20 + $0x180] sm:$0xff] }
  0x83   : > { %v1013_v37 = vmax.f32 %v787_v8, %v1978_v1  ;;  %v628_v39 = vmax.f32 %v302_v27, %v531_v28  ;;  %v718_v2 = vsel %vm648_vm1, %v715_v12, %v717_v34  ;;  %v530_v45 = vrot.slane %v385_v15, 7 }
  0x84   : > { %1269 = vst.msk [vmem:[%s1516_s7 + $0xc8] sm:$0xff] %vm1243_vm2, %v1236_v21  ;;  %v910_v4 = vsel %vm648_vm1, %v908_v31, %v909_v32  ;;  %v788_v16 = vmax.f32 %v418_v33, %v718_v2  ;;  %v912_v46 = vsel %vm648_vm1, %v909_v32, %v911_v41  ;;  %v1168_v48 = vsel %vm648_vm1, %v1165_v57, %v1167_v25  ;;  %v421_v33 = vld [vmem:[%s1452_s29 + $0x168] sm:$0xff] }
  0x85   : > { %v981_v49 = vmax.f32 %v1931_v13, %v910_v4  ;;  %v916_v47 = vrot.slane %v628_v39, 1  ;;  %v982_v50 = vmax.f32 %v1957_v40, %v912_v46  ;;  %v532_v26 = vsel %vm487_vm0, %v530_v45, %v531_v28  ;;  %v307_v25 = vld [vmem:[%s1437_s20 + $0x188] sm:$0xff] }
  0x86   : > { %v1014_v36 = vmax.f32 %v788_v16, %v1991_v17  ;;  %v626_v55 = vmax.f32 %v300_v44, %v530_v45  ;;  %v627_v56 = vmax.f32 %v301_v7, %v532_v26  ;;  %v719_v54 = vrot.slane %v385_v15, 1  ;;  %v308_v45 = vld [vmem:[%s1437_s20 + $0x190] sm:$0x1]  ;;  %v342_v4 = vld [vmem:[%s1442_s23 + $0x188] sm:$0xff] }
  0x87   : > { %v1045_v35 = vmax.f32 %v981_v49, %v1013_v37  ;;  %v720_v13 = vrot.slane %v1987_v43, 1  ;;  %v1169_v63 = vrot.slane %v2004_v51, 1  ;;  %v1170_v40 = vrot.slane %v304_v42, 1  ;;  %v422_v26 = vld [vmem:[%s1452_s29 + $0x170] sm:$0xff] }
  0x88   : > { %v1046_v29 = vmax.f32 %v982_v50, %v1014_v36  ;;  %v913_v53 = vrot.slane %v626_v55, 1  ;;  %v914_v5 = vrot.slane %v627_v56, 1  ;;  %v2030_v44 = vmax.f32 %v304_v42, %v340_v38 }
  0x89   : > { %v1237_v6 = vmax.f32 %v1045_v35, %v1166_v24  ;;  %v721_v41 = vsel %vm648_vm1, %v719_v54, %v720_v13  ;;  %v1171_v7 = vsel %vm648_vm1, %v1169_v63, %v1170_v40  ;;  %v534_v58 = vrot.slane %v2023_v61, 7 }
  0x8a   : > { %v1238_v10 = vmax.f32 %v1046_v29, %v1168_v48  ;;  %v789_v11 = vmax.f32 %v419_v62, %v721_v41  ;;  %v915_v12 = vsel %vm648_vm1, %v913_v53, %v914_v5  ;;  %v722_v57 = vrot.slane %v387_v3, 1 }
  0x8b   : > { %1270 = vst.msk [vmem:[%s1516_s7 + $0xd0] sm:$0xff] %vm1243_vm2, %v1237_v6  ;;  %v983_v14 = vmax.f32 %v1978_v1, %v915_v12  ;;  %v631_v43 = vmax.f32 %v305_v52, %v534_v58  ;;  %v917_v19 = vsel %vm648_vm1, %v914_v5, %v916_v47  ;;  %v1172_v18 = vrot.slane %v305_v52, 1 }
  0x8c   : > { %1271 = vst.msk [vmem:[%s1516_s7 + $0xd8] sm:$0xff] %vm1243_vm2, %v1238_v10  ;;  %v1015_v20 = vmax.f32 %v789_v11, %v2007_v30  ;;  %v723_v59 = vsel %vm648_vm1, %v720_v13, %v722_v57  ;;  %v984_v9 = vmax.f32 %v1991_v17, %v917_v19  ;;  %v533_v24 = vrot.slane %v388_v60, 7  ;;  %v390_v17 = vld [vmem:[%s1447_s26 + $0x178] sm:$0x1] }
  0x8d   : > { %v790_v1 = vmax.f32 %v420_v0, %v723_v59  ;;  %v921_v27 = vrot.slane %v631_v43, 1  ;;  %v1173_v15 = vsel %vm648_vm1, %v1170_v40, %v1172_v18  ;;  %v724_v8 = vrot.slane %v388_v60, 1 }
  0x8e   : > { %v1047_v31 = vmax.f32 %v983_v14, %v1015_v20  ;;  %v535_v28 = vsel %vm487_vm0, %v533_v24, %v534_v58  ;;  %v629_v34 = vmax.f32 %v2004_v51, %v533_v24  ;;  %v725_v21 = vrot.slane %v2023_v61, 1 }
  0x8f   : > { %v1016_v32 = vmax.f32 %v790_v1, %v2030_v44  ;;  %v630_v37 = vmax.f32 %v304_v42, %v535_v28  ;;  %v793_v39 = vmax.f32 %v306_v23, %v341_v22  ;;  %v1174_v2 = vrot.slane %v306_v23, 1 }
  0x90   : > { %v1239_v16 = vmax.f32 %v1047_v31, %v1171_v7  ;;  %v726_v46 = vsel %vm648_vm1, %v724_v8, %v725_v21  ;;  %v918_v48 = vrot.slane %v629_v34, 1  ;;  %v1175_v49 = vrot.slane %v307_v25, 1 }
  0x91   : > { %v1048_v51 = vmax.f32 %v984_v9, %v1016_v32  ;;  %v791_v47 = vmax.f32 %v421_v33, %v726_v46  ;;  %v919_v50 = vrot.slane %v630_v37, 1  ;;  %v727_v38 = vrot.slane %v390_v17, 1 }
  0x92   : > { %1272 = vst.msk [vmem:[%s1516_s7 + $0xe0] sm:$0xff] %vm1243_vm2, %v1239_v16  ;;  %v794_v36 = vmax.f32 %v307_v25, %v342_v4  ;;  %v1177_v55 = vrot.slane %v308_v45, 1  ;;  %v1176_v63 = vsel %vm648_vm1, %v1174_v2, %v1175_v49 }
  0x93   : > { %v1240_v42 = vmax.f32 %v1048_v51, %v1173_v15  ;;  %v920_v56 = vsel %vm648_vm1, %v918_v48, %v919_v50  ;;  %v1017_v54 = vmax.f32 %v791_v47, %v793_v39  ;;  %v728_v61 = vsel %vm648_vm1, %v725_v21, %v727_v38 }
  0x94   : > { %v985_v35 = vmax.f32 %v2007_v30, %v920_v56  ;;  %v792_v62 = vmax.f32 %v422_v26, %v728_v61  ;;  %v922_v13 = vsel %vm648_vm1, %v919_v50, %v921_v27  ;;  %v1178_v53 = vsel %vm648_vm1, %v1175_v49, %v1177_v55 }
  0x95   : > { %1273 = vst.msk [vmem:[%s1516_s7 + $0xe8] sm:$0xff] %vm1243_vm2, %v1240_v42  ;;  %v986_v40 = vmax.f32 %v2030_v44, %v922_v13 }
  0x96   : > { %v1049_v3 = vmax.f32 %v985_v35, %v1017_v54  ;;  %v1018_v29 = vmax.f32 %v792_v62, %v794_v36 }
  0x98   : > { %v1241_v5 = vmax.f32 %v1049_v3, %v1176_v63  ;;  %v1050_v52 = vmax.f32 %v986_v40, %v1018_v29 }
  0x9a   : > { %1274 = vst.msk [vmem:[%s1516_s7 + $0xf0] sm:$0xff] %vm1243_vm2, %v1241_v5  ;;  %v1242_v6 = vmax.f32 %v1050_v52, %v1178_v53 }
  0x9c   : > { %1275 = vst.msk [vmem:[%s1516_s7 + $0xf8] sm:$0xff] %vm1243_vm2, %v1242_v6 }
  0x9d PF: > { %s14_s15 = sadd.s32 1, %s1396_s15  }
  0x9e   : > { %p11_p4 = scmp.ge.s32.totalorder %s14_s15, 4  }
  0xa0   :  { %13 = sbr.rel (!%p11_p4) target bundleno = 1 (0x1), region = 75 }

// kernel: _lambda_.32
= control target key start
LH: loop header
LB: loop body
LE: loop exit
PB: predicated region body
PF: predicated region fallthrough
CT: control target
= control target key end

     0   :  { %vm212_vm0 = vcmask 1043456   ;;  %vm115_vm1 = vcmask 64512   ;;  %s1562_s1 = inlined_call_operand.vmem [shape: bf16[8,8], index: 1, kind: input, shape index: {}]   ;;  %s1563_s0 = inlined_call_operand.vmem [shape: f32[512,8], index: 0, kind: input, shape index: {}]   ;;  %s1564_s2 = inlined_call_operand.vmem [shape: f32[1,8], index: 2, kind: input, shape index: {}]   ;;  %s1565_s3 = inlined_call_operand.vmem [shape: f32[1,8], index: 3, kind: input, shape index: {}]   ;;  %s1566_s4 = inlined_call_operand.vmem [shape: f32[512,8], index: 4, kind: output, shape index: {}]  }
   0x1   :  { %v114_v0 = vld [vmem:[%s1562_s1] sm:$0xf]  ;;  %v19_v2 = vld [vmem:[%s1563_s0 + $0x8] sm:$0xff]  ;;  %v20_v7 = vld [vmem:[%s1563_s0 + $0x10] sm:$0xff] }
   0x2   :  { %v18_v1 = vld [vmem:[%s1563_s0] sm:$0xff]  ;;  %914 = vmatprep.subr.msk.bf16.mxu0 %vm212_vm0, %v114_v0  ;;  %915 = vmatprep.subr.msk.bf16.mxu1 %vm212_vm0, %v114_v0  ;;  %v214_v3 = vsel %vm212_vm0, %v114_v0, 0  ;;  %v51_v6 = vld [vmem:[%s1563_s0 + $0x108] sm:$0xff]  ;;  %v21_v9 = vld [vmem:[%s1563_s0 + $0x18] sm:$0xff] }
   0x3   :  { %v82_v4 = vpack.c.bf16 %v19_v2, %v18_v1  ;;  %v50_v5 = vld [vmem:[%s1563_s0 + $0x100] sm:$0xff]  ;;  %847 = vmatpush3.bf16.msra.mxu0 %v214_v3  ;;  %913 = vmatpush3.bf16.msra.mxu1 %v214_v3  ;;  %v52_v10 = vld [vmem:[%s1563_s0 + $0x110] sm:$0xff]  ;;  %v53_v11 = vld [vmem:[%s1563_s0 + $0x118] sm:$0xff]  ;;  %v83_v12 = vpack.c.bf16 %v21_v9, %v20_v7 }
   0x4   :  { %v98_v8 = vpack.c.bf16 %v51_v6, %v50_v5  ;;  %v99_v13 = vpack.c.bf16 %v53_v11, %v52_v10  ;;  %v22_v14 = vld [vmem:[%s1563_s0 + $0x20] sm:$0xff]  ;;  %v23_v15 = vld [vmem:[%s1563_s0 + $0x28] sm:$0xff]  ;;  %v24_v20 = vld [vmem:[%s1563_s0 + $0x30] sm:$0xff] }
   0x5   :  { %848 = vmatprep.mubr.msk.bf16.mxu0 %vm115_vm1, %v82_v4  ;;  %v54_v16 = vld [vmem:[%s1563_s0 + $0x120] sm:$0xff]  ;;  %v84_v17 = vpack.c.bf16 %v23_v15, %v22_v14  ;;  %v55_v18 = vld [vmem:[%s1563_s0 + $0x128] sm:$0xff]  ;;  %v25_v21 = vld [vmem:[%s1563_s0 + $0x38] sm:$0xff] }
   0x6   :  { %880 = vmatprep.mubr.msk.bf16.mxu1 %vm115_vm1, %v98_v8  ;;  %849 = vmatmul.mubr.msk.bf16.vlgmr.msra.gmra.mxu0 %vm115_vm1, %v83_v12  ;;  %v100_v19 = vpack.c.bf16 %v55_v18, %v54_v16  ;;  %v56_v22 = vld [vmem:[%s1563_s0 + $0x130] sm:$0xff]  ;;  %v57_v23 = vld [vmem:[%s1563_s0 + $0x138] sm:$0xff]  ;;  %v26_v24 = vld [vmem:[%s1563_s0 + $0x40] sm:$0xff]  ;;  %v85_v28 = vpack.c.bf16 %v25_v21, %v24_v20 }
   0x7   :  { %881 = vmatmul.mubr.msk.bf16.vlgmr.msra.gmra.mxu1 %vm115_vm1, %v99_v13  ;;  %852 = vmatprep.mubr.msk.bf16.mxu0 %vm115_vm1, %v84_v17  ;;  %v27_v25 = vld [vmem:[%s1563_s0 + $0x48] sm:$0xff]  ;;  %v58_v26 = vld [vmem:[%s1563_s0 + $0x140] sm:$0xff]  ;;  %v101_v29 = vpack.c.bf16 %v57_v23, %v56_v22  ;;  %v28_v32 = vld [vmem:[%s1563_s0 + $0x50] sm:$0xff] }
   0x8   :  { %884 = vmatprep.mubr.msk.bf16.mxu1 %vm115_vm1, %v100_v19  ;;  %v59_v27 = vld [vmem:[%s1563_s0 + $0x148] sm:$0xff]  ;;  %v86_v30 = vpack.c.bf16 %v27_v25, %v26_v24  ;;  %v29_v33 = vld [vmem:[%s1563_s0 + $0x58] sm:$0xff]  ;;  %v60_v34 = vld [vmem:[%s1563_s0 + $0x150] sm:$0xff] }
   0x9   :  { %v102_v31 = vpack.c.bf16 %v59_v27, %v58_v26  ;;  %v61_v35 = vld [vmem:[%s1563_s0 + $0x158] sm:$0xff]  ;;  %v30_v36 = vld [vmem:[%s1563_s0 + $0x60] sm:$0xff]  ;;  %v31_v37 = vld [vmem:[%s1563_s0 + $0x68] sm:$0xff]  ;;  %v87_v40 = vpack.c.bf16 %v29_v33, %v28_v32 }
   0xa   :  { %v62_v38 = vld [vmem:[%s1563_s0 + $0x160] sm:$0xff]  ;;  %v63_v39 = vld [vmem:[%s1563_s0 + $0x168] sm:$0xff]  ;;  %v103_v41 = vpack.c.bf16 %v61_v35, %v60_v34  ;;  %v88_v42 = vpack.c.bf16 %v31_v37, %v30_v36  ;;  %v32_v44 = vld [vmem:[%s1563_s0 + $0x70] sm:$0xff] }
   0xb   :  { %v104_v43 = vpack.c.bf16 %v63_v39, %v62_v38  ;;  %v33_v45 = vld [vmem:[%s1563_s0 + $0x78] sm:$0xff]  ;;  %v64_v46 = vld [vmem:[%s1563_s0 + $0x170] sm:$0xff]  ;;  %v34_v48 = vld [vmem:[%s1563_s0 + $0x80] sm:$0xff] }
   0xc   :  { %v65_v47 = vld [vmem:[%s1563_s0 + $0x178] sm:$0xff]  ;;  %v35_v49 = vld [vmem:[%s1563_s0 + $0x88] sm:$0xff]  ;;  %v66_v50 = vld [vmem:[%s1563_s0 + $0x180] sm:$0xff]  ;;  %v89_v52 = vpack.c.bf16 %v33_v45, %v32_v44 }
   0xd   :  { %v67_v51 = vld [vmem:[%s1563_s0 + $0x188] sm:$0xff]  ;;  %v105_v53 = vpack.c.bf16 %v65_v47, %v64_v46  ;;  %v90_v54 = vpack.c.bf16 %v35_v49, %v34_v48  ;;  %v36_v56 = vld [vmem:[%s1563_s0 + $0x90] sm:$0xff]  ;;  %v37_v57 = vld [vmem:[%s1563_s0 + $0x98] sm:$0xff] }
   0xe   :  { %853 = vmatmul.mubr.msk.bf16.gmra.mxu0 %vm115_vm1, %v85_v28  ;;  %v106_v55 = vpack.c.bf16 %v67_v51, %v66_v50  ;;  %v68_v58 = vld [vmem:[%s1563_s0 + $0x190] sm:$0xff]  ;;  %v69_v59 = vld [vmem:[%s1563_s0 + $0x198] sm:$0xff]  ;;  %v38_v60 = vld [vmem:[%s1563_s0 + $0xa0] sm:$0xff]  ;;  %v91_v0 = vpack.c.bf16 %v37_v57, %v36_v56 }
   0xf   :  { %885 = vmatmul.mubr.msk.bf16.gmra.mxu1 %vm115_vm1, %v101_v29  ;;  %856 = vmatprep.mubr.msk.bf16.mxu0 %vm115_vm1, %v86_v30  ;;  %v39_v61 = vld [vmem:[%s1563_s0 + $0xa8] sm:$0xff]  ;;  %v70_v62 = vld [vmem:[%s1563_s0 + $0x1a0] sm:$0xff]  ;;  %v107_v1 = vpack.c.bf16 %v69_v59, %v68_v58  ;;  %v40_v4 = vld [vmem:[%s1563_s0 + $0xb0] sm:$0xff] }
  0x10   :  { %888 = vmatprep.mubr.msk.bf16.mxu1 %vm115_vm1, %v102_v31  ;;  %v71_v63 = vld [vmem:[%s1563_s0 + $0x1a8] sm:$0xff]  ;;  %v92_v2 = vpack.c.bf16 %v39_v61, %v38_v60  ;;  %v41_v5 = vld [vmem:[%s1563_s0 + $0xb8] sm:$0xff]  ;;  %v72_v6 = vld [vmem:[%s1563_s0 + $0x1b0] sm:$0xff] }
  0x11   :  { %v108_v3 = vpack.c.bf16 %v71_v63, %v70_v62  ;;  %v73_v7 = vld [vmem:[%s1563_s0 + $0x1b8] sm:$0xff]  ;;  %v42_v8 = vld [vmem:[%s1563_s0 + $0xc0] sm:$0xff]  ;;  %v43_v9 = vld [vmem:[%s1563_s0 + $0xc8] sm:$0xff]  ;;  %v93_v12 = vpack.c.bf16 %v41_v5, %v40_v4 }
  0x12   :  { %v74_v10 = vld [vmem:[%s1563_s0 + $0x1c0] sm:$0xff]  ;;  %v75_v11 = vld [vmem:[%s1563_s0 + $0x1c8] sm:$0xff]  ;;  %v109_v13 = vpack.c.bf16 %v73_v7, %v72_v6  ;;  %v94_v14 = vpack.c.bf16 %v43_v9, %v42_v8  ;;  %v44_v16 = vld [vmem:[%s1563_s0 + $0xd0] sm:$0xff] }
  0x13   :  { %v110_v15 = vpack.c.bf16 %v75_v11, %v74_v10  ;;  %v45_v17 = vld [vmem:[%s1563_s0 + $0xd8] sm:$0xff]  ;;  %v76_v18 = vld [vmem:[%s1563_s0 + $0x1d0] sm:$0xff]  ;;  %v46_v20 = vld [vmem:[%s1563_s0 + $0xe0] sm:$0xff] }
  0x14   :  { %v77_v19 = vld [vmem:[%s1563_s0 + $0x1d8] sm:$0xff]  ;;  %v47_v21 = vld [vmem:[%s1563_s0 + $0xe8] sm:$0xff]  ;;  %v78_v22 = vld [vmem:[%s1563_s0 + $0x1e0] sm:$0xff]  ;;  %v95_v24 = vpack.c.bf16 %v45_v17, %v44_v16 }
  0x15   :  { %v79_v23 = vld [vmem:[%s1563_s0 + $0x1e8] sm:$0xff]  ;;  %v111_v25 = vpack.c.bf16 %v77_v19, %v76_v18  ;;  %v96_v26 = vpack.c.bf16 %v47_v21, %v46_v20  ;;  %v48_v28 = vld [vmem:[%s1563_s0 + $0xf0] sm:$0xff]  ;;  %v49_v29 = vld [vmem:[%s1563_s0 + $0xf8] sm:$0xff] }
  0x16   :  { %857 = vmatmul.mubr.msk.bf16.gmra.mxu0 %vm115_vm1, %v87_v40  ;;  %v112_v27 = vpack.c.bf16 %v79_v23, %v78_v22  ;;  %v80_v30 = vld [vmem:[%s1563_s0 + $0x1f0] sm:$0xff]  ;;  %v81_v31 = vld [vmem:[%s1563_s0 + $0x1f8] sm:$0xff]  ;;  %v97_v32 = vpack.c.bf16 %v49_v29, %v48_v28  ;;  %v1171_v34 = vld [vmem:[%s1564_s2] ss:$0 sm:$0xff] }
  0x17   :  { %889 = vmatmul.mubr.msk.bf16.gmra.mxu1 %vm115_vm1, %v103_v41  ;;  %860 = vmatprep.mubr.msk.bf16.mxu0 %vm115_vm1, %v88_v42  ;;  %v113_v33 = vpack.c.bf16 %v81_v31, %v80_v30  ;;  %v1176_v36 = vld [vmem:[%s1565_s3] ss:$0 sm:$0xff] }
  0x18   :  { %892 = vmatprep.mubr.msk.bf16.mxu1 %vm115_vm1, %v104_v43 }
  0x1e   :  { %861 = vmatmul.mubr.msk.bf16.gmra.mxu0 %vm115_vm1, %v89_v52 }
  0x1f   :  { %893 = vmatmul.mubr.msk.bf16.gmra.mxu1 %vm115_vm1, %v105_v53  ;;  %864 = vmatprep.mubr.msk.bf16.mxu0 %vm115_vm1, %v90_v54 }
  0x20   :  { %896 = vmatprep.mubr.msk.bf16.mxu1 %vm115_vm1, %v106_v55 }
  0x26   :  { %865 = vmatmul.mubr.msk.bf16.gmra.mxu0 %vm115_vm1, %v91_v0 }
  0x27   :  { %897 = vmatmul.mubr.msk.bf16.gmra.mxu1 %vm115_vm1, %v107_v1  ;;  %868 = vmatprep.mubr.msk.bf16.mxu0 %vm115_vm1, %v92_v2 }
  0x28   :  { %900 = vmatprep.mubr.msk.bf16.mxu1 %vm115_vm1, %v108_v3 }
  0x2e   :  { %869 = vmatmul.mubr.msk.bf16.gmra.mxu0 %vm115_vm1, %v93_v12 }
  0x2f   :  { %901 = vmatmul.mubr.msk.bf16.gmra.mxu1 %vm115_vm1, %v109_v13  ;;  %872 = vmatprep.mubr.msk.bf16.mxu0 %vm115_vm1, %v94_v14 }
  0x30   :  { %904 = vmatprep.mubr.msk.bf16.mxu1 %vm115_vm1, %v110_v15 }
  0x36   :  { %873 = vmatmul.mubr.msk.bf16.gmra.mxu0 %vm115_vm1, %v95_v24 }
  0x37   :  { %905 = vmatmul.mubr.msk.bf16.gmra.mxu1 %vm115_vm1, %v111_v25  ;;  %876 = vmatprep.mubr.msk.bf16.mxu0 %vm115_vm1, %v96_v26 }
  0x38   :  { %908 = vmatprep.mubr.msk.bf16.mxu1 %vm115_vm1, %v112_v27 }
  0x3e   :  { %877 = vmatmul.mubr.msk.bf16.gmra.mxu0 %vm115_vm1, %v97_v32 }
  0x3f   :  { %909 = vmatmul.mubr.msk.bf16.gmra.mxu1 %vm115_vm1, %v113_v33 }
  0xc6   :  { %v850_v35 = vpop.f32.mrf.mxu0 }
  0xc7   :  { %v882_v37 = vpop.f32.mrf.mxu1  ;;  %v514_v38 = vmul.f32 %v850_v35, %v1171_v34 }
  0xc8   :  { %v546_v39 = vmul.f32 %v882_v37, %v1171_v34  ;;  %v250_v40 = vpop.f32.mrf.mxu0 }
  0xc9   :  { %v378_v41 = vpop.f32.mrf.mxu1  ;;  %v585_v42 = vadd.f32 %v1176_v36, %v514_v38  ;;  %v512_v44 = vmul.f32 %v1171_v34, %v250_v40 }
  0xca   :  { %v617_v43 = vadd.f32 %v1176_v36, %v546_v39  ;;  %v544_v45 = vmul.f32 %v1171_v34, %v378_v41  ;;  %v851_v46 = vpop.f32.mrf.mxu0 }
  0xcb   :  { %v883_v47 = vpop.f32.mrf.mxu1  ;;  %v649_v48 = vmax.f32 %v585_v42, 0.0  ;;  %v583_v50 = vadd.f32 %v1176_v36, %v512_v44  ;;  %v515_v52 = vmul.f32 %v851_v46, %v1171_v34 }
  0xcc   :  { %v681_v49 = vmax.f32 %v617_v43, 0.0  ;;  %v615_v51 = vadd.f32 %v1176_v36, %v544_v45  ;;  %v547_v53 = vmul.f32 %v883_v47, %v1171_v34  ;;  %v253_v54 = vpop.f32.mrf.mxu0 }
  0xcd   :  { %v381_v55 = vpop.f32.mrf.mxu1  ;;  %713 = vst.msk [vmem:[%s1566_s4 + $0x10] sm:$0xff] %vm115_vm1, %v649_v48  ;;  %v647_v56 = vmax.f32 %v583_v50, 0.0  ;;  %v513_v58 = vmul.f32 %v1171_v34, %v253_v54  ;;  %v586_v60 = vadd.f32 %v1176_v36, %v515_v52 }
  0xce   :  { %745 = vst.msk [vmem:[%s1566_s4 + $0x110] sm:$0xff] %vm115_vm1, %v681_v49  ;;  %v679_v57 = vmax.f32 %v615_v51, 0.0  ;;  %v545_v59 = vmul.f32 %v1171_v34, %v381_v55  ;;  %v618_v61 = vadd.f32 %v1176_v36, %v547_v53  ;;  %v854_v62 = vpop.f32.mrf.mxu0 }
  0xcf   :  { %v886_v63 = vpop.f32.mrf.mxu1  ;;  %711 = vst.msk [vmem:[%s1566_s4] sm:$0xff] %vm115_vm1, %v647_v56  ;;  %v584_v0 = vadd.f32 %v1176_v36, %v513_v58  ;;  %v518_v2 = vmul.f32 %v854_v62, %v1171_v34  ;;  %v650_v4 = vmax.f32 %v586_v60, 0.0 }
  0xd0   :  { %743 = vst.msk [vmem:[%s1566_s4 + $0x100] sm:$0xff] %vm115_vm1, %v679_v57  ;;  %v616_v1 = vadd.f32 %v1176_v36, %v545_v59  ;;  %v550_v3 = vmul.f32 %v886_v63, %v1171_v34  ;;  %v682_v5 = vmax.f32 %v618_v61, 0.0  ;;  %v266_v6 = vpop.f32.mrf.mxu0 }
  0xd1   :  { %v394_v7 = vpop.f32.mrf.mxu1  ;;  %v648_v8 = vmax.f32 %v584_v0, 0.0  ;;  %v589_v10 = vadd.f32 %v1176_v36, %v518_v2  ;;  %714 = vst.msk [vmem:[%s1566_s4 + $0x18] sm:$0xff] %vm115_vm1, %v650_v4  ;;  %v516_v12 = vmul.f32 %v1171_v34, %v266_v6 }
  0xd2   :  { %v680_v9 = vmax.f32 %v616_v1, 0.0  ;;  %v621_v11 = vadd.f32 %v1176_v36, %v550_v3  ;;  %746 = vst.msk [vmem:[%s1566_s4 + $0x118] sm:$0xff] %vm115_vm1, %v682_v5  ;;  %v548_v13 = vmul.f32 %v1171_v34, %v394_v7  ;;  %v855_v14 = vpop.f32.mrf.mxu0 }
  0xd3   :  { %v887_v15 = vpop.f32.mrf.mxu1  ;;  %712 = vst.msk [vmem:[%s1566_s4 + $0x8] sm:$0xff] %vm115_vm1, %v648_v8  ;;  %v653_v16 = vmax.f32 %v589_v10, 0.0  ;;  %v519_v18 = vmul.f32 %v855_v14, %v1171_v34  ;;  %v587_v20 = vadd.f32 %v1176_v36, %v516_v12 }
  0xd4   :  { %744 = vst.msk [vmem:[%s1566_s4 + $0x108] sm:$0xff] %vm115_vm1, %v680_v9  ;;  %v685_v17 = vmax.f32 %v621_v11, 0.0  ;;  %v551_v19 = vmul.f32 %v887_v15, %v1171_v34  ;;  %v619_v21 = vadd.f32 %v1176_v36, %v548_v13  ;;  %v269_v22 = vpop.f32.mrf.mxu0 }
  0xd5   :  { %v397_v23 = vpop.f32.mrf.mxu1  ;;  %717 = vst.msk [vmem:[%s1566_s4 + $0x30] sm:$0xff] %vm115_vm1, %v653_v16  ;;  %v590_v24 = vadd.f32 %v1176_v36, %v519_v18  ;;  %v517_v26 = vmul.f32 %v1171_v34, %v269_v22  ;;  %v651_v28 = vmax.f32 %v587_v20, 0.0 }
  0xd6   :  { %749 = vst.msk [vmem:[%s1566_s4 + $0x130] sm:$0xff] %vm115_vm1, %v685_v17  ;;  %v622_v25 = vadd.f32 %v1176_v36, %v551_v19  ;;  %v549_v27 = vmul.f32 %v1171_v34, %v397_v23  ;;  %v683_v29 = vmax.f32 %v619_v21, 0.0  ;;  %v858_v30 = vpop.f32.mrf.mxu0 }
  0xd7   :  { %v890_v31 = vpop.f32.mrf.mxu1  ;;  %v654_v32 = vmax.f32 %v590_v24, 0.0  ;;  %v588_v35 = vadd.f32 %v1176_v36, %v517_v26  ;;  %715 = vst.msk [vmem:[%s1566_s4 + $0x20] sm:$0xff] %vm115_vm1, %v651_v28  ;;  %v522_v38 = vmul.f32 %v858_v30, %v1171_v34 }
  0xd8   :  { %v686_v33 = vmax.f32 %v622_v25, 0.0  ;;  %v620_v37 = vadd.f32 %v1176_v36, %v549_v27  ;;  %747 = vst.msk [vmem:[%s1566_s4 + $0x120] sm:$0xff] %vm115_vm1, %v683_v29  ;;  %v554_v39 = vmul.f32 %v890_v31, %v1171_v34  ;;  %v282_v40 = vpop.f32.mrf.mxu0 }
  0xd9   :  { %v410_v41 = vpop.f32.mrf.mxu1  ;;  %718 = vst.msk [vmem:[%s1566_s4 + $0x38] sm:$0xff] %vm115_vm1, %v654_v32  ;;  %v652_v42 = vmax.f32 %v588_v35, 0.0  ;;  %v520_v44 = vmul.f32 %v1171_v34, %v282_v40  ;;  %v593_v46 = vadd.f32 %v1176_v36, %v522_v38 }
  0xda   :  { %750 = vst.msk [vmem:[%s1566_s4 + $0x138] sm:$0xff] %vm115_vm1, %v686_v33  ;;  %v684_v43 = vmax.f32 %v620_v37, 0.0  ;;  %v552_v45 = vmul.f32 %v1171_v34, %v410_v41  ;;  %v625_v47 = vadd.f32 %v1176_v36, %v554_v39  ;;  %v859_v48 = vpop.f32.mrf.mxu0 }
  0xdb   :  { %v891_v49 = vpop.f32.mrf.mxu1  ;;  %716 = vst.msk [vmem:[%s1566_s4 + $0x28] sm:$0xff] %vm115_vm1, %v652_v42  ;;  %v591_v50 = vadd.f32 %v1176_v36, %v520_v44  ;;  %v523_v52 = vmul.f32 %v859_v48, %v1171_v34  ;;  %v657_v54 = vmax.f32 %v593_v46, 0.0 }
  0xdc   :  { %748 = vst.msk [vmem:[%s1566_s4 + $0x128] sm:$0xff] %vm115_vm1, %v684_v43  ;;  %v623_v51 = vadd.f32 %v1176_v36, %v552_v45  ;;  %v555_v53 = vmul.f32 %v891_v49, %v1171_v34  ;;  %v689_v55 = vmax.f32 %v625_v47, 0.0  ;;  %v285_v56 = vpop.f32.mrf.mxu0 }
  0xdd   :  { %v413_v57 = vpop.f32.mrf.mxu1  ;;  %v655_v58 = vmax.f32 %v591_v50, 0.0  ;;  %v594_v60 = vadd.f32 %v1176_v36, %v523_v52  ;;  %721 = vst.msk [vmem:[%s1566_s4 + $0x50] sm:$0xff] %vm115_vm1, %v657_v54  ;;  %v521_v62 = vmul.f32 %v1171_v34, %v285_v56 }
  0xde   :  { %v687_v59 = vmax.f32 %v623_v51, 0.0  ;;  %v626_v61 = vadd.f32 %v1176_v36, %v555_v53  ;;  %753 = vst.msk [vmem:[%s1566_s4 + $0x150] sm:$0xff] %vm115_vm1, %v689_v55  ;;  %v553_v63 = vmul.f32 %v1171_v34, %v413_v57  ;;  %v862_v0 = vpop.f32.mrf.mxu0 }
  0xdf   :  { %v894_v1 = vpop.f32.mrf.mxu1  ;;  %719 = vst.msk [vmem:[%s1566_s4 + $0x40] sm:$0xff] %vm115_vm1, %v655_v58  ;;  %v658_v2 = vmax.f32 %v594_v60, 0.0  ;;  %v526_v4 = vmul.f32 %v862_v0, %v1171_v34  ;;  %v592_v6 = vadd.f32 %v1176_v36, %v521_v62 }
  0xe0   :  { %751 = vst.msk [vmem:[%s1566_s4 + $0x140] sm:$0xff] %vm115_vm1, %v687_v59  ;;  %v690_v3 = vmax.f32 %v626_v61, 0.0  ;;  %v558_v5 = vmul.f32 %v894_v1, %v1171_v34  ;;  %v624_v7 = vadd.f32 %v1176_v36, %v553_v63  ;;  %v298_v8 = vpop.f32.mrf.mxu0 }
  0xe1   :  { %v426_v9 = vpop.f32.mrf.mxu1  ;;  %722 = vst.msk [vmem:[%s1566_s4 + $0x58] sm:$0xff] %vm115_vm1, %v658_v2  ;;  %v597_v10 = vadd.f32 %v1176_v36, %v526_v4  ;;  %v524_v12 = vmul.f32 %v1171_v34, %v298_v8  ;;  %v656_v14 = vmax.f32 %v592_v6, 0.0 }
  0xe2   :  { %754 = vst.msk [vmem:[%s1566_s4 + $0x158] sm:$0xff] %vm115_vm1, %v690_v3  ;;  %v629_v11 = vadd.f32 %v1176_v36, %v558_v5  ;;  %v556_v13 = vmul.f32 %v1171_v34, %v426_v9  ;;  %v688_v15 = vmax.f32 %v624_v7, 0.0  ;;  %v863_v16 = vpop.f32.mrf.mxu0 }
  0xe3   :  { %v895_v17 = vpop.f32.mrf.mxu1  ;;  %v661_v18 = vmax.f32 %v597_v10, 0.0  ;;  %v595_v20 = vadd.f32 %v1176_v36, %v524_v12  ;;  %720 = vst.msk [vmem:[%s1566_s4 + $0x48] sm:$0xff] %vm115_vm1, %v656_v14  ;;  %v527_v22 = vmul.f32 %v863_v16, %v1171_v34 }
  0xe4   :  { %v693_v19 = vmax.f32 %v629_v11, 0.0  ;;  %v627_v21 = vadd.f32 %v1176_v36, %v556_v13  ;;  %752 = vst.msk [vmem:[%s1566_s4 + $0x148] sm:$0xff] %vm115_vm1, %v688_v15  ;;  %v559_v23 = vmul.f32 %v895_v17, %v1171_v34  ;;  %v301_v24 = vpop.f32.mrf.mxu0 }
  0xe5   :  { %v429_v25 = vpop.f32.mrf.mxu1  ;;  %725 = vst.msk [vmem:[%s1566_s4 + $0x70] sm:$0xff] %vm115_vm1, %v661_v18  ;;  %v659_v26 = vmax.f32 %v595_v20, 0.0  ;;  %v525_v28 = vmul.f32 %v1171_v34, %v301_v24  ;;  %v598_v30 = vadd.f32 %v1176_v36, %v527_v22 }
  0xe6   :  { %757 = vst.msk [vmem:[%s1566_s4 + $0x170] sm:$0xff] %vm115_vm1, %v693_v19  ;;  %v691_v27 = vmax.f32 %v627_v21, 0.0  ;;  %v557_v29 = vmul.f32 %v1171_v34, %v429_v25  ;;  %v630_v31 = vadd.f32 %v1176_v36, %v559_v23  ;;  %v866_v32 = vpop.f32.mrf.mxu0 }
  0xe7   :  { %v898_v33 = vpop.f32.mrf.mxu1  ;;  %723 = vst.msk [vmem:[%s1566_s4 + $0x60] sm:$0xff] %vm115_vm1, %v659_v26  ;;  %v596_v35 = vadd.f32 %v1176_v36, %v525_v28  ;;  %v530_v38 = vmul.f32 %v866_v32, %v1171_v34  ;;  %v662_v40 = vmax.f32 %v598_v30, 0.0 }
  0xe8   :  { %755 = vst.msk [vmem:[%s1566_s4 + $0x160] sm:$0xff] %vm115_vm1, %v691_v27  ;;  %v628_v37 = vadd.f32 %v1176_v36, %v557_v29  ;;  %v562_v39 = vmul.f32 %v898_v33, %v1171_v34  ;;  %v694_v41 = vmax.f32 %v630_v31, 0.0  ;;  %v314_v42 = vpop.f32.mrf.mxu0 }
  0xe9   :  { %v442_v43 = vpop.f32.mrf.mxu1  ;;  %v660_v44 = vmax.f32 %v596_v35, 0.0  ;;  %v601_v46 = vadd.f32 %v1176_v36, %v530_v38  ;;  %726 = vst.msk [vmem:[%s1566_s4 + $0x78] sm:$0xff] %vm115_vm1, %v662_v40  ;;  %v528_v48 = vmul.f32 %v1171_v34, %v314_v42 }
  0xea   :  { %v692_v45 = vmax.f32 %v628_v37, 0.0  ;;  %v633_v47 = vadd.f32 %v1176_v36, %v562_v39  ;;  %758 = vst.msk [vmem:[%s1566_s4 + $0x178] sm:$0xff] %vm115_vm1, %v694_v41  ;;  %v560_v49 = vmul.f32 %v1171_v34, %v442_v43  ;;  %v867_v50 = vpop.f32.mrf.mxu0 }
  0xeb   :  { %v899_v51 = vpop.f32.mrf.mxu1  ;;  %724 = vst.msk [vmem:[%s1566_s4 + $0x68] sm:$0xff] %vm115_vm1, %v660_v44  ;;  %v665_v52 = vmax.f32 %v601_v46, 0.0  ;;  %v531_v54 = vmul.f32 %v867_v50, %v1171_v34  ;;  %v599_v56 = vadd.f32 %v1176_v36, %v528_v48 }
  0xec   :  { %756 = vst.msk [vmem:[%s1566_s4 + $0x168] sm:$0xff] %vm115_vm1, %v692_v45  ;;  %v697_v53 = vmax.f32 %v633_v47, 0.0  ;;  %v563_v55 = vmul.f32 %v899_v51, %v1171_v34  ;;  %v631_v57 = vadd.f32 %v1176_v36, %v560_v49  ;;  %v317_v58 = vpop.f32.mrf.mxu0 }
  0xed   :  { %v445_v59 = vpop.f32.mrf.mxu1  ;;  %729 = vst.msk [vmem:[%s1566_s4 + $0x90] sm:$0xff] %vm115_vm1, %v665_v52  ;;  %v602_v60 = vadd.f32 %v1176_v36, %v531_v54  ;;  %v529_v62 = vmul.f32 %v1171_v34, %v317_v58  ;;  %v663_v0 = vmax.f32 %v599_v56, 0.0 }
  0xee   :  { %761 = vst.msk [vmem:[%s1566_s4 + $0x190] sm:$0xff] %vm115_vm1, %v697_v53  ;;  %v634_v61 = vadd.f32 %v1176_v36, %v563_v55  ;;  %v561_v63 = vmul.f32 %v1171_v34, %v445_v59  ;;  %v695_v1 = vmax.f32 %v631_v57, 0.0  ;;  %v870_v2 = vpop.f32.mrf.mxu0 }
  0xef   :  { %v902_v3 = vpop.f32.mrf.mxu1  ;;  %v666_v4 = vmax.f32 %v602_v60, 0.0  ;;  %v600_v6 = vadd.f32 %v1176_v36, %v529_v62  ;;  %727 = vst.msk [vmem:[%s1566_s4 + $0x80] sm:$0xff] %vm115_vm1, %v663_v0  ;;  %v534_v8 = vmul.f32 %v870_v2, %v1171_v34 }
  0xf0   :  { %v698_v5 = vmax.f32 %v634_v61, 0.0  ;;  %v632_v7 = vadd.f32 %v1176_v36, %v561_v63  ;;  %759 = vst.msk [vmem:[%s1566_s4 + $0x180] sm:$0xff] %vm115_vm1, %v695_v1  ;;  %v566_v9 = vmul.f32 %v902_v3, %v1171_v34  ;;  %v330_v10 = vpop.f32.mrf.mxu0 }
  0xf1   :  { %v458_v11 = vpop.f32.mrf.mxu1  ;;  %730 = vst.msk [vmem:[%s1566_s4 + $0x98] sm:$0xff] %vm115_vm1, %v666_v4  ;;  %v664_v12 = vmax.f32 %v600_v6, 0.0  ;;  %v532_v14 = vmul.f32 %v1171_v34, %v330_v10  ;;  %v605_v16 = vadd.f32 %v1176_v36, %v534_v8 }
  0xf2   :  { %762 = vst.msk [vmem:[%s1566_s4 + $0x198] sm:$0xff] %vm115_vm1, %v698_v5  ;;  %v696_v13 = vmax.f32 %v632_v7, 0.0  ;;  %v564_v15 = vmul.f32 %v1171_v34, %v458_v11  ;;  %v637_v17 = vadd.f32 %v1176_v36, %v566_v9  ;;  %v871_v18 = vpop.f32.mrf.mxu0 }
  0xf3   :  { %v903_v19 = vpop.f32.mrf.mxu1  ;;  %728 = vst.msk [vmem:[%s1566_s4 + $0x88] sm:$0xff] %vm115_vm1, %v664_v12  ;;  %v603_v20 = vadd.f32 %v1176_v36, %v532_v14  ;;  %v535_v22 = vmul.f32 %v871_v18, %v1171_v34  ;;  %v669_v24 = vmax.f32 %v605_v16, 0.0 }
  0xf4   :  { %760 = vst.msk [vmem:[%s1566_s4 + $0x188] sm:$0xff] %vm115_vm1, %v696_v13  ;;  %v635_v21 = vadd.f32 %v1176_v36, %v564_v15  ;;  %v567_v23 = vmul.f32 %v903_v19, %v1171_v34  ;;  %v701_v25 = vmax.f32 %v637_v17, 0.0  ;;  %v333_v26 = vpop.f32.mrf.mxu0 }
  0xf5   :  { %v461_v27 = vpop.f32.mrf.mxu1  ;;  %v667_v28 = vmax.f32 %v603_v20, 0.0  ;;  %v606_v30 = vadd.f32 %v1176_v36, %v535_v22  ;;  %733 = vst.msk [vmem:[%s1566_s4 + $0xb0] sm:$0xff] %vm115_vm1, %v669_v24  ;;  %v533_v32 = vmul.f32 %v1171_v34, %v333_v26 }
  0xf6   :  { %v699_v29 = vmax.f32 %v635_v21, 0.0  ;;  %v638_v31 = vadd.f32 %v1176_v36, %v567_v23  ;;  %765 = vst.msk [vmem:[%s1566_s4 + $0x1b0] sm:$0xff] %vm115_vm1, %v701_v25  ;;  %v565_v33 = vmul.f32 %v1171_v34, %v461_v27  ;;  %v874_v35 = vpop.f32.mrf.mxu0 }
  0xf7   :  { %v906_v37 = vpop.f32.mrf.mxu1  ;;  %731 = vst.msk [vmem:[%s1566_s4 + $0xa0] sm:$0xff] %vm115_vm1, %v667_v28  ;;  %v670_v38 = vmax.f32 %v606_v30, 0.0  ;;  %v538_v40 = vmul.f32 %v874_v35, %v1171_v34  ;;  %v604_v42 = vadd.f32 %v1176_v36, %v533_v32 }
  0xf8   :  { %763 = vst.msk [vmem:[%s1566_s4 + $0x1a0] sm:$0xff] %vm115_vm1, %v699_v29  ;;  %v702_v39 = vmax.f32 %v638_v31, 0.0  ;;  %v570_v41 = vmul.f32 %v906_v37, %v1171_v34  ;;  %v636_v43 = vadd.f32 %v1176_v36, %v565_v33  ;;  %v346_v44 = vpop.f32.mrf.mxu0 }
  0xf9   :  { %v474_v45 = vpop.f32.mrf.mxu1  ;;  %734 = vst.msk [vmem:[%s1566_s4 + $0xb8] sm:$0xff] %vm115_vm1, %v670_v38  ;;  %v609_v46 = vadd.f32 %v1176_v36, %v538_v40  ;;  %v536_v48 = vmul.f32 %v1171_v34, %v346_v44  ;;  %v668_v50 = vmax.f32 %v604_v42, 0.0 }
  0xfa   :  { %766 = vst.msk [vmem:[%s1566_s4 + $0x1b8] sm:$0xff] %vm115_vm1, %v702_v39  ;;  %v641_v47 = vadd.f32 %v1176_v36, %v570_v41  ;;  %v568_v49 = vmul.f32 %v1171_v34, %v474_v45  ;;  %v700_v51 = vmax.f32 %v636_v43, 0.0  ;;  %v875_v52 = vpop.f32.mrf.mxu0 }
  0xfb   :  { %v907_v53 = vpop.f32.mrf.mxu1  ;;  %v673_v54 = vmax.f32 %v609_v46, 0.0  ;;  %v607_v56 = vadd.f32 %v1176_v36, %v536_v48  ;;  %732 = vst.msk [vmem:[%s1566_s4 + $0xa8] sm:$0xff] %vm115_vm1, %v668_v50  ;;  %v539_v58 = vmul.f32 %v875_v52, %v1171_v34 }
  0xfc   :  { %v705_v55 = vmax.f32 %v641_v47, 0.0  ;;  %v639_v57 = vadd.f32 %v1176_v36, %v568_v49  ;;  %764 = vst.msk [vmem:[%s1566_s4 + $0x1a8] sm:$0xff] %vm115_vm1, %v700_v51  ;;  %v571_v59 = vmul.f32 %v907_v53, %v1171_v34  ;;  %v349_v60 = vpop.f32.mrf.mxu0 }
  0xfd   :  { %v477_v61 = vpop.f32.mrf.mxu1  ;;  %737 = vst.msk [vmem:[%s1566_s4 + $0xd0] sm:$0xff] %vm115_vm1, %v673_v54  ;;  %v671_v62 = vmax.f32 %v607_v56, 0.0  ;;  %v537_v0 = vmul.f32 %v1171_v34, %v349_v60  ;;  %v610_v2 = vadd.f32 %v1176_v36, %v539_v58 }
  0xfe   :  { %769 = vst.msk [vmem:[%s1566_s4 + $0x1d0] sm:$0xff] %vm115_vm1, %v705_v55  ;;  %v703_v63 = vmax.f32 %v639_v57, 0.0  ;;  %v569_v1 = vmul.f32 %v1171_v34, %v477_v61  ;;  %v642_v3 = vadd.f32 %v1176_v36, %v571_v59  ;;  %v878_v4 = vpop.f32.mrf.mxu0 }
  0xff   :  { %v910_v5 = vpop.f32.mrf.mxu1  ;;  %735 = vst.msk [vmem:[%s1566_s4 + $0xc0] sm:$0xff] %vm115_vm1, %v671_v62  ;;  %v608_v6 = vadd.f32 %v1176_v36, %v537_v0  ;;  %v542_v8 = vmul.f32 %v878_v4, %v1171_v34  ;;  %v674_v10 = vmax.f32 %v610_v2, 0.0 }
 0x100   :  { %767 = vst.msk [vmem:[%s1566_s4 + $0x1c0] sm:$0xff] %vm115_vm1, %v703_v63  ;;  %v640_v7 = vadd.f32 %v1176_v36, %v569_v1  ;;  %v574_v9 = vmul.f32 %v910_v5, %v1171_v34  ;;  %v706_v11 = vmax.f32 %v642_v3, 0.0  ;;  %v362_v12 = vpop.f32.mrf.mxu0 }
 0x101   :  { %v490_v13 = vpop.f32.mrf.mxu1  ;;  %v672_v14 = vmax.f32 %v608_v6, 0.0  ;;  %v613_v16 = vadd.f32 %v1176_v36, %v542_v8  ;;  %738 = vst.msk [vmem:[%s1566_s4 + $0xd8] sm:$0xff] %vm115_vm1, %v674_v10  ;;  %v540_v18 = vmul.f32 %v1171_v34, %v362_v12 }
 0x102   :  { %v704_v15 = vmax.f32 %v640_v7, 0.0  ;;  %v645_v17 = vadd.f32 %v1176_v36, %v574_v9  ;;  %770 = vst.msk [vmem:[%s1566_s4 + $0x1d8] sm:$0xff] %vm115_vm1, %v706_v11  ;;  %v572_v19 = vmul.f32 %v1171_v34, %v490_v13  ;;  %v879_v20 = vpop.f32.mrf.mxu0 }
 0x103   :  { %v911_v21 = vpop.f32.mrf.mxu1  ;;  %736 = vst.msk [vmem:[%s1566_s4 + $0xc8] sm:$0xff] %vm115_vm1, %v672_v14  ;;  %v677_v22 = vmax.f32 %v613_v16, 0.0  ;;  %v543_v24 = vmul.f32 %v879_v20, %v1171_v34  ;;  %v611_v26 = vadd.f32 %v1176_v36, %v540_v18 }
 0x104   :  { %768 = vst.msk [vmem:[%s1566_s4 + $0x1c8] sm:$0xff] %vm115_vm1, %v704_v15  ;;  %v709_v23 = vmax.f32 %v645_v17, 0.0  ;;  %v575_v25 = vmul.f32 %v911_v21, %v1171_v34  ;;  %v643_v27 = vadd.f32 %v1176_v36, %v572_v19  ;;  %v365_v28 = vpop.f32.mrf.mxu0 }
 0x105   :  { %v493_v29 = vpop.f32.mrf.mxu1  ;;  %741 = vst.msk [vmem:[%s1566_s4 + $0xf0] sm:$0xff] %vm115_vm1, %v677_v22  ;;  %v614_v30 = vadd.f32 %v1176_v36, %v543_v24  ;;  %v541_v32 = vmul.f32 %v1171_v34, %v365_v28  ;;  %v675_v35 = vmax.f32 %v611_v26, 0.0 }
 0x106   :  { %773 = vst.msk [vmem:[%s1566_s4 + $0x1f0] sm:$0xff] %vm115_vm1, %v709_v23  ;;  %v646_v31 = vadd.f32 %v1176_v36, %v575_v25  ;;  %v573_v33 = vmul.f32 %v1171_v34, %v493_v29  ;;  %v707_v37 = vmax.f32 %v643_v27, 0.0 }
 0x107   :  { %v678_v38 = vmax.f32 %v614_v30, 0.0  ;;  %v612_v40 = vadd.f32 %v1176_v36, %v541_v32  ;;  %739 = vst.msk [vmem:[%s1566_s4 + $0xe0] sm:$0xff] %vm115_vm1, %v675_v35 }
 0x108   :  { %v710_v39 = vmax.f32 %v646_v31, 0.0  ;;  %v644_v41 = vadd.f32 %v1176_v36, %v573_v33  ;;  %771 = vst.msk [vmem:[%s1566_s4 + $0x1e0] sm:$0xff] %vm115_vm1, %v707_v37 }
 0x109   :  { %742 = vst.msk [vmem:[%s1566_s4 + $0xf8] sm:$0xff] %vm115_vm1, %v678_v38  ;;  %v676_v34 = vmax.f32 %v612_v40, 0.0 }
 0x10a   :  { %774 = vst.msk [vmem:[%s1566_s4 + $0x1f8] sm:$0xff] %vm115_vm1, %v710_v39  ;;  %v708_v36 = vmax.f32 %v644_v41, 0.0 }
 0x10b   :  { %740 = vst.msk [vmem:[%s1566_s4 + $0xe8] sm:$0xff] %vm115_vm1, %v676_v34 }
 0x10c   :  { %772 = vst.msk [vmem:[%s1566_s4 + $0x1e8] sm:$0xff] %vm115_vm1, %v708_v36 }

// kernel: _lambda_.36
= control target key start
LH: loop header
LB: loop body
LE: loop exit
PB: predicated region body
PF: predicated region fallthrough
CT: control target
= control target key end

     0   :  { %s1009_s15 = smov 0   ;;  %s1429_s0 = inlined_call_operand.vmem [shape: f32[2,10,10,8], index: 0, kind: input, shape index: {}]   ;;  %s1430_s1 = inlined_call_operand.vmem [shape: f32[9,1,1,8], index: 1, kind: input, shape index: {}]   ;;  %s1431_s2 = inlined_call_operand.vmem [shape: f32[1,1,8], index: 2, kind: input, shape index: {}]   ;;  %s1432_s3 = inlined_call_operand.vmem [shape: f32[1,1,8], index: 3, kind: input, shape index: {}]   ;;  %s1433_s4 = inlined_call_operand.vmem [shape: f32[2,8,8,8], index: 4, kind: output, shape index: {}]  }
   0x1 LB: > { %s937_s16 = sadd.s32 4294967295, %s982_s15   ;;  %p941_p0 = scmp.ge.s32.totalorder %s982_s15, 1  ;;  %s982_s15 = sphi %s1009_s15, %s14_s15  }
   0x2   : > { %p162_p1 = scmp.lt.s32.totalorder %s982_s15, 3 }
   0x4   : > { %p163_p2 = pnand %p941_p0, %p162_p1 }
   0x5   : > { %p188_p3 = scmp.lt.s32.totalorder (!%p163_p2), %s937_s16, 1 }
   0x6   : > { %166 = sbr.rel (%p163_p2) target bundleno = 125 (0x7d), region = 36 }
   0xb   : > { %s1435_s16 = smov (!%p188_p3, %s937_s16), 1  ;;  %v1022_v0 = vld [vmem:[%s1430_s1] ss:$0 sm:$0xff]  ;;  %v1028_v1 = vld [vmem:[%s1430_s1 + $0x1] ss:$0 sm:$0xff]  ;;  %vm425_vm0 = vcmask 1046528  }
   0xc   : > { %s967_s19 = smul.u32 160, %s1435_s16  ;;  %v1033_v2 = vld [vmem:[%s1430_s1 + $0x2] ss:$0 sm:$0xff]  ;;  %v1038_v3 = vld [vmem:[%s1430_s1 + $0x3] ss:$0 sm:$0xff]  ;;  %vm650_vm1 = vcmask 1045504  }
   0xd   : > { %v1043_v4 = vld [vmem:[%s1430_s1 + $0x4] ss:$0 sm:$0xff]  ;;  %v1048_v5 = vld [vmem:[%s1430_s1 + $0x5] ss:$0 sm:$0xff]  ;;  %v1058_v6 = vld [vmem:[%s1430_s1 + $0x6] ss:$0 sm:$0xff] }
   0xe   : > { %s1053_s6 = scalar_lea.vmem %s1429_s0, %s967_s19  ;;  %v1063_v7 = vld [vmem:[%s1430_s1 + $0x7] ss:$0 sm:$0xff]  ;;  %v1068_v8 = vld [vmem:[%s1430_s1 + $0x8] ss:$0 sm:$0xff]  ;;  %vm873_vm2 = vcmask 64512   ;;  %s966_s17 = sshll.u32 %s1435_s16, 6 }
   0xf   : > { %v198_v9 = vld [vmem:[%s1053_s6] sm:$0xff]  ;;  %v199_v10 = vld [vmem:[%s1053_s6 + $0x8] sm:$0x3]  ;;  %v200_v11 = vld [vmem:[%s1053_s6 + $0x10] sm:$0xff]  ;;  %s1164_s21 = scalar_lea.vmem %s1433_s4, %s966_s17 }
  0x10   : > { %v201_v12 = vld [vmem:[%s1053_s6 + $0x18] sm:$0x3]  ;;  %v1075_v13 = vld [vmem:[%s1053_s6 + $0x20] sm:$0xff]  ;;  %v1078_v14 = vld [vmem:[%s1053_s6 + $0x28] sm:$0x3]  ;;  %v225_v15 = vmul.f32 %v1022_v0, %v198_v9  ;;  %v241_v16 = vmul.f32 %v1028_v1, %v198_v9  ;;  %v242_v17 = vmul.f32 %v1028_v1, %v199_v10  ;;  %v265_v18 = vmul.f32 %v1033_v2, %v198_v9 }
  0x11   : > { %v266_v19 = vmul.f32 %v1033_v2, %v199_v10  ;;  %v289_v20 = vmul.f32 %v1038_v3, %v200_v11  ;;  %v305_v21 = vmul.f32 %v1043_v4, %v200_v11  ;;  %v306_v22 = vmul.f32 %v1043_v4, %v201_v12  ;;  %v1110_v57 = vld [vmem:[%s1053_s6 + $0x30] sm:$0xff]  ;;  %v1113_v58 = vld [vmem:[%s1053_s6 + $0x38] sm:$0x3] }
  0x12   : > { %v329_v23 = vmul.f32 %v1048_v5, %v200_v11  ;;  %v330_v24 = vmul.f32 %v1048_v5, %v201_v12  ;;  %v353_v25 = vmul.f32 %v1058_v6, %v1075_v13  ;;  %v369_v26 = vmul.f32 %v1063_v7, %v1075_v13 }
  0x13   : > { %v370_v27 = vmul.f32 %v1063_v7, %v1078_v14  ;;  %v393_v28 = vmul.f32 %v1068_v8, %v1075_v13  ;;  %v394_v29 = vmul.f32 %v1068_v8, %v1078_v14  ;;  %v426_v30 = vrot.slane %v241_v16, 1 }
  0x14   : > { %v427_v31 = vrot.slane %v242_v17, 1  ;;  %v474_v32 = vrot.slane %v289_v20, 6  ;;  %v522_v33 = vrot.slane %v329_v23, 1  ;;  %v523_v34 = vrot.slane %v330_v24, 1 }
  0x15   : > { %v594_v35 = vrot.slane %v369_v26, 1  ;;  %v595_v36 = vrot.slane %v370_v27, 1  ;;  %v803_v37 = vrot.slane %v393_v28, 2  ;;  %v804_v38 = vrot.slane %v394_v29, 2 }
  0x16   : > { %v428_v39 = vsel %vm425_vm0, %v426_v30, %v427_v31  ;;  %v490_v40 = vadd.f32 %v474_v32, %v265_v18  ;;  %v491_v41 = vadd.f32 %v474_v32, %v266_v19  ;;  %v524_v42 = vsel %vm425_vm0, %v522_v33, %v523_v34 }
  0x17   : > { %v458_v43 = vadd.f32 %v428_v39, %v225_v15  ;;  %v562_v44 = vadd.f32 %v524_v42, %v305_v21  ;;  %v563_v45 = vadd.f32 %v523_v34, %v306_v22  ;;  %v596_v46 = vsel %vm425_vm0, %v594_v35, %v595_v36  ;;  %v1141_v36 = vld [vmem:[%s1431_s2] ss:$0 sm:$0xff] }
  0x18   : > { %v626_v47 = vadd.f32 %v596_v46, %v353_v25  ;;  %v651_v48 = vrot.slane %v490_v40, 2  ;;  %v652_v49 = vrot.slane %v491_v41, 2  ;;  %v805_v50 = vsel %vm650_vm1, %v803_v37, %v804_v38 }
  0x19   : > { %v226_v51 = vmul.f32 %v1022_v0, %v200_v11  ;;  %v243_v52 = vmul.f32 %v1028_v1, %v200_v11  ;;  %v244_v53 = vmul.f32 %v1028_v1, %v201_v12  ;;  %v267_v54 = vmul.f32 %v1033_v2, %v200_v11 }
  0x1a   : > { %v653_v55 = vsel %vm650_vm1, %v651_v48, %v652_v49  ;;  %v699_v56 = vrot.slane %v626_v47, 7  ;;  %v268_v59 = vmul.f32 %v1033_v2, %v201_v12  ;;  %v290_v60 = vmul.f32 %v1038_v3, %v1075_v13 }
  0x1b   : > { %v683_v61 = vadd.f32 %v653_v55, %v458_v43  ;;  %v307_v62 = vmul.f32 %v1043_v4, %v1075_v13  ;;  %v308_v63 = vmul.f32 %v1043_v4, %v1078_v14  ;;  %v331_v9 = vmul.f32 %v1048_v5, %v1075_v13  ;;  %v1168_v55 = vld [vmem:[%s1053_s6 + $0x40] sm:$0xff] }
  0x1c   : > { %v715_v10 = vadd.f32 %v699_v56, %v562_v44  ;;  %v716_v11 = vadd.f32 %v699_v56, %v563_v45  ;;  %v332_v15 = vmul.f32 %v1048_v5, %v1078_v14  ;;  %v354_v12 = vmul.f32 %v1058_v6, %v1110_v57  ;;  %v1149_v45 = vld [vmem:[%s1432_s3] ss:$0 sm:$0xff]  ;;  %v1171_v56 = vld [vmem:[%s1053_s6 + $0x48] sm:$0x3] }
  0x1d   : > { %v371_v16 = vmul.f32 %v1063_v7, %v1110_v57  ;;  %v372_v17 = vmul.f32 %v1063_v7, %v1113_v58  ;;  %v395_v18 = vmul.f32 %v1068_v8, %v1110_v57  ;;  %v396_v19 = vmul.f32 %v1068_v8, %v1113_v58 }
  0x1e   : > { %v747_v20 = vrot.slane %v715_v10, 1  ;;  %v748_v21 = vrot.slane %v716_v11, 1  ;;  %v429_v22 = vrot.slane %v243_v52, 1  ;;  %v430_v23 = vrot.slane %v244_v53, 1 }
  0x1f   : > { %v475_v24 = vrot.slane %v290_v60, 6  ;;  %v525_v25 = vrot.slane %v331_v9, 1  ;;  %v526_v26 = vrot.slane %v332_v15, 1  ;;  %v597_v27 = vrot.slane %v371_v16, 1 }
  0x20   : > { %v749_v28 = vsel %vm425_vm0, %v747_v20, %v748_v21  ;;  %v431_v29 = vsel %vm425_vm0, %v429_v22, %v430_v23  ;;  %v598_v30 = vrot.slane %v372_v17, 1  ;;  %v806_v31 = vrot.slane %v395_v18, 2 }
  0x21   : > { %v779_v32 = vadd.f32 %v749_v28, %v683_v61  ;;  %v459_v33 = vadd.f32 %v431_v29, %v226_v51  ;;  %v492_v34 = vadd.f32 %v475_v24, %v267_v54  ;;  %v493_v35 = vadd.f32 %v475_v24, %v268_v59 }
  0x22   : > { %v527_v37 = vsel %vm425_vm0, %v525_v25, %v526_v26  ;;  %v565_v38 = vadd.f32 %v526_v26, %v308_v63  ;;  %v599_v39 = vsel %vm425_vm0, %v597_v27, %v598_v30  ;;  %v807_v40 = vrot.slane %v396_v19, 2 }
  0x23   : > { %v835_v41 = vadd.f32 %v805_v50, %v779_v32  ;;  %v564_v42 = vadd.f32 %v527_v37, %v307_v62  ;;  %v627_v43 = vadd.f32 %v599_v39, %v354_v12  ;;  %v654_v44 = vrot.slane %v492_v34, 2 }
  0x24   : > { %v655_v46 = vrot.slane %v493_v35, 2  ;;  %v808_v47 = vsel %vm650_vm1, %v806_v31, %v807_v40  ;;  %v227_v48 = vmul.f32 %v1022_v0, %v1075_v13  ;;  %v245_v49 = vmul.f32 %v1028_v1, %v1075_v13 }
  0x25   : > { %v850_v50 = vmul.f32 %v1141_v36, %v835_v41  ;;  %v700_v51 = vrot.slane %v627_v43, 7  ;;  %v246_v52 = vmul.f32 %v1028_v1, %v1078_v14  ;;  %v269_v53 = vmul.f32 %v1033_v2, %v1075_v13 }
  0x26   : > { %v656_v54 = vsel %vm650_vm1, %v654_v44, %v655_v46  ;;  %v270_v59 = vmul.f32 %v1033_v2, %v1078_v14  ;;  %v291_v60 = vmul.f32 %v1038_v3, %v1110_v57  ;;  %v309_v13 = vmul.f32 %v1043_v4, %v1110_v57 }
  0x27   : > { %v865_v61 = vadd.f32 %v1149_v45, %v850_v50  ;;  %v684_v62 = vadd.f32 %v656_v54, %v459_v33  ;;  %v717_v63 = vadd.f32 %v700_v51, %v564_v42  ;;  %v718_v9 = vadd.f32 %v700_v51, %v565_v38 }
  0x28   : > { %v310_v10 = vmul.f32 %v1043_v4, %v1113_v58  ;;  %v333_v11 = vmul.f32 %v1048_v5, %v1110_v57  ;;  %v334_v14 = vmul.f32 %v1048_v5, %v1113_v58  ;;  %v355_v15 = vmul.f32 %v1058_v6, %v1168_v55 }
  0x29   : > { %874 = vst.msk [vmem:[%s1164_s21] sm:$0xff] %vm873_vm2, %v865_v61  ;;  %v750_v12 = vrot.slane %v717_v63, 1  ;;  %v751_v16 = vrot.slane %v718_v9, 1  ;;  %v373_v17 = vmul.f32 %v1063_v7, %v1168_v55  ;;  %v374_v18 = vmul.f32 %v1063_v7, %v1171_v56 }
  0x2a   : > { %v397_v19 = vmul.f32 %v1068_v8, %v1168_v55  ;;  %v398_v20 = vmul.f32 %v1068_v8, %v1171_v56  ;;  %v432_v21 = vrot.slane %v245_v49, 1  ;;  %v433_v22 = vrot.slane %v246_v52, 1 }
  0x2b   : > { %v752_v23 = vsel %vm425_vm0, %v750_v12, %v751_v16  ;;  %v476_v24 = vrot.slane %v291_v60, 6  ;;  %v528_v25 = vrot.slane %v333_v11, 1  ;;  %v529_v26 = vrot.slane %v334_v14, 1  ;;  %v1215_v60 = vld [vmem:[%s1053_s6 + $0x50] sm:$0xff] }
  0x2c   : > { %v780_v27 = vadd.f32 %v752_v23, %v684_v62  ;;  %v434_v28 = vsel %vm425_vm0, %v432_v21, %v433_v22  ;;  %v600_v29 = vrot.slane %v373_v17, 1  ;;  %v601_v30 = vrot.slane %v374_v18, 1 }
  0x2d   : > { %v460_v31 = vadd.f32 %v434_v28, %v227_v48  ;;  %v494_v32 = vadd.f32 %v476_v24, %v269_v53  ;;  %v495_v33 = vadd.f32 %v476_v24, %v270_v59  ;;  %v530_v34 = vsel %vm425_vm0, %v528_v25, %v529_v26 }
  0x2e   : > { %v836_v35 = vadd.f32 %v808_v47, %v780_v27  ;;  %v566_v37 = vadd.f32 %v530_v34, %v309_v13  ;;  %v567_v38 = vadd.f32 %v529_v26, %v310_v10  ;;  %v602_v39 = vsel %vm425_vm0, %v600_v29, %v601_v30  ;;  %v1218_v13 = vld [vmem:[%s1053_s6 + $0x58] sm:$0x3] }
  0x2f   : > { %v628_v40 = vadd.f32 %v602_v39, %v355_v15  ;;  %v657_v41 = vrot.slane %v494_v32, 2  ;;  %v658_v42 = vrot.slane %v495_v33, 2  ;;  %v809_v43 = vrot.slane %v397_v19, 2 }
  0x30   : > { %v851_v44 = vmul.f32 %v1141_v36, %v836_v35  ;;  %v810_v46 = vrot.slane %v398_v20, 2  ;;  %v228_v48 = vmul.f32 %v1022_v0, %v1110_v57  ;;  %v247_v47 = vmul.f32 %v1028_v1, %v1110_v57 }
  0x31   : > { %v659_v49 = vsel %vm650_vm1, %v657_v41, %v658_v42  ;;  %v701_v50 = vrot.slane %v628_v40, 7  ;;  %v248_v51 = vmul.f32 %v1028_v1, %v1113_v58  ;;  %v271_v52 = vmul.f32 %v1033_v2, %v1110_v57 }
  0x32   : > { %v866_v53 = vadd.f32 %v1149_v45, %v851_v44  ;;  %v685_v54 = vadd.f32 %v659_v49, %v460_v31  ;;  %v811_v59 = vsel %vm650_vm1, %v809_v43, %v810_v46  ;;  %v272_v61 = vmul.f32 %v1033_v2, %v1113_v58 }
  0x33   : > { %v719_v62 = vadd.f32 %v701_v50, %v566_v37  ;;  %v720_v63 = vadd.f32 %v701_v50, %v567_v38  ;;  %v292_v9 = vmul.f32 %v1038_v3, %v1168_v55  ;;  %v311_v57 = vmul.f32 %v1043_v4, %v1168_v55 }
  0x34   : > { %875 = vst.msk [vmem:[%s1164_s21 + $0x8] sm:$0xff] %vm873_vm2, %v866_v53  ;;  %v312_v10 = vmul.f32 %v1043_v4, %v1171_v56  ;;  %v335_v11 = vmul.f32 %v1048_v5, %v1168_v55  ;;  %v336_v14 = vmul.f32 %v1048_v5, %v1171_v56  ;;  %v356_v58 = vmul.f32 %v1058_v6, %v1215_v60 }
  0x35   : > { %v753_v15 = vrot.slane %v719_v62, 1  ;;  %v754_v12 = vrot.slane %v720_v63, 1  ;;  %v375_v16 = vmul.f32 %v1063_v7, %v1215_v60  ;;  %v376_v17 = vmul.f32 %v1063_v7, %v1218_v13 }
  0x36   : > { %v399_v18 = vmul.f32 %v1068_v8, %v1215_v60  ;;  %v400_v19 = vmul.f32 %v1068_v8, %v1218_v13  ;;  %v435_v20 = vrot.slane %v247_v47, 1  ;;  %v436_v21 = vrot.slane %v248_v51, 1 }
  0x37   : > { %v755_v22 = vsel %vm425_vm0, %v753_v15, %v754_v12  ;;  %v477_v23 = vrot.slane %v292_v9, 6  ;;  %v531_v24 = vrot.slane %v335_v11, 1  ;;  %v532_v25 = vrot.slane %v336_v14, 1 }
  0x38   : > { %v781_v26 = vadd.f32 %v755_v22, %v685_v54  ;;  %v437_v27 = vsel %vm425_vm0, %v435_v20, %v436_v21  ;;  %v603_v28 = vrot.slane %v375_v16, 1  ;;  %v604_v29 = vrot.slane %v376_v17, 1 }
  0x39   : > { %v461_v30 = vadd.f32 %v437_v27, %v228_v48  ;;  %v496_v31 = vadd.f32 %v477_v23, %v271_v52  ;;  %v497_v32 = vadd.f32 %v477_v23, %v272_v61  ;;  %v533_v33 = vsel %vm425_vm0, %v531_v24, %v532_v25  ;;  %v1264_v61 = vld [vmem:[%s1053_s6 + $0x68] sm:$0x3] }
  0x3a   : > { %v837_v34 = vadd.f32 %v811_v59, %v781_v26  ;;  %v568_v35 = vadd.f32 %v533_v33, %v311_v57  ;;  %v569_v37 = vadd.f32 %v532_v25, %v312_v10  ;;  %v605_v38 = vsel %vm425_vm0, %v603_v28, %v604_v29  ;;  %v1261_v59 = vld [vmem:[%s1053_s6 + $0x60] sm:$0xff] }
  0x3b   : > { %v629_v39 = vadd.f32 %v605_v38, %v356_v58  ;;  %v660_v40 = vrot.slane %v496_v31, 2  ;;  %v661_v41 = vrot.slane %v497_v32, 2  ;;  %v812_v42 = vrot.slane %v399_v18, 2 }
  0x3c   : > { %v852_v43 = vmul.f32 %v1141_v36, %v837_v34  ;;  %v813_v44 = vrot.slane %v400_v19, 2  ;;  %v229_v46 = vmul.f32 %v1022_v0, %v1168_v55  ;;  %v249_v48 = vmul.f32 %v1028_v1, %v1168_v55 }
  0x3d   : > { %v662_v47 = vsel %vm650_vm1, %v660_v40, %v661_v41  ;;  %v702_v49 = vrot.slane %v629_v39, 7  ;;  %v250_v50 = vmul.f32 %v1028_v1, %v1171_v56  ;;  %v273_v51 = vmul.f32 %v1033_v2, %v1168_v55 }
  0x3e   : > { %v867_v52 = vadd.f32 %v1149_v45, %v852_v43  ;;  %v686_v53 = vadd.f32 %v662_v47, %v461_v30  ;;  %v814_v54 = vsel %vm650_vm1, %v812_v42, %v813_v44  ;;  %v274_v62 = vmul.f32 %v1033_v2, %v1171_v56 }
  0x3f   : > { %v721_v63 = vadd.f32 %v702_v49, %v568_v35  ;;  %v722_v9 = vadd.f32 %v702_v49, %v569_v37  ;;  %v293_v57 = vmul.f32 %v1038_v3, %v1215_v60  ;;  %v313_v55 = vmul.f32 %v1043_v4, %v1215_v60 }
  0x40   : > { %876 = vst.msk [vmem:[%s1164_s21 + $0x10] sm:$0xff] %vm873_vm2, %v867_v52  ;;  %v314_v10 = vmul.f32 %v1043_v4, %v1218_v13  ;;  %v337_v11 = vmul.f32 %v1048_v5, %v1215_v60  ;;  %v338_v14 = vmul.f32 %v1048_v5, %v1218_v13  ;;  %v357_v56 = vmul.f32 %v1058_v6, %v1261_v59 }
  0x41   : > { %v756_v58 = vrot.slane %v721_v63, 1  ;;  %v757_v15 = vrot.slane %v722_v9, 1  ;;  %v377_v12 = vmul.f32 %v1063_v7, %v1261_v59  ;;  %v378_v16 = vmul.f32 %v1063_v7, %v1264_v61 }
  0x42   : > { %v401_v17 = vmul.f32 %v1068_v8, %v1261_v59  ;;  %v402_v18 = vmul.f32 %v1068_v8, %v1264_v61  ;;  %v438_v19 = vrot.slane %v249_v48, 1  ;;  %v439_v20 = vrot.slane %v250_v50, 1 }
  0x43   : > { %v758_v21 = vsel %vm425_vm0, %v756_v58, %v757_v15  ;;  %v478_v22 = vrot.slane %v293_v57, 6  ;;  %v534_v23 = vrot.slane %v337_v11, 1  ;;  %v535_v24 = vrot.slane %v338_v14, 1 }
  0x44   : > { %v782_v25 = vadd.f32 %v758_v21, %v686_v53  ;;  %v440_v26 = vsel %vm425_vm0, %v438_v19, %v439_v20  ;;  %v606_v27 = vrot.slane %v377_v12, 1  ;;  %v607_v28 = vrot.slane %v378_v16, 1 }
  0x45   : > { %v462_v29 = vadd.f32 %v440_v26, %v229_v46  ;;  %v498_v30 = vadd.f32 %v478_v22, %v273_v51  ;;  %v499_v31 = vadd.f32 %v478_v22, %v274_v62  ;;  %v536_v32 = vsel %vm425_vm0, %v534_v23, %v535_v24  ;;  %v1310_v62 = vld [vmem:[%s1053_s6 + $0x78] sm:$0x3] }
  0x46   : > { %v838_v33 = vadd.f32 %v814_v54, %v782_v25  ;;  %v570_v34 = vadd.f32 %v536_v32, %v313_v55  ;;  %v571_v35 = vadd.f32 %v535_v24, %v314_v10  ;;  %v608_v37 = vsel %vm425_vm0, %v606_v27, %v607_v28  ;;  %v1307_v54 = vld [vmem:[%s1053_s6 + $0x70] sm:$0xff] }
  0x47   : > { %v630_v38 = vadd.f32 %v608_v37, %v357_v56  ;;  %v663_v39 = vrot.slane %v498_v30, 2  ;;  %v664_v40 = vrot.slane %v499_v31, 2  ;;  %v815_v41 = vrot.slane %v401_v17, 2 }
  0x48   : > { %v853_v42 = vmul.f32 %v1141_v36, %v838_v33  ;;  %v816_v43 = vrot.slane %v402_v18, 2  ;;  %v230_v44 = vmul.f32 %v1022_v0, %v1215_v60  ;;  %v251_v46 = vmul.f32 %v1028_v1, %v1215_v60 }
  0x49   : > { %v665_v48 = vsel %vm650_vm1, %v663_v39, %v664_v40  ;;  %v703_v47 = vrot.slane %v630_v38, 7  ;;  %v252_v49 = vmul.f32 %v1028_v1, %v1218_v13  ;;  %v275_v50 = vmul.f32 %v1033_v2, %v1215_v60 }
  0x4a   : > { %v868_v51 = vadd.f32 %v1149_v45, %v853_v42  ;;  %v687_v52 = vadd.f32 %v665_v48, %v462_v29  ;;  %v817_v53 = vsel %vm650_vm1, %v815_v41, %v816_v43  ;;  %v276_v63 = vmul.f32 %v1033_v2, %v1218_v13 }
  0x4b   : > { %v723_v9 = vadd.f32 %v703_v47, %v570_v34  ;;  %v724_v57 = vadd.f32 %v703_v47, %v571_v35  ;;  %v294_v55 = vmul.f32 %v1038_v3, %v1261_v59  ;;  %v315_v60 = vmul.f32 %v1043_v4, %v1261_v59 }
  0x4c   : > { %877 = vst.msk [vmem:[%s1164_s21 + $0x18] sm:$0xff] %vm873_vm2, %v868_v51  ;;  %v316_v10 = vmul.f32 %v1043_v4, %v1264_v61  ;;  %v339_v11 = vmul.f32 %v1048_v5, %v1261_v59  ;;  %v340_v14 = vmul.f32 %v1048_v5, %v1264_v61  ;;  %v358_v13 = vmul.f32 %v1058_v6, %v1307_v54 }
  0x4d   : > { %v759_v56 = vrot.slane %v723_v9, 1  ;;  %v760_v58 = vrot.slane %v724_v57, 1  ;;  %v379_v15 = vmul.f32 %v1063_v7, %v1307_v54  ;;  %v380_v12 = vmul.f32 %v1063_v7, %v1310_v62 }
  0x4e   : > { %v403_v16 = vmul.f32 %v1068_v8, %v1307_v54  ;;  %v404_v17 = vmul.f32 %v1068_v8, %v1310_v62  ;;  %v441_v18 = vrot.slane %v251_v46, 1  ;;  %v442_v19 = vrot.slane %v252_v49, 1 }
  0x4f   : > { %v761_v20 = vsel %vm425_vm0, %v759_v56, %v760_v58  ;;  %v479_v21 = vrot.slane %v294_v55, 6  ;;  %v537_v22 = vrot.slane %v339_v11, 1  ;;  %v538_v23 = vrot.slane %v340_v14, 1 }
  0x50   : > { %v783_v24 = vadd.f32 %v761_v20, %v687_v52  ;;  %v443_v25 = vsel %vm425_vm0, %v441_v18, %v442_v19  ;;  %v609_v26 = vrot.slane %v379_v15, 1  ;;  %v610_v27 = vrot.slane %v380_v12, 1 }
  0x51   : > { %v463_v28 = vadd.f32 %v443_v25, %v230_v44  ;;  %v500_v29 = vadd.f32 %v479_v21, %v275_v50  ;;  %v501_v30 = vadd.f32 %v479_v21, %v276_v63  ;;  %v539_v31 = vsel %vm425_vm0, %v537_v22, %v538_v23  ;;  %v1354_v63 = vld [vmem:[%s1053_s6 + $0x88] sm:$0x3] }
  0x52   : > { %v839_v32 = vadd.f32 %v817_v53, %v783_v24  ;;  %v572_v33 = vadd.f32 %v539_v31, %v315_v60  ;;  %v573_v34 = vadd.f32 %v538_v23, %v316_v10  ;;  %v611_v35 = vsel %vm425_vm0, %v609_v26, %v610_v27  ;;  %v214_v53 = vld [vmem:[%s1053_s6 + $0x80] sm:$0xff] }
  0x53   : > { %v631_v37 = vadd.f32 %v611_v35, %v358_v13  ;;  %v666_v38 = vrot.slane %v500_v29, 2  ;;  %v667_v39 = vrot.slane %v501_v30, 2  ;;  %v818_v40 = vrot.slane %v403_v16, 2 }
  0x54   : > { %v854_v41 = vmul.f32 %v1141_v36, %v839_v32  ;;  %v819_v42 = vrot.slane %v404_v17, 2  ;;  %v231_v43 = vmul.f32 %v1022_v0, %v1261_v59  ;;  %v253_v44 = vmul.f32 %v1028_v1, %v1261_v59 }
  0x55   : > { %v668_v46 = vsel %vm650_vm1, %v666_v38, %v667_v39  ;;  %v704_v48 = vrot.slane %v631_v37, 7  ;;  %v254_v47 = vmul.f32 %v1028_v1, %v1264_v61  ;;  %v277_v49 = vmul.f32 %v1033_v2, %v1261_v59 }
  0x56   : > { %v869_v50 = vadd.f32 %v1149_v45, %v854_v41  ;;  %v688_v51 = vadd.f32 %v668_v46, %v463_v28  ;;  %v820_v52 = vsel %vm650_vm1, %v818_v40, %v819_v42  ;;  %v278_v9 = vmul.f32 %v1033_v2, %v1264_v61 }
  0x57   : > { %v725_v57 = vadd.f32 %v704_v48, %v572_v33  ;;  %v726_v55 = vadd.f32 %v704_v48, %v573_v34  ;;  %v295_v60 = vmul.f32 %v1038_v3, %v1307_v54  ;;  %v317_v10 = vmul.f32 %v1043_v4, %v1307_v54 }
  0x58   : > { %878 = vst.msk [vmem:[%s1164_s21 + $0x20] sm:$0xff] %vm873_vm2, %v869_v50  ;;  %v318_v59 = vmul.f32 %v1043_v4, %v1310_v62  ;;  %v341_v11 = vmul.f32 %v1048_v5, %v1307_v54  ;;  %v342_v14 = vmul.f32 %v1048_v5, %v1310_v62  ;;  %v359_v61 = vmul.f32 %v1058_v6, %v214_v53  ;;  %v217_v50 = vld [vmem:[%s1053_s6 + $0x98] sm:$0x3] }
  0x59   : > { %v762_v13 = vrot.slane %v725_v57, 1  ;;  %v763_v56 = vrot.slane %v726_v55, 1  ;;  %v381_v58 = vmul.f32 %v1063_v7, %v214_v53  ;;  %v382_v15 = vmul.f32 %v1063_v7, %v1354_v63 }
  0x5a   : > { %v405_v12 = vmul.f32 %v1068_v8, %v214_v53  ;;  %v406_v16 = vmul.f32 %v1068_v8, %v1354_v63  ;;  %v444_v17 = vrot.slane %v253_v44, 1  ;;  %v445_v18 = vrot.slane %v254_v47, 1 }
  0x5b   : > { %v764_v19 = vsel %vm425_vm0, %v762_v13, %v763_v56  ;;  %v480_v20 = vrot.slane %v295_v60, 6  ;;  %v540_v21 = vrot.slane %v341_v11, 1  ;;  %v541_v22 = vrot.slane %v342_v14, 1 }
  0x5c   : > { %v784_v23 = vadd.f32 %v764_v19, %v688_v51  ;;  %v446_v24 = vsel %vm425_vm0, %v444_v17, %v445_v18  ;;  %v612_v25 = vrot.slane %v381_v58, 1  ;;  %v613_v26 = vrot.slane %v382_v15, 1 }
  0x5d   : > { %v464_v27 = vadd.f32 %v446_v24, %v231_v43  ;;  %v502_v28 = vadd.f32 %v480_v20, %v277_v49  ;;  %v503_v29 = vadd.f32 %v480_v20, %v278_v9  ;;  %v542_v30 = vsel %vm425_vm0, %v540_v21, %v541_v22  ;;  %v216_v49 = vld [vmem:[%s1053_s6 + $0x90] sm:$0xff] }
  0x5e   : > { %v840_v31 = vadd.f32 %v820_v52, %v784_v23  ;;  %v574_v32 = vadd.f32 %v542_v30, %v317_v10  ;;  %v575_v33 = vadd.f32 %v541_v22, %v318_v59  ;;  %v614_v34 = vsel %vm425_vm0, %v612_v25, %v613_v26 }
  0x5f   : > { %v632_v35 = vadd.f32 %v614_v34, %v359_v61  ;;  %v669_v37 = vrot.slane %v502_v28, 2  ;;  %v670_v38 = vrot.slane %v503_v29, 2  ;;  %v821_v39 = vrot.slane %v405_v12, 2 }
  0x60   : > { %v855_v40 = vmul.f32 %v1141_v36, %v840_v31  ;;  %v822_v41 = vrot.slane %v406_v16, 2  ;;  %v232_v44 = vmul.f32 %v1022_v0, %v1307_v54  ;;  %v255_v46 = vmul.f32 %v1028_v1, %v1307_v54 }
  0x61   : > { %v671_v42 = vsel %vm650_vm1, %v669_v37, %v670_v38  ;;  %v705_v43 = vrot.slane %v632_v35, 7  ;;  %v256_v51 = vmul.f32 %v1028_v1, %v1310_v62  ;;  %v279_v52 = vmul.f32 %v1033_v2, %v1307_v54 }
  0x62   : > { %v870_v48 = vadd.f32 %v1149_v45, %v855_v40  ;;  %v689_v47 = vadd.f32 %v671_v42, %v464_v27  ;;  %v823_v55 = vsel %vm650_vm1, %v821_v39, %v822_v41  ;;  %v296_v0 = vmul.f32 %v1038_v3, %v214_v53 }
  0x63   : > { %v727_v9 = vadd.f32 %v705_v43, %v574_v32  ;;  %v728_v57 = vadd.f32 %v705_v43, %v575_v33  ;;  %v280_v60 = vmul.f32 %v1033_v2, %v1310_v62  ;;  %v319_v10 = vmul.f32 %v1043_v4, %v214_v53 }
  0x64   : > { %879 = vst.msk [vmem:[%s1164_s21 + $0x28] sm:$0xff] %vm873_vm2, %v870_v48  ;;  %v343_v59 = vmul.f32 %v1048_v5, %v214_v53  ;;  %v344_v1 = vmul.f32 %v1048_v5, %v1354_v63  ;;  %v383_v14 = vmul.f32 %v1063_v7, %v216_v49  ;;  %v384_v61 = vmul.f32 %v1063_v7, %v217_v50 }
  0x65   : > { %v765_v11 = vrot.slane %v727_v9, 1  ;;  %v766_v54 = vrot.slane %v728_v57, 1  ;;  %v320_v3 = vmul.f32 %v1043_v4, %v1354_v63  ;;  %v360_v13 = vmul.f32 %v1058_v6, %v216_v49 }
  0x66   : > { %v447_v56 = vrot.slane %v255_v46, 1  ;;  %v448_v2 = vrot.slane %v256_v51, 1  ;;  %v481_v58 = vrot.slane %v296_v0, 6  ;;  %v543_v53 = vrot.slane %v343_v59, 1 }
  0x67   : > { %v767_v62 = vsel %vm425_vm0, %v765_v11, %v766_v54  ;;  %v544_v15 = vrot.slane %v344_v1, 1  ;;  %v407_v5 = vmul.f32 %v1068_v8, %v216_v49  ;;  %v615_v16 = vrot.slane %v383_v14, 1 }
  0x68   : > { %v785_v12 = vadd.f32 %v767_v62, %v689_v47  ;;  %v616_v17 = vrot.slane %v384_v61, 1  ;;  %v449_v18 = vsel %vm425_vm0, %v447_v56, %v448_v2  ;;  %v504_v7 = vadd.f32 %v481_v58, %v279_v52 }
  0x69   : > { %v505_v19 = vadd.f32 %v481_v58, %v280_v60  ;;  %v545_v4 = vsel %vm425_vm0, %v543_v53, %v544_v15  ;;  %v408_v6 = vmul.f32 %v1068_v8, %v217_v50  ;;  %v577_v22 = vadd.f32 %v544_v15, %v320_v3 }
  0x6a   : > { %v841_v63 = vadd.f32 %v823_v55, %v785_v12  ;;  %v576_v20 = vadd.f32 %v545_v4, %v319_v10  ;;  %v617_v21 = vsel %vm425_vm0, %v615_v16, %v616_v17  ;;  %v672_v24 = vrot.slane %v504_v7, 2 }
  0x6b   : > { %v633_v23 = vadd.f32 %v617_v21, %v360_v13  ;;  %v673_v25 = vrot.slane %v505_v19, 2  ;;  %v465_v27 = vadd.f32 %v449_v18, %v232_v44  ;;  %v824_v8 = vrot.slane %v407_v5, 2 }
  0x6c   : > { %v856_v26 = vmul.f32 %v1141_v36, %v841_v63  ;;  %v825_v33 = vrot.slane %v408_v6, 2 }
  0x6d   : > { %v674_v28 = vsel %vm650_vm1, %v672_v24, %v673_v25  ;;  %v706_v29 = vrot.slane %v633_v23, 7 }
  0x6e   : > { %v871_v30 = vadd.f32 %v1149_v45, %v856_v26  ;;  %v690_v34 = vadd.f32 %v674_v28, %v465_v27  ;;  %v826_v39 = vsel %vm650_vm1, %v824_v8, %v825_v33 }
  0x6f   : > { %v729_v31 = vadd.f32 %v706_v29, %v576_v20  ;;  %v730_v32 = vadd.f32 %v706_v29, %v577_v22 }
  0x70   : > { %880 = vst.msk [vmem:[%s1164_s21 + $0x30] sm:$0xff] %vm873_vm2, %v871_v30 }
  0x71   : > { %v768_v35 = vrot.slane %v729_v31, 1  ;;  %v769_v37 = vrot.slane %v730_v32, 1 }
  0x73   : > { %v770_v38 = vsel %vm425_vm0, %v768_v35, %v769_v37 }
  0x74   : > { %v786_v40 = vadd.f32 %v770_v38, %v690_v34 }
  0x76   : > { %v842_v41 = vadd.f32 %v826_v39, %v786_v40 }
  0x78   : > { %v857_v42 = vmul.f32 %v1141_v36, %v842_v41 }
  0x7a   : > { %v872_v43 = vadd.f32 %v1149_v45, %v857_v42 }
  0x7c   : > { %881 = vst.msk [vmem:[%s1164_s21 + $0x38] sm:$0xff] %vm873_vm2, %v872_v43 }
  0x7d PF: > { %s14_s15 = sadd.s32 1, %s982_s15  }
  0x7e   : > { %p11_p4 = scmp.ge.s32.totalorder %s14_s15, 4  }
  0x80   :  { %13 = sbr.rel (!%p11_p4) target bundleno = 1 (0x1), region = 74 }

// kernel: _lambda_.39
= control target key start
LH: loop header
LB: loop body
LE: loop exit
PB: predicated region body
PF: predicated region fallthrough
CT: control target
= control target key end

     0   :  { %vm32_vm0 = vcmask 130048   ;;  %s201_s1 = inlined_call_operand.vmem [shape: bf16[16,16], index: 1, kind: input, shape index: {}]   ;;  %s202_s0 = inlined_call_operand.vmem [shape: f32[32,16], index: 0, kind: input, shape index: {}]   ;;  %s203_s2 = inlined_call_operand.vmem [shape: f32[1,16], index: 2, kind: input, shape index: {}]   ;;  %s204_s3 = inlined_call_operand.vmem [shape: f32[1,16], index: 3, kind: input, shape index: {}]   ;;  %s205_s4 = inlined_call_operand.vmem [shape: f32[32,16], index: 4, kind: output, shape index: {}]  }
   0x1   :  { %v136_v0 = vld [vmem:[%s201_s1] sm:$0xff]   ;;  %v19_v2 = vld [vmem:[%s202_s0 + $0x8] sm:$0xff]  ;;  %v20_v3 = vld [vmem:[%s202_s0 + $0x10] sm:$0xff] }
   0x2   :  { %v18_v1 = vld [vmem:[%s202_s0] sm:$0xff]  ;;  %130 = vmatprep.subr.bf16.mxu0 %v136_v0  ;;  %v21_v5 = vld [vmem:[%s202_s0 + $0x18] sm:$0xff] }
   0x3   :  { %v22_v4 = vpack.c.bf16 %v19_v2, %v18_v1  ;;  %131 = vmatpush3.bf16.msra.mxu0 %v136_v0  ;;  %v23_v6 = vpack.c.bf16 %v21_v5, %v20_v3  ;;  %v125_v7 = vld [vmem:[%s203_s2] ss:$0 sm:$0xff] }
   0x4   :  { %v126_v9 = vld [vmem:[%s204_s3] ss:$0 sm:$0xff] }
   0x5   :  { %132 = vmatprep.mubr.msk.bf16.mxu0 %vm32_vm0, %v22_v4 }
   0x6   :  { %133 = vmatmul.mubr.msk.bf16.vlgmr.msra.gmra.mxu0 %vm32_vm0, %v23_v6 }
  0xc6   :  { %v134_v8 = vpop.f32.mrf.mxu0 }
  0xc7   :  { %v97_v10 = vmul.f32 %v134_v8, %v125_v7 }
  0xc8   :  { %v73_v11 = vpop.f32.mrf.mxu0 }
  0xc9   :  { %v108_v12 = vadd.f32 %v126_v9, %v97_v10  ;;  %v95_v13 = vmul.f32 %v125_v7, %v73_v11 }
  0xca   :  { %v135_v14 = vpop.f32.mrf.mxu0 }
  0xcb   :  { %v112_v15 = vmax.f32 %v108_v12, 0.0  ;;  %v106_v16 = vadd.f32 %v126_v9, %v95_v13  ;;  %v98_v17 = vmul.f32 %v135_v14, %v125_v7 }
  0xcc   :  { %v76_v18 = vpop.f32.mrf.mxu0 }
  0xcd   :  { %116 = vst.msk [vmem:[%s205_s4 + $0x10] sm:$0xff] %vm32_vm0, %v112_v15  ;;  %v110_v19 = vmax.f32 %v106_v16, 0.0  ;;  %v109_v20 = vadd.f32 %v126_v9, %v98_v17  ;;  %v96_v21 = vmul.f32 %v125_v7, %v76_v18 }
  0xcf   :  { %114 = vst.msk [vmem:[%s205_s4] sm:$0xff] %vm32_vm0, %v110_v19  ;;  %v113_v22 = vmax.f32 %v109_v20, 0.0  ;;  %v107_v23 = vadd.f32 %v126_v9, %v96_v21 }
  0xd1   :  { %117 = vst.msk [vmem:[%s205_s4 + $0x18] sm:$0xff] %vm32_vm0, %v113_v22  ;;  %v111_v24 = vmax.f32 %v107_v23, 0.0 }
  0xd3   :  { %115 = vst.msk [vmem:[%s205_s4 + $0x8] sm:$0xff] %vm32_vm0, %v111_v24 }

// kernel: _lambda_.38
= control target key start
LH: loop header
LB: loop body
LE: loop exit
PB: predicated region body
PF: predicated region fallthrough
CT: control target
= control target key end

     0   :  { %s752_s24 = smov 0   ;;  %s905_s0 = inlined_call_operand.vmem [shape: f32[2,5,5,16], index: 0, kind: input, shape index: {}]   ;;  %s906_s1 = inlined_call_operand.vmem [shape: f32[2,5,5,16], index: 1, kind: input, shape index: {}]   ;;  %s907_s2 = inlined_call_operand.vmem [shape: f32[2,5,5,16], index: 2, kind: input, shape index: {}]   ;;  %s908_s3 = inlined_call_operand.vmem [shape: f32[2,5,5,16], index: 3, kind: input, shape index: {}]   ;;  %s909_s4 = inlined_call_operand.vmem [shape: f32[9,1,1,16], index: 4, kind: input, shape index: {}]   ;;  %s910_s5 = inlined_call_operand.vmem [shape: f32[1,1,16], index: 5, kind: input, shape index: {}]   ;;  %s911_s6 = inlined_call_operand.vmem [shape: f32[1,1,16], index: 6, kind: input, shape index: {}]   ;;  %s912_s7 = inlined_call_operand.vmem [shape: f32[2,4,4,16], index: 7, kind: output, shape index: {}]  }
   0x1 LB: > { %s662_s25 = sadd.s32 4294967295, %s710_s24   ;;  %p666_p0 = scmp.ge.s32.totalorder %s710_s24, 1  ;;  %s710_s24 = sphi %s752_s24, %s17_s24  }
   0x2   : > { %p267_p1 = scmp.lt.s32.totalorder %s710_s24, 3 }
   0x4   : > { %p268_p2 = pnand %p666_p0, %p267_p1 }
   0x5   : > { %p314_p3 = scmp.lt.s32.totalorder (!%p268_p2), %s662_s25, 1 }
   0x6   : > { %271 = sbr.rel (%p268_p2) target bundleno = 50 (0x32), region = 48 }
   0xb   : > { %s914_s25 = smov (!%p314_p3, %s662_s25), 1  ;;  %v765_v0 = vld [vmem:[%s909_s4] ss:$0 sm:$0xff]  ;;  %v771_v1 = vld [vmem:[%s909_s4 + $0x1] ss:$0 sm:$0xff]  ;;  %vm566_vm0 = vcmask 125952  }
   0xc   : > { %s695_s28 = smul.u32 40, %s914_s25  ;;  %v776_v2 = vld [vmem:[%s909_s4 + $0x2] ss:$0 sm:$0xff]  ;;  %v781_v3 = vld [vmem:[%s909_s4 + $0x3] ss:$0 sm:$0xff]  ;;  %s694_s15 = sshll.u32 %s914_s25, 4 }
   0xd   : > { %v786_v4 = vld [vmem:[%s909_s4 + $0x4] ss:$0 sm:$0xff]  ;;  %v791_v5 = vld [vmem:[%s909_s4 + $0x6] ss:$0 sm:$0xff]  ;;  %v806_v6 = vld [vmem:[%s909_s4 + $0x5] ss:$0 sm:$0xff]  ;;  %s889_s19 = scalar_lea.vmem %s912_s7, %s694_s15 }
   0xe   : > { %s796_s18 = scalar_lea.vmem %s905_s0, %s695_s28  ;;  %s801_s21 = scalar_lea.vmem %s906_s1, %s695_s28  ;;  %v811_v7 = vld [vmem:[%s909_s4 + $0x7] ss:$0 sm:$0xff]  ;;  %v816_v8 = vld [vmem:[%s909_s4 + $0x8] ss:$0 sm:$0xff] }
   0xf   : > { %s821_s10 = scalar_lea.vmem %s907_s2, %s695_s28  ;;  %s826_s13 = scalar_lea.vmem %s908_s3, %s695_s28  ;;  %v339_v9 = vld [vmem:[%s796_s18] sm:$0x1f]  ;;  %v340_v10 = vld [vmem:[%s796_s18 + $0x8] sm:$0x1f]  ;;  %v346_v26 = vld [vmem:[%s801_s21 + $0x10] sm:$0x1f] }
  0x10   : > { %v344_v11 = vld [vmem:[%s801_s21] sm:$0x1f]  ;;  %v345_v12 = vld [vmem:[%s801_s21 + $0x8] sm:$0x1f]  ;;  %v364_v15 = vmul.f32 %v765_v0, %v339_v9  ;;  %v388_v17 = vmul.f32 %v776_v2, %v339_v9  ;;  %v436_v18 = vmul.f32 %v791_v5, %v340_v10  ;;  %v460_v24 = vmul.f32 %v816_v8, %v340_v10  ;;  %v341_v33 = vld [vmem:[%s796_s18 + $0x10] sm:$0x1f] }
  0x11   : > { %v349_v13 = vld [vmem:[%s821_s10] sm:$0x1f]  ;;  %v376_v16 = vmul.f32 %v771_v1, %v344_v11  ;;  %v448_v22 = vmul.f32 %v811_v7, %v345_v12  ;;  %v350_v23 = vld [vmem:[%s821_s10 + $0x8] sm:$0x1f]  ;;  %v365_v28 = vmul.f32 %v765_v0, %v340_v10  ;;  %v377_v32 = vmul.f32 %v771_v1, %v345_v12  ;;  %v351_v42 = vld [vmem:[%s821_s10 + $0x10] sm:$0x1f] }
  0x12   : > { %v353_v14 = vld [vmem:[%s826_s13] sm:$0x1f]  ;;  %v400_v19 = vmul.f32 %v781_v3, %v349_v13  ;;  %v424_v21 = vmul.f32 %v806_v6, %v349_v13  ;;  %v354_v27 = vld [vmem:[%s826_s13 + $0x8] sm:$0x1f]  ;;  %v389_v34 = vmul.f32 %v776_v2, %v340_v10  ;;  %v401_v35 = vmul.f32 %v781_v3, %v350_v23  ;;  %v355_v47 = vld [vmem:[%s826_s13 + $0x10] sm:$0x1f] }
  0x13   : > { %v412_v20 = vmul.f32 %v786_v4, %v353_v14  ;;  %v464_v25 = vadd.f32 %v376_v16, %v364_v15  ;;  %v500_v31 = vadd.f32 %v448_v22, %v436_v18  ;;  %v413_v36 = vmul.f32 %v786_v4, %v354_v27  ;;  %v347_v54 = vld [vmem:[%s801_s21 + $0x18] sm:$0x1f]  ;;  %v690_v12 = vld [vmem:[%s910_s5] ss:$0 sm:$0xff] }
  0x14   : > { %v472_v29 = vrot.slane %v400_v19, 7  ;;  %v488_v30 = vrot.slane %v424_v21, 1  ;;  %v425_v37 = vmul.f32 %v806_v6, %v350_v23  ;;  %v437_v40 = vmul.f32 %v791_v5, %v341_v33  ;;  %v342_v58 = vld [vmem:[%s796_s18 + $0x18] sm:$0x1f]  ;;  %v691_v27 = vld [vmem:[%s911_s6] ss:$0 sm:$0xff] }
  0x15   : > { %v449_v41 = vmul.f32 %v811_v7, %v346_v26  ;;  %v532_v43 = vrot.slane %v460_v24, 1  ;;  %v461_v44 = vmul.f32 %v816_v8, %v341_v33  ;;  %v473_v45 = vrot.slane %v401_v35, 7  ;;  %v356_v21 = vld [vmem:[%s826_s13 + $0x18] sm:$0x1f]  ;;  %v343_v24 = vld [vmem:[%s796_s18 + $0x20] sm:$0x1f] }
  0x16   : > { %v480_v38 = vadd.f32 %v472_v29, %v388_v17  ;;  %v496_v39 = vadd.f32 %v488_v30, %v412_v20  ;;  %v489_v46 = vrot.slane %v425_v37, 1  ;;  %v465_v50 = vadd.f32 %v377_v32, %v365_v28  ;;  %v352_v20 = vld [vmem:[%s821_s10 + $0x18] sm:$0x1f] }
  0x17   : > { %v501_v51 = vadd.f32 %v449_v41, %v437_v40  ;;  %v481_v52 = vadd.f32 %v473_v45, %v389_v34  ;;  %v366_v55 = vmul.f32 %v765_v0, %v341_v33  ;;  %v378_v56 = vmul.f32 %v771_v1, %v346_v26 }
  0x18   : > { %v508_v48 = vrot.slane %v480_v38, 1  ;;  %v520_v49 = vadd.f32 %v500_v31, %v496_v39  ;;  %v497_v53 = vadd.f32 %v489_v46, %v413_v36  ;;  %v390_v59 = vmul.f32 %v776_v2, %v341_v33  ;;  %v348_v31 = vld [vmem:[%s801_s21 + $0x20] sm:$0x1f] }
  0x19   : > { %v402_v60 = vmul.f32 %v781_v3, %v351_v42  ;;  %v414_v61 = vmul.f32 %v786_v4, %v355_v47  ;;  %v509_v62 = vrot.slane %v481_v52, 1  ;;  %v426_v9 = vmul.f32 %v806_v6, %v351_v42 }
  0x1a   : > { %v516_v57 = vadd.f32 %v508_v48, %v464_v25  ;;  %v521_v63 = vadd.f32 %v501_v51, %v497_v53  ;;  %v438_v10 = vmul.f32 %v791_v5, %v342_v58  ;;  %v533_v13 = vrot.slane %v461_v44, 1 }
  0x1b   : > { %v450_v14 = vmul.f32 %v811_v7, %v347_v54  ;;  %v462_v15 = vmul.f32 %v816_v8, %v342_v58  ;;  %v517_v16 = vadd.f32 %v509_v62, %v465_v50  ;;  %v466_v17 = vadd.f32 %v378_v56, %v366_v55 }
  0x1c   : > { %v524_v11 = vadd.f32 %v520_v49, %v516_v57  ;;  %v474_v18 = vrot.slane %v402_v60, 7  ;;  %v490_v19 = vrot.slane %v426_v9, 1  ;;  %v367_v25 = vmul.f32 %v765_v0, %v342_v58 }
  0x1d   : > { %v502_v23 = vadd.f32 %v450_v14, %v438_v10  ;;  %v379_v26 = vmul.f32 %v771_v1, %v347_v54  ;;  %v525_v28 = vadd.f32 %v521_v63, %v517_v16  ;;  %v391_v32 = vmul.f32 %v776_v2, %v342_v58 }
  0x1e   : > { %v540_v22 = vadd.f32 %v532_v43, %v524_v11  ;;  %v482_v29 = vadd.f32 %v474_v18, %v390_v59  ;;  %v498_v30 = vadd.f32 %v490_v19, %v414_v61  ;;  %v403_v34 = vmul.f32 %v781_v3, %v352_v20 }
  0x1f   : > { %v415_v35 = vmul.f32 %v786_v4, %v356_v21  ;;  %v427_v36 = vmul.f32 %v806_v6, %v352_v20  ;;  %v541_v0 = vadd.f32 %v533_v13, %v525_v28  ;;  %v439_v38 = vmul.f32 %v791_v5, %v343_v24 }
  0x20   : > { %v551_v33 = vmul.f32 %v690_v12, %v540_v22  ;;  %v510_v1 = vrot.slane %v482_v29, 1  ;;  %v522_v37 = vadd.f32 %v502_v23, %v498_v30  ;;  %v534_v39 = vrot.slane %v462_v15, 1 }
  0x21   : > { %v451_v3 = vmul.f32 %v811_v7, %v348_v31  ;;  %v552_v40 = vmul.f32 %v690_v12, %v541_v0  ;;  %v475_v41 = vrot.slane %v403_v34, 7  ;;  %v491_v6 = vrot.slane %v427_v36, 1 }
  0x22   : > { %v562_v2 = vadd.f32 %v691_v27, %v551_v33  ;;  %v518_v4 = vadd.f32 %v510_v1, %v466_v17  ;;  %v463_v42 = vmul.f32 %v816_v8, %v343_v24  ;;  %v467_v43 = vadd.f32 %v379_v26, %v367_v25 }
  0x23   : > { %v503_v44 = vadd.f32 %v451_v3, %v439_v38  ;;  %v563_v45 = vadd.f32 %v691_v27, %v552_v40  ;;  %v483_v5 = vadd.f32 %v475_v41, %v391_v32  ;;  %v499_v47 = vadd.f32 %v491_v6, %v415_v35 }
  0x24   : > { %567 = vst.msk [vmem:[%s889_s19] sm:$0xf] %vm566_vm0, %v562_v2  ;;  %v526_v46 = vadd.f32 %v522_v37, %v518_v4  ;;  %v535_v52 = vrot.slane %v463_v42, 1 }
  0x25   : > { %568 = vst.msk [vmem:[%s889_s19 + $0x4] sm:$0xf] %vm566_vm0, %v563_v45  ;;  %v511_v7 = vrot.slane %v483_v5, 1  ;;  %v523_v49 = vadd.f32 %v503_v44, %v499_v47 }
  0x26   : > { %v542_v48 = vadd.f32 %v534_v39, %v526_v46 }
  0x27   : > { %v519_v51 = vadd.f32 %v511_v7, %v467_v43 }
  0x28   : > { %v553_v50 = vmul.f32 %v690_v12, %v542_v48 }
  0x29   : > { %v527_v54 = vadd.f32 %v523_v49, %v519_v51 }
  0x2a   : > { %v564_v53 = vadd.f32 %v691_v27, %v553_v50 }
  0x2b   : > { %v543_v8 = vadd.f32 %v535_v52, %v527_v54 }
  0x2c   : > { %569 = vst.msk [vmem:[%s889_s19 + $0x8] sm:$0xf] %vm566_vm0, %v564_v53 }
  0x2d   : > { %v554_v55 = vmul.f32 %v690_v12, %v543_v8 }
  0x2f   : > { %v565_v56 = vadd.f32 %v691_v27, %v554_v55 }
  0x31   : > { %570 = vst.msk [vmem:[%s889_s19 + $0xc] sm:$0xf] %vm566_vm0, %v565_v56 }
  0x32 PF: > { %s17_s24 = sadd.s32 1, %s710_s24  }
  0x33   : > { %p14_p4 = scmp.ge.s32.totalorder %s17_s24, 4  }
  0x35   :  { %16 = sbr.rel (!%p14_p4) target bundleno = 1 (0x1), region = 95 }

// kernel: _lambda_.40
= control target key start
LH: loop header
LB: loop body
LE: loop exit
PB: predicated region body
PF: predicated region fallthrough
CT: control target
= control target key end

     0   :  { %vm50_vm0 = vcmask 130048   ;;  %s485_s1 = inlined_call_operand.vmem [shape: bf16[16,16], index: 1, kind: input, shape index: {}]   ;;  %s486_s0 = inlined_call_operand.vmem [shape: f32[128,16], index: 0, kind: input, shape index: {}]   ;;  %s487_s2 = inlined_call_operand.vmem [shape: f32[1,16], index: 2, kind: input, shape index: {}]   ;;  %s488_s3 = inlined_call_operand.vmem [shape: f32[1,16], index: 3, kind: input, shape index: {}]   ;;  %s489_s4 = inlined_call_operand.vmem [shape: f32[128,16], index: 4, kind: output, shape index: {}]  }
   0x1   :  { %v294_v0 = vld [vmem:[%s485_s1] sm:$0xff]   ;;  %v19_v2 = vld [vmem:[%s486_s0 + $0x8] sm:$0xff]  ;;  %v20_v6 = vld [vmem:[%s486_s0 + $0x10] sm:$0xff] }
   0x2   :  { %v18_v1 = vld [vmem:[%s486_s0] sm:$0xff]  ;;  %274 = vmatprep.subr.bf16.mxu0 %v294_v0  ;;  %292 = vmatprep.subr.bf16.mxu1 %v294_v0  ;;  %v27_v5 = vld [vmem:[%s486_s0 + $0x48] sm:$0xff]  ;;  %v21_v7 = vld [vmem:[%s486_s0 + $0x18] sm:$0xff] }
   0x3   :  { %v26_v3 = vld [vmem:[%s486_s0 + $0x40] sm:$0xff]  ;;  %v34_v4 = vpack.c.bf16 %v19_v2, %v18_v1  ;;  %275 = vmatpush3.bf16.msra.mxu0 %v294_v0  ;;  %293 = vmatpush3.bf16.msra.mxu1 %v294_v0  ;;  %v35_v9 = vpack.c.bf16 %v21_v7, %v20_v6  ;;  %v28_v10 = vld [vmem:[%s486_s0 + $0x50] sm:$0xff]  ;;  %v29_v11 = vld [vmem:[%s486_s0 + $0x58] sm:$0xff] }
   0x4   :  { %v38_v8 = vpack.c.bf16 %v27_v5, %v26_v3  ;;  %v22_v12 = vld [vmem:[%s486_s0 + $0x20] sm:$0xff]  ;;  %v39_v13 = vpack.c.bf16 %v29_v11, %v28_v10  ;;  %v23_v14 = vld [vmem:[%s486_s0 + $0x28] sm:$0xff]  ;;  %v24_v19 = vld [vmem:[%s486_s0 + $0x30] sm:$0xff] }
   0x5   :  { %276 = vmatprep.mubr.msk.bf16.mxu0 %vm50_vm0, %v34_v4  ;;  %v30_v15 = vld [vmem:[%s486_s0 + $0x60] sm:$0xff]  ;;  %v31_v16 = vld [vmem:[%s486_s0 + $0x68] sm:$0xff]  ;;  %v36_v17 = vpack.c.bf16 %v23_v14, %v22_v12  ;;  %v25_v20 = vld [vmem:[%s486_s0 + $0x38] sm:$0xff] }
   0x6   :  { %284 = vmatprep.mubr.msk.bf16.mxu1 %vm50_vm0, %v38_v8  ;;  %v40_v18 = vpack.c.bf16 %v31_v16, %v30_v15  ;;  %277 = vmatmul.mubr.msk.bf16.vlgmr.msra.gmra.mxu0 %vm50_vm0, %v35_v9  ;;  %v32_v21 = vld [vmem:[%s486_s0 + $0x70] sm:$0xff]  ;;  %v33_v22 = vld [vmem:[%s486_s0 + $0x78] sm:$0xff]  ;;  %v37_v23 = vpack.c.bf16 %v25_v20, %v24_v19  ;;  %v382_v25 = vld [vmem:[%s487_s2] ss:$0 sm:$0xff] }
   0x7   :  { %285 = vmatmul.mubr.msk.bf16.vlgmr.msra.gmra.mxu1 %vm50_vm0, %v39_v13  ;;  %280 = vmatprep.mubr.msk.bf16.mxu0 %vm50_vm0, %v36_v17  ;;  %v41_v24 = vpack.c.bf16 %v33_v22, %v32_v21  ;;  %v387_v27 = vld [vmem:[%s488_s3] ss:$0 sm:$0xff] }
   0x8   :  { %288 = vmatprep.mubr.msk.bf16.mxu1 %vm50_vm0, %v40_v18 }
   0xe   :  { %281 = vmatmul.mubr.msk.bf16.gmra.mxu0 %vm50_vm0, %v37_v23 }
   0xf   :  { %289 = vmatmul.mubr.msk.bf16.gmra.mxu1 %vm50_vm0, %v41_v24 }
  0xc6   :  { %v278_v26 = vpop.f32.mrf.mxu0 }
  0xc7   :  { %v286_v28 = vpop.f32.mrf.mxu1  ;;  %v181_v29 = vmul.f32 %v278_v26, %v382_v25 }
  0xc8   :  { %v189_v30 = vmul.f32 %v286_v28, %v382_v25  ;;  %v109_v31 = vpop.f32.mrf.mxu0 }
  0xc9   :  { %v141_v32 = vpop.f32.mrf.mxu1  ;;  %v204_v33 = vadd.f32 %v387_v27, %v181_v29  ;;  %v179_v35 = vmul.f32 %v382_v25, %v109_v31 }
  0xca   :  { %v212_v34 = vadd.f32 %v387_v27, %v189_v30  ;;  %v187_v36 = vmul.f32 %v382_v25, %v141_v32  ;;  %v279_v37 = vpop.f32.mrf.mxu0 }
  0xcb   :  { %v287_v38 = vpop.f32.mrf.mxu1  ;;  %v220_v39 = vmax.f32 %v204_v33, 0.0  ;;  %v202_v41 = vadd.f32 %v387_v27, %v179_v35  ;;  %v182_v43 = vmul.f32 %v279_v37, %v382_v25 }
  0xcc   :  { %v228_v40 = vmax.f32 %v212_v34, 0.0  ;;  %v210_v42 = vadd.f32 %v387_v27, %v187_v36  ;;  %v190_v44 = vmul.f32 %v287_v38, %v382_v25  ;;  %v112_v45 = vpop.f32.mrf.mxu0 }
  0xcd   :  { %v144_v46 = vpop.f32.mrf.mxu1  ;;  %236 = vst.msk [vmem:[%s489_s4 + $0x10] sm:$0xff] %vm50_vm0, %v220_v39  ;;  %v218_v47 = vmax.f32 %v202_v41, 0.0  ;;  %v180_v49 = vmul.f32 %v382_v25, %v112_v45  ;;  %v205_v51 = vadd.f32 %v387_v27, %v182_v43 }
  0xce   :  { %244 = vst.msk [vmem:[%s489_s4 + $0x50] sm:$0xff] %vm50_vm0, %v228_v40  ;;  %v226_v48 = vmax.f32 %v210_v42, 0.0  ;;  %v188_v50 = vmul.f32 %v382_v25, %v144_v46  ;;  %v213_v52 = vadd.f32 %v387_v27, %v190_v44  ;;  %v282_v53 = vpop.f32.mrf.mxu0 }
  0xcf   :  { %v290_v54 = vpop.f32.mrf.mxu1  ;;  %234 = vst.msk [vmem:[%s489_s4] sm:$0xff] %vm50_vm0, %v218_v47  ;;  %v203_v55 = vadd.f32 %v387_v27, %v180_v49  ;;  %v185_v57 = vmul.f32 %v282_v53, %v382_v25  ;;  %v221_v59 = vmax.f32 %v205_v51, 0.0 }
  0xd0   :  { %242 = vst.msk [vmem:[%s489_s4 + $0x40] sm:$0xff] %vm50_vm0, %v226_v48  ;;  %v211_v56 = vadd.f32 %v387_v27, %v188_v50  ;;  %v193_v58 = vmul.f32 %v290_v54, %v382_v25  ;;  %v229_v60 = vmax.f32 %v213_v52, 0.0  ;;  %v125_v61 = vpop.f32.mrf.mxu0 }
  0xd1   :  { %v157_v62 = vpop.f32.mrf.mxu1  ;;  %v219_v63 = vmax.f32 %v203_v55, 0.0  ;;  %v208_v1 = vadd.f32 %v387_v27, %v185_v57  ;;  %237 = vst.msk [vmem:[%s489_s4 + $0x18] sm:$0xff] %vm50_vm0, %v221_v59  ;;  %v183_v3 = vmul.f32 %v382_v25, %v125_v61 }
  0xd2   :  { %v227_v0 = vmax.f32 %v211_v56, 0.0  ;;  %v216_v2 = vadd.f32 %v387_v27, %v193_v58  ;;  %245 = vst.msk [vmem:[%s489_s4 + $0x58] sm:$0xff] %vm50_vm0, %v229_v60  ;;  %v191_v4 = vmul.f32 %v382_v25, %v157_v62  ;;  %v283_v5 = vpop.f32.mrf.mxu0 }
  0xd3   :  { %v291_v6 = vpop.f32.mrf.mxu1  ;;  %235 = vst.msk [vmem:[%s489_s4 + $0x8] sm:$0xff] %vm50_vm0, %v219_v63  ;;  %v224_v7 = vmax.f32 %v208_v1, 0.0  ;;  %v186_v9 = vmul.f32 %v283_v5, %v382_v25  ;;  %v206_v11 = vadd.f32 %v387_v27, %v183_v3 }
  0xd4   :  { %243 = vst.msk [vmem:[%s489_s4 + $0x48] sm:$0xff] %vm50_vm0, %v227_v0  ;;  %v232_v8 = vmax.f32 %v216_v2, 0.0  ;;  %v194_v10 = vmul.f32 %v291_v6, %v382_v25  ;;  %v214_v12 = vadd.f32 %v387_v27, %v191_v4  ;;  %v128_v13 = vpop.f32.mrf.mxu0 }
  0xd5   :  { %v160_v14 = vpop.f32.mrf.mxu1  ;;  %240 = vst.msk [vmem:[%s489_s4 + $0x30] sm:$0xff] %vm50_vm0, %v224_v7  ;;  %v209_v15 = vadd.f32 %v387_v27, %v186_v9  ;;  %v184_v17 = vmul.f32 %v382_v25, %v128_v13  ;;  %v222_v19 = vmax.f32 %v206_v11, 0.0 }
  0xd6   :  { %248 = vst.msk [vmem:[%s489_s4 + $0x70] sm:$0xff] %vm50_vm0, %v232_v8  ;;  %v217_v16 = vadd.f32 %v387_v27, %v194_v10  ;;  %v192_v18 = vmul.f32 %v382_v25, %v160_v14  ;;  %v230_v20 = vmax.f32 %v214_v12, 0.0 }
  0xd7   :  { %v225_v21 = vmax.f32 %v209_v15, 0.0  ;;  %v207_v23 = vadd.f32 %v387_v27, %v184_v17  ;;  %238 = vst.msk [vmem:[%s489_s4 + $0x20] sm:$0xff] %vm50_vm0, %v222_v19 }
  0xd8   :  { %v233_v22 = vmax.f32 %v217_v16, 0.0  ;;  %v215_v24 = vadd.f32 %v387_v27, %v192_v18  ;;  %246 = vst.msk [vmem:[%s489_s4 + $0x60] sm:$0xff] %vm50_vm0, %v230_v20 }
  0xd9   :  { %241 = vst.msk [vmem:[%s489_s4 + $0x38] sm:$0xff] %vm50_vm0, %v225_v21  ;;  %v223_v25 = vmax.f32 %v207_v23, 0.0 }
  0xda   :  { %249 = vst.msk [vmem:[%s489_s4 + $0x78] sm:$0xff] %vm50_vm0, %v233_v22  ;;  %v231_v26 = vmax.f32 %v215_v24, 0.0 }
  0xdb   :  { %239 = vst.msk [vmem:[%s489_s4 + $0x28] sm:$0xff] %vm50_vm0, %v223_v25 }
  0xdc   :  { %247 = vst.msk [vmem:[%s489_s4 + $0x68] sm:$0xff] %vm50_vm0, %v231_v26 }

// kernel: _lambda_.41
= control target key start
LH: loop header
LB: loop body
LE: loop exit
PB: predicated region body
PF: predicated region fallthrough
CT: control target
= control target key end

     0   :  { %12 = vsyncpa [#allocation3], 0  ;;  %s1079_s0 = inlined_call_operand.vmem [shape: f32[2,5,5,16], index: 0, kind: input, shape index: {}]   ;;  %s1080_s1 = inlined_call_operand.vmem [shape: f32[2,5,5,16], index: 1, kind: input, shape index: {}]   ;;  %s1081_s2 = inlined_call_operand.vmem [shape: f32[2,5,5,16], index: 2, kind: input, shape index: {}]   ;;  %s1082_s3 = inlined_call_operand.vmem [shape: f32[2,5,5,16], index: 3, kind: input, shape index: {}]   ;;  %s1083_s4 = inlined_call_operand.vmem [shape: f32[9,1,1,16], index: 4, kind: input, shape index: {}]   ;;  %s1084_s5 = inlined_call_operand.hbm [shape: f32[1,1,16], index: 5, kind: input, shape index: {}]   ;;  %s1085_s6 = inlined_call_operand.hbm [shape: f32[1,1,16], index: 6, kind: input, shape index: {}]   ;;  %s1086_s7 = inlined_call_operand.vmem [shape: f32[2,4,4,16], index: 7, kind: output, shape index: {}]  }
   0x1   :  { %13 = vsyncpa [#allocation5], 0  ;;  %s887_s24 = smov 0  }
   0x2 LB: > { %s893_s25 = sadd.s32 4294967295, %s843_s24   ;;  %p712_p0 = scmp.ge.s32.totalorder %s843_s24, 1  ;;  %s843_s24 = sphi %s887_s24, %s19_s24  }
   0x3   : > { %p217_p1 = scmp.lt.s32.totalorder %s843_s24, 3  ;;  %p1087_p2 = scmp.eq.s32.totalorder %s893_s25, 0 }
   0x4   : > { %s845_s27 = smov [#allocation2]   ;;  %s846_s29 = smov [#allocation4]  }
   0x5   : > { %p898_p3 = pnand %p712_p0, %p217_p1  ;;  %s233_s28 = sshll.u32 %s845_s27, 4  ;;  %s234_s28 = int_to_ptr.vmem [resolvable:$true] %s233_s28 }
   0x6   : > { %s244_s30 = sshll.u32 %s846_s29, 4  ;;  %s788_s9 = scalar_lea.vmem %s234_s28, 16  ;;  %s245_s30 = int_to_ptr.vmem [resolvable:$true] %s244_s30 }
   0x7   : > { %p756_p4 = pneg %p898_p3  ;;  %p789_p7 = scmp.ne.s32.totalorder %s234_s28, %s788_s9 }
   0x8   : > { %s795_s10 = scalar_lea.vmem %s234_s28, 32  ;;  %p796_p10 = scmp.lt.s32.totalorder %s234_s28, %s234_s28 }
   0x9   : > { %p906_p5 = pnand %p1087_p2, %p756_p4  ;;  %p797_p11 = scmp.lt.s32.totalorder %s795_s10, %s788_s9 }
   0xb   : > { %p779_p6 = pneg %p906_p5  ;;  %p798_p12 = por %p797_p11, %p796_p10 }
   0xd   : > { %p791_p8 = pnand %p789_p7, %p779_p6 }
   0xf   : > { %p792_p9 = pneg %p791_p8 }
  0x11   : > { %p799_p13 = pnand %p798_p12, %p792_p9 }
  0x13   : > { %802 = shalt.err (!%p799_p13)
}
  0x14   : > { %759 = dma.hbm_to_vmem [thread:$0]  (!%p906_p5), %s1084_s5, 16, %s234_s28, [#allocation3]  }
  0x15   : > { %s814_s13 = scalar_lea.vmem %s245_s30, 16  ;;  %s821_s14 = scalar_lea.vmem %s245_s30, 32 }
  0x16   : > { %p815_p0 = scmp.ne.s32.totalorder %s245_s30, %s814_s13  ;;  %p822_p7 = scmp.lt.s32.totalorder %s245_s30, %s245_s30 }
  0x17   : > { %p823_p8 = scmp.lt.s32.totalorder %s821_s14, %s814_s13 }
  0x18   : > { %p817_p1 = pnand %p815_p0, %p779_p6 }
  0x19   : > { %p824_p2 = por %p823_p8, %p822_p7 }
  0x1a   : > { %p818_p4 = pneg %p817_p1 }
  0x1c   : > { %p825_p10 = pnand %p824_p2, %p818_p4 }
  0x1e   : > { %828 = shalt.err (!%p825_p10)
}
  0x1f   : > { %762 = dma.hbm_to_vmem [thread:$0]  (!%p906_p5), %s1085_s6, 16, %s245_s30, [#allocation5]  }
  0x20   : > { %289 = sbr.rel (%p898_p3) target bundleno = 83 (0x53), region = 48  ;;  %p1090_p9 = scmp.eq.s32.totalorder (!%p898_p3), %s893_s25, 0 }
  0x25   : > { %834 = dma.done.wait (%p1090_p9), [#allocation3], 16   ;;  %p1091_p6 = pmov %p1090_p9 }
  0x27   : > { %836 = vsyncadd (%p1091_p6), [#allocation3], 4294967280  ;;  %p1092_p11 = pmov %p1091_p6 }
  0x28   : > { %p1093_p2 = pmov %p1091_p6 }
  0x29   : > { %838 = dma.done.wait (%p1092_p11), [#allocation5], 16  }
  0x2a   : > { %840 = vsyncadd (%p1093_p2), [#allocation5], 4294967280  ;;  %p340_p12 = scmp.lt.s32.totalorder %s893_s25, 1  ;;  %v974_v8 = vld [vmem:[%s1083_s4] ss:$0 sm:$0xff]  ;;  %vm592_vm0 = vcmask 125952  }
  0x2b   : > { %v979_v9 = vld [vmem:[%s1083_s4 + $0x1] ss:$0 sm:$0xff]  ;;  %v984_v10 = vld [vmem:[%s1083_s4 + $0x2] ss:$0 sm:$0xff]  ;;  %v992_v14 = vld [vmem:[%s1083_s4 + $0x3] ss:$0 sm:$0xff] }
  0x2c   : > { %s1095_s25 = smov (!%p340_p12, %s893_s25), 1  ;;  %v997_v15 = vld [vmem:[%s1083_s4 + $0x4] ss:$0 sm:$0xff]  ;;  %v1002_v16 = vld [vmem:[%s1083_s4 + $0x5] ss:$0 sm:$0xff] }
  0x2d   : > { %s747_s17 = smul.u32 40, %s1095_s25  ;;  %v1010_v20 = vld [vmem:[%s1083_s4 + $0x6] ss:$0 sm:$0xff]  ;;  %v1015_v21 = vld [vmem:[%s1083_s4 + $0x7] ss:$0 sm:$0xff]  ;;  %s746_s10 = sshll.u32 %s1095_s25, 4 }
  0x2e   : > { %v1020_v22 = vld [vmem:[%s1083_s4 + $0x8] ss:$0 sm:$0xff] }
  0x2f   : > { %s946_s20 = scalar_lea.vmem %s1079_s0, %s747_s17  ;;  %s951_s23 = scalar_lea.vmem %s1080_s1, %s747_s17 }
  0x30   : > { %s956_s28 = scalar_lea.vmem %s1081_s2, %s747_s17  ;;  %s961_s8 = scalar_lea.vmem %s1082_s3, %s747_s17  ;;  %v365_v0 = vld [vmem:[%s946_s20] sm:$0x1f]  ;;  %v371_v2 = vld [vmem:[%s951_s23 + $0x8] sm:$0x1f]  ;;  %v372_v31 = vld [vmem:[%s951_s23 + $0x10] sm:$0x1f] }
  0x31   : > { %v370_v1 = vld [vmem:[%s951_s23] sm:$0x1f]  ;;  %v366_v3 = vld [vmem:[%s946_s20 + $0x8] sm:$0x1f]  ;;  %v390_v11 = vmul.f32 %v974_v8, %v365_v0  ;;  %v414_v13 = vmul.f32 %v984_v10, %v365_v0  ;;  %v474_v25 = vmul.f32 %v1015_v21, %v371_v2  ;;  %v403_v27 = vmul.f32 %v979_v9, %v371_v2  ;;  %v367_v34 = vld [vmem:[%s946_s20 + $0x10] sm:$0x1f] }
  0x32   : > { %v375_v4 = vld [vmem:[%s956_s28] sm:$0x1f]  ;;  %v376_v5 = vld [vmem:[%s956_s28 + $0x8] sm:$0x1f]  ;;  %v402_v12 = vmul.f32 %v979_v9, %v370_v1  ;;  %v391_v23 = vmul.f32 %v974_v8, %v366_v3  ;;  %v462_v24 = vmul.f32 %v1010_v20, %v366_v3  ;;  %v486_v26 = vmul.f32 %v1020_v22, %v366_v3  ;;  %v377_v38 = vld [vmem:[%s956_s28 + $0x10] sm:$0x1f] }
  0x33   : > { %v379_v6 = vld [vmem:[%s961_s8] sm:$0x1f]  ;;  %v380_v7 = vld [vmem:[%s961_s8 + $0x8] sm:$0x1f]  ;;  %v426_v17 = vmul.f32 %v992_v14, %v375_v4  ;;  %v450_v19 = vmul.f32 %v1002_v16, %v375_v4  ;;  %v427_v32 = vmul.f32 %v992_v14, %v376_v5  ;;  %v415_v35 = vmul.f32 %v984_v10, %v366_v3  ;;  %v381_v43 = vld [vmem:[%s961_s8 + $0x10] sm:$0x1f] }
  0x34   : > { %v438_v18 = vmul.f32 %v997_v15, %v379_v6  ;;  %v490_v28 = vadd.f32 %v402_v12, %v390_v11  ;;  %v526_v33 = vadd.f32 %v474_v25, %v462_v24  ;;  %v439_v36 = vmul.f32 %v997_v15, %v380_v7  ;;  %v373_v54 = vld [vmem:[%s951_s23 + $0x18] sm:$0x1f]  ;;  %v742_v11 = vld [vmem:[#allocation2] ss:$0 sm:$0xff] }
  0x35   : > { %v498_v29 = vrot.slane %v426_v17, 7  ;;  %v514_v30 = vrot.slane %v450_v19, 1  ;;  %v451_v37 = vmul.f32 %v1002_v16, %v376_v5  ;;  %v463_v41 = vmul.f32 %v1010_v20, %v367_v34  ;;  %v368_v58 = vld [vmem:[%s946_s20 + $0x18] sm:$0x1f]  ;;  %v369_v24 = vld [vmem:[%s946_s20 + $0x20] sm:$0x1f] }
  0x36   : > { %v475_v42 = vmul.f32 %v1015_v21, %v372_v31  ;;  %v558_v44 = vrot.slane %v486_v26, 1  ;;  %v487_v45 = vmul.f32 %v1020_v22, %v367_v34  ;;  %v499_v46 = vrot.slane %v427_v32, 7  ;;  %v378_v2 = vld [vmem:[%s956_s28 + $0x18] sm:$0x1f]  ;;  %s1063_s28 = scalar_lea.vmem %s1086_s7, %s746_s10 }
  0x37   : > { %v506_v39 = vadd.f32 %v498_v29, %v414_v13  ;;  %v522_v40 = vadd.f32 %v514_v30, %v438_v18  ;;  %v515_v47 = vrot.slane %v451_v37, 1  ;;  %v491_v50 = vadd.f32 %v403_v27, %v391_v23  ;;  %v382_v7 = vld [vmem:[%s961_s8 + $0x18] sm:$0x1f]  ;;  %v743_v27 = vld [vmem:[#allocation4] ss:$0 sm:$0xff] }
  0x38   : > { %v527_v51 = vadd.f32 %v475_v42, %v463_v41  ;;  %v507_v52 = vadd.f32 %v499_v46, %v415_v35  ;;  %v392_v55 = vmul.f32 %v974_v8, %v367_v34  ;;  %v404_v56 = vmul.f32 %v979_v9, %v372_v31  ;;  %v374_v31 = vld [vmem:[%s951_s23 + $0x20] sm:$0x1f] }
  0x39   : > { %v534_v48 = vrot.slane %v506_v39, 1  ;;  %v546_v49 = vadd.f32 %v526_v33, %v522_v40  ;;  %v523_v53 = vadd.f32 %v515_v47, %v439_v36  ;;  %v416_v59 = vmul.f32 %v984_v10, %v367_v34 }
  0x3a   : > { %v428_v60 = vmul.f32 %v992_v14, %v377_v38  ;;  %v440_v61 = vmul.f32 %v997_v15, %v381_v43  ;;  %v535_v62 = vrot.slane %v507_v52, 1  ;;  %v452_v0 = vmul.f32 %v1002_v16, %v377_v38 }
  0x3b   : > { %v542_v57 = vadd.f32 %v534_v48, %v490_v28  ;;  %v547_v63 = vadd.f32 %v527_v51, %v523_v53  ;;  %v464_v1 = vmul.f32 %v1010_v20, %v368_v58  ;;  %v559_v4 = vrot.slane %v487_v45, 1 }
  0x3c   : > { %v476_v5 = vmul.f32 %v1015_v21, %v373_v54  ;;  %v488_v6 = vmul.f32 %v1020_v22, %v368_v58  ;;  %v543_v12 = vadd.f32 %v535_v62, %v491_v50  ;;  %v492_v13 = vadd.f32 %v404_v56, %v392_v55 }
  0x3d   : > { %v550_v3 = vadd.f32 %v546_v49, %v542_v57  ;;  %v500_v17 = vrot.slane %v428_v60, 7  ;;  %v516_v18 = vrot.slane %v452_v0, 1  ;;  %v393_v25 = vmul.f32 %v974_v8, %v368_v58 }
  0x3e   : > { %v528_v23 = vadd.f32 %v476_v5, %v464_v1  ;;  %v405_v26 = vmul.f32 %v979_v9, %v373_v54  ;;  %v551_v28 = vadd.f32 %v547_v63, %v543_v12  ;;  %v417_v32 = vmul.f32 %v984_v10, %v368_v58 }
  0x3f   : > { %v566_v19 = vadd.f32 %v558_v44, %v550_v3  ;;  %v508_v29 = vadd.f32 %v500_v17, %v416_v59  ;;  %v524_v30 = vadd.f32 %v516_v18, %v440_v61  ;;  %v429_v34 = vmul.f32 %v992_v14, %v378_v2 }
  0x40   : > { %v441_v35 = vmul.f32 %v997_v15, %v382_v7  ;;  %v453_v36 = vmul.f32 %v1002_v16, %v378_v2  ;;  %v567_v8 = vadd.f32 %v559_v4, %v551_v28  ;;  %v465_v38 = vmul.f32 %v1010_v20, %v369_v24 }
  0x41   : > { %v577_v33 = vmul.f32 %v742_v11, %v566_v19  ;;  %v536_v9 = vrot.slane %v508_v29, 1  ;;  %v548_v37 = vadd.f32 %v528_v23, %v524_v30  ;;  %v560_v39 = vrot.slane %v488_v6, 1 }
  0x42   : > { %v477_v14 = vmul.f32 %v1015_v21, %v374_v31  ;;  %v578_v40 = vmul.f32 %v742_v11, %v567_v8  ;;  %v501_v41 = vrot.slane %v429_v34, 7  ;;  %v517_v16 = vrot.slane %v453_v36, 1 }
  0x43   : > { %v588_v10 = vadd.f32 %v743_v27, %v577_v33  ;;  %v544_v15 = vadd.f32 %v536_v9, %v492_v13  ;;  %v489_v42 = vmul.f32 %v1020_v22, %v369_v24  ;;  %v493_v43 = vadd.f32 %v405_v26, %v393_v25 }
  0x44   : > { %v529_v44 = vadd.f32 %v477_v14, %v465_v38  ;;  %v589_v45 = vadd.f32 %v743_v27, %v578_v40  ;;  %v509_v20 = vadd.f32 %v501_v41, %v417_v32  ;;  %v525_v47 = vadd.f32 %v517_v16, %v441_v35 }
  0x45   : > { %593 = vst.msk [vmem:[%s1063_s28] sm:$0xf] %vm592_vm0, %v588_v10  ;;  %v552_v46 = vadd.f32 %v548_v37, %v544_v15  ;;  %v561_v52 = vrot.slane %v489_v42, 1 }
  0x46   : > { %594 = vst.msk [vmem:[%s1063_s28 + $0x4] sm:$0xf] %vm592_vm0, %v589_v45  ;;  %v537_v21 = vrot.slane %v509_v20, 1  ;;  %v549_v49 = vadd.f32 %v529_v44, %v525_v47 }
  0x47   : > { %v568_v48 = vadd.f32 %v560_v39, %v552_v46 }
  0x48   : > { %v545_v51 = vadd.f32 %v537_v21, %v493_v43 }
  0x49   : > { %v579_v50 = vmul.f32 %v742_v11, %v568_v48 }
  0x4a   : > { %v553_v54 = vadd.f32 %v549_v49, %v545_v51 }
  0x4b   : > { %v590_v53 = vadd.f32 %v743_v27, %v579_v50 }
  0x4c   : > { %v569_v22 = vadd.f32 %v561_v52, %v553_v54 }
  0x4d   : > { %595 = vst.msk [vmem:[%s1063_s28 + $0x8] sm:$0xf] %vm592_vm0, %v590_v53 }
  0x4e   : > { %v580_v55 = vmul.f32 %v742_v11, %v569_v22 }
  0x50   : > { %v591_v56 = vadd.f32 %v743_v27, %v580_v55 }
  0x52   : > { %596 = vst.msk [vmem:[%s1063_s28 + $0xc] sm:$0xf] %vm592_vm0, %v591_v56 }
  0x53 PF: > { %s19_s24 = sadd.s32 1, %s843_s24  }
  0x54   : > { %p16_p3 = scmp.ge.s32.totalorder %s19_s24, 4  }
  0x56   :  { %18 = sbr.rel (!%p16_p3) target bundleno = 2 (0x2), region = 104 }
  0x5b   :  { %618 = vsyncpa [#allocation3], 1 }
  0x5c   :  { %620 = vsyncpa [#allocation3 + $0x1], 1 }
  0x5d   :  { %621 = vsyncpa [#allocation5], 1 }

// kernel: _lambda_.44
= control target key start
LH: loop header
LB: loop body
LE: loop exit
PB: predicated region body
PF: predicated region fallthrough
CT: control target
= control target key end

     0   :  { %s593_s15 = smov 0   ;;  %s730_s0 = inlined_call_operand.vmem [shape: f32[2,6,6,16], index: 0, kind: input, shape index: {}]   ;;  %s731_s1 = inlined_call_operand.vmem [shape: f32[9,1,1,16], index: 1, kind: input, shape index: {}]   ;;  %s732_s2 = inlined_call_operand.vmem [shape: f32[1,1,16], index: 2, kind: input, shape index: {}]   ;;  %s733_s3 = inlined_call_operand.vmem [shape: f32[1,1,16], index: 3, kind: input, shape index: {}]   ;;  %s734_s4 = inlined_call_operand.vmem [shape: f32[2,4,4,16], index: 4, kind: output, shape index: {}]  }
   0x1 LB: > { %s521_s16 = sadd.s32 4294967295, %s566_s15   ;;  %p525_p0 = scmp.ge.s32.totalorder %s566_s15, 1  ;;  %s566_s15 = sphi %s593_s15, %s14_s15  }
   0x2   : > { %p162_p1 = scmp.lt.s32.totalorder %s566_s15, 3 }
   0x4   : > { %p163_p2 = pnand %p525_p0, %p162_p1 }
   0x5   : > { %p188_p3 = scmp.lt.s32.totalorder (!%p163_p2), %s521_s16, 1 }
   0x6   : > { %166 = sbr.rel (%p163_p2) target bundleno = 56 (0x38), region = 36 }
   0xb   : > { %s736_s16 = smov (!%p188_p3, %s521_s16), 1  ;;  %v607_v0 = vld [vmem:[%s731_s1] ss:$0 sm:$0xff]  ;;  %v612_v1 = vld [vmem:[%s731_s1 + $0x1] ss:$0 sm:$0xff]  ;;  %vm461_vm0 = vcmask 125952  }
   0xc   : > { %s551_s17 = smul.u32 48, %s736_s16  ;;  %v617_v2 = vld [vmem:[%s731_s1 + $0x2] ss:$0 sm:$0xff]  ;;  %v622_v3 = vld [vmem:[%s731_s1 + $0x3] ss:$0 sm:$0xff] }
   0xd   : > { %v627_v4 = vld [vmem:[%s731_s1 + $0x4] ss:$0 sm:$0xff]  ;;  %v637_v5 = vld [vmem:[%s731_s1 + $0x5] ss:$0 sm:$0xff]  ;;  %v642_v6 = vld [vmem:[%s731_s1 + $0x6] ss:$0 sm:$0xff] }
   0xe   : > { %s632_s30 = scalar_lea.vmem %s730_s0, %s551_s17  ;;  %v647_v7 = vld [vmem:[%s731_s1 + $0x7] ss:$0 sm:$0xff]  ;;  %v659_v15 = vld [vmem:[%s731_s1 + $0x8] ss:$0 sm:$0xff]  ;;  %s550_s17 = sshll.u32 %s736_s16, 4 }
   0xf   : > { %v198_v8 = vld [vmem:[%s632_s30] sm:$0x3f]  ;;  %v199_v9 = vld [vmem:[%s632_s30 + $0x8] sm:$0x3f]  ;;  %v200_v10 = vld [vmem:[%s632_s30 + $0x10] sm:$0x3f]  ;;  %s710_s21 = scalar_lea.vmem %s734_s4, %s550_s17 }
  0x10   : > { %v211_v11 = vmul.f32 %v607_v0, %v198_v8  ;;  %v223_v12 = vmul.f32 %v612_v1, %v198_v8  ;;  %v235_v13 = vmul.f32 %v617_v2, %v198_v8  ;;  %v247_v14 = vmul.f32 %v622_v3, %v199_v9  ;;  %v666_v22 = vld [vmem:[%s632_s30 + $0x18] sm:$0x3f]  ;;  %v202_v47 = vld [vmem:[%s632_s30 + $0x20] sm:$0x3f] }
  0x11   : > { %v259_v16 = vmul.f32 %v627_v4, %v199_v9  ;;  %v271_v17 = vmul.f32 %v637_v5, %v199_v9  ;;  %v283_v18 = vmul.f32 %v642_v6, %v200_v10  ;;  %v295_v19 = vmul.f32 %v647_v7, %v200_v10 }
  0x12   : > { %v315_v20 = vrot.slane %v223_v12, 1  ;;  %v331_v21 = vrot.slane %v247_v14, 6  ;;  %v307_v23 = vmul.f32 %v659_v15, %v200_v10  ;;  %v224_v26 = vmul.f32 %v612_v1, %v199_v9 }
  0x13   : > { %v347_v24 = vrot.slane %v271_v17, 1  ;;  %v363_v25 = vrot.slane %v295_v19, 1  ;;  %v212_v29 = vmul.f32 %v607_v0, %v199_v9  ;;  %v248_v30 = vmul.f32 %v622_v3, %v200_v10 }
  0x14   : > { %v323_v27 = vadd.f32 %v315_v20, %v211_v11  ;;  %v339_v28 = vadd.f32 %v331_v21, %v235_v13  ;;  %v236_v33 = vmul.f32 %v617_v2, %v199_v9  ;;  %v272_v34 = vmul.f32 %v637_v5, %v200_v10 }
  0x15   : > { %v355_v31 = vadd.f32 %v347_v24, %v259_v16  ;;  %v371_v32 = vadd.f32 %v363_v25, %v283_v18  ;;  %v260_v36 = vmul.f32 %v627_v4, %v200_v10  ;;  %v284_v37 = vmul.f32 %v642_v6, %v666_v22 }
  0x16   : > { %v379_v35 = vrot.slane %v339_v28, 2  ;;  %v296_v38 = vmul.f32 %v647_v7, %v666_v22  ;;  %v316_v40 = vrot.slane %v224_v26, 1  ;;  %v332_v41 = vrot.slane %v248_v30, 6 }
  0x17   : > { %v395_v39 = vrot.slane %v371_v32, 7  ;;  %v348_v42 = vrot.slane %v272_v34, 1  ;;  %v427_v44 = vrot.slane %v307_v23, 2  ;;  %v308_v45 = vmul.f32 %v659_v15, %v666_v22  ;;  %v547_v23 = vld [vmem:[%s733_s3] ss:$0 sm:$0xff] }
  0x18   : > { %v387_v43 = vadd.f32 %v379_v35, %v323_v27  ;;  %v364_v46 = vrot.slane %v296_v38, 1  ;;  %v324_v49 = vadd.f32 %v316_v40, %v212_v29  ;;  %v340_v50 = vadd.f32 %v332_v41, %v236_v33  ;;  %v203_v27 = vld [vmem:[%s632_s30 + $0x28] sm:$0x3f] }
  0x19   : > { %v403_v48 = vadd.f32 %v395_v39, %v355_v31  ;;  %v213_v51 = vmul.f32 %v607_v0, %v200_v10  ;;  %v356_v52 = vadd.f32 %v348_v42, %v260_v36  ;;  %v225_v54 = vmul.f32 %v612_v1, %v200_v10 }
  0x1a   : > { %v372_v53 = vadd.f32 %v364_v46, %v284_v37  ;;  %v249_v55 = vmul.f32 %v622_v3, %v666_v22  ;;  %v380_v57 = vrot.slane %v340_v50, 2  ;;  %v237_v58 = vmul.f32 %v617_v2, %v200_v10  ;;  %v546_v10 = vld [vmem:[%s732_s2] ss:$0 sm:$0xff] }
  0x1b   : > { %v411_v56 = vrot.slane %v403_v48, 1  ;;  %v273_v59 = vmul.f32 %v637_v5, %v666_v22  ;;  %v261_v61 = vmul.f32 %v627_v4, %v666_v22  ;;  %v285_v62 = vmul.f32 %v642_v6, %v202_v47 }
  0x1c   : > { %v396_v60 = vrot.slane %v372_v53, 7  ;;  %v297_v63 = vmul.f32 %v647_v7, %v202_v47  ;;  %v428_v9 = vrot.slane %v308_v45, 2  ;;  %v317_v11 = vrot.slane %v225_v54, 1 }
  0x1d   : > { %v419_v8 = vadd.f32 %v411_v56, %v387_v43  ;;  %v333_v12 = vrot.slane %v249_v55, 6  ;;  %v388_v13 = vadd.f32 %v380_v57, %v324_v49  ;;  %v349_v16 = vrot.slane %v273_v59, 1 }
  0x1e   : > { %v404_v14 = vadd.f32 %v396_v60, %v356_v52  ;;  %v365_v17 = vrot.slane %v297_v63, 1  ;;  %v309_v19 = vmul.f32 %v659_v15, %v202_v47  ;;  %v325_v20 = vadd.f32 %v317_v11, %v213_v51 }
  0x1f   : > { %v435_v18 = vadd.f32 %v427_v44, %v419_v8  ;;  %v341_v21 = vadd.f32 %v333_v12, %v237_v58  ;;  %v357_v25 = vadd.f32 %v349_v16, %v261_v61  ;;  %v226_v28 = vmul.f32 %v612_v1, %v666_v22 }
  0x20   : > { %v412_v24 = vrot.slane %v404_v14, 1  ;;  %v373_v26 = vadd.f32 %v365_v17, %v285_v62  ;;  %v214_v31 = vmul.f32 %v607_v0, %v666_v22  ;;  %v250_v32 = vmul.f32 %v622_v3, %v202_v47 }
  0x21   : > { %v446_v29 = vmul.f32 %v546_v10, %v435_v18  ;;  %v381_v30 = vrot.slane %v341_v21, 2  ;;  %v238_v35 = vmul.f32 %v617_v2, %v666_v22  ;;  %v274_v1 = vmul.f32 %v637_v5, %v202_v47 }
  0x22   : > { %v420_v33 = vadd.f32 %v412_v24, %v388_v13  ;;  %v397_v34 = vrot.slane %v373_v26, 7  ;;  %v262_v37 = vmul.f32 %v627_v4, %v202_v47  ;;  %v286_v0 = vmul.f32 %v642_v6, %v203_v27 }
  0x23   : > { %v457_v36 = vadd.f32 %v547_v23, %v446_v29  ;;  %v298_v3 = vmul.f32 %v647_v7, %v203_v27  ;;  %v389_v39 = vadd.f32 %v381_v30, %v325_v20  ;;  %v318_v41 = vrot.slane %v226_v28, 1 }
  0x24   : > { %v436_v38 = vadd.f32 %v428_v9, %v420_v33  ;;  %v405_v40 = vadd.f32 %v397_v34, %v357_v25  ;;  %v334_v42 = vrot.slane %v250_v32, 6  ;;  %v350_v43 = vrot.slane %v274_v1, 1 }
  0x25   : > { %462 = vst.msk [vmem:[%s710_s21] sm:$0xf] %vm461_vm0, %v457_v36  ;;  %v366_v44 = vrot.slane %v298_v3, 1  ;;  %v429_v5 = vrot.slane %v309_v19, 2  ;;  %v326_v45 = vadd.f32 %v318_v41, %v214_v31  ;;  %v310_v48 = vmul.f32 %v659_v15, %v203_v27 }
  0x26   : > { %v447_v2 = vmul.f32 %v546_v10, %v436_v38  ;;  %v413_v22 = vrot.slane %v405_v40, 1  ;;  %v342_v46 = vadd.f32 %v334_v42, %v238_v35  ;;  %v358_v4 = vadd.f32 %v350_v43, %v262_v37 }
  0x27   : > { %v374_v6 = vadd.f32 %v366_v44, %v286_v0  ;;  %v430_v56 = vrot.slane %v310_v48, 2 }
  0x28   : > { %v458_v47 = vadd.f32 %v547_v23, %v447_v2  ;;  %v421_v7 = vadd.f32 %v413_v22, %v389_v39  ;;  %v382_v49 = vrot.slane %v342_v46, 2 }
  0x29   : > { %v398_v50 = vrot.slane %v374_v6, 7 }
  0x2a   : > { %463 = vst.msk [vmem:[%s710_s21 + $0x4] sm:$0xf] %vm461_vm0, %v458_v47  ;;  %v437_v51 = vadd.f32 %v429_v5, %v421_v7  ;;  %v390_v52 = vadd.f32 %v382_v49, %v326_v45 }
  0x2b   : > { %v406_v53 = vadd.f32 %v398_v50, %v358_v4 }
  0x2c   : > { %v448_v54 = vmul.f32 %v546_v10, %v437_v51 }
  0x2d   : > { %v414_v55 = vrot.slane %v406_v53, 1 }
  0x2e   : > { %v459_v57 = vadd.f32 %v547_v23, %v448_v54 }
  0x2f   : > { %v422_v58 = vadd.f32 %v414_v55, %v390_v52 }
  0x30   : > { %464 = vst.msk [vmem:[%s710_s21 + $0x8] sm:$0xf] %vm461_vm0, %v459_v57 }
  0x31   : > { %v438_v59 = vadd.f32 %v430_v56, %v422_v58 }
  0x33   : > { %v449_v60 = vmul.f32 %v546_v10, %v438_v59 }
  0x35   : > { %v460_v61 = vadd.f32 %v547_v23, %v449_v60 }
  0x37   : > { %465 = vst.msk [vmem:[%s710_s21 + $0xc] sm:$0xf] %vm461_vm0, %v460_v61 }
  0x38 PF: > { %s14_s15 = sadd.s32 1, %s566_s15  }
  0x39   : > { %p11_p4 = scmp.ge.s32.totalorder %s14_s15, 4  }
  0x3b   :  { %13 = sbr.rel (!%p11_p4) target bundleno = 1 (0x1), region = 74 }

// kernel: _lambda_.47
= control target key start
LH: loop header
LB: loop body
LE: loop exit
PB: predicated region body
PF: predicated region fallthrough
CT: control target
= control target key end

     0   :  { %v122_v0 = vmov 0.0   ;;  %vm123_vm0 = vmmov 0   ;;  %vm36_vm1 = vcmask 261120   ;;  %s167_s1 = inlined_call_operand.vmem [shape: bf16[32,32], index: 1, kind: input, shape index: {}]   ;;  %s168_s0 = inlined_call_operand.vmem [shape: f32[8,32], index: 0, kind: input, shape index: {}]   ;;  %s169_s2 = inlined_call_operand.vmem [shape: f32[1,32], index: 2, kind: input, shape index: {}]   ;;  %s170_s3 = inlined_call_operand.vmem [shape: f32[1,32], index: 3, kind: input, shape index: {}]   ;;  %s171_s4 = inlined_call_operand.vmem [shape: f32[8,32], index: 4, kind: output, shape index: {}]  }
   0x1   :  { %110 = vmatprep.subr.bf16.mxu0 %v122_v0  ;;  %v120_v1 = vld [vmem:[%s167_s1 + $0x8] sm:$0xff]   ;;  %114 = vmatprep.mubr.msk.bf16.mxu0 %vm123_vm0, %v122_v0  ;;  %v121_v2 = vld [vmem:[%s167_s1] sm:$0xff]  }
   0x2   :  { %111 = vmatpush3.bf16.msra.mxu0 %v120_v1  ;;  %v18_v3 = vld [vmem:[%s168_s0] sm:$0xff] }
   0x3   :  { %112 = vmatprep.subr.bf16.mxu0 %v122_v0  ;;  %v19_v4 = vpack.c.bf16 %v18_v3, %v18_v3  ;;  %v105_v5 = vld [vmem:[%s169_s2] ss:$0 sm:$0xff] }
   0x4   :  { %v106_v7 = vld [vmem:[%s170_s3] ss:$0 sm:$0xff] }
   0x6   :  { %113 = vmatpush3.bf16.msra.mxu0 %v121_v2 }
   0x9   :  { %115 = vmatmul.mubr.msk.bf16.vlgmr.msra.gmra.mxu0 %vm36_vm1, %v19_v4 }
  0xc9   :  { %v74_v6 = vpop.f32.mrf.mxu0 }
  0xca   :  { %v87_v8 = vmul.f32 %v105_v5, %v74_v6 }
  0xcb   :  { %v116_v9 = vpop.f32.mrf.mxu0 }
  0xcc   :  { %v95_v10 = vadd.f32 %v106_v7, %v87_v8 }
  0xcd   :  { %v77_v11 = vpop.f32.mrf.mxu0 }
  0xce   :  { %v96_v12 = vmax.f32 %v95_v10, 0.0 }
  0xcf   :  { %v117_v13 = vpop.f32.mrf.mxu0 }
  0xd0   :  { %97 = vst.msk [vmem:[%s171_s4] sm:$0xff] %vm36_vm1, %v96_v12 }

// kernel: _lambda_.46
= control target key start
LH: loop header
LB: loop body
LE: loop exit
PB: predicated region body
PF: predicated region fallthrough
CT: control target
= control target key end

     0   :  { %s680_s24 = smov 0   ;;  %s743_s0 = inlined_call_operand.vmem [shape: f32[2,3,3,32], index: 0, kind: input, shape index: {}]   ;;  %s744_s1 = inlined_call_operand.vmem [shape: f32[2,3,3,32], index: 1, kind: input, shape index: {}]   ;;  %s745_s2 = inlined_call_operand.vmem [shape: f32[2,3,3,32], index: 2, kind: input, shape index: {}]   ;;  %s746_s3 = inlined_call_operand.vmem [shape: f32[2,3,3,32], index: 3, kind: input, shape index: {}]   ;;  %s747_s4 = inlined_call_operand.vmem [shape: f32[9,1,1,32], index: 4, kind: input, shape index: {}]   ;;  %s748_s5 = inlined_call_operand.vmem [shape: f32[1,1,32], index: 5, kind: input, shape index: {}]   ;;  %s749_s6 = inlined_call_operand.vmem [shape: f32[1,1,32], index: 6, kind: input, shape index: {}]   ;;  %s750_s7 = inlined_call_operand.vmem [shape: f32[2,2,2,32], index: 7, kind: output, shape index: {}]  }
   0x1 LB: > { %s590_s25 = sadd.s32 4294967295, %s638_s24   ;;  %p594_p0 = scmp.ge.s32.totalorder %s638_s24, 1  ;;  %s638_s24 = sphi %s680_s24, %s17_s24  }
   0x2   : > { %p267_p1 = scmp.lt.s32.totalorder %s638_s24, 3 }
   0x4   : > { %p268_p2 = pnand %p594_p0, %p267_p1 }
   0x5   : > { %p314_p3 = scmp.lt.s32.totalorder (!%p268_p2), %s590_s25, 1 }
   0x6   : > { %271 = sbr.rel (%p268_p2) target bundleno = 38 (0x26), region = 48 }
   0xb   : > { %s752_s25 = smov (!%p314_p3, %s590_s25), 1  ;;  %v601_v0 = vld [vmem:[%s747_s4] ss:$0 sm:$0xff]  ;;  %v603_v1 = vld [vmem:[%s747_s4 + $0x1] ss:$0 sm:$0xff]  ;;  %vm496_vm0 = vcmask 254976  }
   0xc   : > { %s623_s28 = smul.u32 12, %s752_s25  ;;  %v605_v2 = vld [vmem:[%s747_s4 + $0x2] ss:$0 sm:$0xff]  ;;  %v607_v3 = vld [vmem:[%s747_s4 + $0x3] ss:$0 sm:$0xff]  ;;  %s622_s15 = sshll.u32 %s752_s25, 2 }
   0xd   : > { %v609_v4 = vld [vmem:[%s747_s4 + $0x4] ss:$0 sm:$0xff]  ;;  %v613_v5 = vld [vmem:[%s747_s4 + $0x6] ss:$0 sm:$0xff]  ;;  %v611_v6 = vld [vmem:[%s747_s4 + $0x5] ss:$0 sm:$0xff]  ;;  %s338_s20 = scalar_lea.vmem %s750_s7, %s622_s15 }
   0xe   : > { %s318_s18 = scalar_lea.vmem %s743_s0, %s623_s28  ;;  %s323_s21 = scalar_lea.vmem %s744_s1, %s623_s28  ;;  %v615_v7 = vld [vmem:[%s747_s4 + $0x7] ss:$0 sm:$0xff]  ;;  %v617_v8 = vld [vmem:[%s747_s4 + $0x8] ss:$0 sm:$0xff]  ;;  %v618_v56 = vld [vmem:[%s748_s5] ss:$0 sm:$0xff] }
   0xf   : > { %s328_s10 = scalar_lea.vmem %s745_s2, %s623_s28  ;;  %s333_s13 = scalar_lea.vmem %s746_s3, %s623_s28  ;;  %v339_v9 = vld [vmem:[%s318_s18] sm:$0x7]  ;;  %v340_v10 = vld [vmem:[%s318_s18 + $0x4] sm:$0x7]  ;;  %v344_v24 = vld [vmem:[%s323_s21 + $0x8] sm:$0x7] }
  0x10   : > { %v342_v11 = vld [vmem:[%s323_s21] sm:$0x7]  ;;  %v343_v12 = vld [vmem:[%s323_s21 + $0x4] sm:$0x7]  ;;  %v356_v14 = vmul.f32 %v601_v0, %v339_v9  ;;  %v416_v16 = vmul.f32 %v613_v5, %v340_v10  ;;  %v376_v20 = vmul.f32 %v605_v2, %v339_v9  ;;  %v436_v28 = vmul.f32 %v617_v8, %v340_v10  ;;  %v341_v29 = vld [vmem:[%s318_s18 + $0x8] sm:$0x7] }
  0x11   : > { %v345_v13 = vld [vmem:[%s328_s10] sm:$0x7]  ;;  %v366_v15 = vmul.f32 %v603_v1, %v342_v11  ;;  %v346_v17 = vld [vmem:[%s328_s10 + $0x4] sm:$0x7]  ;;  %v426_v23 = vmul.f32 %v615_v7, %v343_v12  ;;  %v357_v34 = vmul.f32 %v601_v0, %v340_v10  ;;  %v367_v35 = vmul.f32 %v603_v1, %v343_v12 }
  0x12   : > { %v347_v18 = vld [vmem:[%s333_s13] sm:$0x7]  ;;  %v348_v19 = vld [vmem:[%s333_s13 + $0x4] sm:$0x7]  ;;  %v386_v21 = vmul.f32 %v607_v3, %v345_v13  ;;  %v406_v22 = vmul.f32 %v611_v6, %v345_v13  ;;  %v387_v25 = vmul.f32 %v607_v3, %v346_v17  ;;  %v407_v27 = vmul.f32 %v611_v6, %v346_v17 }
  0x13   : > { %v396_v26 = vmul.f32 %v609_v4, %v347_v18  ;;  %v438_v30 = vadd.f32 %v366_v15, %v356_v14  ;;  %v456_v33 = vadd.f32 %v426_v23, %v416_v16  ;;  %v377_v36 = vmul.f32 %v605_v2, %v340_v10  ;;  %v619_v60 = vld [vmem:[%s749_s6] ss:$0 sm:$0xff] }
  0x14   : > { %v442_v31 = vrot.slane %v386_v21, 7  ;;  %v450_v32 = vrot.slane %v406_v22, 1  ;;  %v397_v37 = vmul.f32 %v609_v4, %v348_v19  ;;  %v417_v40 = vmul.f32 %v613_v5, %v341_v29 }
  0x15   : > { %v427_v41 = vmul.f32 %v615_v7, %v344_v24  ;;  %v443_v42 = vrot.slane %v387_v25, 7  ;;  %v451_v43 = vrot.slane %v407_v27, 1  ;;  %v437_v47 = vmul.f32 %v617_v8, %v341_v29 }
  0x16   : > { %v446_v38 = vadd.f32 %v442_v31, %v376_v20  ;;  %v454_v39 = vadd.f32 %v450_v32, %v396_v26  ;;  %v439_v48 = vadd.f32 %v367_v35, %v357_v34  ;;  %v472_v52 = vrot.slane %v436_v28, 1 }
  0x17   : > { %v457_v46 = vadd.f32 %v427_v41, %v417_v40  ;;  %v447_v49 = vadd.f32 %v443_v42, %v377_v36  ;;  %v455_v50 = vadd.f32 %v451_v43, %v397_v37  ;;  %v473_v58 = vrot.slane %v437_v47, 1 }
  0x18   : > { %v460_v44 = vrot.slane %v446_v38, 1  ;;  %v466_v45 = vadd.f32 %v456_v33, %v454_v39 }
  0x19   : > { %v461_v53 = vrot.slane %v447_v49, 1  ;;  %v467_v54 = vadd.f32 %v457_v46, %v455_v50 }
  0x1a   : > { %v464_v51 = vadd.f32 %v460_v44, %v438_v30 }
  0x1b   : > { %v465_v57 = vadd.f32 %v461_v53, %v439_v48 }
  0x1c   : > { %v468_v55 = vadd.f32 %v466_v45, %v464_v51 }
  0x1d   : > { %v469_v61 = vadd.f32 %v467_v54, %v465_v57 }
  0x1e   : > { %v476_v59 = vadd.f32 %v472_v52, %v468_v55 }
  0x1f   : > { %v477_v63 = vadd.f32 %v473_v58, %v469_v61 }
  0x20   : > { %v485_v62 = vmul.f32 %v618_v56, %v476_v59 }
  0x21   : > { %v486_v1 = vmul.f32 %v618_v56, %v477_v63 }
  0x22   : > { %v494_v0 = vadd.f32 %v619_v60, %v485_v62 }
  0x23   : > { %v495_v2 = vadd.f32 %v619_v60, %v486_v1 }
  0x24   : > { %497 = vst.msk [vmem:[%s338_s20] sm:$0x3] %vm496_vm0, %v494_v0 }
  0x25   : > { %498 = vst.msk [vmem:[%s338_s20 + $0x2] sm:$0x3] %vm496_vm0, %v495_v2 }
  0x26 PF: > { %s17_s24 = sadd.s32 1, %s638_s24  }
  0x27   : > { %p14_p4 = scmp.ge.s32.totalorder %s17_s24, 4  }
  0x29   :  { %16 = sbr.rel (!%p14_p4) target bundleno = 1 (0x1), region = 95 }

// kernel: _lambda_.48
= control target key start
LH: loop header
LB: loop body
LE: loop exit
PB: predicated region body
PF: predicated region fallthrough
CT: control target
= control target key end

     0   :  { %vm40_vm0 = vcmask 261120   ;;  %s217_s1 = inlined_call_operand.vmem [shape: bf16[32,32], index: 1, kind: input, shape index: {}]   ;;  %s218_s0 = inlined_call_operand.vmem [shape: f32[32,32], index: 0, kind: input, shape index: {}]   ;;  %s219_s2 = inlined_call_operand.vmem [shape: f32[1,32], index: 2, kind: input, shape index: {}]   ;;  %s220_s3 = inlined_call_operand.vmem [shape: f32[1,32], index: 3, kind: input, shape index: {}]   ;;  %s221_s4 = inlined_call_operand.vmem [shape: f32[32,32], index: 4, kind: output, shape index: {}]  }
   0x1   :  { %v148_v0 = vld [vmem:[%s217_s1 + $0x8] sm:$0xff]   ;;  %v149_v1 = vld [vmem:[%s217_s1] sm:$0xff]   ;;  %v20_v5 = vld [vmem:[%s218_s0 + $0x10] sm:$0xff] }
   0x2   :  { %140 = vmatprep.subr.bf16.mxu0 %v148_v0  ;;  %v18_v2 = vld [vmem:[%s218_s0] sm:$0xff]  ;;  %v19_v3 = vld [vmem:[%s218_s0 + $0x8] sm:$0xff]  ;;  %v21_v6 = vld [vmem:[%s218_s0 + $0x18] sm:$0xff] }
   0x3   :  { %141 = vmatpush3.bf16.msra.mxu0 %v148_v0  ;;  %v22_v4 = vpack.c.bf16 %v19_v3, %v18_v2  ;;  %v23_v7 = vpack.c.bf16 %v21_v6, %v20_v5  ;;  %v134_v8 = vld [vmem:[%s219_s2] ss:$0 sm:$0xff] }
   0x4   :  { %142 = vmatprep.subr.bf16.mxu0 %v149_v1  ;;  %v135_v10 = vld [vmem:[%s220_s3] ss:$0 sm:$0xff] }
   0x5   :  { %144 = vmatprep.mubr.msk.bf16.mxu0 %vm40_vm0, %v22_v4 }
   0x7   :  { %143 = vmatpush3.bf16.msra.mxu0 %v149_v1 }
   0xa   :  { %145 = vmatmul.mubr.msk.bf16.vlgmr.msra.gmra.mxu0 %vm40_vm0, %v23_v7 }
  0xca   :  { %v146_v9 = vpop.f32.mrf.mxu0 }
  0xcb   :  { %v105_v11 = vmul.f32 %v146_v9, %v134_v8 }
  0xcc   :  { %v81_v12 = vpop.f32.mrf.mxu0 }
  0xcd   :  { %v116_v13 = vadd.f32 %v135_v10, %v105_v11  ;;  %v103_v14 = vmul.f32 %v134_v8, %v81_v12 }
  0xce   :  { %v147_v15 = vpop.f32.mrf.mxu0 }
  0xcf   :  { %v120_v16 = vmax.f32 %v116_v13, 0.0  ;;  %v114_v17 = vadd.f32 %v135_v10, %v103_v14  ;;  %v106_v18 = vmul.f32 %v147_v15, %v134_v8 }
  0xd0   :  { %v84_v19 = vpop.f32.mrf.mxu0 }
  0xd1   :  { %124 = vst.msk [vmem:[%s221_s4 + $0x10] sm:$0xff] %vm40_vm0, %v120_v16  ;;  %v118_v20 = vmax.f32 %v114_v17, 0.0  ;;  %v117_v21 = vadd.f32 %v135_v10, %v106_v18  ;;  %v104_v22 = vmul.f32 %v134_v8, %v84_v19 }
  0xd3   :  { %122 = vst.msk [vmem:[%s221_s4] sm:$0xff] %vm40_vm0, %v118_v20  ;;  %v121_v23 = vmax.f32 %v117_v21, 0.0  ;;  %v115_v24 = vadd.f32 %v135_v10, %v104_v22 }
  0xd5   :  { %125 = vst.msk [vmem:[%s221_s4 + $0x18] sm:$0xff] %vm40_vm0, %v121_v23  ;;  %v119_v25 = vmax.f32 %v115_v24, 0.0 }
  0xd7   :  { %123 = vst.msk [vmem:[%s221_s4 + $0x8] sm:$0xff] %vm40_vm0, %v119_v25 }

// kernel: _lambda_.52
= control target key start
LH: loop header
LB: loop body
LE: loop exit
PB: predicated region body
PF: predicated region fallthrough
CT: control target
= control target key end

     0   :  { %s504_s15 = smov 0   ;;  %s558_s0 = inlined_call_operand.vmem [shape: f32[2,4,4,32], index: 0, kind: input, shape index: {}]   ;;  %s559_s1 = inlined_call_operand.vmem [shape: f32[9,1,1,32], index: 1, kind: input, shape index: {}]   ;;  %s560_s2 = inlined_call_operand.vmem [shape: f32[1,1,32], index: 2, kind: input, shape index: {}]   ;;  %s561_s3 = inlined_call_operand.vmem [shape: f32[1,1,32], index: 3, kind: input, shape index: {}]   ;;  %s562_s4 = inlined_call_operand.vmem [shape: f32[2,2,2,32], index: 4, kind: output, shape index: {}]  }
   0x1 LB: > { %s431_s16 = sadd.s32 4294967295, %s477_s15   ;;  %p435_p0 = scmp.ge.s32.totalorder %s477_s15, 1  ;;  %s477_s15 = sphi %s504_s15, %s14_s15  }
   0x2   : > { %p162_p1 = scmp.lt.s32.totalorder %s477_s15, 3 }
   0x4   : > { %p163_p2 = pnand %p435_p0, %p162_p1 }
   0x5   : > { %p188_p3 = scmp.lt.s32.totalorder (!%p163_p2), %s431_s16, 1 }
   0x6   : > { %166 = sbr.rel (%p163_p2) target bundleno = 39 (0x27), region = 36 }
   0xb   : > { %s564_s16 = smov (!%p188_p3, %s431_s16), 1  ;;  %v440_v0 = vld [vmem:[%s559_s1] ss:$0 sm:$0xff]  ;;  %v442_v1 = vld [vmem:[%s559_s1 + $0x1] ss:$0 sm:$0xff]  ;;  %vm373_vm0 = vcmask 254976  }
   0xc   : > { %v444_v2 = vld [vmem:[%s559_s1 + $0x2] ss:$0 sm:$0xff]  ;;  %s461_s23 = sshll.u32 %s564_s16, 4  ;;  %v446_v3 = vld [vmem:[%s559_s1 + $0x3] ss:$0 sm:$0xff]  ;;  %s462_s17 = sshll.u32 %s564_s16, 2 }
   0xd   : > { %v448_v4 = vld [vmem:[%s559_s1 + $0x4] ss:$0 sm:$0xff]  ;;  %s192_s30 = scalar_lea.vmem %s558_s0, %s461_s23  ;;  %v450_v5 = vld [vmem:[%s559_s1 + $0x5] ss:$0 sm:$0xff]  ;;  %v452_v6 = vld [vmem:[%s559_s1 + $0x6] ss:$0 sm:$0xff]  ;;  %s197_s22 = scalar_lea.vmem %s562_s4, %s462_s17 }
   0xe   : > { %v454_v7 = vld [vmem:[%s559_s1 + $0x7] ss:$0 sm:$0xff]  ;;  %v198_v8 = vld [vmem:[%s192_s30] sm:$0xf]  ;;  %v200_v10 = vld [vmem:[%s192_s30 + $0x8] sm:$0xf] }
   0xf   : > { %v199_v9 = vld [vmem:[%s192_s30 + $0x4] sm:$0xf]  ;;  %v201_v11 = vld [vmem:[%s192_s30 + $0xc] sm:$0xf]  ;;  %v209_v12 = vmul.f32 %v440_v0, %v198_v8  ;;  %v219_v13 = vmul.f32 %v442_v1, %v198_v8  ;;  %v229_v16 = vmul.f32 %v444_v2, %v198_v8  ;;  %v269_v20 = vmul.f32 %v452_v6, %v200_v10  ;;  %v456_v30 = vld [vmem:[%s559_s1 + $0x8] ss:$0 sm:$0xff] }
  0x10   : > { %v210_v14 = vmul.f32 %v440_v0, %v199_v9  ;;  %v220_v15 = vmul.f32 %v442_v1, %v199_v9  ;;  %v239_v17 = vmul.f32 %v446_v3, %v199_v9  ;;  %v249_v18 = vmul.f32 %v448_v4, %v199_v9  ;;  %v457_v60 = vld [vmem:[%s560_s2] ss:$0 sm:$0xff] }
  0x11   : > { %v259_v19 = vmul.f32 %v450_v5, %v199_v9  ;;  %v279_v21 = vmul.f32 %v454_v7, %v200_v10  ;;  %v230_v22 = vmul.f32 %v444_v2, %v199_v9  ;;  %v270_v23 = vmul.f32 %v452_v6, %v201_v11  ;;  %v458_v63 = vld [vmem:[%s561_s3] ss:$0 sm:$0xff] }
  0x12   : > { %v280_v24 = vmul.f32 %v454_v7, %v201_v11  ;;  %v293_v25 = vrot.slane %v219_v13, 1  ;;  %v301_v26 = vrot.slane %v239_v17, 6  ;;  %v240_v29 = vmul.f32 %v446_v3, %v200_v10 }
  0x13   : > { %v309_v27 = vrot.slane %v259_v19, 1  ;;  %v317_v28 = vrot.slane %v279_v21, 1  ;;  %v294_v31 = vrot.slane %v220_v15, 1  ;;  %v250_v34 = vmul.f32 %v448_v4, %v200_v10 }
  0x14   : > { %v297_v32 = vadd.f32 %v293_v25, %v209_v12  ;;  %v318_v33 = vrot.slane %v280_v24, 1  ;;  %v305_v35 = vadd.f32 %v301_v26, %v229_v16  ;;  %v260_v38 = vmul.f32 %v450_v5, %v200_v10 }
  0x15   : > { %v313_v36 = vadd.f32 %v309_v27, %v249_v18  ;;  %v321_v37 = vadd.f32 %v317_v28, %v269_v20  ;;  %v302_v40 = vrot.slane %v240_v29, 6  ;;  %v289_v41 = vmul.f32 %v456_v30, %v200_v10 }
  0x16   : > { %v322_v39 = vadd.f32 %v318_v33, %v270_v23  ;;  %v325_v42 = vrot.slane %v305_v35, 2  ;;  %v310_v44 = vrot.slane %v260_v38, 1  ;;  %v298_v45 = vadd.f32 %v294_v31, %v210_v14 }
  0x17   : > { %v333_v43 = vrot.slane %v321_v37, 7  ;;  %v306_v46 = vadd.f32 %v302_v40, %v230_v22  ;;  %v290_v50 = vmul.f32 %v456_v30, %v201_v11  ;;  %v349_v54 = vrot.slane %v289_v41, 2 }
  0x18   : > { %v334_v47 = vrot.slane %v322_v39, 7  ;;  %v329_v48 = vadd.f32 %v325_v42, %v297_v32  ;;  %v314_v51 = vadd.f32 %v310_v44, %v250_v34 }
  0x19   : > { %v337_v49 = vadd.f32 %v333_v43, %v313_v36  ;;  %v326_v52 = vrot.slane %v306_v46, 2  ;;  %v350_v59 = vrot.slane %v290_v50, 2 }
  0x1a   : > { %v338_v55 = vadd.f32 %v334_v47, %v314_v51 }
  0x1b   : > { %v341_v53 = vrot.slane %v337_v49, 1  ;;  %v330_v56 = vadd.f32 %v326_v52, %v298_v45 }
  0x1c   : > { %v342_v58 = vrot.slane %v338_v55, 1 }
  0x1d   : > { %v345_v57 = vadd.f32 %v341_v53, %v329_v48 }
  0x1e   : > { %v346_v62 = vadd.f32 %v342_v58, %v330_v56 }
  0x1f   : > { %v353_v61 = vadd.f32 %v349_v54, %v345_v57 }
  0x20   : > { %v354_v1 = vadd.f32 %v350_v59, %v346_v62 }
  0x21   : > { %v362_v0 = vmul.f32 %v457_v60, %v353_v61 }
  0x22   : > { %v363_v3 = vmul.f32 %v457_v60, %v354_v1 }
  0x23   : > { %v371_v2 = vadd.f32 %v458_v63, %v362_v0 }
  0x24   : > { %v372_v4 = vadd.f32 %v458_v63, %v363_v3 }
  0x25   : > { %374 = vst.msk [vmem:[%s197_s22] sm:$0x3] %vm373_vm0, %v371_v2 }
  0x26   : > { %375 = vst.msk [vmem:[%s197_s22 + $0x2] sm:$0x3] %vm373_vm0, %v372_v4 }
  0x27 PF: > { %s14_s15 = sadd.s32 1, %s477_s15  }
  0x28   : > { %p11_p4 = scmp.ge.s32.totalorder %s14_s15, 4  }
  0x2a   :  { %13 = sbr.rel (!%p11_p4) target bundleno = 1 (0x1), region = 74 }

// kernel: _lambda_.54
= control target key start
LH: loop header
LB: loop body
LE: loop exit
PB: predicated region body
PF: predicated region fallthrough
CT: control target
= control target key end

     0   :  { %v148_v0 = vmov 0.0   ;;  %vm149_vm0 = vmmov 0   ;;  %vm52_vm1 = vcmask 523264   ;;  %s199_s1 = inlined_call_operand.vmem [shape: bf16[64,128], index: 1, kind: input, shape index: {}]   ;;  %s200_s0 = inlined_call_operand.vmem [shape: f32[8,64], index: 0, kind: input, shape index: {}]   ;;  %s201_s2 = inlined_call_operand.vmem [shape: f32[1,128], index: 2, kind: input, shape index: {}]   ;;  %s202_s3 = inlined_call_operand.vmem [shape: f32[1,128], index: 3, kind: input, shape index: {}]   ;;  %s203_s4 = inlined_call_operand.vmem [shape: f32[8,128], index: 4, kind: output, shape index: {}]  }
   0x1   :  { %130 = vmatprep.subr.bf16.mxu0 %v148_v0  ;;  %v144_v1 = vld [vmem:[%s199_s1 + $0x18] sm:$0xff]   ;;  %138 = vmatprep.mubr.msk.bf16.mxu0 %vm149_vm0, %v148_v0  ;;  %v145_v2 = vld [vmem:[%s199_s1 + $0x10] sm:$0xff]   ;;  %v146_v3 = vld [vmem:[%s199_s1 + $0x8] sm:$0xff]  }
   0x2   :  { %131 = vmatpush3.bf16.msra.mxu0 %v144_v1  ;;  %v147_v4 = vld [vmem:[%s199_s1] sm:$0xff]  }
   0x3   :  { %132 = vmatprep.subr.bf16.mxu0 %v148_v0  ;;  %v18_v5 = vld [vmem:[%s200_s0] sm:$0xff] }
   0x4   :  { %v19_v6 = vpack.c.bf16 %v18_v5, %v18_v5  ;;  %v123_v7 = vld [vmem:[%s201_s2] ss:$0 sm:$0xff] }
   0x5   :  { %v124_v9 = vld [vmem:[%s202_s3] ss:$0 sm:$0xff] }
   0x6   :  { %133 = vmatpush3.bf16.msra.mxu0 %v145_v2 }
   0x7   :  { %134 = vmatprep.subr.bf16.mxu0 %v148_v0 }
   0xa   :  { %135 = vmatpush3.bf16.msra.mxu0 %v146_v3 }
   0xb   :  { %136 = vmatprep.subr.bf16.mxu0 %v148_v0 }
   0xe   :  { %137 = vmatpush3.bf16.msra.mxu0 %v147_v4 }
  0x11   :  { %139 = vmatmul.mubr.msk.bf16.vlgmr.msra.gmra.mxu0 %vm52_vm1, %v19_v6 }
  0xd1   :  { %v90_v8 = vpop.f32.mrf.mxu0 }
  0xd2   :  { %v103_v10 = vmul.f32 %v123_v7, %v90_v8 }
  0xd3   :  { %v140_v11 = vpop.f32.mrf.mxu0 }
  0xd4   :  { %v111_v12 = vadd.f32 %v124_v9, %v103_v10 }
  0xd5   :  { %v93_v13 = vpop.f32.mrf.mxu0 }
  0xd6   :  { %v112_v14 = vmax.f32 %v111_v12, 0.0 }
  0xd7   :  { %v141_v15 = vpop.f32.mrf.mxu0 }
  0xd8   :  { %113 = vst [vmem:[%s203_s4] sm:$0xff] %v112_v14 }

// kernel: _lambda_.55
= control target key start
LH: loop header
LB: loop body
LE: loop exit
PB: predicated region body
PF: predicated region fallthrough
CT: control target
= control target key end

     0   :  { %v243_v1 = vmov 0.0   ;;  %vm244_vm0 = vmmov 0   ;;  %vm18_vm1 = vcmask 1043456   ;;  %s302_s0 = inlined_call_operand.vmem [shape: f32[2,4,128], index: 0, kind: input, shape index: {}]   ;;  %s303_s1 = inlined_call_operand.vmem [shape: bf16[128,10], index: 1, kind: input, shape index: {}]   ;;  %s304_s2 = inlined_call_operand.vmem [shape: f32[1,10], index: 2, kind: input, shape index: {}]   ;;  %s305_s3 = inlined_call_operand.hbm [shape: f32[2,10], index: 3, kind: output, shape index: {}]  }
   0x1   :  { %v213_v0 = vld [vmem:[%s303_s1 + $0x38] sm:$0xff]   ;;  %190 = vmatprep.subr.bf16.mxu0 %v243_v1  ;;  %v214_v2 = vld [vmem:[%s303_s1 + $0x30] sm:$0xff]   ;;  %206 = vmatprep.mubr.msk.bf16.mxu0 %vm244_vm0, %v243_v1  ;;  %v215_v3 = vld [vmem:[%s303_s1 + $0x28] sm:$0xff]  }
   0x2   :  { %191 = vmatpush3.bf16.msra.mxu0 %v213_v0  ;;  %v16_v4 = vld [vmem:[%s302_s0] sm:$0xf]  ;;  %v17_v5 = vld [vmem:[%s302_s0 + $0x4] sm:$0xf] }
   0x3   :  { %192 = vmatprep.subr.bf16.mxu0 %v243_v1  ;;  %v19_v6 = vsel %vm18_vm1, %v16_v4, 0.0  ;;  %v26_v7 = vsel %vm18_vm1, %v17_v5, 0.0 }
   0x6   :  { %193 = vmatpush3.bf16.msra.mxu0 %v214_v2 }
   0x7   :  { %194 = vmatprep.subr.bf16.mxu0 %v243_v1 }
   0x8   :  { %8 = vsyncpa [#allocation3], 0  ;;  %v216_v8 = vld [vmem:[%s303_s1 + $0x20] sm:$0xff]   ;;  %v20_v9 = vrot.slane %v19_v6, 4  ;;  %v27_v10 = vrot.slane %v26_v7, 4  ;;  %v217_v13 = vld [vmem:[%s303_s1 + $0x18] sm:$0xff]  }
   0x9   :  { %v218_v18 = vld [vmem:[%s303_s1 + $0x10] sm:$0xff]   ;;  %v219_v23 = vld [vmem:[%s303_s1 + $0x8] sm:$0xff]   ;;  %vm64_vm2 = vcmask 1041409   ;;  %v220_v28 = vld [vmem:[%s303_s1] sm:$0xff]   ;;  %s245_s6 = smov [#allocation2]   ;;  %vm156_vm3 = vcmask 74752  }
   0xa   :  { %195 = vmatpush3.bf16.msra.mxu0 %v215_v3  ;;  %v21_v11 = vadd.f32 %v20_v9, %v19_v6  ;;  %v28_v12 = vadd.f32 %v27_v10, %v26_v7  ;;  %v172_v33 = vld [vmem:[%s304_s2] ss:$0 sm:$0xff]  ;;  %s164_s7 = sshll.u32 %s245_s6, 4  ;;  %s165_s7 = int_to_ptr.vmem [resolvable:$true] %s164_s7 }
   0xb   :  { %196 = vmatprep.subr.bf16.mxu0 %v243_v1  ;;  %s221_s1 = scalar_lea.vmem %s165_s7, 32  ;;  %p226_p1 = scmp.lt.s32.totalorder %s165_s7, %s165_s7 }
   0xc   :  { %v22_v14 = vrot.slane %v21_v11, 2  ;;  %v29_v15 = vrot.slane %v28_v12, 2  ;;  %p222_p0 = scmp.ne.s32.totalorder %s165_s7, %s221_s1  ;;  %p227_p2 = scmp.lt.s32.totalorder %s221_s1, %s221_s1 }
   0xe   :  { %197 = vmatpush3.bf16.msra.mxu0 %v216_v8  ;;  %v23_v16 = vadd.f32 %v22_v14, %v21_v11  ;;  %v30_v17 = vadd.f32 %v29_v15, %v28_v12  ;;  %p228_p3 = por %p227_p2, %p226_p1 }
   0xf   :  { %198 = vmatprep.subr.bf16.mxu0 %v243_v1 }
  0x10   :  { %v24_v19 = vrot.slane %v23_v16, 1  ;;  %v31_v20 = vrot.slane %v30_v17, 1  ;;  %p229_p4 = pnand %p228_p3, %p222_p0 }
  0x12   :  { %199 = vmatpush3.bf16.msra.mxu0 %v217_v13  ;;  %v25_v21 = vadd.f32 %v24_v19, %v23_v16  ;;  %v32_v22 = vadd.f32 %v31_v20, %v30_v17 }
  0x13   :  { %200 = vmatprep.subr.bf16.mxu0 %v243_v1 }
  0x14   :  { %v33_v24 = vmul.f32 0.25, %v25_v21  ;;  %v34_v25 = vmul.f32 0.25, %v32_v22 }
  0x16   :  { %201 = vmatpush3.bf16.msra.mxu0 %v218_v18  ;;  %v35_v26 = vpack.c.bf16 %v33_v24, %v33_v24  ;;  %v36_v27 = vpack.c.bf16 %v34_v25, %v34_v25 }
  0x17   :  { %202 = vmatprep.subr.bf16.mxu0 %v243_v1 }
  0x18   :  { %v62_v29 = vunpack.c.l.b16 %v35_v26  ;;  %v63_v30 = vunpack.c.l.b16 %v36_v27 }
  0x1a   :  { %203 = vmatpush3.bf16.msra.mxu0 %v219_v23  ;;  %v65_v31 = vsel %vm64_vm2, %v63_v30, %v62_v29 }
  0x1b   :  { %204 = vmatprep.subr.bf16.mxu0 %v243_v1  ;;  %v66_v32 = vpack.c.b16 %v65_v31, %v65_v31 }
  0x1e   :  { %205 = vmatpush3.bf16.msra.mxu0 %v220_v28 }
  0x21   :  { %207 = vmatmul.mubr.bf16.vlgmr.msra.gmra.mxu0 %v66_v32 }
  0xe1   :  { %v150_v34 = vpop.f32.mrf.mxu0 }
  0xe2   :  { %v151_v35 = vadd.f32 %v172_v33, %v150_v34 }
  0xe3   :  { %v208_v36 = vpop.f32.mrf.mxu0 }
  0xe4   :  { %157 = vst.msk [vmem:[#allocation2] sm:$0x3] %vm156_vm3, %v151_v35 }
  0xe5   :  { %v153_v37 = vpop.f32.mrf.mxu0 }
  0xe6   :  { %232 = shalt.err (!%p229_p4)
}
  0xe7   :  { %167 = dma.vmem_to_hbm [thread:$0]  %s165_s7, 32, %s305_s3, [#allocation3]   ;;  %v209_v38 = vpop.f32.mrf.mxu0 }
  0xe8   :  { %241 = dma.done.wait [#allocation3], 32  }
  0xe9   :  { %242 = vsyncadd [#allocation3], 4294967264 }
  0xea   :  { %171 = vsyncpa [#allocation3], 1 }

</bundles_post_ra>
